<compile_context>
chip_gen: v5e
topology: v5e:2x2
jax: 0.10.0
libtpu: 0.0.40
codegen_flags: <defaults>
</compile_context>

<pallas_src>
import functools
import math

import numpy as np

import jax
import jax.numpy as jnp
from jax.experimental import pallas as pl
from jax.experimental.pallas import tpu as pltpu


FPN_DIM = 16
CONV_DIM = 16
NUM_CLASSES = 4
NUM_GROUPS = 4
COMMON_STRIDE = 4
GN_EPS = 1e-5

SLACK = 128  # zero slack (lanes) on each side of the flat padded slab (128-aligned)


def _vmem_limit_bytes():
    # Re-derive the scoped-VMEM budget per generation (v7x has 64 MiB physical).
    try:
        info = pltpu.get_tpu_info()
        cap = getattr(info, "vmem_capacity_bytes", None)
        if cap:
            return int(min(cap // 2, 96 * 1024 * 1024))
    except Exception:  # pragma: no cover - CPU / older runtimes
        pass
    return 32 * 1024 * 1024


_VMEM_LIMIT = _vmem_limit_bytes()


# ----------------------------------------------------------------------------
# Pallas kernel: fused (sum of slabs) -> wide-K conv matmul -> [GN] -> [ReLU]
# ----------------------------------------------------------------------------
def _conv_kernel(*refs, n_in, taps, cin, m, s_out, relu, use_gn, groups, count, eps):
    """Channel-major conv on flat padded slabs.

    refs: x_0..x_{n_in-1} (Cin_slab, Ltot_in) bf16, w (Cout, K) bf16,
          b (Cout, 1) f32, [gamma (Cout,1), beta (Cout,1) f32], mask (1, M) f32,
          o (Cout, Ltot_out).
    taps: static tuple of (row_offset, lane_start) per conv tap; each tap slice
          is (cin, m).  All taps are concatenated along sublanes into a single
          (K, M) operand and contracted in ONE MXU matmul (f32 accumulate).
    """
    xs = refs[:n_in]
    w_ref = refs[n_in]
    b_ref = refs[n_in + 1]
    if use_gn:
        gam_ref, bet_ref, msk_ref, o_ref = refs[n_in + 2:n_in + 6]
    else:
        msk_ref, o_ref = refs[n_in + 2:n_in + 4]

    # In-VMEM im2col: gather the shifted tap slices (summing the input slabs
    # first when the conv is fused over several summands, e.g. the head sum).
    pieces = []
    for (row, st) in taps:
        if n_in == 1:
            piece = xs[0][row:row + cin, st:st + m]
        else:
            piece = xs[0][row:row + cin, st:st + m].astype(jnp.float32)
            for xr in xs[1:]:
                piece = piece + xr[row:row + cin, st:st + m].astype(jnp.float32)
            piece = piece.astype(xs[0].dtype)
        pieces.append(piece)
    xcat = pieces[0] if len(pieces) == 1 else jnp.concatenate(pieces, axis=0)

    # One wide-K matmul: (Cout, K) @ (K, M) -> (Cout, M), f32 accumulation.
    acc = jnp.dot(w_ref[...], xcat, preferred_element_type=jnp.float32)
    acc = acc + b_ref[...]
    msk = msk_ref[...]                                # (1, M) interior mask

    if use_gn:
        cout = acc.shape[0]
        cg = cout // groups
        am = acc * msk
        ch_sum = jnp.sum(am, axis=1, keepdims=True)   # (Cout, 1)
        ch_sq = jnp.sum(am * acc, axis=1, keepdims=True)
        c_idx = jax.lax.broadcasted_iota(jnp.int32, (cout, 1), 0)
        mean_c = jnp.zeros((cout, 1), jnp.float32)
        rstd_c = jnp.zeros((cout, 1), jnp.float32)
        inv_n = 1.0 / count
        for g in range(groups):                       # groups is small (4)
            sel = ((c_idx >= g * cg) & (c_idx < (g + 1) * cg)).astype(jnp.float32)
            gs = jnp.sum(ch_sum * sel, axis=0, keepdims=True)
            gss = jnp.sum(ch_sq * sel, axis=0, keepdims=True)
            mg = gs * inv_n
            vg = jnp.maximum(gss * inv_n - mg * mg, 0.0)   # clamp (numerics)
            rg = jax.lax.rsqrt(vg + eps)
            mean_c = mean_c + sel * mg
            rstd_c = rstd_c + sel * rg
        acc = (acc - mean_c) * (rstd_c * gam_ref[...]) + bet_ref[...]

    if relu or use_gn:
        acc = jnp.maximum(acc, 0.0)
    acc = acc * msk                                   # zero the pad ring

    cout = o_ref.shape[0]
    ltot = o_ref.shape[1]
    # Write the slab: [zero slack | result | zero slack] (main store lane-dense,
    # 128-aligned start).
    o_ref[:, :s_out] = jnp.zeros((cout, s_out), o_ref.dtype)
    o_ref[:, s_out:s_out + m] = acc.astype(o_ref.dtype)
    o_ref[:, s_out + m:] = jnp.zeros((cout, ltot - s_out - m), o_ref.dtype)


# ----------------------------------------------------------------------------
# pallas_call wrapper
# ----------------------------------------------------------------------------
def _fuse_w(w):
    """(KH, KW, Cin, Cout) -> (Cout, KH*KW*Cin) bf16, tap order (kh, kw) row-major."""
    kh, kw, cin, cout = w.shape
    return jnp.transpose(w, (3, 0, 1, 2)).reshape(cout, kh * kw * cin).astype(jnp.bfloat16)


@functools.lru_cache(maxsize=None)
def _interior_mask_np(h, w):
    m = np.zeros((h + 2, w + 2), np.float32)
    m[1:h + 1, 1:w + 1] = 1.0
    return m.reshape(1, (h + 2) * (w + 2))


def _run_conv(slabs, taps, cin, m, w_fused, bias, mask, *, relu, gn, out_dtype):
    n, cin_slab, ltot_in = slabs[0].shape
    for s in slabs:
        assert s.shape == slabs[0].shape
    cout, k = w_fused.shape
    ltot_out = 2 * SLACK + m
    use_gn = gn is not None

    kern = functools.partial(
        _conv_kernel, n_in=len(slabs), taps=tuple(taps), cin=cin, m=m,
        s_out=SLACK, relu=relu, use_gn=use_gn,
        groups=gn[2] if use_gn else 1,
        count=gn[3] if use_gn else 1.0,
        eps=gn[4] if use_gn else GN_EPS)

    in_specs = [pl.BlockSpec((None, cin_slab, ltot_in), lambda i: (i, 0, 0))
                for _ in slabs]
    args = list(slabs)
    in_specs += [pl.BlockSpec((cout, k), lambda i: (0, 0)),
                 pl.BlockSpec((cout, 1), lambda i: (0, 0))]
    args += [w_fused, bias.reshape(cout, 1).astype(jnp.float32)]
    if use_gn:
        gamma, beta = gn[0], gn[1]
        in_specs += [pl.BlockSpec((cout, 1), lambda i: (0, 0)),
                     pl.BlockSpec((cout, 1), lambda i: (0, 0))]
        args += [gamma.reshape(cout, 1).astype(jnp.float32),
                 beta.reshape(cout, 1).astype(jnp.float32)]
    in_specs += [pl.BlockSpec((1, m), lambda i: (0, 0))]
    args += [mask]

    # TODO(synk): for detection-sized images, tile the flat spatial axis with a
    # second ("parallel") grid axis + partial-GN accumulation; whole-image
    # blocks are fine at these feature-map sizes (acc is <=20 dense vregs).
    return pl.pallas_call(
        kern,
        out_shape=jax.ShapeDtypeStruct((n, cout, ltot_out), out_dtype),
        grid=(n,),
        in_specs=in_specs,
        out_specs=pl.BlockSpec((None, cout, ltot_out), lambda i: (i, 0, 0)),
        compiler_params=pltpu.CompilerParams(
            dimension_semantics=("parallel",),
            vmem_limit_bytes=_VMEM_LIMIT),
    )(*args)


def conv_s1(slabs, h, w, wconv, b, *, relu=False, gn=None, out_dtype=jnp.bfloat16):
    """Stride-1 'same' conv (1x1 or 3x3) on flat padded slab(s) at resolution (h, w).

    slabs: one slab or a list of slabs (summed inside the kernel before the conv).
    gn: optional (gamma, beta, num_groups) -> fused GroupNorm + ReLU epilogue.
    """
    if not isinstance(slabs, (list, tuple)):
        slabs = [slabs]
    KH, KW, cin, cout = wconv.shape
    assert slabs[0].shape[1] == cin
    pad_h, pad_w = (KH - 1) // 2, (KW - 1) // 2
    wrow = w + 2
    taps = [(0, SLACK + (kh - pad_h) * wrow + (kw - pad_w))
            for kh in range(KH) for kw in range(KW)]
    m = (h + 2) * (w + 2)
    assert slabs[0].shape[2] == 2 * SLACK + m
    mask = jnp.asarray(_interior_mask_np(h, w))
    gn_cfg = None
    if gn is not None:
        gamma, beta, groups = gn
        gn_cfg = (gamma, beta, groups, float((cout // groups) * h * w), GN_EPS)
    out = _run_conv(list(slabs), taps, cin, m, _fuse_w(wconv), b, mask,
                    relu=relu, gn=gn_cfg, out_dtype=out_dtype)
    return out, h, w


def conv_s2(slab_s2d, ho, wo, wconv, b, *, relu=True, out_dtype=jnp.bfloat16):
    """Stride-2 3x3 conv on a space-to-depth slab (4*Cin channels, output res (ho, wo))."""
    KH, KW, cin, cout = wconv.shape
    assert (KH, KW) == (3, 3)
    assert slab_s2d.shape[1] == 4 * cin
    wq = wo + 2
    taps = [(((kh % 2) * 2 + (kw % 2)) * cin,
             SLACK + (kh // 2 - 1) * wq + (kw // 2 - 1))
            for kh in range(3) for kw in range(3)]
    m = (ho + 2) * (wo + 2)
    assert slab_s2d.shape[2] == 2 * SLACK + m
    mask = jnp.asarray(_interior_mask_np(ho, wo))
    out = _run_conv([slab_s2d], taps, cin, m, _fuse_w(wconv), b, mask,
                    relu=relu, gn=None, out_dtype=out_dtype)
    return out, ho, wo


# ----------------------------------------------------------------------------
# Plain-JAX layout helpers (small tensors)
# ----------------------------------------------------------------------------
def _slab_from_dense(x):
    """(N, C, H, W) -> flat padded slab (N, C, 2*SLACK + (H+2)*(W+2)), zero ring/slack."""
    n, c, h, w = x.shape
    xp = jnp.pad(x, ((0, 0), (0, 0), (1, 1), (1, 1))).reshape(n, c, (h + 2) * (w + 2))
    return jnp.pad(xp, ((0, 0), (0, 0), (SLACK, SLACK)))


def _dense_from_slab(slab, h, w):
    n, c, _ = slab.shape
    hp, wp = h + 2, w + 2
    return slab[:, :, SLACK:SLACK + hp * wp].reshape(n, c, hp, wp)[:, :, 1:h + 1, 1:w + 1]


def _s2d_slab_from_slab(slab, h, w):
    """Space-to-depth restaging of a slab at res (h, w) for a stride-2 3x3 conv."""
    # TODO(synk): this restaging still runs in XLA; could be absorbed into the
    # consuming kernel with in-kernel strided gathers.
    n, c, _ = slab.shape
    hp, wp = h + 2, w + 2
    x = slab[:, :, SLACK:SLACK + hp * wp].reshape(n, c, hp, wp)
    x = jnp.pad(x, ((0, 0), (0, 0), (0, 2), (0, 2)))           # (H+4, W+4), ring already 0
    parts = [x[:, :, a::2, b::2] for a in range(2) for b in range(2)]
    s = jnp.concatenate(parts, axis=1).reshape(n, 4 * c, (h // 2 + 2) * (w // 2 + 2))
    return jnp.pad(s, ((0, 0), (0, 0), (SLACK, SLACK)))


def _stem_s2d_slab(images_nchw, pixel_mean, cin_pad=8):
    """Raw image -> s2d slab for the stem; pad ring filled with pixel_mean so the
    normalization folded into the stem weights stays exact; channels padded to 8."""
    n, c, h, w = images_nchw.shape
    mean_p = jnp.concatenate([pixel_mean, jnp.zeros((cin_pad - c,), jnp.float32)])
    x = jnp.pad(images_nchw.astype(jnp.float32),
                ((0, 0), (0, cin_pad - c), (0, 0), (0, 0)))
    xp = jnp.broadcast_to(mean_p.reshape(1, cin_pad, 1, 1), (n, cin_pad, h + 4, w + 4))
    xp = xp.at[:, :, 1:h + 1, 1:w + 1].set(x)
    parts = [xp[:, :, a::2, b::2] for a in range(2) for b in range(2)]
    s = jnp.concatenate(parts, axis=1).reshape(n, 4 * cin_pad, (h // 2 + 2) * (w // 2 + 2))
    s = jnp.pad(s, ((0, 0), (0, 0), (SLACK, SLACK)))
    return s.astype(jnp.bfloat16)


def _upsample_nearest_2x(x):
    # TODO(synk): nearest-2x + top-down add stay in XLA; could be folded into the
    # consuming conv's tap gather.
    return jnp.repeat(jnp.repeat(x, 2, axis=2), 2, axis=3)


# ----------------------------------------------------------------------------
# Parameter construction (deterministic, synthetic backbone/head)
# ----------------------------------------------------------------------------
def _init_conv(key, kh, kw, cin, cout):
    kw_, kb_ = jax.random.split(key)
    fan_in = kh * kw * cin
    w = jax.random.normal(kw_, (kh, kw, cin, cout), jnp.float32) / math.sqrt(fan_in)
    b = 0.01 * jax.random.normal(kb_, (cout,), jnp.float32)
    return w, b


def build_params(key):
    params = {}
    keys = iter(jax.random.split(key, 64))

    # backbone stem + res2..res5 (strides 2, 4, 8, 16, 32)
    params["stem"] = _init_conv(next(keys), 3, 3, 3, 8)
    params["res2"] = _init_conv(next(keys), 3, 3, 8, 16)
    params["res3"] = _init_conv(next(keys), 3, 3, 16, 16)
    params["res4"] = _init_conv(next(keys), 3, 3, 16, 16)
    params["res5"] = _init_conv(next(keys), 3, 3, 16, 16)

    # FPN laterals (1x1) + output convs (3x3)
    for lvl in ("res2", "res3", "res4", "res5"):
        params[f"lateral_{lvl}"] = _init_conv(next(keys), 1, 1, 16, FPN_DIM)
    for lvl in ("p2", "p3", "p4", "p5"):
        params[f"fpn_out_{lvl}"] = _init_conv(next(keys), 3, 3, FPN_DIM, FPN_DIM)

    # SemSegFPNHead scale heads: conv3x3 + GN + ReLU (+ 2x upsample), repeated
    strides = {"p2": 4, "p3": 8, "p4": 16, "p5": 32}
    for lvl, s in strides.items():
        n_stages = max(1, int(math.log2(s) - math.log2(COMMON_STRIDE)))
        for i in range(n_stages):
            w, b = _init_conv(next(keys), 3, 3, FPN_DIM if i == 0 else CONV_DIM, CONV_DIM)
            gamma = jnp.ones((CONV_DIM,), jnp.float32)
            beta = jnp.zeros((CONV_DIM,), jnp.float32)
            params[f"head_{lvl}_{i}"] = (w, b, gamma, beta)

    # predictor 1x1 -> num_classes
    params["predictor"] = _init_conv(next(keys), 1, 1, CONV_DIM, NUM_CLASSES)
    return params


# ----------------------------------------------------------------------------
# SemanticFPN forward
# ----------------------------------------------------------------------------
def semantic_fpn_forward(params, images_nchw, pixel_mean, pixel_std, out_hw):
    # ImageList.from_tensors: all images already same size & divisible by 32, so
    # batching/padding is a no-op here.
    # TODO(synk): ragged per-image padding / image_sizes cropping not modeled.
    n, c, h_in, w_in = images_nchw.shape
    assert h_in % 32 == 0 and w_in % 32 == 0

    # --- stem: pixel normalization folded into weights/bias (exact) ---
    w_s, b_s = params["stem"]
    inv_std = 1.0 / pixel_std
    w_fold = w_s * inv_std.reshape(1, 1, c, 1)
    b_fold = b_s - jnp.einsum("hwio,i->o", w_s, pixel_mean * inv_std)
    w_fold8 = jnp.pad(w_fold, ((0, 0), (0, 0), (0, 8 - c), (0, 0)))
    stem_in = _stem_s2d_slab(images_nchw, pixel_mean, cin_pad=8)
    x, h, w = conv_s2(stem_in, h_in // 2, w_in // 2, w_fold8, b_fold, relu=True)  # /2

    # --- backbone res2..res5 (3x3 stride-2 + ReLU) ---
    feats = {}
    for name in ("res2", "res3", "res4", "res5"):
        s2d = _s2d_slab_from_slab(x, h, w)
        x, h, w = conv_s2(s2d, h // 2, w // 2, *params[name], relu=True)
        feats[name] = (x, h, w)

    # --- FPN: 1x1 laterals, top-down nearest-2x + add, 3x3 output convs ---
    lat = {}
    for name in ("res2", "res3", "res4", "res5"):
        xs, hh, ww = feats[name]
        slab, _, _ = conv_s1(xs, hh, ww, *params[f"lateral_{name}"])
        lat[name] = (slab, hh, ww)

    td, th, tw = lat["res5"]
    p = {}
    slab, _, _ = conv_s1(td, th, tw, *params["fpn_out_p5"])
    p["p5"] = (slab, th, tw)
    for src, name in (("res4", "p4"), ("res3", "p3"), ("res2", "p2")):
        up = _upsample_nearest_2x(_dense_from_slab(td, th, tw))
        th, tw = th * 2, tw * 2
        td = lat[src][0] + _slab_from_dense(up)
        slab, _, _ = conv_s1(td, th, tw, *params[f"fpn_out_{name}"])
        p[name] = (slab, th, tw)

    # --- SemSegFPNHead: per level, fused conv+GN+ReLU (+ 2x bilinear upsample) ---
    strides = {"p2": 4, "p3": 8, "p4": 16, "p5": 32}
    head_outs = []
    for name in ("p2", "p3", "p4", "p5"):
        y, hh, ww = p[name]
        n_stages = max(1, int(math.log2(strides[name]) - math.log2(COMMON_STRIDE)))
        for i in range(n_stages):
            wc, bc, gamma, beta = params[f"head_{name}_{i}"]
            y, hh, ww = conv_s1(y, hh, ww, wc, bc, gn=(gamma, beta, NUM_GROUPS))
            if strides[name] != COMMON_STRIDE:
                # TODO(synk): bilinear 2x resize stays in XLA (jax.image.resize).
                yd = _dense_from_slab(y, hh, ww)
                hh, ww = hh * 2, ww * 2
                yd = jax.image.resize(yd, (yd.shape[0], yd.shape[1], hh, ww),
                                      method="bilinear")
                y = _slab_from_dense(yd)
        head_outs.append(y)  # all at stride 4 in slab format

    # --- fused 4-level sum + 1x1 predictor in a single kernel ---
    h4, w4 = h_in // COMMON_STRIDE, w_in // COMMON_STRIDE
    logits_slab, _, _ = conv_s1(head_outs, h4, w4, *params["predictor"],
                                out_dtype=jnp.float32)
    logits = _dense_from_slab(logits_slab, h4, w4)            # (N, K, H/4, W/4) f32

    # --- x COMMON_STRIDE bilinear upsample + sem_seg_postprocess ---
    logits = jax.image.resize(
        logits, (n, NUM_CLASSES, h4 * COMMON_STRIDE, w4 * COMMON_STRIDE),
        method="bilinear")
    out_h, out_w = out_hw
    if (out_h, out_w) != (h4 * COMMON_STRIDE, w4 * COMMON_STRIDE):
        logits = jax.image.resize(logits, (n, NUM_CLASSES, out_h, out_w),
                                  method="bilinear")          # identity resize skipped

    # permute(1, 2, 0) per image + batch stack -> (N, H, W, K)
    return {"pixel_label_nr": jnp.transpose(logits, (0, 2, 3, 1))}


# ----------------------------------------------------------------------------
if __name__ == "__main__":
    key = jax.random.PRNGKey(0)
    k_img, k_param = jax.random.split(key)

    N, C, H, W = 2, 3, 64, 64
    images = jax.random.uniform(k_img, (N, C, H, W), jnp.float32, 0.0, 255.0)
    pixel_mean = jnp.array([103.53, 116.28, 123.675], jnp.float32)
    pixel_std = jnp.array([57.375, 57.12, 58.395], jnp.float32)

    params = build_params(k_param)

    fwd = jax.jit(functools.partial(semantic_fpn_forward, out_hw=(H, W)))
    out = fwd(params, images, pixel_mean, pixel_std)
    res = jax.block_until_ready(out["pixel_label_nr"])

    assert res.shape == (N, H, W, NUM_CLASSES), res.shape
    assert bool(jnp.all(jnp.isfinite(res)))
    print("KERNEL_OK")
</pallas_src>

<mosaic_0001>
module attributes {stable_mosaic.version = 11 : i64} {
  func.func @_conv_kernel(%arg0: i32, %arg1: memref<1x32x1412xbf16, #tpu.memory_space<vmem>>, %arg2: memref<8x72xbf16, #tpu.memory_space<vmem>>, %arg3: memref<8x1xf32, #tpu.memory_space<vmem>>, %arg4: memref<1x1156xf32, #tpu.memory_space<vmem>>, %arg5: memref<1x8x1412xbf16, #tpu.memory_space<vmem>>) attributes {dimension_semantics = [#tpu.dimension_semantics<parallel>], iteration_bounds = array<i64: 2>, scalar_prefetch = 0 : i64, scratch_operands = 0 : i64, tpu.core_type = #tpu.core_type<tc>, window_params = [{transform_indices = @transform_0, window_bounds = array<i64: 1, 32, 1412>}, {pipeline_mode = #tpu.pipeline_mode<synchronous>, transform_indices = @transform_1, window_bounds = array<i64: 8, 72>}, {pipeline_mode = #tpu.pipeline_mode<synchronous>, transform_indices = @transform_2, window_bounds = array<i64: 8, 1>}, {pipeline_mode = #tpu.pipeline_mode<synchronous>, transform_indices = @transform_3, window_bounds = array<i64: 1, 1156>}, {transform_indices = @transform_4, window_bounds = array<i64: 1, 8, 1412>}]} {
    %c0 = arith.constant 0 : index
    %c0_0 = arith.constant 0 : index
    %c93 = arith.constant 93 : index
    %0 = vector.load %arg1[%c0, %c0_0, %c93] : memref<1x32x1412xbf16, #tpu.memory_space<vmem>>, vector<1x8x1156xbf16>
    %1 = vector.shape_cast %0 : vector<1x8x1156xbf16> to vector<8x1156xbf16>
    %c0_1 = arith.constant 0 : index
    %c8 = arith.constant 8 : index
    %c93_2 = arith.constant 93 : index
    %2 = vector.load %arg1[%c0_1, %c8, %c93_2] : memref<1x32x1412xbf16, #tpu.memory_space<vmem>>, vector<1x8x1156xbf16>
    %3 = vector.shape_cast %2 : vector<1x8x1156xbf16> to vector<8x1156xbf16>
    %c0_3 = arith.constant 0 : index
    %c0_4 = arith.constant 0 : index
    %c94 = arith.constant 94 : index
    %4 = vector.load %arg1[%c0_3, %c0_4, %c94] : memref<1x32x1412xbf16, #tpu.memory_space<vmem>>, vector<1x8x1156xbf16>
    %5 = vector.shape_cast %4 : vector<1x8x1156xbf16> to vector<8x1156xbf16>
    %c0_5 = arith.constant 0 : index
    %c16 = arith.constant 16 : index
    %c93_6 = arith.constant 93 : index
    %6 = vector.load %arg1[%c0_5, %c16, %c93_6] : memref<1x32x1412xbf16, #tpu.memory_space<vmem>>, vector<1x8x1156xbf16>
    %7 = vector.shape_cast %6 : vector<1x8x1156xbf16> to vector<8x1156xbf16>
    %c0_7 = arith.constant 0 : index
    %c24 = arith.constant 24 : index
    %c93_8 = arith.constant 93 : index
    %8 = vector.load %arg1[%c0_7, %c24, %c93_8] : memref<1x32x1412xbf16, #tpu.memory_space<vmem>>, vector<1x8x1156xbf16>
    %9 = vector.shape_cast %8 : vector<1x8x1156xbf16> to vector<8x1156xbf16>
    %c0_9 = arith.constant 0 : index
    %c16_10 = arith.constant 16 : index
    %c94_11 = arith.constant 94 : index
    %10 = vector.load %arg1[%c0_9, %c16_10, %c94_11] : memref<1x32x1412xbf16, #tpu.memory_space<vmem>>, vector<1x8x1156xbf16>
    %11 = vector.shape_cast %10 : vector<1x8x1156xbf16> to vector<8x1156xbf16>
    %c0_12 = arith.constant 0 : index
    %c0_13 = arith.constant 0 : index
    %c127 = arith.constant 127 : index
    %12 = vector.load %arg1[%c0_12, %c0_13, %c127] : memref<1x32x1412xbf16, #tpu.memory_space<vmem>>, vector<1x8x1156xbf16>
    %13 = vector.shape_cast %12 : vector<1x8x1156xbf16> to vector<8x1156xbf16>
    %c0_14 = arith.constant 0 : index
    %c8_15 = arith.constant 8 : index
    %c127_16 = arith.constant 127 : index
    %14 = vector.load %arg1[%c0_14, %c8_15, %c127_16] : memref<1x32x1412xbf16, #tpu.memory_space<vmem>>, vector<1x8x1156xbf16>
    %15 = vector.shape_cast %14 : vector<1x8x1156xbf16> to vector<8x1156xbf16>
    %c0_17 = arith.constant 0 : index
    %c0_18 = arith.constant 0 : index
    %c128 = arith.constant 128 : index
    %16 = vector.load %arg1[%c0_17, %c0_18, %c128] : memref<1x32x1412xbf16, #tpu.memory_space<vmem>>, vector<1x8x1156xbf16>
    %17 = vector.shape_cast %16 : vector<1x8x1156xbf16> to vector<8x1156xbf16>
    %18 = tpu.concatenate %1, %3, %5, %7, %9, %11, %13, %15, %17 in 0 : vector<8x1156xbf16>, vector<8x1156xbf16>, vector<8x1156xbf16>, vector<8x1156xbf16>, vector<8x1156xbf16>, vector<8x1156xbf16>, vector<8x1156xbf16>, vector<8x1156xbf16>, vector<8x1156xbf16> -> vector<72x1156xbf16>
    %c0_19 = arith.constant 0 : index
    %c0_20 = arith.constant 0 : index
    %19 = vector.load %arg2[%c0_19, %c0_20] : memref<8x72xbf16, #tpu.memory_space<vmem>>, vector<8x72xbf16>
    %cst = arith.constant dense<0.000000e+00> : vector<8x1156xf32>
    %20 = tpu.matmul %19, %18, %cst {dimension_numbers = #tpu.dot_dimension_numbers<[1], [0], [0], [1], [0, 0, 1, 1], [], []>} : vector<8x72xbf16>, vector<72x1156xbf16>, vector<8x1156xf32> -> vector<8x1156xf32>
    %c0_21 = arith.constant 0 : index
    %c0_22 = arith.constant 0 : index
    %21 = vector.load %arg3[%c0_21, %c0_22] : memref<8x1xf32, #tpu.memory_space<vmem>>, vector<8x1xf32>
    %22 = vector.broadcast %21 : vector<8x1xf32> to vector<8x1156xf32>
    %23 = arith.addf %20, %22 : vector<8x1156xf32>
    %c0_23 = arith.constant 0 : index
    %c0_24 = arith.constant 0 : index
    %24 = vector.load %arg4[%c0_23, %c0_24] : memref<1x1156xf32, #tpu.memory_space<vmem>>, vector<1x1156xf32>
    %cst_25 = arith.constant 0.000000e+00 : f32
    %25 = vector.broadcast %cst_25 : f32 to vector<8x1156xf32>
    %26 = arith.maximumf %23, %25 : vector<8x1156xf32>
    %27 = vector.broadcast %24 : vector<1x1156xf32> to vector<8x1156xf32>
    %28 = arith.mulf %26, %27 : vector<8x1156xf32>
    %cst_26 = arith.constant 0.000000e+00 : bf16
    %29 = vector.broadcast %cst_26 : bf16 to vector<8x128xbf16>
    %c0_27 = arith.constant 0 : index
    %c0_28 = arith.constant 0 : index
    %c0_29 = arith.constant 0 : index
    %30 = vector.load %arg5[%c0_27, %c0_28, %c0_29] : memref<1x8x1412xbf16, #tpu.memory_space<vmem>>, vector<1x8x128xbf16>
    %31 = vector.shape_cast %30 : vector<1x8x128xbf16> to vector<8x128xbf16>
    %32 = vector.shape_cast %29 : vector<8x128xbf16> to vector<1x8x128xbf16>
    tpu.vector_store %arg5[%c0_27, %c0_28, %c0_29], %32 {strides = array<i32>} : memref<1x8x1412xbf16, #tpu.memory_space<vmem>>, vector<1x8x128xbf16>,
    %33 = arith.truncf %28 : vector<8x1156xf32> to vector<8x1156xbf16>
    %c0_30 = arith.constant 0 : index
    %c0_31 = arith.constant 0 : index
    %c128_32 = arith.constant 128 : index
    %34 = vector.load %arg5[%c0_30, %c0_31, %c128_32] : memref<1x8x1412xbf16, #tpu.memory_space<vmem>>, vector<1x8x1156xbf16>
    %35 = vector.shape_cast %34 : vector<1x8x1156xbf16> to vector<8x1156xbf16>
    %36 = vector.shape_cast %33 : vector<8x1156xbf16> to vector<1x8x1156xbf16>
    tpu.vector_store %arg5[%c0_30, %c0_31, %c128_32], %36 {strides = array<i32>} : memref<1x8x1412xbf16, #tpu.memory_space<vmem>>, vector<1x8x1156xbf16>,
    %cst_33 = arith.constant 0.000000e+00 : bf16
    %37 = vector.broadcast %cst_33 : bf16 to vector<8x128xbf16>
    %c0_34 = arith.constant 0 : index
    %c0_35 = arith.constant 0 : index
    %c1284 = arith.constant 1284 : index
    %38 = vector.load %arg5[%c0_34, %c0_35, %c1284] : memref<1x8x1412xbf16, #tpu.memory_space<vmem>>, vector<1x8x128xbf16>
    %39 = vector.shape_cast %38 : vector<1x8x128xbf16> to vector<8x128xbf16>
    %40 = vector.shape_cast %37 : vector<8x128xbf16> to vector<1x8x128xbf16>
    tpu.vector_store %arg5[%c0_34, %c0_35, %c1284], %40 {strides = array<i32>} : memref<1x8x1412xbf16, #tpu.memory_space<vmem>>, vector<1x8x128xbf16>,
    return
  }
  func.func @transform_0(%arg0: i32) -> (i32, i32, i32) {
    %c0_i32 = arith.constant 0 : i32
    %c0_i32_0 = arith.constant 0 : i32
    %c0_i32_1 = arith.constant 0 : i32
    return %arg0, %c0_i32, %c0_i32_0 : i32, i32, i32
  }
  func.func @transform_1(%arg0: i32) -> (i32, i32) {
    %c0_i32 = arith.constant 0 : i32
    %c0_i32_0 = arith.constant 0 : i32
    %c0_i32_1 = arith.constant 0 : i32
    return %c0_i32, %c0_i32_0 : i32, i32
  }
  func.func @transform_2(%arg0: i32) -> (i32, i32) {
    %c0_i32 = arith.constant 0 : i32
    %c0_i32_0 = arith.constant 0 : i32
    %c0_i32_1 = arith.constant 0 : i32
    return %c0_i32, %c0_i32_0 : i32, i32
  }
  func.func @transform_3(%arg0: i32) -> (i32, i32) {
    %c0_i32 = arith.constant 0 : i32
    %c0_i32_0 = arith.constant 0 : i32
    %c0_i32_1 = arith.constant 0 : i32
    return %c0_i32, %c0_i32_0 : i32, i32
  }
  func.func @transform_4(%arg0: i32) -> (i32, i32, i32) {
    %c0_i32 = arith.constant 0 : i32
    %c0_i32_0 = arith.constant 0 : i32
    %c0_i32_1 = arith.constant 0 : i32
    return %arg0, %c0_i32, %c0_i32_0 : i32, i32, i32
  }
}

module attributes {stable_mosaic.version = 11 : i64} {
  func.func @_conv_kernel(%arg0: i32, %arg1: memref<1x32x580xbf16, #tpu.memory_space<vmem>>, %arg2: memref<16x72xbf16, #tpu.memory_space<vmem>>, %arg3: memref<16x1xf32, #tpu.memory_space<vmem>>, %arg4: memref<1x324xf32, #tpu.memory_space<vmem>>, %arg5: memref<1x16x580xbf16, #tpu.memory_space<vmem>>) attributes {dimension_semantics = [#tpu.dimension_semantics<parallel>], iteration_bounds = array<i64: 2>, scalar_prefetch = 0 : i64, scratch_operands = 0 : i64, tpu.core_type = #tpu.core_type<tc>, window_params = [{transform_indices = @transform_0, window_bounds = array<i64: 1, 32, 580>}, {pipeline_mode = #tpu.pipeline_mode<synchronous>, transform_indices = @transform_1, window_bounds = array<i64: 16, 72>}, {pipeline_mode = #tpu.pipeline_mode<synchronous>, transform_indices = @transform_2, window_bounds = array<i64: 16, 1>}, {pipeline_mode = #tpu.pipeline_mode<synchronous>, transform_indices = @transform_3, window_bounds = array<i64: 1, 324>}, {transform_indices = @transform_4, window_bounds = array<i64: 1, 16, 580>}]} {
    %c0 = arith.constant 0 : index
    %c0_0 = arith.constant 0 : index
    %c109 = arith.constant 109 : index
    %0 = vector.load %arg1[%c0, %c0_0, %c109] : memref<1x32x580xbf16, #tpu.memory_space<vmem>>, vector<1x8x324xbf16>
    %1 = vector.shape_cast %0 : vector<1x8x324xbf16> to vector<8x324xbf16>
    %c0_1 = arith.constant 0 : index
    %c8 = arith.constant 8 : index
    %c109_2 = arith.constant 109 : index
    %2 = vector.load %arg1[%c0_1, %c8, %c109_2] : memref<1x32x580xbf16, #tpu.memory_space<vmem>>, vector<1x8x324xbf16>
    %3 = vector.shape_cast %2 : vector<1x8x324xbf16> to vector<8x324xbf16>
    %c0_3 = arith.constant 0 : index
    %c0_4 = arith.constant 0 : index
    %c110 = arith.constant 110 : index
    %4 = vector.load %arg1[%c0_3, %c0_4, %c110] : memref<1x32x580xbf16, #tpu.memory_space<vmem>>, vector<1x8x324xbf16>
    %5 = vector.shape_cast %4 : vector<1x8x324xbf16> to vector<8x324xbf16>
    %c0_5 = arith.constant 0 : index
    %c16 = arith.constant 16 : index
    %c109_6 = arith.constant 109 : index
    %6 = vector.load %arg1[%c0_5, %c16, %c109_6] : memref<1x32x580xbf16, #tpu.memory_space<vmem>>, vector<1x8x324xbf16>
    %7 = vector.shape_cast %6 : vector<1x8x324xbf16> to vector<8x324xbf16>
    %c0_7 = arith.constant 0 : index
    %c24 = arith.constant 24 : index
    %c109_8 = arith.constant 109 : index
    %8 = vector.load %arg1[%c0_7, %c24, %c109_8] : memref<1x32x580xbf16, #tpu.memory_space<vmem>>, vector<1x8x324xbf16>
    %9 = vector.shape_cast %8 : vector<1x8x324xbf16> to vector<8x324xbf16>
    %c0_9 = arith.constant 0 : index
    %c16_10 = arith.constant 16 : index
    %c110_11 = arith.constant 110 : index
    %10 = vector.load %arg1[%c0_9, %c16_10, %c110_11] : memref<1x32x580xbf16, #tpu.memory_space<vmem>>, vector<1x8x324xbf16>
    %11 = vector.shape_cast %10 : vector<1x8x324xbf16> to vector<8x324xbf16>
    %c0_12 = arith.constant 0 : index
    %c0_13 = arith.constant 0 : index
    %c127 = arith.constant 127 : index
    %12 = vector.load %arg1[%c0_12, %c0_13, %c127] : memref<1x32x580xbf16, #tpu.memory_space<vmem>>, vector<1x8x324xbf16>
    %13 = vector.shape_cast %12 : vector<1x8x324xbf16> to vector<8x324xbf16>
    %c0_14 = arith.constant 0 : index
    %c8_15 = arith.constant 8 : index
    %c127_16 = arith.constant 127 : index
    %14 = vector.load %arg1[%c0_14, %c8_15, %c127_16] : memref<1x32x580xbf16, #tpu.memory_space<vmem>>, vector<1x8x324xbf16>
    %15 = vector.shape_cast %14 : vector<1x8x324xbf16> to vector<8x324xbf16>
    %c0_17 = arith.constant 0 : index
    %c0_18 = arith.constant 0 : index
    %c128 = arith.constant 128 : index
    %16 = vector.load %arg1[%c0_17, %c0_18, %c128] : memref<1x32x580xbf16, #tpu.memory_space<vmem>>, vector<1x8x324xbf16>
    %17 = vector.shape_cast %16 : vector<1x8x324xbf16> to vector<8x324xbf16>
    %18 = tpu.concatenate %1, %3, %5, %7, %9, %11, %13, %15, %17 in 0 : vector<8x324xbf16>, vector<8x324xbf16>, vector<8x324xbf16>, vector<8x324xbf16>, vector<8x324xbf16>, vector<8x324xbf16>, vector<8x324xbf16>, vector<8x324xbf16>, vector<8x324xbf16> -> vector<72x324xbf16>
    %c0_19 = arith.constant 0 : index
    %c0_20 = arith.constant 0 : index
    %19 = vector.load %arg2[%c0_19, %c0_20] : memref<16x72xbf16, #tpu.memory_space<vmem>>, vector<16x72xbf16>
    %cst = arith.constant dense<0.000000e+00> : vector<16x324xf32>
    %20 = tpu.matmul %19, %18, %cst {dimension_numbers = #tpu.dot_dimension_numbers<[1], [0], [0], [1], [0, 0, 1, 1], [], []>} : vector<16x72xbf16>, vector<72x324xbf16>, vector<16x324xf32> -> vector<16x324xf32>
    %c0_21 = arith.constant 0 : index
    %c0_22 = arith.constant 0 : index
    %21 = vector.load %arg3[%c0_21, %c0_22] : memref<16x1xf32, #tpu.memory_space<vmem>>, vector<16x1xf32>
    %22 = vector.broadcast %21 : vector<16x1xf32> to vector<16x324xf32>
    %23 = arith.addf %20, %22 : vector<16x324xf32>
    %c0_23 = arith.constant 0 : index
    %c0_24 = arith.constant 0 : index
    %24 = vector.load %arg4[%c0_23, %c0_24] : memref<1x324xf32, #tpu.memory_space<vmem>>, vector<1x324xf32>
    %cst_25 = arith.constant 0.000000e+00 : f32
    %25 = vector.broadcast %cst_25 : f32 to vector<16x324xf32>
    %26 = arith.maximumf %23, %25 : vector<16x324xf32>
    %27 = vector.broadcast %24 : vector<1x324xf32> to vector<16x324xf32>
    %28 = arith.mulf %26, %27 : vector<16x324xf32>
    %cst_26 = arith.constant 0.000000e+00 : bf16
    %29 = vector.broadcast %cst_26 : bf16 to vector<16x128xbf16>
    %c0_27 = arith.constant 0 : index
    %c0_28 = arith.constant 0 : index
    %c0_29 = arith.constant 0 : index
    %30 = vector.load %arg5[%c0_27, %c0_28, %c0_29] : memref<1x16x580xbf16, #tpu.memory_space<vmem>>, vector<1x16x128xbf16>
    %31 = vector.shape_cast %30 : vector<1x16x128xbf16> to vector<16x128xbf16>
    %32 = vector.shape_cast %29 : vector<16x128xbf16> to vector<1x16x128xbf16>
    tpu.vector_store %arg5[%c0_27, %c0_28, %c0_29], %32 {strides = array<i32>} : memref<1x16x580xbf16, #tpu.memory_space<vmem>>, vector<1x16x128xbf16>,
    %33 = arith.truncf %28 : vector<16x324xf32> to vector<16x324xbf16>
    %c0_30 = arith.constant 0 : index
    %c0_31 = arith.constant 0 : index
    %c128_32 = arith.constant 128 : index
    %34 = vector.load %arg5[%c0_30, %c0_31, %c128_32] : memref<1x16x580xbf16, #tpu.memory_space<vmem>>, vector<1x16x324xbf16>
    %35 = vector.shape_cast %34 : vector<1x16x324xbf16> to vector<16x324xbf16>
    %36 = vector.shape_cast %33 : vector<16x324xbf16> to vector<1x16x324xbf16>
    tpu.vector_store %arg5[%c0_30, %c0_31, %c128_32], %36 {strides = array<i32>} : memref<1x16x580xbf16, #tpu.memory_space<vmem>>, vector<1x16x324xbf16>,
    %cst_33 = arith.constant 0.000000e+00 : bf16
    %37 = vector.broadcast %cst_33 : bf16 to vector<16x128xbf16>
    %c0_34 = arith.constant 0 : index
    %c0_35 = arith.constant 0 : index
    %c452 = arith.constant 452 : index
    %38 = vector.load %arg5[%c0_34, %c0_35, %c452] : memref<1x16x580xbf16, #tpu.memory_space<vmem>>, vector<1x16x128xbf16>
    %39 = vector.shape_cast %38 : vector<1x16x128xbf16> to vector<16x128xbf16>
    %40 = vector.shape_cast %37 : vector<16x128xbf16> to vector<1x16x128xbf16>
    tpu.vector_store %arg5[%c0_34, %c0_35, %c452], %40 {strides = array<i32>} : memref<1x16x580xbf16, #tpu.memory_space<vmem>>, vector<1x16x128xbf16>,
    return
  }
  func.func @transform_0(%arg0: i32) -> (i32, i32, i32) {
    %c0_i32 = arith.constant 0 : i32
    %c0_i32_0 = arith.constant 0 : i32
    %c0_i32_1 = arith.constant 0 : i32
    return %arg0, %c0_i32, %c0_i32_0 : i32, i32, i32
  }
  func.func @transform_1(%arg0: i32) -> (i32, i32) {
    %c0_i32 = arith.constant 0 : i32
    %c0_i32_0 = arith.constant 0 : i32
    %c0_i32_1 = arith.constant 0 : i32
    return %c0_i32, %c0_i32_0 : i32, i32
  }
  func.func @transform_2(%arg0: i32) -> (i32, i32) {
    %c0_i32 = arith.constant 0 : i32
    %c0_i32_0 = arith.constant 0 : i32
    %c0_i32_1 = arith.constant 0 : i32
    return %c0_i32, %c0_i32_0 : i32, i32
  }
  func.func @transform_3(%arg0: i32) -> (i32, i32) {
    %c0_i32 = arith.constant 0 : i32
    %c0_i32_0 = arith.constant 0 : i32
    %c0_i32_1 = arith.constant 0 : i32
    return %c0_i32, %c0_i32_0 : i32, i32
  }
  func.func @transform_4(%arg0: i32) -> (i32, i32, i32) {
    %c0_i32 = arith.constant 0 : i32
    %c0_i32_0 = arith.constant 0 : i32
    %c0_i32_1 = arith.constant 0 : i32
    return %arg0, %c0_i32, %c0_i32_0 : i32, i32, i32
  }
}

module attributes {stable_mosaic.version = 11 : i64} {
  func.func @_conv_kernel(%arg0: i32, %arg1: memref<1x64x356xbf16, #tpu.memory_space<vmem>>, %arg2: memref<16x144xbf16, #tpu.memory_space<vmem>>, %arg3: memref<16x1xf32, #tpu.memory_space<vmem>>, %arg4: memref<1x100xf32, #tpu.memory_space<vmem>>, %arg5: memref<1x16x356xbf16, #tpu.memory_space<vmem>>) attributes {dimension_semantics = [#tpu.dimension_semantics<parallel>], iteration_bounds = array<i64: 2>, scalar_prefetch = 0 : i64, scratch_operands = 0 : i64, tpu.core_type = #tpu.core_type<tc>, window_params = [{transform_indices = @transform_0, window_bounds = array<i64: 1, 64, 356>}, {pipeline_mode = #tpu.pipeline_mode<synchronous>, transform_indices = @transform_1, window_bounds = array<i64: 16, 144>}, {pipeline_mode = #tpu.pipeline_mode<synchronous>, transform_indices = @transform_2, window_bounds = array<i64: 16, 1>}, {pipeline_mode = #tpu.pipeline_mode<synchronous>, transform_indices = @transform_3, window_bounds = array<i64: 1, 100>}, {transform_indices = @transform_4, window_bounds = array<i64: 1, 16, 356>}]} {
    %c0 = arith.constant 0 : index
    %c0_0 = arith.constant 0 : index
    %c117 = arith.constant 117 : index
    %0 = vector.load %arg1[%c0, %c0_0, %c117] : memref<1x64x356xbf16, #tpu.memory_space<vmem>>, vector<1x16x100xbf16>
    %1 = vector.shape_cast %0 : vector<1x16x100xbf16> to vector<16x100xbf16>
    %c0_1 = arith.constant 0 : index
    %c16 = arith.constant 16 : index
    %c117_2 = arith.constant 117 : index
    %2 = vector.load %arg1[%c0_1, %c16, %c117_2] : memref<1x64x356xbf16, #tpu.memory_space<vmem>>, vector<1x16x100xbf16>
    %3 = vector.shape_cast %2 : vector<1x16x100xbf16> to vector<16x100xbf16>
    %c0_3 = arith.constant 0 : index
    %c0_4 = arith.constant 0 : index
    %c118 = arith.constant 118 : index
    %4 = vector.load %arg1[%c0_3, %c0_4, %c118] : memref<1x64x356xbf16, #tpu.memory_space<vmem>>, vector<1x16x100xbf16>
    %5 = vector.shape_cast %4 : vector<1x16x100xbf16> to vector<16x100xbf16>
    %c0_5 = arith.constant 0 : index
    %c32 = arith.constant 32 : index
    %c117_6 = arith.constant 117 : index
    %6 = vector.load %arg1[%c0_5, %c32, %c117_6] : memref<1x64x356xbf16, #tpu.memory_space<vmem>>, vector<1x16x100xbf16>
    %7 = vector.shape_cast %6 : vector<1x16x100xbf16> to vector<16x100xbf16>
    %c0_7 = arith.constant 0 : index
    %c48 = arith.constant 48 : index
    %c117_8 = arith.constant 117 : index
    %8 = vector.load %arg1[%c0_7, %c48, %c117_8] : memref<1x64x356xbf16, #tpu.memory_space<vmem>>, vector<1x16x100xbf16>
    %9 = vector.shape_cast %8 : vector<1x16x100xbf16> to vector<16x100xbf16>
    %c0_9 = arith.constant 0 : index
    %c32_10 = arith.constant 32 : index
    %c118_11 = arith.constant 118 : index
    %10 = vector.load %arg1[%c0_9, %c32_10, %c118_11] : memref<1x64x356xbf16, #tpu.memory_space<vmem>>, vector<1x16x100xbf16>
    %11 = vector.shape_cast %10 : vector<1x16x100xbf16> to vector<16x100xbf16>
    %c0_12 = arith.constant 0 : index
    %c0_13 = arith.constant 0 : index
    %c127 = arith.constant 127 : index
    %12 = vector.load %arg1[%c0_12, %c0_13, %c127] : memref<1x64x356xbf16, #tpu.memory_space<vmem>>, vector<1x16x100xbf16>
    %13 = vector.shape_cast %12 : vector<1x16x100xbf16> to vector<16x100xbf16>
    %c0_14 = arith.constant 0 : index
    %c16_15 = arith.constant 16 : index
    %c127_16 = arith.constant 127 : index
    %14 = vector.load %arg1[%c0_14, %c16_15, %c127_16] : memref<1x64x356xbf16, #tpu.memory_space<vmem>>, vector<1x16x100xbf16>
    %15 = vector.shape_cast %14 : vector<1x16x100xbf16> to vector<16x100xbf16>
    %c0_17 = arith.constant 0 : index
    %c0_18 = arith.constant 0 : index
    %c128 = arith.constant 128 : index
    %16 = vector.load %arg1[%c0_17, %c0_18, %c128] : memref<1x64x356xbf16, #tpu.memory_space<vmem>>, vector<1x16x100xbf16>
    %17 = vector.shape_cast %16 : vector<1x16x100xbf16> to vector<16x100xbf16>
    %18 = tpu.concatenate %1, %3, %5, %7, %9, %11, %13, %15, %17 in 0 : vector<16x100xbf16>, vector<16x100xbf16>, vector<16x100xbf16>, vector<16x100xbf16>, vector<16x100xbf16>, vector<16x100xbf16>, vector<16x100xbf16>, vector<16x100xbf16>, vector<16x100xbf16> -> vector<144x100xbf16>
    %c0_19 = arith.constant 0 : index
    %c0_20 = arith.constant 0 : index
    %19 = vector.load %arg2[%c0_19, %c0_20] : memref<16x144xbf16, #tpu.memory_space<vmem>>, vector<16x144xbf16>
    %cst = arith.constant dense<0.000000e+00> : vector<16x100xf32>
    %20 = tpu.matmul %19, %18, %cst {dimension_numbers = #tpu.dot_dimension_numbers<[1], [0], [0], [1], [0, 0, 1, 1], [], []>} : vector<16x144xbf16>, vector<144x100xbf16>, vector<16x100xf32> -> vector<16x100xf32>
    %c0_21 = arith.constant 0 : index
    %c0_22 = arith.constant 0 : index
    %21 = vector.load %arg3[%c0_21, %c0_22] : memref<16x1xf32, #tpu.memory_space<vmem>>, vector<16x1xf32>
    %22 = vector.broadcast %21 : vector<16x1xf32> to vector<16x100xf32>
    %23 = arith.addf %20, %22 : vector<16x100xf32>
    %c0_23 = arith.constant 0 : index
    %c0_24 = arith.constant 0 : index
    %24 = vector.load %arg4[%c0_23, %c0_24] : memref<1x100xf32, #tpu.memory_space<vmem>>, vector<1x100xf32>
    %cst_25 = arith.constant 0.000000e+00 : f32
    %25 = vector.broadcast %cst_25 : f32 to vector<16x100xf32>
    %26 = arith.maximumf %23, %25 : vector<16x100xf32>
    %27 = vector.broadcast %24 : vector<1x100xf32> to vector<16x100xf32>
    %28 = arith.mulf %26, %27 : vector<16x100xf32>
    %cst_26 = arith.constant 0.000000e+00 : bf16
    %29 = vector.broadcast %cst_26 : bf16 to vector<16x128xbf16>
    %c0_27 = arith.constant 0 : index
    %c0_28 = arith.constant 0 : index
    %c0_29 = arith.constant 0 : index
    %30 = vector.load %arg5[%c0_27, %c0_28, %c0_29] : memref<1x16x356xbf16, #tpu.memory_space<vmem>>, vector<1x16x128xbf16>
    %31 = vector.shape_cast %30 : vector<1x16x128xbf16> to vector<16x128xbf16>
    %32 = vector.shape_cast %29 : vector<16x128xbf16> to vector<1x16x128xbf16>
    tpu.vector_store %arg5[%c0_27, %c0_28, %c0_29], %32 {strides = array<i32>} : memref<1x16x356xbf16, #tpu.memory_space<vmem>>, vector<1x16x128xbf16>,
    %33 = arith.truncf %28 : vector<16x100xf32> to vector<16x100xbf16>
    %c0_30 = arith.constant 0 : index
    %c0_31 = arith.constant 0 : index
    %c128_32 = arith.constant 128 : index
    %34 = vector.load %arg5[%c0_30, %c0_31, %c128_32] : memref<1x16x356xbf16, #tpu.memory_space<vmem>>, vector<1x16x100xbf16>
    %35 = vector.shape_cast %34 : vector<1x16x100xbf16> to vector<16x100xbf16>
    %36 = vector.shape_cast %33 : vector<16x100xbf16> to vector<1x16x100xbf16>
    tpu.vector_store %arg5[%c0_30, %c0_31, %c128_32], %36 {strides = array<i32>} : memref<1x16x356xbf16, #tpu.memory_space<vmem>>, vector<1x16x100xbf16>,
    %cst_33 = arith.constant 0.000000e+00 : bf16
    %37 = vector.broadcast %cst_33 : bf16 to vector<16x128xbf16>
    %c0_34 = arith.constant 0 : index
    %c0_35 = arith.constant 0 : index
    %c228 = arith.constant 228 : index
    %38 = vector.load %arg5[%c0_34, %c0_35, %c228] : memref<1x16x356xbf16, #tpu.memory_space<vmem>>, vector<1x16x128xbf16>
    %39 = vector.shape_cast %38 : vector<1x16x128xbf16> to vector<16x128xbf16>
    %40 = vector.shape_cast %37 : vector<16x128xbf16> to vector<1x16x128xbf16>
    tpu.vector_store %arg5[%c0_34, %c0_35, %c228], %40 {strides = array<i32>} : memref<1x16x356xbf16, #tpu.memory_space<vmem>>, vector<1x16x128xbf16>,
    return
  }
  func.func @transform_0(%arg0: i32) -> (i32, i32, i32) {
    %c0_i32 = arith.constant 0 : i32
    %c0_i32_0 = arith.constant 0 : i32
    %c0_i32_1 = arith.constant 0 : i32
    return %arg0, %c0_i32, %c0_i32_0 : i32, i32, i32
  }
  func.func @transform_1(%arg0: i32) -> (i32, i32) {
    %c0_i32 = arith.constant 0 : i32
    %c0_i32_0 = arith.constant 0 : i32
    %c0_i32_1 = arith.constant 0 : i32
    return %c0_i32, %c0_i32_0 : i32, i32
  }
  func.func @transform_2(%arg0: i32) -> (i32, i32) {
    %c0_i32 = arith.constant 0 : i32
    %c0_i32_0 = arith.constant 0 : i32
    %c0_i32_1 = arith.constant 0 : i32
    return %c0_i32, %c0_i32_0 : i32, i32
  }
  func.func @transform_3(%arg0: i32) -> (i32, i32) {
    %c0_i32 = arith.constant 0 : i32
    %c0_i32_0 = arith.constant 0 : i32
    %c0_i32_1 = arith.constant 0 : i32
    return %c0_i32, %c0_i32_0 : i32, i32
  }
  func.func @transform_4(%arg0: i32) -> (i32, i32, i32) {
    %c0_i32 = arith.constant 0 : i32
    %c0_i32_0 = arith.constant 0 : i32
    %c0_i32_1 = arith.constant 0 : i32
    return %arg0, %c0_i32, %c0_i32_0 : i32, i32, i32
  }
}

module attributes {stable_mosaic.version = 11 : i64} {
  func.func @_conv_kernel(%arg0: i32, %arg1: memref<1x64x292xbf16, #tpu.memory_space<vmem>>, %arg2: memref<16x144xbf16, #tpu.memory_space<vmem>>, %arg3: memref<16x1xf32, #tpu.memory_space<vmem>>, %arg4: memref<1x36xf32, #tpu.memory_space<vmem>>, %arg5: memref<1x16x292xbf16, #tpu.memory_space<vmem>>) attributes {dimension_semantics = [#tpu.dimension_semantics<parallel>], iteration_bounds = array<i64: 2>, scalar_prefetch = 0 : i64, scratch_operands = 0 : i64, tpu.core_type = #tpu.core_type<tc>, window_params = [{transform_indices = @transform_0, window_bounds = array<i64: 1, 64, 292>}, {pipeline_mode = #tpu.pipeline_mode<synchronous>, transform_indices = @transform_1, window_bounds = array<i64: 16, 144>}, {pipeline_mode = #tpu.pipeline_mode<synchronous>, transform_indices = @transform_2, window_bounds = array<i64: 16, 1>}, {pipeline_mode = #tpu.pipeline_mode<synchronous>, transform_indices = @transform_3, window_bounds = array<i64: 1, 36>}, {transform_indices = @transform_4, window_bounds = array<i64: 1, 16, 292>}]} {
    %c0 = arith.constant 0 : index
    %c0_0 = arith.constant 0 : index
    %c121 = arith.constant 121 : index
    %0 = vector.load %arg1[%c0, %c0_0, %c121] : memref<1x64x292xbf16, #tpu.memory_space<vmem>>, vector<1x16x36xbf16>
    %1 = vector.shape_cast %0 : vector<1x16x36xbf16> to vector<16x36xbf16>
    %c0_1 = arith.constant 0 : index
    %c16 = arith.constant 16 : index
    %c121_2 = arith.constant 121 : index
    %2 = vector.load %arg1[%c0_1, %c16, %c121_2] : memref<1x64x292xbf16, #tpu.memory_space<vmem>>, vector<1x16x36xbf16>
    %3 = vector.shape_cast %2 : vector<1x16x36xbf16> to vector<16x36xbf16>
    %c0_3 = arith.constant 0 : index
    %c0_4 = arith.constant 0 : index
    %c122 = arith.constant 122 : index
    %4 = vector.load %arg1[%c0_3, %c0_4, %c122] : memref<1x64x292xbf16, #tpu.memory_space<vmem>>, vector<1x16x36xbf16>
    %5 = vector.shape_cast %4 : vector<1x16x36xbf16> to vector<16x36xbf16>
    %c0_5 = arith.constant 0 : index
    %c32 = arith.constant 32 : index
    %c121_6 = arith.constant 121 : index
    %6 = vector.load %arg1[%c0_5, %c32, %c121_6] : memref<1x64x292xbf16, #tpu.memory_space<vmem>>, vector<1x16x36xbf16>
    %7 = vector.shape_cast %6 : vector<1x16x36xbf16> to vector<16x36xbf16>
    %c0_7 = arith.constant 0 : index
    %c48 = arith.constant 48 : index
    %c121_8 = arith.constant 121 : index
    %8 = vector.load %arg1[%c0_7, %c48, %c121_8] : memref<1x64x292xbf16, #tpu.memory_space<vmem>>, vector<1x16x36xbf16>
    %9 = vector.shape_cast %8 : vector<1x16x36xbf16> to vector<16x36xbf16>
    %c0_9 = arith.constant 0 : index
    %c32_10 = arith.constant 32 : index
    %c122_11 = arith.constant 122 : index
    %10 = vector.load %arg1[%c0_9, %c32_10, %c122_11] : memref<1x64x292xbf16, #tpu.memory_space<vmem>>, vector<1x16x36xbf16>
    %11 = vector.shape_cast %10 : vector<1x16x36xbf16> to vector<16x36xbf16>
    %c0_12 = arith.constant 0 : index
    %c0_13 = arith.constant 0 : index
    %c127 = arith.constant 127 : index
    %12 = vector.load %arg1[%c0_12, %c0_13, %c127] : memref<1x64x292xbf16, #tpu.memory_space<vmem>>, vector<1x16x36xbf16>
    %13 = vector.shape_cast %12 : vector<1x16x36xbf16> to vector<16x36xbf16>
    %c0_14 = arith.constant 0 : index
    %c16_15 = arith.constant 16 : index
    %c127_16 = arith.constant 127 : index
    %14 = vector.load %arg1[%c0_14, %c16_15, %c127_16] : memref<1x64x292xbf16, #tpu.memory_space<vmem>>, vector<1x16x36xbf16>
    %15 = vector.shape_cast %14 : vector<1x16x36xbf16> to vector<16x36xbf16>
    %c0_17 = arith.constant 0 : index
    %c0_18 = arith.constant 0 : index
    %c128 = arith.constant 128 : index
    %16 = vector.load %arg1[%c0_17, %c0_18, %c128] : memref<1x64x292xbf16, #tpu.memory_space<vmem>>, vector<1x16x36xbf16>
    %17 = vector.shape_cast %16 : vector<1x16x36xbf16> to vector<16x36xbf16>
    %18 = tpu.concatenate %1, %3, %5, %7, %9, %11, %13, %15, %17 in 0 : vector<16x36xbf16>, vector<16x36xbf16>, vector<16x36xbf16>, vector<16x36xbf16>, vector<16x36xbf16>, vector<16x36xbf16>, vector<16x36xbf16>, vector<16x36xbf16>, vector<16x36xbf16> -> vector<144x36xbf16>
    %c0_19 = arith.constant 0 : index
    %c0_20 = arith.constant 0 : index
    %19 = vector.load %arg2[%c0_19, %c0_20] : memref<16x144xbf16, #tpu.memory_space<vmem>>, vector<16x144xbf16>
    %cst = arith.constant dense<0.000000e+00> : vector<16x36xf32>
    %20 = tpu.matmul %19, %18, %cst {dimension_numbers = #tpu.dot_dimension_numbers<[1], [0], [0], [1], [0, 0, 1, 1], [], []>} : vector<16x144xbf16>, vector<144x36xbf16>, vector<16x36xf32> -> vector<16x36xf32>
    %c0_21 = arith.constant 0 : index
    %c0_22 = arith.constant 0 : index
    %21 = vector.load %arg3[%c0_21, %c0_22] : memref<16x1xf32, #tpu.memory_space<vmem>>, vector<16x1xf32>
    %22 = vector.broadcast %21 : vector<16x1xf32> to vector<16x36xf32>
    %23 = arith.addf %20, %22 : vector<16x36xf32>
    %c0_23 = arith.constant 0 : index
    %c0_24 = arith.constant 0 : index
    %24 = vector.load %arg4[%c0_23, %c0_24] : memref<1x36xf32, #tpu.memory_space<vmem>>, vector<1x36xf32>
    %cst_25 = arith.constant 0.000000e+00 : f32
    %25 = vector.broadcast %cst_25 : f32 to vector<16x36xf32>
    %26 = arith.maximumf %23, %25 : vector<16x36xf32>
    %27 = vector.broadcast %24 : vector<1x36xf32> to vector<16x36xf32>
    %28 = arith.mulf %26, %27 : vector<16x36xf32>
    %cst_26 = arith.constant 0.000000e+00 : bf16
    %29 = vector.broadcast %cst_26 : bf16 to vector<16x128xbf16>
    %c0_27 = arith.constant 0 : index
    %c0_28 = arith.constant 0 : index
    %c0_29 = arith.constant 0 : index
    %30 = vector.load %arg5[%c0_27, %c0_28, %c0_29] : memref<1x16x292xbf16, #tpu.memory_space<vmem>>, vector<1x16x128xbf16>
    %31 = vector.shape_cast %30 : vector<1x16x128xbf16> to vector<16x128xbf16>
    %32 = vector.shape_cast %29 : vector<16x128xbf16> to vector<1x16x128xbf16>
    tpu.vector_store %arg5[%c0_27, %c0_28, %c0_29], %32 {strides = array<i32>} : memref<1x16x292xbf16, #tpu.memory_space<vmem>>, vector<1x16x128xbf16>,
    %33 = arith.truncf %28 : vector<16x36xf32> to vector<16x36xbf16>
    %c0_30 = arith.constant 0 : index
    %c0_31 = arith.constant 0 : index
    %c128_32 = arith.constant 128 : index
    %34 = vector.load %arg5[%c0_30, %c0_31, %c128_32] : memref<1x16x292xbf16, #tpu.memory_space<vmem>>, vector<1x16x36xbf16>
    %35 = vector.shape_cast %34 : vector<1x16x36xbf16> to vector<16x36xbf16>
    %36 = vector.shape_cast %33 : vector<16x36xbf16> to vector<1x16x36xbf16>
    tpu.vector_store %arg5[%c0_30, %c0_31, %c128_32], %36 {strides = array<i32>} : memref<1x16x292xbf16, #tpu.memory_space<vmem>>, vector<1x16x36xbf16>,
    %cst_33 = arith.constant 0.000000e+00 : bf16
    %37 = vector.broadcast %cst_33 : bf16 to vector<16x128xbf16>
    %c0_34 = arith.constant 0 : index
    %c0_35 = arith.constant 0 : index
    %c164 = arith.constant 164 : index
    %38 = vector.load %arg5[%c0_34, %c0_35, %c164] : memref<1x16x292xbf16, #tpu.memory_space<vmem>>, vector<1x16x128xbf16>
    %39 = vector.shape_cast %38 : vector<1x16x128xbf16> to vector<16x128xbf16>
    %40 = vector.shape_cast %37 : vector<16x128xbf16> to vector<1x16x128xbf16>
    tpu.vector_store %arg5[%c0_34, %c0_35, %c164], %40 {strides = array<i32>} : memref<1x16x292xbf16, #tpu.memory_space<vmem>>, vector<1x16x128xbf16>,
    return
  }
  func.func @transform_0(%arg0: i32) -> (i32, i32, i32) {
    %c0_i32 = arith.constant 0 : i32
    %c0_i32_0 = arith.constant 0 : i32
    %c0_i32_1 = arith.constant 0 : i32
    return %arg0, %c0_i32, %c0_i32_0 : i32, i32, i32
  }
  func.func @transform_1(%arg0: i32) -> (i32, i32) {
    %c0_i32 = arith.constant 0 : i32
    %c0_i32_0 = arith.constant 0 : i32
    %c0_i32_1 = arith.constant 0 : i32
    return %c0_i32, %c0_i32_0 : i32, i32
  }
  func.func @transform_2(%arg0: i32) -> (i32, i32) {
    %c0_i32 = arith.constant 0 : i32
    %c0_i32_0 = arith.constant 0 : i32
    %c0_i32_1 = arith.constant 0 : i32
    return %c0_i32, %c0_i32_0 : i32, i32
  }
  func.func @transform_3(%arg0: i32) -> (i32, i32) {
    %c0_i32 = arith.constant 0 : i32
    %c0_i32_0 = arith.constant 0 : i32
    %c0_i32_1 = arith.constant 0 : i32
    return %c0_i32, %c0_i32_0 : i32, i32
  }
  func.func @transform_4(%arg0: i32) -> (i32, i32, i32) {
    %c0_i32 = arith.constant 0 : i32
    %c0_i32_0 = arith.constant 0 : i32
    %c0_i32_1 = arith.constant 0 : i32
    return %arg0, %c0_i32, %c0_i32_0 : i32, i32, i32
  }
}

module attributes {stable_mosaic.version = 11 : i64} {
  func.func @_conv_kernel(%arg0: i32, %arg1: memref<1x16x272xbf16, #tpu.memory_space<vmem>>, %arg2: memref<16x144xbf16, #tpu.memory_space<vmem>>, %arg3: memref<16x1xf32, #tpu.memory_space<vmem>>, %arg4: memref<1x16xf32, #tpu.memory_space<vmem>>, %arg5: memref<1x16x272xbf16, #tpu.memory_space<vmem>>) attributes {dimension_semantics = [#tpu.dimension_semantics<parallel>], iteration_bounds = array<i64: 2>, scalar_prefetch = 0 : i64, scratch_operands = 0 : i64, tpu.core_type = #tpu.core_type<tc>, window_params = [{transform_indices = @transform_0, window_bounds = array<i64: 1, 16, 272>}, {pipeline_mode = #tpu.pipeline_mode<synchronous>, transform_indices = @transform_1, window_bounds = array<i64: 16, 144>}, {pipeline_mode = #tpu.pipeline_mode<synchronous>, transform_indices = @transform_2, window_bounds = array<i64: 16, 1>}, {pipeline_mode = #tpu.pipeline_mode<synchronous>, transform_indices = @transform_3, window_bounds = array<i64: 1, 16>}, {transform_indices = @transform_4, window_bounds = array<i64: 1, 16, 272>}]} {
    %c0 = arith.constant 0 : index
    %c0_0 = arith.constant 0 : index
    %c123 = arith.constant 123 : index
    %0 = vector.load %arg1[%c0, %c0_0, %c123] : memref<1x16x272xbf16, #tpu.memory_space<vmem>>, vector<1x16x16xbf16>
    %1 = vector.shape_cast %0 : vector<1x16x16xbf16> to vector<16x16xbf16>
    %c0_1 = arith.constant 0 : index
    %c0_2 = arith.constant 0 : index
    %c124 = arith.constant 124 : index
    %2 = vector.load %arg1[%c0_1, %c0_2, %c124] : memref<1x16x272xbf16, #tpu.memory_space<vmem>>, vector<1x16x16xbf16>
    %3 = vector.shape_cast %2 : vector<1x16x16xbf16> to vector<16x16xbf16>
    %c0_3 = arith.constant 0 : index
    %c0_4 = arith.constant 0 : index
    %c125 = arith.constant 125 : index
    %4 = vector.load %arg1[%c0_3, %c0_4, %c125] : memref<1x16x272xbf16, #tpu.memory_space<vmem>>, vector<1x16x16xbf16>
    %5 = vector.shape_cast %4 : vector<1x16x16xbf16> to vector<16x16xbf16>
    %c0_5 = arith.constant 0 : index
    %c0_6 = arith.constant 0 : index
    %c127 = arith.constant 127 : index
    %6 = vector.load %arg1[%c0_5, %c0_6, %c127] : memref<1x16x272xbf16, #tpu.memory_space<vmem>>, vector<1x16x16xbf16>
    %7 = vector.shape_cast %6 : vector<1x16x16xbf16> to vector<16x16xbf16>
    %c0_7 = arith.constant 0 : index
    %c0_8 = arith.constant 0 : index
    %c128 = arith.constant 128 : index
    %8 = vector.load %arg1[%c0_7, %c0_8, %c128] : memref<1x16x272xbf16, #tpu.memory_space<vmem>>, vector<1x16x16xbf16>
    %9 = vector.shape_cast %8 : vector<1x16x16xbf16> to vector<16x16xbf16>
    %c0_9 = arith.constant 0 : index
    %c0_10 = arith.constant 0 : index
    %c129 = arith.constant 129 : index
    %10 = vector.load %arg1[%c0_9, %c0_10, %c129] : memref<1x16x272xbf16, #tpu.memory_space<vmem>>, vector<1x16x16xbf16>
    %11 = vector.shape_cast %10 : vector<1x16x16xbf16> to vector<16x16xbf16>
    %c0_11 = arith.constant 0 : index
    %c0_12 = arith.constant 0 : index
    %c131 = arith.constant 131 : index
    %12 = vector.load %arg1[%c0_11, %c0_12, %c131] : memref<1x16x272xbf16, #tpu.memory_space<vmem>>, vector<1x16x16xbf16>
    %13 = vector.shape_cast %12 : vector<1x16x16xbf16> to vector<16x16xbf16>
    %c0_13 = arith.constant 0 : index
    %c0_14 = arith.constant 0 : index
    %c132 = arith.constant 132 : index
    %14 = vector.load %arg1[%c0_13, %c0_14, %c132] : memref<1x16x272xbf16, #tpu.memory_space<vmem>>, vector<1x16x16xbf16>
    %15 = vector.shape_cast %14 : vector<1x16x16xbf16> to vector<16x16xbf16>
    %c0_15 = arith.constant 0 : index
    %c0_16 = arith.constant 0 : index
    %c133 = arith.constant 133 : index
    %16 = vector.load %arg1[%c0_15, %c0_16, %c133] : memref<1x16x272xbf16, #tpu.memory_space<vmem>>, vector<1x16x16xbf16>
    %17 = vector.shape_cast %16 : vector<1x16x16xbf16> to vector<16x16xbf16>
    %18 = tpu.concatenate %1, %3, %5, %7, %9, %11, %13, %15, %17 in 0 : vector<16x16xbf16>, vector<16x16xbf16>, vector<16x16xbf16>, vector<16x16xbf16>, vector<16x16xbf16>, vector<16x16xbf16>, vector<16x16xbf16>, vector<16x16xbf16>, vector<16x16xbf16> -> vector<144x16xbf16>
    %c0_17 = arith.constant 0 : index
    %c0_18 = arith.constant 0 : index
    %19 = vector.load %arg2[%c0_17, %c0_18] : memref<16x144xbf16, #tpu.memory_space<vmem>>, vector<16x144xbf16>
    %cst = arith.constant dense<0.000000e+00> : vector<16x16xf32>
    %20 = tpu.matmul %19, %18, %cst {dimension_numbers = #tpu.dot_dimension_numbers<[1], [0], [0], [1], [0, 0, 1, 1], [], []>} : vector<16x144xbf16>, vector<144x16xbf16>, vector<16x16xf32> -> vector<16x16xf32>
    %c0_19 = arith.constant 0 : index
    %c0_20 = arith.constant 0 : index
    %21 = vector.load %arg3[%c0_19, %c0_20] : memref<16x1xf32, #tpu.memory_space<vmem>>, vector<16x1xf32>
    %22 = vector.broadcast %21 : vector<16x1xf32> to vector<16x16xf32>
    %23 = arith.addf %20, %22 : vector<16x16xf32>
    %c0_21 = arith.constant 0 : index
    %c0_22 = arith.constant 0 : index
    %24 = vector.load %arg4[%c0_21, %c0_22] : memref<1x16xf32, #tpu.memory_space<vmem>>, vector<1x16xf32>
    %25 = vector.broadcast %24 : vector<1x16xf32> to vector<16x16xf32>
    %26 = arith.mulf %23, %25 : vector<16x16xf32>
    %cst_23 = arith.constant 0.000000e+00 : bf16
    %27 = vector.broadcast %cst_23 : bf16 to vector<16x128xbf16>
    %c0_24 = arith.constant 0 : index
    %c0_25 = arith.constant 0 : index
    %c0_26 = arith.constant 0 : index
    %28 = vector.load %arg5[%c0_24, %c0_25, %c0_26] : memref<1x16x272xbf16, #tpu.memory_space<vmem>>, vector<1x16x128xbf16>
    %29 = vector.shape_cast %28 : vector<1x16x128xbf16> to vector<16x128xbf16>
    %30 = vector.shape_cast %27 : vector<16x128xbf16> to vector<1x16x128xbf16>
    tpu.vector_store %arg5[%c0_24, %c0_25, %c0_26], %30 {strides = array<i32>} : memref<1x16x272xbf16, #tpu.memory_space<vmem>>, vector<1x16x128xbf16>,
    %31 = arith.truncf %26 : vector<16x16xf32> to vector<16x16xbf16>
    %c0_27 = arith.constant 0 : index
    %c0_28 = arith.constant 0 : index
    %c128_29 = arith.constant 128 : index
    %32 = vector.load %arg5[%c0_27, %c0_28, %c128_29] : memref<1x16x272xbf16, #tpu.memory_space<vmem>>, vector<1x16x16xbf16>
    %33 = vector.shape_cast %32 : vector<1x16x16xbf16> to vector<16x16xbf16>
    %34 = vector.shape_cast %31 : vector<16x16xbf16> to vector<1x16x16xbf16>
    tpu.vector_store %arg5[%c0_27, %c0_28, %c128_29], %34 {strides = array<i32>} : memref<1x16x272xbf16, #tpu.memory_space<vmem>>, vector<1x16x16xbf16>,
    %cst_30 = arith.constant 0.000000e+00 : bf16
    %35 = vector.broadcast %cst_30 : bf16 to vector<16x128xbf16>
    %c0_31 = arith.constant 0 : index
    %c0_32 = arith.constant 0 : index
    %c144 = arith.constant 144 : index
    %36 = vector.load %arg5[%c0_31, %c0_32, %c144] : memref<1x16x272xbf16, #tpu.memory_space<vmem>>, vector<1x16x128xbf16>
    %37 = vector.shape_cast %36 : vector<1x16x128xbf16> to vector<16x128xbf16>
    %38 = vector.shape_cast %35 : vector<16x128xbf16> to vector<1x16x128xbf16>
    tpu.vector_store %arg5[%c0_31, %c0_32, %c144], %38 {strides = array<i32>} : memref<1x16x272xbf16, #tpu.memory_space<vmem>>, vector<1x16x128xbf16>,
    return
  }
  func.func @transform_0(%arg0: i32) -> (i32, i32, i32) {
    %c0_i32 = arith.constant 0 : i32
    %c0_i32_0 = arith.constant 0 : i32
    %c0_i32_1 = arith.constant 0 : i32
    return %arg0, %c0_i32, %c0_i32_0 : i32, i32, i32
  }
  func.func @transform_1(%arg0: i32) -> (i32, i32) {
    %c0_i32 = arith.constant 0 : i32
    %c0_i32_0 = arith.constant 0 : i32
    %c0_i32_1 = arith.constant 0 : i32
    return %c0_i32, %c0_i32_0 : i32, i32
  }
  func.func @transform_2(%arg0: i32) -> (i32, i32) {
    %c0_i32 = arith.constant 0 : i32
    %c0_i32_0 = arith.constant 0 : i32
    %c0_i32_1 = arith.constant 0 : i32
    return %c0_i32, %c0_i32_0 : i32, i32
  }
  func.func @transform_3(%arg0: i32) -> (i32, i32) {
    %c0_i32 = arith.constant 0 : i32
    %c0_i32_0 = arith.constant 0 : i32
    %c0_i32_1 = arith.constant 0 : i32
    return %c0_i32, %c0_i32_0 : i32, i32
  }
  func.func @transform_4(%arg0: i32) -> (i32, i32, i32) {
    %c0_i32 = arith.constant 0 : i32
    %c0_i32_0 = arith.constant 0 : i32
    %c0_i32_1 = arith.constant 0 : i32
    return %arg0, %c0_i32, %c0_i32_0 : i32, i32, i32
  }
}

module attributes {stable_mosaic.version = 11 : i64} {
  func.func @_conv_kernel(%arg0: i32, %arg1: memref<1x16x272xbf16, #tpu.memory_space<vmem>>, %arg2: memref<16x16xbf16, #tpu.memory_space<vmem>>, %arg3: memref<16x1xf32, #tpu.memory_space<vmem>>, %arg4: memref<1x16xf32, #tpu.memory_space<vmem>>, %arg5: memref<1x16x272xbf16, #tpu.memory_space<vmem>>) attributes {dimension_semantics = [#tpu.dimension_semantics<parallel>], iteration_bounds = array<i64: 2>, scalar_prefetch = 0 : i64, scratch_operands = 0 : i64, tpu.core_type = #tpu.core_type<tc>, window_params = [{transform_indices = @transform_0, window_bounds = array<i64: 1, 16, 272>}, {pipeline_mode = #tpu.pipeline_mode<synchronous>, transform_indices = @transform_1, window_bounds = array<i64: 16, 16>}, {pipeline_mode = #tpu.pipeline_mode<synchronous>, transform_indices = @transform_2, window_bounds = array<i64: 16, 1>}, {pipeline_mode = #tpu.pipeline_mode<synchronous>, transform_indices = @transform_3, window_bounds = array<i64: 1, 16>}, {transform_indices = @transform_4, window_bounds = array<i64: 1, 16, 272>}]} {
    %c0 = arith.constant 0 : index
    %c0_0 = arith.constant 0 : index
    %c128 = arith.constant 128 : index
    %0 = vector.load %arg1[%c0, %c0_0, %c128] : memref<1x16x272xbf16, #tpu.memory_space<vmem>>, vector<1x16x16xbf16>
    %1 = vector.shape_cast %0 : vector<1x16x16xbf16> to vector<16x16xbf16>
    %c0_1 = arith.constant 0 : index
    %c0_2 = arith.constant 0 : index
    %2 = vector.load %arg2[%c0_1, %c0_2] : memref<16x16xbf16, #tpu.memory_space<vmem>>, vector<16x16xbf16>
    %cst = arith.constant dense<0.000000e+00> : vector<16x16xf32>
    %3 = tpu.matmul %2, %1, %cst {dimension_numbers = #tpu.dot_dimension_numbers<[1], [0], [0], [1], [0, 0, 1, 1], [], []>} : vector<16x16xbf16>, vector<16x16xbf16>, vector<16x16xf32> -> vector<16x16xf32>
    %c0_3 = arith.constant 0 : index
    %c0_4 = arith.constant 0 : index
    %4 = vector.load %arg3[%c0_3, %c0_4] : memref<16x1xf32, #tpu.memory_space<vmem>>, vector<16x1xf32>
    %5 = vector.broadcast %4 : vector<16x1xf32> to vector<16x16xf32>
    %6 = arith.addf %3, %5 : vector<16x16xf32>
    %c0_5 = arith.constant 0 : index
    %c0_6 = arith.constant 0 : index
    %7 = vector.load %arg4[%c0_5, %c0_6] : memref<1x16xf32, #tpu.memory_space<vmem>>, vector<1x16xf32>
    %8 = vector.broadcast %7 : vector<1x16xf32> to vector<16x16xf32>
    %9 = arith.mulf %6, %8 : vector<16x16xf32>
    %cst_7 = arith.constant 0.000000e+00 : bf16
    %10 = vector.broadcast %cst_7 : bf16 to vector<16x128xbf16>
    %c0_8 = arith.constant 0 : index
    %c0_9 = arith.constant 0 : index
    %c0_10 = arith.constant 0 : index
    %11 = vector.load %arg5[%c0_8, %c0_9, %c0_10] : memref<1x16x272xbf16, #tpu.memory_space<vmem>>, vector<1x16x128xbf16>
    %12 = vector.shape_cast %11 : vector<1x16x128xbf16> to vector<16x128xbf16>
    %13 = vector.shape_cast %10 : vector<16x128xbf16> to vector<1x16x128xbf16>
    tpu.vector_store %arg5[%c0_8, %c0_9, %c0_10], %13 {strides = array<i32>} : memref<1x16x272xbf16, #tpu.memory_space<vmem>>, vector<1x16x128xbf16>,
    %14 = arith.truncf %9 : vector<16x16xf32> to vector<16x16xbf16>
    %c0_11 = arith.constant 0 : index
    %c0_12 = arith.constant 0 : index
    %c128_13 = arith.constant 128 : index
    %15 = vector.load %arg5[%c0_11, %c0_12, %c128_13] : memref<1x16x272xbf16, #tpu.memory_space<vmem>>, vector<1x16x16xbf16>
    %16 = vector.shape_cast %15 : vector<1x16x16xbf16> to vector<16x16xbf16>
    %17 = vector.shape_cast %14 : vector<16x16xbf16> to vector<1x16x16xbf16>
    tpu.vector_store %arg5[%c0_11, %c0_12, %c128_13], %17 {strides = array<i32>} : memref<1x16x272xbf16, #tpu.memory_space<vmem>>, vector<1x16x16xbf16>,
    %cst_14 = arith.constant 0.000000e+00 : bf16
    %18 = vector.broadcast %cst_14 : bf16 to vector<16x128xbf16>
    %c0_15 = arith.constant 0 : index
    %c0_16 = arith.constant 0 : index
    %c144 = arith.constant 144 : index
    %19 = vector.load %arg5[%c0_15, %c0_16, %c144] : memref<1x16x272xbf16, #tpu.memory_space<vmem>>, vector<1x16x128xbf16>
    %20 = vector.shape_cast %19 : vector<1x16x128xbf16> to vector<16x128xbf16>
    %21 = vector.shape_cast %18 : vector<16x128xbf16> to vector<1x16x128xbf16>
    tpu.vector_store %arg5[%c0_15, %c0_16, %c144], %21 {strides = array<i32>} : memref<1x16x272xbf16, #tpu.memory_space<vmem>>, vector<1x16x128xbf16>,
    return
  }
  func.func @transform_0(%arg0: i32) -> (i32, i32, i32) {
    %c0_i32 = arith.constant 0 : i32
    %c0_i32_0 = arith.constant 0 : i32
    %c0_i32_1 = arith.constant 0 : i32
    return %arg0, %c0_i32, %c0_i32_0 : i32, i32, i32
  }
  func.func @transform_1(%arg0: i32) -> (i32, i32) {
    %c0_i32 = arith.constant 0 : i32
    %c0_i32_0 = arith.constant 0 : i32
    %c0_i32_1 = arith.constant 0 : i32
    return %c0_i32, %c0_i32_0 : i32, i32
  }
  func.func @transform_2(%arg0: i32) -> (i32, i32) {
    %c0_i32 = arith.constant 0 : i32
    %c0_i32_0 = arith.constant 0 : i32
    %c0_i32_1 = arith.constant 0 : i32
    return %c0_i32, %c0_i32_0 : i32, i32
  }
  func.func @transform_3(%arg0: i32) -> (i32, i32) {
    %c0_i32 = arith.constant 0 : i32
    %c0_i32_0 = arith.constant 0 : i32
    %c0_i32_1 = arith.constant 0 : i32
    return %c0_i32, %c0_i32_0 : i32, i32
  }
  func.func @transform_4(%arg0: i32) -> (i32, i32, i32) {
    %c0_i32 = arith.constant 0 : i32
    %c0_i32_0 = arith.constant 0 : i32
    %c0_i32_1 = arith.constant 0 : i32
    return %arg0, %c0_i32, %c0_i32_0 : i32, i32, i32
  }
}

module attributes {stable_mosaic.version = 11 : i64} {
  func.func @_conv_kernel(%arg0: i32, %arg1: memref<1x64x272xbf16, #tpu.memory_space<vmem>>, %arg2: memref<16x144xbf16, #tpu.memory_space<vmem>>, %arg3: memref<16x1xf32, #tpu.memory_space<vmem>>, %arg4: memref<1x16xf32, #tpu.memory_space<vmem>>, %arg5: memref<1x16x272xbf16, #tpu.memory_space<vmem>>) attributes {dimension_semantics = [#tpu.dimension_semantics<parallel>], iteration_bounds = array<i64: 2>, scalar_prefetch = 0 : i64, scratch_operands = 0 : i64, tpu.core_type = #tpu.core_type<tc>, window_params = [{transform_indices = @transform_0, window_bounds = array<i64: 1, 64, 272>}, {pipeline_mode = #tpu.pipeline_mode<synchronous>, transform_indices = @transform_1, window_bounds = array<i64: 16, 144>}, {pipeline_mode = #tpu.pipeline_mode<synchronous>, transform_indices = @transform_2, window_bounds = array<i64: 16, 1>}, {pipeline_mode = #tpu.pipeline_mode<synchronous>, transform_indices = @transform_3, window_bounds = array<i64: 1, 16>}, {transform_indices = @transform_4, window_bounds = array<i64: 1, 16, 272>}]} {
    %c0 = arith.constant 0 : index
    %c0_0 = arith.constant 0 : index
    %c123 = arith.constant 123 : index
    %0 = vector.load %arg1[%c0, %c0_0, %c123] : memref<1x64x272xbf16, #tpu.memory_space<vmem>>, vector<1x16x16xbf16>
    %1 = vector.shape_cast %0 : vector<1x16x16xbf16> to vector<16x16xbf16>
    %c0_1 = arith.constant 0 : index
    %c16 = arith.constant 16 : index
    %c123_2 = arith.constant 123 : index
    %2 = vector.load %arg1[%c0_1, %c16, %c123_2] : memref<1x64x272xbf16, #tpu.memory_space<vmem>>, vector<1x16x16xbf16>
    %3 = vector.shape_cast %2 : vector<1x16x16xbf16> to vector<16x16xbf16>
    %c0_3 = arith.constant 0 : index
    %c0_4 = arith.constant 0 : index
    %c124 = arith.constant 124 : index
    %4 = vector.load %arg1[%c0_3, %c0_4, %c124] : memref<1x64x272xbf16, #tpu.memory_space<vmem>>, vector<1x16x16xbf16>
    %5 = vector.shape_cast %4 : vector<1x16x16xbf16> to vector<16x16xbf16>
    %c0_5 = arith.constant 0 : index
    %c32 = arith.constant 32 : index
    %c123_6 = arith.constant 123 : index
    %6 = vector.load %arg1[%c0_5, %c32, %c123_6] : memref<1x64x272xbf16, #tpu.memory_space<vmem>>, vector<1x16x16xbf16>
    %7 = vector.shape_cast %6 : vector<1x16x16xbf16> to vector<16x16xbf16>
    %c0_7 = arith.constant 0 : index
    %c48 = arith.constant 48 : index
    %c123_8 = arith.constant 123 : index
    %8 = vector.load %arg1[%c0_7, %c48, %c123_8] : memref<1x64x272xbf16, #tpu.memory_space<vmem>>, vector<1x16x16xbf16>
    %9 = vector.shape_cast %8 : vector<1x16x16xbf16> to vector<16x16xbf16>
    %c0_9 = arith.constant 0 : index
    %c32_10 = arith.constant 32 : index
    %c124_11 = arith.constant 124 : index
    %10 = vector.load %arg1[%c0_9, %c32_10, %c124_11] : memref<1x64x272xbf16, #tpu.memory_space<vmem>>, vector<1x16x16xbf16>
    %11 = vector.shape_cast %10 : vector<1x16x16xbf16> to vector<16x16xbf16>
    %c0_12 = arith.constant 0 : index
    %c0_13 = arith.constant 0 : index
    %c127 = arith.constant 127 : index
    %12 = vector.load %arg1[%c0_12, %c0_13, %c127] : memref<1x64x272xbf16, #tpu.memory_space<vmem>>, vector<1x16x16xbf16>
    %13 = vector.shape_cast %12 : vector<1x16x16xbf16> to vector<16x16xbf16>
    %c0_14 = arith.constant 0 : index
    %c16_15 = arith.constant 16 : index
    %c127_16 = arith.constant 127 : index
    %14 = vector.load %arg1[%c0_14, %c16_15, %c127_16] : memref<1x64x272xbf16, #tpu.memory_space<vmem>>, vector<1x16x16xbf16>
    %15 = vector.shape_cast %14 : vector<1x16x16xbf16> to vector<16x16xbf16>
    %c0_17 = arith.constant 0 : index
    %c0_18 = arith.constant 0 : index
    %c128 = arith.constant 128 : index
    %16 = vector.load %arg1[%c0_17, %c0_18, %c128] : memref<1x64x272xbf16, #tpu.memory_space<vmem>>, vector<1x16x16xbf16>
    %17 = vector.shape_cast %16 : vector<1x16x16xbf16> to vector<16x16xbf16>
    %18 = tpu.concatenate %1, %3, %5, %7, %9, %11, %13, %15, %17 in 0 : vector<16x16xbf16>, vector<16x16xbf16>, vector<16x16xbf16>, vector<16x16xbf16>, vector<16x16xbf16>, vector<16x16xbf16>, vector<16x16xbf16>, vector<16x16xbf16>, vector<16x16xbf16> -> vector<144x16xbf16>
    %c0_19 = arith.constant 0 : index
    %c0_20 = arith.constant 0 : index
    %19 = vector.load %arg2[%c0_19, %c0_20] : memref<16x144xbf16, #tpu.memory_space<vmem>>, vector<16x144xbf16>
    %cst = arith.constant dense<0.000000e+00> : vector<16x16xf32>
    %20 = tpu.matmul %19, %18, %cst {dimension_numbers = #tpu.dot_dimension_numbers<[1], [0], [0], [1], [0, 0, 1, 1], [], []>} : vector<16x144xbf16>, vector<144x16xbf16>, vector<16x16xf32> -> vector<16x16xf32>
    %c0_21 = arith.constant 0 : index
    %c0_22 = arith.constant 0 : index
    %21 = vector.load %arg3[%c0_21, %c0_22] : memref<16x1xf32, #tpu.memory_space<vmem>>, vector<16x1xf32>
    %22 = vector.broadcast %21 : vector<16x1xf32> to vector<16x16xf32>
    %23 = arith.addf %20, %22 : vector<16x16xf32>
    %c0_23 = arith.constant 0 : index
    %c0_24 = arith.constant 0 : index
    %24 = vector.load %arg4[%c0_23, %c0_24] : memref<1x16xf32, #tpu.memory_space<vmem>>, vector<1x16xf32>
    %cst_25 = arith.constant 0.000000e+00 : f32
    %25 = vector.broadcast %cst_25 : f32 to vector<16x16xf32>
    %26 = arith.maximumf %23, %25 : vector<16x16xf32>
    %27 = vector.broadcast %24 : vector<1x16xf32> to vector<16x16xf32>
    %28 = arith.mulf %26, %27 : vector<16x16xf32>
    %cst_26 = arith.constant 0.000000e+00 : bf16
    %29 = vector.broadcast %cst_26 : bf16 to vector<16x128xbf16>
    %c0_27 = arith.constant 0 : index
    %c0_28 = arith.constant 0 : index
    %c0_29 = arith.constant 0 : index
    %30 = vector.load %arg5[%c0_27, %c0_28, %c0_29] : memref<1x16x272xbf16, #tpu.memory_space<vmem>>, vector<1x16x128xbf16>
    %31 = vector.shape_cast %30 : vector<1x16x128xbf16> to vector<16x128xbf16>
    %32 = vector.shape_cast %29 : vector<16x128xbf16> to vector<1x16x128xbf16>
    tpu.vector_store %arg5[%c0_27, %c0_28, %c0_29], %32 {strides = array<i32>} : memref<1x16x272xbf16, #tpu.memory_space<vmem>>, vector<1x16x128xbf16>,
    %33 = arith.truncf %28 : vector<16x16xf32> to vector<16x16xbf16>
    %c0_30 = arith.constant 0 : index
    %c0_31 = arith.constant 0 : index
    %c128_32 = arith.constant 128 : index
    %34 = vector.load %arg5[%c0_30, %c0_31, %c128_32] : memref<1x16x272xbf16, #tpu.memory_space<vmem>>, vector<1x16x16xbf16>
    %35 = vector.shape_cast %34 : vector<1x16x16xbf16> to vector<16x16xbf16>
    %36 = vector.shape_cast %33 : vector<16x16xbf16> to vector<1x16x16xbf16>
    tpu.vector_store %arg5[%c0_30, %c0_31, %c128_32], %36 {strides = array<i32>} : memref<1x16x272xbf16, #tpu.memory_space<vmem>>, vector<1x16x16xbf16>,
    %cst_33 = arith.constant 0.000000e+00 : bf16
    %37 = vector.broadcast %cst_33 : bf16 to vector<16x128xbf16>
    %c0_34 = arith.constant 0 : index
    %c0_35 = arith.constant 0 : index
    %c144 = arith.constant 144 : index
    %38 = vector.load %arg5[%c0_34, %c0_35, %c144] : memref<1x16x272xbf16, #tpu.memory_space<vmem>>, vector<1x16x128xbf16>
    %39 = vector.shape_cast %38 : vector<1x16x128xbf16> to vector<16x128xbf16>
    %40 = vector.shape_cast %37 : vector<16x128xbf16> to vector<1x16x128xbf16>
    tpu.vector_store %arg5[%c0_34, %c0_35, %c144], %40 {strides = array<i32>} : memref<1x16x272xbf16, #tpu.memory_space<vmem>>, vector<1x16x128xbf16>,
    return
  }
  func.func @transform_0(%arg0: i32) -> (i32, i32, i32) {
    %c0_i32 = arith.constant 0 : i32
    %c0_i32_0 = arith.constant 0 : i32
    %c0_i32_1 = arith.constant 0 : i32
    return %arg0, %c0_i32, %c0_i32_0 : i32, i32, i32
  }
  func.func @transform_1(%arg0: i32) -> (i32, i32) {
    %c0_i32 = arith.constant 0 : i32
    %c0_i32_0 = arith.constant 0 : i32
    %c0_i32_1 = arith.constant 0 : i32
    return %c0_i32, %c0_i32_0 : i32, i32
  }
  func.func @transform_2(%arg0: i32) -> (i32, i32) {
    %c0_i32 = arith.constant 0 : i32
    %c0_i32_0 = arith.constant 0 : i32
    %c0_i32_1 = arith.constant 0 : i32
    return %c0_i32, %c0_i32_0 : i32, i32
  }
  func.func @transform_3(%arg0: i32) -> (i32, i32) {
    %c0_i32 = arith.constant 0 : i32
    %c0_i32_0 = arith.constant 0 : i32
    %c0_i32_1 = arith.constant 0 : i32
    return %c0_i32, %c0_i32_0 : i32, i32
  }
  func.func @transform_4(%arg0: i32) -> (i32, i32, i32) {
    %c0_i32 = arith.constant 0 : i32
    %c0_i32_0 = arith.constant 0 : i32
    %c0_i32_1 = arith.constant 0 : i32
    return %arg0, %c0_i32, %c0_i32_0 : i32, i32, i32
  }
}

module attributes {stable_mosaic.version = 11 : i64} {
  func.func @_conv_kernel(%arg0: i32, %arg1: memref<1x16x272xbf16, #tpu.memory_space<vmem>>, %arg2: memref<16x144xbf16, #tpu.memory_space<vmem>>, %arg3: memref<16x1xf32, #tpu.memory_space<vmem>>, %arg4: memref<16x1xf32, #tpu.memory_space<vmem>>, %arg5: memref<16x1xf32, #tpu.memory_space<vmem>>, %arg6: memref<1x16xf32, #tpu.memory_space<vmem>>, %arg7: memref<1x16x272xbf16, #tpu.memory_space<vmem>>) attributes {dimension_semantics = [#tpu.dimension_semantics<parallel>], iteration_bounds = array<i64: 2>, scalar_prefetch = 0 : i64, scratch_operands = 0 : i64, tpu.core_type = #tpu.core_type<tc>, window_params = [{transform_indices = @transform_0, window_bounds = array<i64: 1, 16, 272>}, {pipeline_mode = #tpu.pipeline_mode<synchronous>, transform_indices = @transform_1, window_bounds = array<i64: 16, 144>}, {pipeline_mode = #tpu.pipeline_mode<synchronous>, transform_indices = @transform_2, window_bounds = array<i64: 16, 1>}, {pipeline_mode = #tpu.pipeline_mode<synchronous>, transform_indices = @transform_3, window_bounds = array<i64: 16, 1>}, {pipeline_mode = #tpu.pipeline_mode<synchronous>, transform_indices = @transform_4, window_bounds = array<i64: 16, 1>}, {pipeline_mode = #tpu.pipeline_mode<synchronous>, transform_indices = @transform_5, window_bounds = array<i64: 1, 16>}, {transform_indices = @transform_6, window_bounds = array<i64: 1, 16, 272>}]} {
    %c0 = arith.constant 0 : index
    %c0_0 = arith.constant 0 : index
    %c123 = arith.constant 123 : index
    %0 = vector.load %arg1[%c0, %c0_0, %c123] : memref<1x16x272xbf16, #tpu.memory_space<vmem>>, vector<1x16x16xbf16>
    %1 = vector.shape_cast %0 : vector<1x16x16xbf16> to vector<16x16xbf16>
    %c0_1 = arith.constant 0 : index
    %c0_2 = arith.constant 0 : index
    %c124 = arith.constant 124 : index
    %2 = vector.load %arg1[%c0_1, %c0_2, %c124] : memref<1x16x272xbf16, #tpu.memory_space<vmem>>, vector<1x16x16xbf16>
    %3 = vector.shape_cast %2 : vector<1x16x16xbf16> to vector<16x16xbf16>
    %c0_3 = arith.constant 0 : index
    %c0_4 = arith.constant 0 : index
    %c125 = arith.constant 125 : index
    %4 = vector.load %arg1[%c0_3, %c0_4, %c125] : memref<1x16x272xbf16, #tpu.memory_space<vmem>>, vector<1x16x16xbf16>
    %5 = vector.shape_cast %4 : vector<1x16x16xbf16> to vector<16x16xbf16>
    %c0_5 = arith.constant 0 : index
    %c0_6 = arith.constant 0 : index
    %c127 = arith.constant 127 : index
    %6 = vector.load %arg1[%c0_5, %c0_6, %c127] : memref<1x16x272xbf16, #tpu.memory_space<vmem>>, vector<1x16x16xbf16>
    %7 = vector.shape_cast %6 : vector<1x16x16xbf16> to vector<16x16xbf16>
    %c0_7 = arith.constant 0 : index
    %c0_8 = arith.constant 0 : index
    %c128 = arith.constant 128 : index
    %8 = vector.load %arg1[%c0_7, %c0_8, %c128] : memref<1x16x272xbf16, #tpu.memory_space<vmem>>, vector<1x16x16xbf16>
    %9 = vector.shape_cast %8 : vector<1x16x16xbf16> to vector<16x16xbf16>
    %c0_9 = arith.constant 0 : index
    %c0_10 = arith.constant 0 : index
    %c129 = arith.constant 129 : index
    %10 = vector.load %arg1[%c0_9, %c0_10, %c129] : memref<1x16x272xbf16, #tpu.memory_space<vmem>>, vector<1x16x16xbf16>
    %11 = vector.shape_cast %10 : vector<1x16x16xbf16> to vector<16x16xbf16>
    %c0_11 = arith.constant 0 : index
    %c0_12 = arith.constant 0 : index
    %c131 = arith.constant 131 : index
    %12 = vector.load %arg1[%c0_11, %c0_12, %c131] : memref<1x16x272xbf16, #tpu.memory_space<vmem>>, vector<1x16x16xbf16>
    %13 = vector.shape_cast %12 : vector<1x16x16xbf16> to vector<16x16xbf16>
    %c0_13 = arith.constant 0 : index
    %c0_14 = arith.constant 0 : index
    %c132 = arith.constant 132 : index
    %14 = vector.load %arg1[%c0_13, %c0_14, %c132] : memref<1x16x272xbf16, #tpu.memory_space<vmem>>, vector<1x16x16xbf16>
    %15 = vector.shape_cast %14 : vector<1x16x16xbf16> to vector<16x16xbf16>
    %c0_15 = arith.constant 0 : index
    %c0_16 = arith.constant 0 : index
    %c133 = arith.constant 133 : index
    %16 = vector.load %arg1[%c0_15, %c0_16, %c133] : memref<1x16x272xbf16, #tpu.memory_space<vmem>>, vector<1x16x16xbf16>
    %17 = vector.shape_cast %16 : vector<1x16x16xbf16> to vector<16x16xbf16>
    %18 = tpu.concatenate %1, %3, %5, %7, %9, %11, %13, %15, %17 in 0 : vector<16x16xbf16>, vector<16x16xbf16>, vector<16x16xbf16>, vector<16x16xbf16>, vector<16x16xbf16>, vector<16x16xbf16>, vector<16x16xbf16>, vector<16x16xbf16>, vector<16x16xbf16> -> vector<144x16xbf16>
    %c0_17 = arith.constant 0 : index
    %c0_18 = arith.constant 0 : index
    %19 = vector.load %arg2[%c0_17, %c0_18] : memref<16x144xbf16, #tpu.memory_space<vmem>>, vector<16x144xbf16>
    %cst = arith.constant dense<0.000000e+00> : vector<16x16xf32>
    %20 = tpu.matmul %19, %18, %cst {dimension_numbers = #tpu.dot_dimension_numbers<[1], [0], [0], [1], [0, 0, 1, 1], [], []>} : vector<16x144xbf16>, vector<144x16xbf16>, vector<16x16xf32> -> vector<16x16xf32>
    %c0_19 = arith.constant 0 : index
    %c0_20 = arith.constant 0 : index
    %21 = vector.load %arg3[%c0_19, %c0_20] : memref<16x1xf32, #tpu.memory_space<vmem>>, vector<16x1xf32>
    %22 = vector.broadcast %21 : vector<16x1xf32> to vector<16x16xf32>
    %23 = arith.addf %20, %22 : vector<16x16xf32>
    %c0_21 = arith.constant 0 : index
    %c0_22 = arith.constant 0 : index
    %24 = vector.load %arg6[%c0_21, %c0_22] : memref<1x16xf32, #tpu.memory_space<vmem>>, vector<1x16xf32>
    %25 = vector.broadcast %24 : vector<1x16xf32> to vector<16x16xf32>
    %26 = arith.mulf %23, %25 : vector<16x16xf32>
    %cst_23 = arith.constant dense<0.000000e+00> : vector<16xf32>
    %27 = vector.multi_reduction <add>, %26, %cst_23 [1] : vector<16x16xf32> to vector<16xf32>
    %28 = vector.shape_cast %27 : vector<16xf32> to vector<16x1xf32>
    %29 = arith.mulf %26, %23 : vector<16x16xf32>
    %cst_24 = arith.constant dense<0.000000e+00> : vector<16xf32>
    %30 = vector.multi_reduction <add>, %29, %cst_24 [1] : vector<16x16xf32> to vector<16xf32>
    %31 = vector.shape_cast %30 : vector<16xf32> to vector<16x1xf32>
    %32 = tpu.iota {dimensions = array<i32: 0>} : vector<16x1xi32>
    %cst_25 = arith.constant 0.000000e+00 : f32
    %33 = vector.broadcast %cst_25 : f32 to vector<16x1xf32>
    %cst_26 = arith.constant 0.000000e+00 : f32
    %34 = vector.broadcast %cst_26 : f32 to vector<16x1xf32>
    %c0_i32 = arith.constant 0 : i32
    %35 = vector.broadcast %c0_i32 : i32 to vector<16x1xi32>
    %36 = arith.cmpi sge, %32, %35 : vector<16x1xi32>
    %c4_i32 = arith.constant 4 : i32
    %37 = vector.broadcast %c4_i32 : i32 to vector<16x1xi32>
    %38 = arith.cmpi slt, %32, %37 : vector<16x1xi32>
    %39 = arith.andi %36, %38 : vector<16x1xi1>
    %40 = arith.extui %39 : vector<16x1xi1> to vector<16x1xi32>
    %41 = arith.sitofp %40 : vector<16x1xi32> to vector<16x1xf32>
    %42 = arith.mulf %28, %41 : vector<16x1xf32>
    %cst_27 = arith.constant dense<0.000000e+00> : vector<1xf32>
    %43 = vector.multi_reduction <add>, %42, %cst_27 [0] : vector<16x1xf32> to vector<1xf32>
    %44 = vector.shape_cast %43 : vector<1xf32> to vector<1x1xf32>
    %45 = arith.mulf %31, %41 : vector<16x1xf32>
    %cst_28 = arith.constant dense<0.000000e+00> : vector<1xf32>
    %46 = vector.multi_reduction <add>, %45, %cst_28 [0] : vector<16x1xf32> to vector<1xf32>
    %47 = vector.shape_cast %46 : vector<1xf32> to vector<1x1xf32>
    %cst_29 = arith.constant 6.250000e-02 : f32
    %48 = vector.broadcast %cst_29 : f32 to vector<1x1xf32>
    %49 = arith.mulf %44, %48 : vector<1x1xf32>
    %cst_30 = arith.constant 6.250000e-02 : f32
    %50 = vector.broadcast %cst_30 : f32 to vector<1x1xf32>
    %51 = arith.mulf %47, %50 : vector<1x1xf32>
    %52 = arith.mulf %49, %49 : vector<1x1xf32>
    %53 = arith.subf %51, %52 : vector<1x1xf32>
    %cst_31 = arith.constant 0.000000e+00 : f32
    %54 = vector.broadcast %cst_31 : f32 to vector<1x1xf32>
    %55 = arith.maximumf %53, %54 : vector<1x1xf32>
    %cst_32 = arith.constant 9.99999974E-6 : f32
    %56 = vector.broadcast %cst_32 : f32 to vector<1x1xf32>
    %57 = arith.addf %55, %56 : vector<1x1xf32>
    %58 = math.rsqrt %57 : vector<1x1xf32>
    %59 = vector.broadcast %49 : vector<1x1xf32> to vector<16x1xf32>
    %60 = arith.mulf %41, %59 : vector<16x1xf32>
    %61 = arith.addf %33, %60 : vector<16x1xf32>
    %62 = vector.broadcast %58 : vector<1x1xf32> to vector<16x1xf32>
    %63 = arith.mulf %41, %62 : vector<16x1xf32>
    %64 = arith.addf %34, %63 : vector<16x1xf32>
    %c4_i32_33 = arith.constant 4 : i32
    %65 = vector.broadcast %c4_i32_33 : i32 to vector<16x1xi32>
    %66 = arith.cmpi sge, %32, %65 : vector<16x1xi32>
    %c8_i32 = arith.constant 8 : i32
    %67 = vector.broadcast %c8_i32 : i32 to vector<16x1xi32>
    %68 = arith.cmpi slt, %32, %67 : vector<16x1xi32>
    %69 = arith.andi %66, %68 : vector<16x1xi1>
    %70 = arith.extui %69 : vector<16x1xi1> to vector<16x1xi32>
    %71 = arith.sitofp %70 : vector<16x1xi32> to vector<16x1xf32>
    %72 = arith.mulf %28, %71 : vector<16x1xf32>
    %cst_34 = arith.constant dense<0.000000e+00> : vector<1xf32>
    %73 = vector.multi_reduction <add>, %72, %cst_34 [0] : vector<16x1xf32> to vector<1xf32>
    %74 = vector.shape_cast %73 : vector<1xf32> to vector<1x1xf32>
    %75 = arith.mulf %31, %71 : vector<16x1xf32>
    %cst_35 = arith.constant dense<0.000000e+00> : vector<1xf32>
    %76 = vector.multi_reduction <add>, %75, %cst_35 [0] : vector<16x1xf32> to vector<1xf32>
    %77 = vector.shape_cast %76 : vector<1xf32> to vector<1x1xf32>
    %cst_36 = arith.constant 6.250000e-02 : f32
    %78 = vector.broadcast %cst_36 : f32 to vector<1x1xf32>
    %79 = arith.mulf %74, %78 : vector<1x1xf32>
    %cst_37 = arith.constant 6.250000e-02 : f32
    %80 = vector.broadcast %cst_37 : f32 to vector<1x1xf32>
    %81 = arith.mulf %77, %80 : vector<1x1xf32>
    %82 = arith.mulf %79, %79 : vector<1x1xf32>
    %83 = arith.subf %81, %82 : vector<1x1xf32>
    %cst_38 = arith.constant 0.000000e+00 : f32
    %84 = vector.broadcast %cst_38 : f32 to vector<1x1xf32>
    %85 = arith.maximumf %83, %84 : vector<1x1xf32>
    %cst_39 = arith.constant 9.99999974E-6 : f32
    %86 = vector.broadcast %cst_39 : f32 to vector<1x1xf32>
    %87 = arith.addf %85, %86 : vector<1x1xf32>
    %88 = math.rsqrt %87 : vector<1x1xf32>
    %89 = vector.broadcast %79 : vector<1x1xf32> to vector<16x1xf32>
    %90 = arith.mulf %71, %89 : vector<16x1xf32>
    %91 = arith.addf %61, %90 : vector<16x1xf32>
    %92 = vector.broadcast %88 : vector<1x1xf32> to vector<16x1xf32>
    %93 = arith.mulf %71, %92 : vector<16x1xf32>
    %94 = arith.addf %64, %93 : vector<16x1xf32>
    %c8_i32_40 = arith.constant 8 : i32
    %95 = vector.broadcast %c8_i32_40 : i32 to vector<16x1xi32>
    %96 = arith.cmpi sge, %32, %95 : vector<16x1xi32>
    %c12_i32 = arith.constant 12 : i32
    %97 = vector.broadcast %c12_i32 : i32 to vector<16x1xi32>
    %98 = arith.cmpi slt, %32, %97 : vector<16x1xi32>
    %99 = arith.andi %96, %98 : vector<16x1xi1>
    %100 = arith.extui %99 : vector<16x1xi1> to vector<16x1xi32>
    %101 = arith.sitofp %100 : vector<16x1xi32> to vector<16x1xf32>
    %102 = arith.mulf %28, %101 : vector<16x1xf32>
    %cst_41 = arith.constant dense<0.000000e+00> : vector<1xf32>
    %103 = vector.multi_reduction <add>, %102, %cst_41 [0] : vector<16x1xf32> to vector<1xf32>
    %104 = vector.shape_cast %103 : vector<1xf32> to vector<1x1xf32>
    %105 = arith.mulf %31, %101 : vector<16x1xf32>
    %cst_42 = arith.constant dense<0.000000e+00> : vector<1xf32>
    %106 = vector.multi_reduction <add>, %105, %cst_42 [0] : vector<16x1xf32> to vector<1xf32>
    %107 = vector.shape_cast %106 : vector<1xf32> to vector<1x1xf32>
    %cst_43 = arith.constant 6.250000e-02 : f32
    %108 = vector.broadcast %cst_43 : f32 to vector<1x1xf32>
    %109 = arith.mulf %104, %108 : vector<1x1xf32>
    %cst_44 = arith.constant 6.250000e-02 : f32
    %110 = vector.broadcast %cst_44 : f32 to vector<1x1xf32>
    %111 = arith.mulf %107, %110 : vector<1x1xf32>
    %112 = arith.mulf %109, %109 : vector<1x1xf32>
    %113 = arith.subf %111, %112 : vector<1x1xf32>
    %cst_45 = arith.constant 0.000000e+00 : f32
    %114 = vector.broadcast %cst_45 : f32 to vector<1x1xf32>
    %115 = arith.maximumf %113, %114 : vector<1x1xf32>
    %cst_46 = arith.constant 9.99999974E-6 : f32
    %116 = vector.broadcast %cst_46 : f32 to vector<1x1xf32>
    %117 = arith.addf %115, %116 : vector<1x1xf32>
    %118 = math.rsqrt %117 : vector<1x1xf32>
    %119 = vector.broadcast %109 : vector<1x1xf32> to vector<16x1xf32>
    %120 = arith.mulf %101, %119 : vector<16x1xf32>
    %121 = arith.addf %91, %120 : vector<16x1xf32>
    %122 = vector.broadcast %118 : vector<1x1xf32> to vector<16x1xf32>
    %123 = arith.mulf %101, %122 : vector<16x1xf32>
    %124 = arith.addf %94, %123 : vector<16x1xf32>
    %c12_i32_47 = arith.constant 12 : i32
    %125 = vector.broadcast %c12_i32_47 : i32 to vector<16x1xi32>
    %126 = arith.cmpi sge, %32, %125 : vector<16x1xi32>
    %c16_i32 = arith.constant 16 : i32
    %127 = vector.broadcast %c16_i32 : i32 to vector<16x1xi32>
    %128 = arith.cmpi slt, %32, %127 : vector<16x1xi32>
    %129 = arith.andi %126, %128 : vector<16x1xi1>
    %130 = arith.extui %129 : vector<16x1xi1> to vector<16x1xi32>
    %131 = arith.sitofp %130 : vector<16x1xi32> to vector<16x1xf32>
    %132 = arith.mulf %28, %131 : vector<16x1xf32>
    %cst_48 = arith.constant dense<0.000000e+00> : vector<1xf32>
    %133 = vector.multi_reduction <add>, %132, %cst_48 [0] : vector<16x1xf32> to vector<1xf32>
    %134 = vector.shape_cast %133 : vector<1xf32> to vector<1x1xf32>
    %135 = arith.mulf %31, %131 : vector<16x1xf32>
    %cst_49 = arith.constant dense<0.000000e+00> : vector<1xf32>
    %136 = vector.multi_reduction <add>, %135, %cst_49 [0] : vector<16x1xf32> to vector<1xf32>
    %137 = vector.shape_cast %136 : vector<1xf32> to vector<1x1xf32>
    %cst_50 = arith.constant 6.250000e-02 : f32
    %138 = vector.broadcast %cst_50 : f32 to vector<1x1xf32>
    %139 = arith.mulf %134, %138 : vector<1x1xf32>
    %cst_51 = arith.constant 6.250000e-02 : f32
    %140 = vector.broadcast %cst_51 : f32 to vector<1x1xf32>
    %141 = arith.mulf %137, %140 : vector<1x1xf32>
    %142 = arith.mulf %139, %139 : vector<1x1xf32>
    %143 = arith.subf %141, %142 : vector<1x1xf32>
    %cst_52 = arith.constant 0.000000e+00 : f32
    %144 = vector.broadcast %cst_52 : f32 to vector<1x1xf32>
    %145 = arith.maximumf %143, %144 : vector<1x1xf32>
    %cst_53 = arith.constant 9.99999974E-6 : f32
    %146 = vector.broadcast %cst_53 : f32 to vector<1x1xf32>
    %147 = arith.addf %145, %146 : vector<1x1xf32>
    %148 = math.rsqrt %147 : vector<1x1xf32>
    %149 = vector.broadcast %139 : vector<1x1xf32> to vector<16x1xf32>
    %150 = arith.mulf %131, %149 : vector<16x1xf32>
    %151 = arith.addf %121, %150 : vector<16x1xf32>
    %152 = vector.broadcast %148 : vector<1x1xf32> to vector<16x1xf32>
    %153 = arith.mulf %131, %152 : vector<16x1xf32>
    %154 = arith.addf %124, %153 : vector<16x1xf32>
    %155 = vector.broadcast %151 : vector<16x1xf32> to vector<16x16xf32>
    %156 = arith.subf %23, %155 : vector<16x16xf32>
    %c0_54 = arith.constant 0 : index
    %c0_55 = arith.constant 0 : index
    %157 = vector.load %arg4[%c0_54, %c0_55] : memref<16x1xf32, #tpu.memory_space<vmem>>, vector<16x1xf32>
    %158 = arith.mulf %154, %157 : vector<16x1xf32>
    %159 = vector.broadcast %158 : vector<16x1xf32> to vector<16x16xf32>
    %160 = arith.mulf %156, %159 : vector<16x16xf32>
    %c0_56 = arith.constant 0 : index
    %c0_57 = arith.constant 0 : index
    %161 = vector.load %arg5[%c0_56, %c0_57] : memref<16x1xf32, #tpu.memory_space<vmem>>, vector<16x1xf32>
    %162 = vector.broadcast %161 : vector<16x1xf32> to vector<16x16xf32>
    %163 = arith.addf %160, %162 : vector<16x16xf32>
    %cst_58 = arith.constant 0.000000e+00 : f32
    %164 = vector.broadcast %cst_58 : f32 to vector<16x16xf32>
    %165 = arith.maximumf %163, %164 : vector<16x16xf32>
    %166 = vector.broadcast %24 : vector<1x16xf32> to vector<16x16xf32>
    %167 = arith.mulf %165, %166 : vector<16x16xf32>
    %cst_59 = arith.constant 0.000000e+00 : bf16
    %168 = vector.broadcast %cst_59 : bf16 to vector<16x128xbf16>
    %c0_60 = arith.constant 0 : index
    %c0_61 = arith.constant 0 : index
    %c0_62 = arith.constant 0 : index
    %169 = vector.load %arg7[%c0_60, %c0_61, %c0_62] : memref<1x16x272xbf16, #tpu.memory_space<vmem>>, vector<1x16x128xbf16>
    %170 = vector.shape_cast %169 : vector<1x16x128xbf16> to vector<16x128xbf16>
    %171 = vector.shape_cast %168 : vector<16x128xbf16> to vector<1x16x128xbf16>
    tpu.vector_store %arg7[%c0_60, %c0_61, %c0_62], %171 {strides = array<i32>} : memref<1x16x272xbf16, #tpu.memory_space<vmem>>, vector<1x16x128xbf16>,
    %172 = arith.truncf %167 : vector<16x16xf32> to vector<16x16xbf16>
    %c0_63 = arith.constant 0 : index
    %c0_64 = arith.constant 0 : index
    %c128_65 = arith.constant 128 : index
    %173 = vector.load %arg7[%c0_63, %c0_64, %c128_65] : memref<1x16x272xbf16, #tpu.memory_space<vmem>>, vector<1x16x16xbf16>
    %174 = vector.shape_cast %173 : vector<1x16x16xbf16> to vector<16x16xbf16>
    %175 = vector.shape_cast %172 : vector<16x16xbf16> to vector<1x16x16xbf16>
    tpu.vector_store %arg7[%c0_63, %c0_64, %c128_65], %175 {strides = array<i32>} : memref<1x16x272xbf16, #tpu.memory_space<vmem>>, vector<1x16x16xbf16>,
    %cst_66 = arith.constant 0.000000e+00 : bf16
    %176 = vector.broadcast %cst_66 : bf16 to vector<16x128xbf16>
    %c0_67 = arith.constant 0 : index
    %c0_68 = arith.constant 0 : index
    %c144 = arith.constant 144 : index
    %177 = vector.load %arg7[%c0_67, %c0_68, %c144] : memref<1x16x272xbf16, #tpu.memory_space<vmem>>, vector<1x16x128xbf16>
    %178 = vector.shape_cast %177 : vector<1x16x128xbf16> to vector<16x128xbf16>
    %179 = vector.shape_cast %176 : vector<16x128xbf16> to vector<1x16x128xbf16>
    tpu.vector_store %arg7[%c0_67, %c0_68, %c144], %179 {strides = array<i32>} : memref<1x16x272xbf16, #tpu.memory_space<vmem>>, vector<1x16x128xbf16>,
    return
  }
  func.func @transform_0(%arg0: i32) -> (i32, i32, i32) {
    %c0_i32 = arith.constant 0 : i32
    %c0_i32_0 = arith.constant 0 : i32
    %c0_i32_1 = arith.constant 0 : i32
    return %arg0, %c0_i32, %c0_i32_0 : i32, i32, i32
  }
  func.func @transform_1(%arg0: i32) -> (i32, i32) {
    %c0_i32 = arith.constant 0 : i32
    %c0_i32_0 = arith.constant 0 : i32
    %c0_i32_1 = arith.constant 0 : i32
    return %c0_i32, %c0_i32_0 : i32, i32
  }
  func.func @transform_2(%arg0: i32) -> (i32, i32) {
    %c0_i32 = arith.constant 0 : i32
    %c0_i32_0 = arith.constant 0 : i32
    %c0_i32_1 = arith.constant 0 : i32
    return %c0_i32, %c0_i32_0 : i32, i32
  }
  func.func @transform_3(%arg0: i32) -> (i32, i32) {
    %c0_i32 = arith.constant 0 : i32
    %c0_i32_0 = arith.constant 0 : i32
    %c0_i32_1 = arith.constant 0 : i32
    return %c0_i32, %c0_i32_0 : i32, i32
  }
  func.func @transform_4(%arg0: i32) -> (i32, i32) {
    %c0_i32 = arith.constant 0 : i32
    %c0_i32_0 = arith.constant 0 : i32
    %c0_i32_1 = arith.constant 0 : i32
    return %c0_i32, %c0_i32_0 : i32, i32
  }
  func.func @transform_5(%arg0: i32) -> (i32, i32) {
    %c0_i32 = arith.constant 0 : i32
    %c0_i32_0 = arith.constant 0 : i32
    %c0_i32_1 = arith.constant 0 : i32
    return %c0_i32, %c0_i32_0 : i32, i32
  }
  func.func @transform_6(%arg0: i32) -> (i32, i32, i32) {
    %c0_i32 = arith.constant 0 : i32
    %c0_i32_0 = arith.constant 0 : i32
    %c0_i32_1 = arith.constant 0 : i32
    return %arg0, %c0_i32, %c0_i32_0 : i32, i32, i32
  }
}

module attributes {stable_mosaic.version = 11 : i64} {
  func.func @_conv_kernel(%arg0: i32, %arg1: memref<1x16x292xbf16, #tpu.memory_space<vmem>>, %arg2: memref<16x144xbf16, #tpu.memory_space<vmem>>, %arg3: memref<16x1xf32, #tpu.memory_space<vmem>>, %arg4: memref<16x1xf32, #tpu.memory_space<vmem>>, %arg5: memref<16x1xf32, #tpu.memory_space<vmem>>, %arg6: memref<1x36xf32, #tpu.memory_space<vmem>>, %arg7: memref<1x16x292xbf16, #tpu.memory_space<vmem>>) attributes {dimension_semantics = [#tpu.dimension_semantics<parallel>], iteration_bounds = array<i64: 2>, scalar_prefetch = 0 : i64, scratch_operands = 0 : i64, tpu.core_type = #tpu.core_type<tc>, window_params = [{transform_indices = @transform_0, window_bounds = array<i64: 1, 16, 292>}, {pipeline_mode = #tpu.pipeline_mode<synchronous>, transform_indices = @transform_1, window_bounds = array<i64: 16, 144>}, {pipeline_mode = #tpu.pipeline_mode<synchronous>, transform_indices = @transform_2, window_bounds = array<i64: 16, 1>}, {pipeline_mode = #tpu.pipeline_mode<synchronous>, transform_indices = @transform_3, window_bounds = array<i64: 16, 1>}, {pipeline_mode = #tpu.pipeline_mode<synchronous>, transform_indices = @transform_4, window_bounds = array<i64: 16, 1>}, {pipeline_mode = #tpu.pipeline_mode<synchronous>, transform_indices = @transform_5, window_bounds = array<i64: 1, 36>}, {transform_indices = @transform_6, window_bounds = array<i64: 1, 16, 292>}]} {
    %c0 = arith.constant 0 : index
    %c0_0 = arith.constant 0 : index
    %c121 = arith.constant 121 : index
    %0 = vector.load %arg1[%c0, %c0_0, %c121] : memref<1x16x292xbf16, #tpu.memory_space<vmem>>, vector<1x16x36xbf16>
    %1 = vector.shape_cast %0 : vector<1x16x36xbf16> to vector<16x36xbf16>
    %c0_1 = arith.constant 0 : index
    %c0_2 = arith.constant 0 : index
    %c122 = arith.constant 122 : index
    %2 = vector.load %arg1[%c0_1, %c0_2, %c122] : memref<1x16x292xbf16, #tpu.memory_space<vmem>>, vector<1x16x36xbf16>
    %3 = vector.shape_cast %2 : vector<1x16x36xbf16> to vector<16x36xbf16>
    %c0_3 = arith.constant 0 : index
    %c0_4 = arith.constant 0 : index
    %c123 = arith.constant 123 : index
    %4 = vector.load %arg1[%c0_3, %c0_4, %c123] : memref<1x16x292xbf16, #tpu.memory_space<vmem>>, vector<1x16x36xbf16>
    %5 = vector.shape_cast %4 : vector<1x16x36xbf16> to vector<16x36xbf16>
    %c0_5 = arith.constant 0 : index
    %c0_6 = arith.constant 0 : index
    %c127 = arith.constant 127 : index
    %6 = vector.load %arg1[%c0_5, %c0_6, %c127] : memref<1x16x292xbf16, #tpu.memory_space<vmem>>, vector<1x16x36xbf16>
    %7 = vector.shape_cast %6 : vector<1x16x36xbf16> to vector<16x36xbf16>
    %c0_7 = arith.constant 0 : index
    %c0_8 = arith.constant 0 : index
    %c128 = arith.constant 128 : index
    %8 = vector.load %arg1[%c0_7, %c0_8, %c128] : memref<1x16x292xbf16, #tpu.memory_space<vmem>>, vector<1x16x36xbf16>
    %9 = vector.shape_cast %8 : vector<1x16x36xbf16> to vector<16x36xbf16>
    %c0_9 = arith.constant 0 : index
    %c0_10 = arith.constant 0 : index
    %c129 = arith.constant 129 : index
    %10 = vector.load %arg1[%c0_9, %c0_10, %c129] : memref<1x16x292xbf16, #tpu.memory_space<vmem>>, vector<1x16x36xbf16>
    %11 = vector.shape_cast %10 : vector<1x16x36xbf16> to vector<16x36xbf16>
    %c0_11 = arith.constant 0 : index
    %c0_12 = arith.constant 0 : index
    %c133 = arith.constant 133 : index
    %12 = vector.load %arg1[%c0_11, %c0_12, %c133] : memref<1x16x292xbf16, #tpu.memory_space<vmem>>, vector<1x16x36xbf16>
    %13 = vector.shape_cast %12 : vector<1x16x36xbf16> to vector<16x36xbf16>
    %c0_13 = arith.constant 0 : index
    %c0_14 = arith.constant 0 : index
    %c134 = arith.constant 134 : index
    %14 = vector.load %arg1[%c0_13, %c0_14, %c134] : memref<1x16x292xbf16, #tpu.memory_space<vmem>>, vector<1x16x36xbf16>
    %15 = vector.shape_cast %14 : vector<1x16x36xbf16> to vector<16x36xbf16>
    %c0_15 = arith.constant 0 : index
    %c0_16 = arith.constant 0 : index
    %c135 = arith.constant 135 : index
    %16 = vector.load %arg1[%c0_15, %c0_16, %c135] : memref<1x16x292xbf16, #tpu.memory_space<vmem>>, vector<1x16x36xbf16>
    %17 = vector.shape_cast %16 : vector<1x16x36xbf16> to vector<16x36xbf16>
    %18 = tpu.concatenate %1, %3, %5, %7, %9, %11, %13, %15, %17 in 0 : vector<16x36xbf16>, vector<16x36xbf16>, vector<16x36xbf16>, vector<16x36xbf16>, vector<16x36xbf16>, vector<16x36xbf16>, vector<16x36xbf16>, vector<16x36xbf16>, vector<16x36xbf16> -> vector<144x36xbf16>
    %c0_17 = arith.constant 0 : index
    %c0_18 = arith.constant 0 : index
    %19 = vector.load %arg2[%c0_17, %c0_18] : memref<16x144xbf16, #tpu.memory_space<vmem>>, vector<16x144xbf16>
    %cst = arith.constant dense<0.000000e+00> : vector<16x36xf32>
    %20 = tpu.matmul %19, %18, %cst {dimension_numbers = #tpu.dot_dimension_numbers<[1], [0], [0], [1], [0, 0, 1, 1], [], []>} : vector<16x144xbf16>, vector<144x36xbf16>, vector<16x36xf32> -> vector<16x36xf32>
    %c0_19 = arith.constant 0 : index
    %c0_20 = arith.constant 0 : index
    %21 = vector.load %arg3[%c0_19, %c0_20] : memref<16x1xf32, #tpu.memory_space<vmem>>, vector<16x1xf32>
    %22 = vector.broadcast %21 : vector<16x1xf32> to vector<16x36xf32>
    %23 = arith.addf %20, %22 : vector<16x36xf32>
    %c0_21 = arith.constant 0 : index
    %c0_22 = arith.constant 0 : index
    %24 = vector.load %arg6[%c0_21, %c0_22] : memref<1x36xf32, #tpu.memory_space<vmem>>, vector<1x36xf32>
    %25 = vector.broadcast %24 : vector<1x36xf32> to vector<16x36xf32>
    %26 = arith.mulf %23, %25 : vector<16x36xf32>
    %cst_23 = arith.constant dense<0.000000e+00> : vector<16xf32>
    %27 = vector.multi_reduction <add>, %26, %cst_23 [1] : vector<16x36xf32> to vector<16xf32>
    %28 = vector.shape_cast %27 : vector<16xf32> to vector<16x1xf32>
    %29 = arith.mulf %26, %23 : vector<16x36xf32>
    %cst_24 = arith.constant dense<0.000000e+00> : vector<16xf32>
    %30 = vector.multi_reduction <add>, %29, %cst_24 [1] : vector<16x36xf32> to vector<16xf32>
    %31 = vector.shape_cast %30 : vector<16xf32> to vector<16x1xf32>
    %32 = tpu.iota {dimensions = array<i32: 0>} : vector<16x1xi32>
    %cst_25 = arith.constant 0.000000e+00 : f32
    %33 = vector.broadcast %cst_25 : f32 to vector<16x1xf32>
    %cst_26 = arith.constant 0.000000e+00 : f32
    %34 = vector.broadcast %cst_26 : f32 to vector<16x1xf32>
    %c0_i32 = arith.constant 0 : i32
    %35 = vector.broadcast %c0_i32 : i32 to vector<16x1xi32>
    %36 = arith.cmpi sge, %32, %35 : vector<16x1xi32>
    %c4_i32 = arith.constant 4 : i32
    %37 = vector.broadcast %c4_i32 : i32 to vector<16x1xi32>
    %38 = arith.cmpi slt, %32, %37 : vector<16x1xi32>
    %39 = arith.andi %36, %38 : vector<16x1xi1>
    %40 = arith.extui %39 : vector<16x1xi1> to vector<16x1xi32>
    %41 = arith.sitofp %40 : vector<16x1xi32> to vector<16x1xf32>
    %42 = arith.mulf %28, %41 : vector<16x1xf32>
    %cst_27 = arith.constant dense<0.000000e+00> : vector<1xf32>
    %43 = vector.multi_reduction <add>, %42, %cst_27 [0] : vector<16x1xf32> to vector<1xf32>
    %44 = vector.shape_cast %43 : vector<1xf32> to vector<1x1xf32>
    %45 = arith.mulf %31, %41 : vector<16x1xf32>
    %cst_28 = arith.constant dense<0.000000e+00> : vector<1xf32>
    %46 = vector.multi_reduction <add>, %45, %cst_28 [0] : vector<16x1xf32> to vector<1xf32>
    %47 = vector.shape_cast %46 : vector<1xf32> to vector<1x1xf32>
    %cst_29 = arith.constant 1.562500e-02 : f32
    %48 = vector.broadcast %cst_29 : f32 to vector<1x1xf32>
    %49 = arith.mulf %44, %48 : vector<1x1xf32>
    %cst_30 = arith.constant 1.562500e-02 : f32
    %50 = vector.broadcast %cst_30 : f32 to vector<1x1xf32>
    %51 = arith.mulf %47, %50 : vector<1x1xf32>
    %52 = arith.mulf %49, %49 : vector<1x1xf32>
    %53 = arith.subf %51, %52 : vector<1x1xf32>
    %cst_31 = arith.constant 0.000000e+00 : f32
    %54 = vector.broadcast %cst_31 : f32 to vector<1x1xf32>
    %55 = arith.maximumf %53, %54 : vector<1x1xf32>
    %cst_32 = arith.constant 9.99999974E-6 : f32
    %56 = vector.broadcast %cst_32 : f32 to vector<1x1xf32>
    %57 = arith.addf %55, %56 : vector<1x1xf32>
    %58 = math.rsqrt %57 : vector<1x1xf32>
    %59 = vector.broadcast %49 : vector<1x1xf32> to vector<16x1xf32>
    %60 = arith.mulf %41, %59 : vector<16x1xf32>
    %61 = arith.addf %33, %60 : vector<16x1xf32>
    %62 = vector.broadcast %58 : vector<1x1xf32> to vector<16x1xf32>
    %63 = arith.mulf %41, %62 : vector<16x1xf32>
    %64 = arith.addf %34, %63 : vector<16x1xf32>
    %c4_i32_33 = arith.constant 4 : i32
    %65 = vector.broadcast %c4_i32_33 : i32 to vector<16x1xi32>
    %66 = arith.cmpi sge, %32, %65 : vector<16x1xi32>
    %c8_i32 = arith.constant 8 : i32
    %67 = vector.broadcast %c8_i32 : i32 to vector<16x1xi32>
    %68 = arith.cmpi slt, %32, %67 : vector<16x1xi32>
    %69 = arith.andi %66, %68 : vector<16x1xi1>
    %70 = arith.extui %69 : vector<16x1xi1> to vector<16x1xi32>
    %71 = arith.sitofp %70 : vector<16x1xi32> to vector<16x1xf32>
    %72 = arith.mulf %28, %71 : vector<16x1xf32>
    %cst_34 = arith.constant dense<0.000000e+00> : vector<1xf32>
    %73 = vector.multi_reduction <add>, %72, %cst_34 [0] : vector<16x1xf32> to vector<1xf32>
    %74 = vector.shape_cast %73 : vector<1xf32> to vector<1x1xf32>
    %75 = arith.mulf %31, %71 : vector<16x1xf32>
    %cst_35 = arith.constant dense<0.000000e+00> : vector<1xf32>
    %76 = vector.multi_reduction <add>, %75, %cst_35 [0] : vector<16x1xf32> to vector<1xf32>
    %77 = vector.shape_cast %76 : vector<1xf32> to vector<1x1xf32>
    %cst_36 = arith.constant 1.562500e-02 : f32
    %78 = vector.broadcast %cst_36 : f32 to vector<1x1xf32>
    %79 = arith.mulf %74, %78 : vector<1x1xf32>
    %cst_37 = arith.constant 1.562500e-02 : f32
    %80 = vector.broadcast %cst_37 : f32 to vector<1x1xf32>
    %81 = arith.mulf %77, %80 : vector<1x1xf32>
    %82 = arith.mulf %79, %79 : vector<1x1xf32>
    %83 = arith.subf %81, %82 : vector<1x1xf32>
    %cst_38 = arith.constant 0.000000e+00 : f32
    %84 = vector.broadcast %cst_38 : f32 to vector<1x1xf32>
    %85 = arith.maximumf %83, %84 : vector<1x1xf32>
    %cst_39 = arith.constant 9.99999974E-6 : f32
    %86 = vector.broadcast %cst_39 : f32 to vector<1x1xf32>
    %87 = arith.addf %85, %86 : vector<1x1xf32>
    %88 = math.rsqrt %87 : vector<1x1xf32>
    %89 = vector.broadcast %79 : vector<1x1xf32> to vector<16x1xf32>
    %90 = arith.mulf %71, %89 : vector<16x1xf32>
    %91 = arith.addf %61, %90 : vector<16x1xf32>
    %92 = vector.broadcast %88 : vector<1x1xf32> to vector<16x1xf32>
    %93 = arith.mulf %71, %92 : vector<16x1xf32>
    %94 = arith.addf %64, %93 : vector<16x1xf32>
    %c8_i32_40 = arith.constant 8 : i32
    %95 = vector.broadcast %c8_i32_40 : i32 to vector<16x1xi32>
    %96 = arith.cmpi sge, %32, %95 : vector<16x1xi32>
    %c12_i32 = arith.constant 12 : i32
    %97 = vector.broadcast %c12_i32 : i32 to vector<16x1xi32>
    %98 = arith.cmpi slt, %32, %97 : vector<16x1xi32>
    %99 = arith.andi %96, %98 : vector<16x1xi1>
    %100 = arith.extui %99 : vector<16x1xi1> to vector<16x1xi32>
    %101 = arith.sitofp %100 : vector<16x1xi32> to vector<16x1xf32>
    %102 = arith.mulf %28, %101 : vector<16x1xf32>
    %cst_41 = arith.constant dense<0.000000e+00> : vector<1xf32>
    %103 = vector.multi_reduction <add>, %102, %cst_41 [0] : vector<16x1xf32> to vector<1xf32>
    %104 = vector.shape_cast %103 : vector<1xf32> to vector<1x1xf32>
    %105 = arith.mulf %31, %101 : vector<16x1xf32>
    %cst_42 = arith.constant dense<0.000000e+00> : vector<1xf32>
    %106 = vector.multi_reduction <add>, %105, %cst_42 [0] : vector<16x1xf32> to vector<1xf32>
    %107 = vector.shape_cast %106 : vector<1xf32> to vector<1x1xf32>
    %cst_43 = arith.constant 1.562500e-02 : f32
    %108 = vector.broadcast %cst_43 : f32 to vector<1x1xf32>
    %109 = arith.mulf %104, %108 : vector<1x1xf32>
    %cst_44 = arith.constant 1.562500e-02 : f32
    %110 = vector.broadcast %cst_44 : f32 to vector<1x1xf32>
    %111 = arith.mulf %107, %110 : vector<1x1xf32>
    %112 = arith.mulf %109, %109 : vector<1x1xf32>
    %113 = arith.subf %111, %112 : vector<1x1xf32>
    %cst_45 = arith.constant 0.000000e+00 : f32
    %114 = vector.broadcast %cst_45 : f32 to vector<1x1xf32>
    %115 = arith.maximumf %113, %114 : vector<1x1xf32>
    %cst_46 = arith.constant 9.99999974E-6 : f32
    %116 = vector.broadcast %cst_46 : f32 to vector<1x1xf32>
    %117 = arith.addf %115, %116 : vector<1x1xf32>
    %118 = math.rsqrt %117 : vector<1x1xf32>
    %119 = vector.broadcast %109 : vector<1x1xf32> to vector<16x1xf32>
    %120 = arith.mulf %101, %119 : vector<16x1xf32>
    %121 = arith.addf %91, %120 : vector<16x1xf32>
    %122 = vector.broadcast %118 : vector<1x1xf32> to vector<16x1xf32>
    %123 = arith.mulf %101, %122 : vector<16x1xf32>
    %124 = arith.addf %94, %123 : vector<16x1xf32>
    %c12_i32_47 = arith.constant 12 : i32
    %125 = vector.broadcast %c12_i32_47 : i32 to vector<16x1xi32>
    %126 = arith.cmpi sge, %32, %125 : vector<16x1xi32>
    %c16_i32 = arith.constant 16 : i32
    %127 = vector.broadcast %c16_i32 : i32 to vector<16x1xi32>
    %128 = arith.cmpi slt, %32, %127 : vector<16x1xi32>
    %129 = arith.andi %126, %128 : vector<16x1xi1>
    %130 = arith.extui %129 : vector<16x1xi1> to vector<16x1xi32>
    %131 = arith.sitofp %130 : vector<16x1xi32> to vector<16x1xf32>
    %132 = arith.mulf %28, %131 : vector<16x1xf32>
    %cst_48 = arith.constant dense<0.000000e+00> : vector<1xf32>
    %133 = vector.multi_reduction <add>, %132, %cst_48 [0] : vector<16x1xf32> to vector<1xf32>
    %134 = vector.shape_cast %133 : vector<1xf32> to vector<1x1xf32>
    %135 = arith.mulf %31, %131 : vector<16x1xf32>
    %cst_49 = arith.constant dense<0.000000e+00> : vector<1xf32>
    %136 = vector.multi_reduction <add>, %135, %cst_49 [0] : vector<16x1xf32> to vector<1xf32>
    %137 = vector.shape_cast %136 : vector<1xf32> to vector<1x1xf32>
    %cst_50 = arith.constant 1.562500e-02 : f32
    %138 = vector.broadcast %cst_50 : f32 to vector<1x1xf32>
    %139 = arith.mulf %134, %138 : vector<1x1xf32>
    %cst_51 = arith.constant 1.562500e-02 : f32
    %140 = vector.broadcast %cst_51 : f32 to vector<1x1xf32>
    %141 = arith.mulf %137, %140 : vector<1x1xf32>
    %142 = arith.mulf %139, %139 : vector<1x1xf32>
    %143 = arith.subf %141, %142 : vector<1x1xf32>
    %cst_52 = arith.constant 0.000000e+00 : f32
    %144 = vector.broadcast %cst_52 : f32 to vector<1x1xf32>
    %145 = arith.maximumf %143, %144 : vector<1x1xf32>
    %cst_53 = arith.constant 9.99999974E-6 : f32
    %146 = vector.broadcast %cst_53 : f32 to vector<1x1xf32>
    %147 = arith.addf %145, %146 : vector<1x1xf32>
    %148 = math.rsqrt %147 : vector<1x1xf32>
    %149 = vector.broadcast %139 : vector<1x1xf32> to vector<16x1xf32>
    %150 = arith.mulf %131, %149 : vector<16x1xf32>
    %151 = arith.addf %121, %150 : vector<16x1xf32>
    %152 = vector.broadcast %148 : vector<1x1xf32> to vector<16x1xf32>
    %153 = arith.mulf %131, %152 : vector<16x1xf32>
    %154 = arith.addf %124, %153 : vector<16x1xf32>
    %155 = vector.broadcast %151 : vector<16x1xf32> to vector<16x36xf32>
    %156 = arith.subf %23, %155 : vector<16x36xf32>
    %c0_54 = arith.constant 0 : index
    %c0_55 = arith.constant 0 : index
    %157 = vector.load %arg4[%c0_54, %c0_55] : memref<16x1xf32, #tpu.memory_space<vmem>>, vector<16x1xf32>
    %158 = arith.mulf %154, %157 : vector<16x1xf32>
    %159 = vector.broadcast %158 : vector<16x1xf32> to vector<16x36xf32>
    %160 = arith.mulf %156, %159 : vector<16x36xf32>
    %c0_56 = arith.constant 0 : index
    %c0_57 = arith.constant 0 : index
    %161 = vector.load %arg5[%c0_56, %c0_57] : memref<16x1xf32, #tpu.memory_space<vmem>>, vector<16x1xf32>
    %162 = vector.broadcast %161 : vector<16x1xf32> to vector<16x36xf32>
    %163 = arith.addf %160, %162 : vector<16x36xf32>
    %cst_58 = arith.constant 0.000000e+00 : f32
    %164 = vector.broadcast %cst_58 : f32 to vector<16x36xf32>
    %165 = arith.maximumf %163, %164 : vector<16x36xf32>
    %166 = vector.broadcast %24 : vector<1x36xf32> to vector<16x36xf32>
    %167 = arith.mulf %165, %166 : vector<16x36xf32>
    %cst_59 = arith.constant 0.000000e+00 : bf16
    %168 = vector.broadcast %cst_59 : bf16 to vector<16x128xbf16>
    %c0_60 = arith.constant 0 : index
    %c0_61 = arith.constant 0 : index
    %c0_62 = arith.constant 0 : index
    %169 = vector.load %arg7[%c0_60, %c0_61, %c0_62] : memref<1x16x292xbf16, #tpu.memory_space<vmem>>, vector<1x16x128xbf16>
    %170 = vector.shape_cast %169 : vector<1x16x128xbf16> to vector<16x128xbf16>
    %171 = vector.shape_cast %168 : vector<16x128xbf16> to vector<1x16x128xbf16>
    tpu.vector_store %arg7[%c0_60, %c0_61, %c0_62], %171 {strides = array<i32>} : memref<1x16x292xbf16, #tpu.memory_space<vmem>>, vector<1x16x128xbf16>,
    %172 = arith.truncf %167 : vector<16x36xf32> to vector<16x36xbf16>
    %c0_63 = arith.constant 0 : index
    %c0_64 = arith.constant 0 : index
    %c128_65 = arith.constant 128 : index
    %173 = vector.load %arg7[%c0_63, %c0_64, %c128_65] : memref<1x16x292xbf16, #tpu.memory_space<vmem>>, vector<1x16x36xbf16>
    %174 = vector.shape_cast %173 : vector<1x16x36xbf16> to vector<16x36xbf16>
    %175 = vector.shape_cast %172 : vector<16x36xbf16> to vector<1x16x36xbf16>
    tpu.vector_store %arg7[%c0_63, %c0_64, %c128_65], %175 {strides = array<i32>} : memref<1x16x292xbf16, #tpu.memory_space<vmem>>, vector<1x16x36xbf16>,
    %cst_66 = arith.constant 0.000000e+00 : bf16
    %176 = vector.broadcast %cst_66 : bf16 to vector<16x128xbf16>
    %c0_67 = arith.constant 0 : index
    %c0_68 = arith.constant 0 : index
    %c164 = arith.constant 164 : index
    %177 = vector.load %arg7[%c0_67, %c0_68, %c164] : memref<1x16x292xbf16, #tpu.memory_space<vmem>>, vector<1x16x128xbf16>
    %178 = vector.shape_cast %177 : vector<1x16x128xbf16> to vector<16x128xbf16>
    %179 = vector.shape_cast %176 : vector<16x128xbf16> to vector<1x16x128xbf16>
    tpu.vector_store %arg7[%c0_67, %c0_68, %c164], %179 {strides = array<i32>} : memref<1x16x292xbf16, #tpu.memory_space<vmem>>, vector<1x16x128xbf16>,
    return
  }
  func.func @transform_0(%arg0: i32) -> (i32, i32, i32) {
    %c0_i32 = arith.constant 0 : i32
    %c0_i32_0 = arith.constant 0 : i32
    %c0_i32_1 = arith.constant 0 : i32
    return %arg0, %c0_i32, %c0_i32_0 : i32, i32, i32
  }
  func.func @transform_1(%arg0: i32) -> (i32, i32) {
    %c0_i32 = arith.constant 0 : i32
    %c0_i32_0 = arith.constant 0 : i32
    %c0_i32_1 = arith.constant 0 : i32
    return %c0_i32, %c0_i32_0 : i32, i32
  }
  func.func @transform_2(%arg0: i32) -> (i32, i32) {
    %c0_i32 = arith.constant 0 : i32
    %c0_i32_0 = arith.constant 0 : i32
    %c0_i32_1 = arith.constant 0 : i32
    return %c0_i32, %c0_i32_0 : i32, i32
  }
  func.func @transform_3(%arg0: i32) -> (i32, i32) {
    %c0_i32 = arith.constant 0 : i32
    %c0_i32_0 = arith.constant 0 : i32
    %c0_i32_1 = arith.constant 0 : i32
    return %c0_i32, %c0_i32_0 : i32, i32
  }
  func.func @transform_4(%arg0: i32) -> (i32, i32) {
    %c0_i32 = arith.constant 0 : i32
    %c0_i32_0 = arith.constant 0 : i32
    %c0_i32_1 = arith.constant 0 : i32
    return %c0_i32, %c0_i32_0 : i32, i32
  }
  func.func @transform_5(%arg0: i32) -> (i32, i32) {
    %c0_i32 = arith.constant 0 : i32
    %c0_i32_0 = arith.constant 0 : i32
    %c0_i32_1 = arith.constant 0 : i32
    return %c0_i32, %c0_i32_0 : i32, i32
  }
  func.func @transform_6(%arg0: i32) -> (i32, i32, i32) {
    %c0_i32 = arith.constant 0 : i32
    %c0_i32_0 = arith.constant 0 : i32
    %c0_i32_1 = arith.constant 0 : i32
    return %arg0, %c0_i32, %c0_i32_0 : i32, i32, i32
  }
}

module attributes {stable_mosaic.version = 11 : i64} {
  func.func @_conv_kernel(%arg0: i32, %arg1: memref<1x16x356xbf16, #tpu.memory_space<vmem>>, %arg2: memref<16x144xbf16, #tpu.memory_space<vmem>>, %arg3: memref<16x1xf32, #tpu.memory_space<vmem>>, %arg4: memref<16x1xf32, #tpu.memory_space<vmem>>, %arg5: memref<16x1xf32, #tpu.memory_space<vmem>>, %arg6: memref<1x100xf32, #tpu.memory_space<vmem>>, %arg7: memref<1x16x356xbf16, #tpu.memory_space<vmem>>) attributes {dimension_semantics = [#tpu.dimension_semantics<parallel>], iteration_bounds = array<i64: 2>, scalar_prefetch = 0 : i64, scratch_operands = 0 : i64, tpu.core_type = #tpu.core_type<tc>, window_params = [{transform_indices = @transform_0, window_bounds = array<i64: 1, 16, 356>}, {pipeline_mode = #tpu.pipeline_mode<synchronous>, transform_indices = @transform_1, window_bounds = array<i64: 16, 144>}, {pipeline_mode = #tpu.pipeline_mode<synchronous>, transform_indices = @transform_2, window_bounds = array<i64: 16, 1>}, {pipeline_mode = #tpu.pipeline_mode<synchronous>, transform_indices = @transform_3, window_bounds = array<i64: 16, 1>}, {pipeline_mode = #tpu.pipeline_mode<synchronous>, transform_indices = @transform_4, window_bounds = array<i64: 16, 1>}, {pipeline_mode = #tpu.pipeline_mode<synchronous>, transform_indices = @transform_5, window_bounds = array<i64: 1, 100>}, {transform_indices = @transform_6, window_bounds = array<i64: 1, 16, 356>}]} {
    %c0 = arith.constant 0 : index
    %c0_0 = arith.constant 0 : index
    %c117 = arith.constant 117 : index
    %0 = vector.load %arg1[%c0, %c0_0, %c117] : memref<1x16x356xbf16, #tpu.memory_space<vmem>>, vector<1x16x100xbf16>
    %1 = vector.shape_cast %0 : vector<1x16x100xbf16> to vector<16x100xbf16>
    %c0_1 = arith.constant 0 : index
    %c0_2 = arith.constant 0 : index
    %c118 = arith.constant 118 : index
    %2 = vector.load %arg1[%c0_1, %c0_2, %c118] : memref<1x16x356xbf16, #tpu.memory_space<vmem>>, vector<1x16x100xbf16>
    %3 = vector.shape_cast %2 : vector<1x16x100xbf16> to vector<16x100xbf16>
    %c0_3 = arith.constant 0 : index
    %c0_4 = arith.constant 0 : index
    %c119 = arith.constant 119 : index
    %4 = vector.load %arg1[%c0_3, %c0_4, %c119] : memref<1x16x356xbf16, #tpu.memory_space<vmem>>, vector<1x16x100xbf16>
    %5 = vector.shape_cast %4 : vector<1x16x100xbf16> to vector<16x100xbf16>
    %c0_5 = arith.constant 0 : index
    %c0_6 = arith.constant 0 : index
    %c127 = arith.constant 127 : index
    %6 = vector.load %arg1[%c0_5, %c0_6, %c127] : memref<1x16x356xbf16, #tpu.memory_space<vmem>>, vector<1x16x100xbf16>
    %7 = vector.shape_cast %6 : vector<1x16x100xbf16> to vector<16x100xbf16>
    %c0_7 = arith.constant 0 : index
    %c0_8 = arith.constant 0 : index
    %c128 = arith.constant 128 : index
    %8 = vector.load %arg1[%c0_7, %c0_8, %c128] : memref<1x16x356xbf16, #tpu.memory_space<vmem>>, vector<1x16x100xbf16>
    %9 = vector.shape_cast %8 : vector<1x16x100xbf16> to vector<16x100xbf16>
    %c0_9 = arith.constant 0 : index
    %c0_10 = arith.constant 0 : index
    %c129 = arith.constant 129 : index
    %10 = vector.load %arg1[%c0_9, %c0_10, %c129] : memref<1x16x356xbf16, #tpu.memory_space<vmem>>, vector<1x16x100xbf16>
    %11 = vector.shape_cast %10 : vector<1x16x100xbf16> to vector<16x100xbf16>
    %c0_11 = arith.constant 0 : index
    %c0_12 = arith.constant 0 : index
    %c137 = arith.constant 137 : index
    %12 = vector.load %arg1[%c0_11, %c0_12, %c137] : memref<1x16x356xbf16, #tpu.memory_space<vmem>>, vector<1x16x100xbf16>
    %13 = vector.shape_cast %12 : vector<1x16x100xbf16> to vector<16x100xbf16>
    %c0_13 = arith.constant 0 : index
    %c0_14 = arith.constant 0 : index
    %c138 = arith.constant 138 : index
    %14 = vector.load %arg1[%c0_13, %c0_14, %c138] : memref<1x16x356xbf16, #tpu.memory_space<vmem>>, vector<1x16x100xbf16>
    %15 = vector.shape_cast %14 : vector<1x16x100xbf16> to vector<16x100xbf16>
    %c0_15 = arith.constant 0 : index
    %c0_16 = arith.constant 0 : index
    %c139 = arith.constant 139 : index
    %16 = vector.load %arg1[%c0_15, %c0_16, %c139] : memref<1x16x356xbf16, #tpu.memory_space<vmem>>, vector<1x16x100xbf16>
    %17 = vector.shape_cast %16 : vector<1x16x100xbf16> to vector<16x100xbf16>
    %18 = tpu.concatenate %1, %3, %5, %7, %9, %11, %13, %15, %17 in 0 : vector<16x100xbf16>, vector<16x100xbf16>, vector<16x100xbf16>, vector<16x100xbf16>, vector<16x100xbf16>, vector<16x100xbf16>, vector<16x100xbf16>, vector<16x100xbf16>, vector<16x100xbf16> -> vector<144x100xbf16>
    %c0_17 = arith.constant 0 : index
    %c0_18 = arith.constant 0 : index
    %19 = vector.load %arg2[%c0_17, %c0_18] : memref<16x144xbf16, #tpu.memory_space<vmem>>, vector<16x144xbf16>
    %cst = arith.constant dense<0.000000e+00> : vector<16x100xf32>
    %20 = tpu.matmul %19, %18, %cst {dimension_numbers = #tpu.dot_dimension_numbers<[1], [0], [0], [1], [0, 0, 1, 1], [], []>} : vector<16x144xbf16>, vector<144x100xbf16>, vector<16x100xf32> -> vector<16x100xf32>
    %c0_19 = arith.constant 0 : index
    %c0_20 = arith.constant 0 : index
    %21 = vector.load %arg3[%c0_19, %c0_20] : memref<16x1xf32, #tpu.memory_space<vmem>>, vector<16x1xf32>
    %22 = vector.broadcast %21 : vector<16x1xf32> to vector<16x100xf32>
    %23 = arith.addf %20, %22 : vector<16x100xf32>
    %c0_21 = arith.constant 0 : index
    %c0_22 = arith.constant 0 : index
    %24 = vector.load %arg6[%c0_21, %c0_22] : memref<1x100xf32, #tpu.memory_space<vmem>>, vector<1x100xf32>
    %25 = vector.broadcast %24 : vector<1x100xf32> to vector<16x100xf32>
    %26 = arith.mulf %23, %25 : vector<16x100xf32>
    %cst_23 = arith.constant dense<0.000000e+00> : vector<16xf32>
    %27 = vector.multi_reduction <add>, %26, %cst_23 [1] : vector<16x100xf32> to vector<16xf32>
    %28 = vector.shape_cast %27 : vector<16xf32> to vector<16x1xf32>
    %29 = arith.mulf %26, %23 : vector<16x100xf32>
    %cst_24 = arith.constant dense<0.000000e+00> : vector<16xf32>
    %30 = vector.multi_reduction <add>, %29, %cst_24 [1] : vector<16x100xf32> to vector<16xf32>
    %31 = vector.shape_cast %30 : vector<16xf32> to vector<16x1xf32>
    %32 = tpu.iota {dimensions = array<i32: 0>} : vector<16x1xi32>
    %cst_25 = arith.constant 0.000000e+00 : f32
    %33 = vector.broadcast %cst_25 : f32 to vector<16x1xf32>
    %cst_26 = arith.constant 0.000000e+00 : f32
    %34 = vector.broadcast %cst_26 : f32 to vector<16x1xf32>
    %c0_i32 = arith.constant 0 : i32
    %35 = vector.broadcast %c0_i32 : i32 to vector<16x1xi32>
    %36 = arith.cmpi sge, %32, %35 : vector<16x1xi32>
    %c4_i32 = arith.constant 4 : i32
    %37 = vector.broadcast %c4_i32 : i32 to vector<16x1xi32>
    %38 = arith.cmpi slt, %32, %37 : vector<16x1xi32>
    %39 = arith.andi %36, %38 : vector<16x1xi1>
    %40 = arith.extui %39 : vector<16x1xi1> to vector<16x1xi32>
    %41 = arith.sitofp %40 : vector<16x1xi32> to vector<16x1xf32>
    %42 = arith.mulf %28, %41 : vector<16x1xf32>
    %cst_27 = arith.constant dense<0.000000e+00> : vector<1xf32>
    %43 = vector.multi_reduction <add>, %42, %cst_27 [0] : vector<16x1xf32> to vector<1xf32>
    %44 = vector.shape_cast %43 : vector<1xf32> to vector<1x1xf32>
    %45 = arith.mulf %31, %41 : vector<16x1xf32>
    %cst_28 = arith.constant dense<0.000000e+00> : vector<1xf32>
    %46 = vector.multi_reduction <add>, %45, %cst_28 [0] : vector<16x1xf32> to vector<1xf32>
    %47 = vector.shape_cast %46 : vector<1xf32> to vector<1x1xf32>
    %cst_29 = arith.constant 3.906250e-03 : f32
    %48 = vector.broadcast %cst_29 : f32 to vector<1x1xf32>
    %49 = arith.mulf %44, %48 : vector<1x1xf32>
    %cst_30 = arith.constant 3.906250e-03 : f32
    %50 = vector.broadcast %cst_30 : f32 to vector<1x1xf32>
    %51 = arith.mulf %47, %50 : vector<1x1xf32>
    %52 = arith.mulf %49, %49 : vector<1x1xf32>
    %53 = arith.subf %51, %52 : vector<1x1xf32>
    %cst_31 = arith.constant 0.000000e+00 : f32
    %54 = vector.broadcast %cst_31 : f32 to vector<1x1xf32>
    %55 = arith.maximumf %53, %54 : vector<1x1xf32>
    %cst_32 = arith.constant 9.99999974E-6 : f32
    %56 = vector.broadcast %cst_32 : f32 to vector<1x1xf32>
    %57 = arith.addf %55, %56 : vector<1x1xf32>
    %58 = math.rsqrt %57 : vector<1x1xf32>
    %59 = vector.broadcast %49 : vector<1x1xf32> to vector<16x1xf32>
    %60 = arith.mulf %41, %59 : vector<16x1xf32>
    %61 = arith.addf %33, %60 : vector<16x1xf32>
    %62 = vector.broadcast %58 : vector<1x1xf32> to vector<16x1xf32>
    %63 = arith.mulf %41, %62 : vector<16x1xf32>
    %64 = arith.addf %34, %63 : vector<16x1xf32>
    %c4_i32_33 = arith.constant 4 : i32
    %65 = vector.broadcast %c4_i32_33 : i32 to vector<16x1xi32>
    %66 = arith.cmpi sge, %32, %65 : vector<16x1xi32>
    %c8_i32 = arith.constant 8 : i32
    %67 = vector.broadcast %c8_i32 : i32 to vector<16x1xi32>
    %68 = arith.cmpi slt, %32, %67 : vector<16x1xi32>
    %69 = arith.andi %66, %68 : vector<16x1xi1>
    %70 = arith.extui %69 : vector<16x1xi1> to vector<16x1xi32>
    %71 = arith.sitofp %70 : vector<16x1xi32> to vector<16x1xf32>
    %72 = arith.mulf %28, %71 : vector<16x1xf32>
    %cst_34 = arith.constant dense<0.000000e+00> : vector<1xf32>
    %73 = vector.multi_reduction <add>, %72, %cst_34 [0] : vector<16x1xf32> to vector<1xf32>
    %74 = vector.shape_cast %73 : vector<1xf32> to vector<1x1xf32>
    %75 = arith.mulf %31, %71 : vector<16x1xf32>
    %cst_35 = arith.constant dense<0.000000e+00> : vector<1xf32>
    %76 = vector.multi_reduction <add>, %75, %cst_35 [0] : vector<16x1xf32> to vector<1xf32>
    %77 = vector.shape_cast %76 : vector<1xf32> to vector<1x1xf32>
    %cst_36 = arith.constant 3.906250e-03 : f32
    %78 = vector.broadcast %cst_36 : f32 to vector<1x1xf32>
    %79 = arith.mulf %74, %78 : vector<1x1xf32>
    %cst_37 = arith.constant 3.906250e-03 : f32
    %80 = vector.broadcast %cst_37 : f32 to vector<1x1xf32>
    %81 = arith.mulf %77, %80 : vector<1x1xf32>
    %82 = arith.mulf %79, %79 : vector<1x1xf32>
    %83 = arith.subf %81, %82 : vector<1x1xf32>
    %cst_38 = arith.constant 0.000000e+00 : f32
    %84 = vector.broadcast %cst_38 : f32 to vector<1x1xf32>
    %85 = arith.maximumf %83, %84 : vector<1x1xf32>
    %cst_39 = arith.constant 9.99999974E-6 : f32
    %86 = vector.broadcast %cst_39 : f32 to vector<1x1xf32>
    %87 = arith.addf %85, %86 : vector<1x1xf32>
    %88 = math.rsqrt %87 : vector<1x1xf32>
    %89 = vector.broadcast %79 : vector<1x1xf32> to vector<16x1xf32>
    %90 = arith.mulf %71, %89 : vector<16x1xf32>
    %91 = arith.addf %61, %90 : vector<16x1xf32>
    %92 = vector.broadcast %88 : vector<1x1xf32> to vector<16x1xf32>
    %93 = arith.mulf %71, %92 : vector<16x1xf32>
    %94 = arith.addf %64, %93 : vector<16x1xf32>
    %c8_i32_40 = arith.constant 8 : i32
    %95 = vector.broadcast %c8_i32_40 : i32 to vector<16x1xi32>
    %96 = arith.cmpi sge, %32, %95 : vector<16x1xi32>
    %c12_i32 = arith.constant 12 : i32
    %97 = vector.broadcast %c12_i32 : i32 to vector<16x1xi32>
    %98 = arith.cmpi slt, %32, %97 : vector<16x1xi32>
    %99 = arith.andi %96, %98 : vector<16x1xi1>
    %100 = arith.extui %99 : vector<16x1xi1> to vector<16x1xi32>
    %101 = arith.sitofp %100 : vector<16x1xi32> to vector<16x1xf32>
    %102 = arith.mulf %28, %101 : vector<16x1xf32>
    %cst_41 = arith.constant dense<0.000000e+00> : vector<1xf32>
    %103 = vector.multi_reduction <add>, %102, %cst_41 [0] : vector<16x1xf32> to vector<1xf32>
    %104 = vector.shape_cast %103 : vector<1xf32> to vector<1x1xf32>
    %105 = arith.mulf %31, %101 : vector<16x1xf32>
    %cst_42 = arith.constant dense<0.000000e+00> : vector<1xf32>
    %106 = vector.multi_reduction <add>, %105, %cst_42 [0] : vector<16x1xf32> to vector<1xf32>
    %107 = vector.shape_cast %106 : vector<1xf32> to vector<1x1xf32>
    %cst_43 = arith.constant 3.906250e-03 : f32
    %108 = vector.broadcast %cst_43 : f32 to vector<1x1xf32>
    %109 = arith.mulf %104, %108 : vector<1x1xf32>
    %cst_44 = arith.constant 3.906250e-03 : f32
    %110 = vector.broadcast %cst_44 : f32 to vector<1x1xf32>
    %111 = arith.mulf %107, %110 : vector<1x1xf32>
    %112 = arith.mulf %109, %109 : vector<1x1xf32>
    %113 = arith.subf %111, %112 : vector<1x1xf32>
    %cst_45 = arith.constant 0.000000e+00 : f32
    %114 = vector.broadcast %cst_45 : f32 to vector<1x1xf32>
    %115 = arith.maximumf %113, %114 : vector<1x1xf32>
    %cst_46 = arith.constant 9.99999974E-6 : f32
    %116 = vector.broadcast %cst_46 : f32 to vector<1x1xf32>
    %117 = arith.addf %115, %116 : vector<1x1xf32>
    %118 = math.rsqrt %117 : vector<1x1xf32>
    %119 = vector.broadcast %109 : vector<1x1xf32> to vector<16x1xf32>
    %120 = arith.mulf %101, %119 : vector<16x1xf32>
    %121 = arith.addf %91, %120 : vector<16x1xf32>
    %122 = vector.broadcast %118 : vector<1x1xf32> to vector<16x1xf32>
    %123 = arith.mulf %101, %122 : vector<16x1xf32>
    %124 = arith.addf %94, %123 : vector<16x1xf32>
    %c12_i32_47 = arith.constant 12 : i32
    %125 = vector.broadcast %c12_i32_47 : i32 to vector<16x1xi32>
    %126 = arith.cmpi sge, %32, %125 : vector<16x1xi32>
    %c16_i32 = arith.constant 16 : i32
    %127 = vector.broadcast %c16_i32 : i32 to vector<16x1xi32>
    %128 = arith.cmpi slt, %32, %127 : vector<16x1xi32>
    %129 = arith.andi %126, %128 : vector<16x1xi1>
    %130 = arith.extui %129 : vector<16x1xi1> to vector<16x1xi32>
    %131 = arith.sitofp %130 : vector<16x1xi32> to vector<16x1xf32>
    %132 = arith.mulf %28, %131 : vector<16x1xf32>
    %cst_48 = arith.constant dense<0.000000e+00> : vector<1xf32>
    %133 = vector.multi_reduction <add>, %132, %cst_48 [0] : vector<16x1xf32> to vector<1xf32>
    %134 = vector.shape_cast %133 : vector<1xf32> to vector<1x1xf32>
    %135 = arith.mulf %31, %131 : vector<16x1xf32>
    %cst_49 = arith.constant dense<0.000000e+00> : vector<1xf32>
    %136 = vector.multi_reduction <add>, %135, %cst_49 [0] : vector<16x1xf32> to vector<1xf32>
    %137 = vector.shape_cast %136 : vector<1xf32> to vector<1x1xf32>
    %cst_50 = arith.constant 3.906250e-03 : f32
    %138 = vector.broadcast %cst_50 : f32 to vector<1x1xf32>
    %139 = arith.mulf %134, %138 : vector<1x1xf32>
    %cst_51 = arith.constant 3.906250e-03 : f32
    %140 = vector.broadcast %cst_51 : f32 to vector<1x1xf32>
    %141 = arith.mulf %137, %140 : vector<1x1xf32>
    %142 = arith.mulf %139, %139 : vector<1x1xf32>
    %143 = arith.subf %141, %142 : vector<1x1xf32>
    %cst_52 = arith.constant 0.000000e+00 : f32
    %144 = vector.broadcast %cst_52 : f32 to vector<1x1xf32>
    %145 = arith.maximumf %143, %144 : vector<1x1xf32>
    %cst_53 = arith.constant 9.99999974E-6 : f32
    %146 = vector.broadcast %cst_53 : f32 to vector<1x1xf32>
    %147 = arith.addf %145, %146 : vector<1x1xf32>
    %148 = math.rsqrt %147 : vector<1x1xf32>
    %149 = vector.broadcast %139 : vector<1x1xf32> to vector<16x1xf32>
    %150 = arith.mulf %131, %149 : vector<16x1xf32>
    %151 = arith.addf %121, %150 : vector<16x1xf32>
    %152 = vector.broadcast %148 : vector<1x1xf32> to vector<16x1xf32>
    %153 = arith.mulf %131, %152 : vector<16x1xf32>
    %154 = arith.addf %124, %153 : vector<16x1xf32>
    %155 = vector.broadcast %151 : vector<16x1xf32> to vector<16x100xf32>
    %156 = arith.subf %23, %155 : vector<16x100xf32>
    %c0_54 = arith.constant 0 : index
    %c0_55 = arith.constant 0 : index
    %157 = vector.load %arg4[%c0_54, %c0_55] : memref<16x1xf32, #tpu.memory_space<vmem>>, vector<16x1xf32>
    %158 = arith.mulf %154, %157 : vector<16x1xf32>
    %159 = vector.broadcast %158 : vector<16x1xf32> to vector<16x100xf32>
    %160 = arith.mulf %156, %159 : vector<16x100xf32>
    %c0_56 = arith.constant 0 : index
    %c0_57 = arith.constant 0 : index
    %161 = vector.load %arg5[%c0_56, %c0_57] : memref<16x1xf32, #tpu.memory_space<vmem>>, vector<16x1xf32>
    %162 = vector.broadcast %161 : vector<16x1xf32> to vector<16x100xf32>
    %163 = arith.addf %160, %162 : vector<16x100xf32>
    %cst_58 = arith.constant 0.000000e+00 : f32
    %164 = vector.broadcast %cst_58 : f32 to vector<16x100xf32>
    %165 = arith.maximumf %163, %164 : vector<16x100xf32>
    %166 = vector.broadcast %24 : vector<1x100xf32> to vector<16x100xf32>
    %167 = arith.mulf %165, %166 : vector<16x100xf32>
    %cst_59 = arith.constant 0.000000e+00 : bf16
    %168 = vector.broadcast %cst_59 : bf16 to vector<16x128xbf16>
    %c0_60 = arith.constant 0 : index
    %c0_61 = arith.constant 0 : index
    %c0_62 = arith.constant 0 : index
    %169 = vector.load %arg7[%c0_60, %c0_61, %c0_62] : memref<1x16x356xbf16, #tpu.memory_space<vmem>>, vector<1x16x128xbf16>
    %170 = vector.shape_cast %169 : vector<1x16x128xbf16> to vector<16x128xbf16>
    %171 = vector.shape_cast %168 : vector<16x128xbf16> to vector<1x16x128xbf16>
    tpu.vector_store %arg7[%c0_60, %c0_61, %c0_62], %171 {strides = array<i32>} : memref<1x16x356xbf16, #tpu.memory_space<vmem>>, vector<1x16x128xbf16>,
    %172 = arith.truncf %167 : vector<16x100xf32> to vector<16x100xbf16>
    %c0_63 = arith.constant 0 : index
    %c0_64 = arith.constant 0 : index
    %c128_65 = arith.constant 128 : index
    %173 = vector.load %arg7[%c0_63, %c0_64, %c128_65] : memref<1x16x356xbf16, #tpu.memory_space<vmem>>, vector<1x16x100xbf16>
    %174 = vector.shape_cast %173 : vector<1x16x100xbf16> to vector<16x100xbf16>
    %175 = vector.shape_cast %172 : vector<16x100xbf16> to vector<1x16x100xbf16>
    tpu.vector_store %arg7[%c0_63, %c0_64, %c128_65], %175 {strides = array<i32>} : memref<1x16x356xbf16, #tpu.memory_space<vmem>>, vector<1x16x100xbf16>,
    %cst_66 = arith.constant 0.000000e+00 : bf16
    %176 = vector.broadcast %cst_66 : bf16 to vector<16x128xbf16>
    %c0_67 = arith.constant 0 : index
    %c0_68 = arith.constant 0 : index
    %c228 = arith.constant 228 : index
    %177 = vector.load %arg7[%c0_67, %c0_68, %c228] : memref<1x16x356xbf16, #tpu.memory_space<vmem>>, vector<1x16x128xbf16>
    %178 = vector.shape_cast %177 : vector<1x16x128xbf16> to vector<16x128xbf16>
    %179 = vector.shape_cast %176 : vector<16x128xbf16> to vector<1x16x128xbf16>
    tpu.vector_store %arg7[%c0_67, %c0_68, %c228], %179 {strides = array<i32>} : memref<1x16x356xbf16, #tpu.memory_space<vmem>>, vector<1x16x128xbf16>,
    return
  }
  func.func @transform_0(%arg0: i32) -> (i32, i32, i32) {
    %c0_i32 = arith.constant 0 : i32
    %c0_i32_0 = arith.constant 0 : i32
    %c0_i32_1 = arith.constant 0 : i32
    return %arg0, %c0_i32, %c0_i32_0 : i32, i32, i32
  }
  func.func @transform_1(%arg0: i32) -> (i32, i32) {
    %c0_i32 = arith.constant 0 : i32
    %c0_i32_0 = arith.constant 0 : i32
    %c0_i32_1 = arith.constant 0 : i32
    return %c0_i32, %c0_i32_0 : i32, i32
  }
  func.func @transform_2(%arg0: i32) -> (i32, i32) {
    %c0_i32 = arith.constant 0 : i32
    %c0_i32_0 = arith.constant 0 : i32
    %c0_i32_1 = arith.constant 0 : i32
    return %c0_i32, %c0_i32_0 : i32, i32
  }
  func.func @transform_3(%arg0: i32) -> (i32, i32) {
    %c0_i32 = arith.constant 0 : i32
    %c0_i32_0 = arith.constant 0 : i32
    %c0_i32_1 = arith.constant 0 : i32
    return %c0_i32, %c0_i32_0 : i32, i32
  }
  func.func @transform_4(%arg0: i32) -> (i32, i32) {
    %c0_i32 = arith.constant 0 : i32
    %c0_i32_0 = arith.constant 0 : i32
    %c0_i32_1 = arith.constant 0 : i32
    return %c0_i32, %c0_i32_0 : i32, i32
  }
  func.func @transform_5(%arg0: i32) -> (i32, i32) {
    %c0_i32 = arith.constant 0 : i32
    %c0_i32_0 = arith.constant 0 : i32
    %c0_i32_1 = arith.constant 0 : i32
    return %c0_i32, %c0_i32_0 : i32, i32
  }
  func.func @transform_6(%arg0: i32) -> (i32, i32, i32) {
    %c0_i32 = arith.constant 0 : i32
    %c0_i32_0 = arith.constant 0 : i32
    %c0_i32_1 = arith.constant 0 : i32
    return %arg0, %c0_i32, %c0_i32_0 : i32, i32, i32
  }
}

module attributes {stable_mosaic.version = 11 : i64} {
  func.func @_conv_kernel(%arg0: i32, %arg1: memref<1x16x292xbf16, #tpu.memory_space<vmem>>, %arg2: memref<16x16xbf16, #tpu.memory_space<vmem>>, %arg3: memref<16x1xf32, #tpu.memory_space<vmem>>, %arg4: memref<1x36xf32, #tpu.memory_space<vmem>>, %arg5: memref<1x16x292xbf16, #tpu.memory_space<vmem>>) attributes {dimension_semantics = [#tpu.dimension_semantics<parallel>], iteration_bounds = array<i64: 2>, scalar_prefetch = 0 : i64, scratch_operands = 0 : i64, tpu.core_type = #tpu.core_type<tc>, window_params = [{transform_indices = @transform_0, window_bounds = array<i64: 1, 16, 292>}, {pipeline_mode = #tpu.pipeline_mode<synchronous>, transform_indices = @transform_1, window_bounds = array<i64: 16, 16>}, {pipeline_mode = #tpu.pipeline_mode<synchronous>, transform_indices = @transform_2, window_bounds = array<i64: 16, 1>}, {pipeline_mode = #tpu.pipeline_mode<synchronous>, transform_indices = @transform_3, window_bounds = array<i64: 1, 36>}, {transform_indices = @transform_4, window_bounds = array<i64: 1, 16, 292>}]} {
    %c0 = arith.constant 0 : index
    %c0_0 = arith.constant 0 : index
    %c128 = arith.constant 128 : index
    %0 = vector.load %arg1[%c0, %c0_0, %c128] : memref<1x16x292xbf16, #tpu.memory_space<vmem>>, vector<1x16x36xbf16>
    %1 = vector.shape_cast %0 : vector<1x16x36xbf16> to vector<16x36xbf16>
    %c0_1 = arith.constant 0 : index
    %c0_2 = arith.constant 0 : index
    %2 = vector.load %arg2[%c0_1, %c0_2] : memref<16x16xbf16, #tpu.memory_space<vmem>>, vector<16x16xbf16>
    %cst = arith.constant dense<0.000000e+00> : vector<16x36xf32>
    %3 = tpu.matmul %2, %1, %cst {dimension_numbers = #tpu.dot_dimension_numbers<[1], [0], [0], [1], [0, 0, 1, 1], [], []>} : vector<16x16xbf16>, vector<16x36xbf16>, vector<16x36xf32> -> vector<16x36xf32>
    %c0_3 = arith.constant 0 : index
    %c0_4 = arith.constant 0 : index
    %4 = vector.load %arg3[%c0_3, %c0_4] : memref<16x1xf32, #tpu.memory_space<vmem>>, vector<16x1xf32>
    %5 = vector.broadcast %4 : vector<16x1xf32> to vector<16x36xf32>
    %6 = arith.addf %3, %5 : vector<16x36xf32>
    %c0_5 = arith.constant 0 : index
    %c0_6 = arith.constant 0 : index
    %7 = vector.load %arg4[%c0_5, %c0_6] : memref<1x36xf32, #tpu.memory_space<vmem>>, vector<1x36xf32>
    %8 = vector.broadcast %7 : vector<1x36xf32> to vector<16x36xf32>
    %9 = arith.mulf %6, %8 : vector<16x36xf32>
    %cst_7 = arith.constant 0.000000e+00 : bf16
    %10 = vector.broadcast %cst_7 : bf16 to vector<16x128xbf16>
    %c0_8 = arith.constant 0 : index
    %c0_9 = arith.constant 0 : index
    %c0_10 = arith.constant 0 : index
    %11 = vector.load %arg5[%c0_8, %c0_9, %c0_10] : memref<1x16x292xbf16, #tpu.memory_space<vmem>>, vector<1x16x128xbf16>
    %12 = vector.shape_cast %11 : vector<1x16x128xbf16> to vector<16x128xbf16>
    %13 = vector.shape_cast %10 : vector<16x128xbf16> to vector<1x16x128xbf16>
    tpu.vector_store %arg5[%c0_8, %c0_9, %c0_10], %13 {strides = array<i32>} : memref<1x16x292xbf16, #tpu.memory_space<vmem>>, vector<1x16x128xbf16>,
    %14 = arith.truncf %9 : vector<16x36xf32> to vector<16x36xbf16>
    %c0_11 = arith.constant 0 : index
    %c0_12 = arith.constant 0 : index
    %c128_13 = arith.constant 128 : index
    %15 = vector.load %arg5[%c0_11, %c0_12, %c128_13] : memref<1x16x292xbf16, #tpu.memory_space<vmem>>, vector<1x16x36xbf16>
    %16 = vector.shape_cast %15 : vector<1x16x36xbf16> to vector<16x36xbf16>
    %17 = vector.shape_cast %14 : vector<16x36xbf16> to vector<1x16x36xbf16>
    tpu.vector_store %arg5[%c0_11, %c0_12, %c128_13], %17 {strides = array<i32>} : memref<1x16x292xbf16, #tpu.memory_space<vmem>>, vector<1x16x36xbf16>,
    %cst_14 = arith.constant 0.000000e+00 : bf16
    %18 = vector.broadcast %cst_14 : bf16 to vector<16x128xbf16>
    %c0_15 = arith.constant 0 : index
    %c0_16 = arith.constant 0 : index
    %c164 = arith.constant 164 : index
    %19 = vector.load %arg5[%c0_15, %c0_16, %c164] : memref<1x16x292xbf16, #tpu.memory_space<vmem>>, vector<1x16x128xbf16>
    %20 = vector.shape_cast %19 : vector<1x16x128xbf16> to vector<16x128xbf16>
    %21 = vector.shape_cast %18 : vector<16x128xbf16> to vector<1x16x128xbf16>
    tpu.vector_store %arg5[%c0_15, %c0_16, %c164], %21 {strides = array<i32>} : memref<1x16x292xbf16, #tpu.memory_space<vmem>>, vector<1x16x128xbf16>,
    return
  }
  func.func @transform_0(%arg0: i32) -> (i32, i32, i32) {
    %c0_i32 = arith.constant 0 : i32
    %c0_i32_0 = arith.constant 0 : i32
    %c0_i32_1 = arith.constant 0 : i32
    return %arg0, %c0_i32, %c0_i32_0 : i32, i32, i32
  }
  func.func @transform_1(%arg0: i32) -> (i32, i32) {
    %c0_i32 = arith.constant 0 : i32
    %c0_i32_0 = arith.constant 0 : i32
    %c0_i32_1 = arith.constant 0 : i32
    return %c0_i32, %c0_i32_0 : i32, i32
  }
  func.func @transform_2(%arg0: i32) -> (i32, i32) {
    %c0_i32 = arith.constant 0 : i32
    %c0_i32_0 = arith.constant 0 : i32
    %c0_i32_1 = arith.constant 0 : i32
    return %c0_i32, %c0_i32_0 : i32, i32
  }
  func.func @transform_3(%arg0: i32) -> (i32, i32) {
    %c0_i32 = arith.constant 0 : i32
    %c0_i32_0 = arith.constant 0 : i32
    %c0_i32_1 = arith.constant 0 : i32
    return %c0_i32, %c0_i32_0 : i32, i32
  }
  func.func @transform_4(%arg0: i32) -> (i32, i32, i32) {
    %c0_i32 = arith.constant 0 : i32
    %c0_i32_0 = arith.constant 0 : i32
    %c0_i32_1 = arith.constant 0 : i32
    return %arg0, %c0_i32, %c0_i32_0 : i32, i32, i32
  }
}

module attributes {stable_mosaic.version = 11 : i64} {
  func.func @_conv_kernel(%arg0: i32, %arg1: memref<1x16x356xbf16, #tpu.memory_space<vmem>>, %arg2: memref<16x16xbf16, #tpu.memory_space<vmem>>, %arg3: memref<16x1xf32, #tpu.memory_space<vmem>>, %arg4: memref<1x100xf32, #tpu.memory_space<vmem>>, %arg5: memref<1x16x356xbf16, #tpu.memory_space<vmem>>) attributes {dimension_semantics = [#tpu.dimension_semantics<parallel>], iteration_bounds = array<i64: 2>, scalar_prefetch = 0 : i64, scratch_operands = 0 : i64, tpu.core_type = #tpu.core_type<tc>, window_params = [{transform_indices = @transform_0, window_bounds = array<i64: 1, 16, 356>}, {pipeline_mode = #tpu.pipeline_mode<synchronous>, transform_indices = @transform_1, window_bounds = array<i64: 16, 16>}, {pipeline_mode = #tpu.pipeline_mode<synchronous>, transform_indices = @transform_2, window_bounds = array<i64: 16, 1>}, {pipeline_mode = #tpu.pipeline_mode<synchronous>, transform_indices = @transform_3, window_bounds = array<i64: 1, 100>}, {transform_indices = @transform_4, window_bounds = array<i64: 1, 16, 356>}]} {
    %c0 = arith.constant 0 : index
    %c0_0 = arith.constant 0 : index
    %c128 = arith.constant 128 : index
    %0 = vector.load %arg1[%c0, %c0_0, %c128] : memref<1x16x356xbf16, #tpu.memory_space<vmem>>, vector<1x16x100xbf16>
    %1 = vector.shape_cast %0 : vector<1x16x100xbf16> to vector<16x100xbf16>
    %c0_1 = arith.constant 0 : index
    %c0_2 = arith.constant 0 : index
    %2 = vector.load %arg2[%c0_1, %c0_2] : memref<16x16xbf16, #tpu.memory_space<vmem>>, vector<16x16xbf16>
    %cst = arith.constant dense<0.000000e+00> : vector<16x100xf32>
    %3 = tpu.matmul %2, %1, %cst {dimension_numbers = #tpu.dot_dimension_numbers<[1], [0], [0], [1], [0, 0, 1, 1], [], []>} : vector<16x16xbf16>, vector<16x100xbf16>, vector<16x100xf32> -> vector<16x100xf32>
    %c0_3 = arith.constant 0 : index
    %c0_4 = arith.constant 0 : index
    %4 = vector.load %arg3[%c0_3, %c0_4] : memref<16x1xf32, #tpu.memory_space<vmem>>, vector<16x1xf32>
    %5 = vector.broadcast %4 : vector<16x1xf32> to vector<16x100xf32>
    %6 = arith.addf %3, %5 : vector<16x100xf32>
    %c0_5 = arith.constant 0 : index
    %c0_6 = arith.constant 0 : index
    %7 = vector.load %arg4[%c0_5, %c0_6] : memref<1x100xf32, #tpu.memory_space<vmem>>, vector<1x100xf32>
    %8 = vector.broadcast %7 : vector<1x100xf32> to vector<16x100xf32>
    %9 = arith.mulf %6, %8 : vector<16x100xf32>
    %cst_7 = arith.constant 0.000000e+00 : bf16
    %10 = vector.broadcast %cst_7 : bf16 to vector<16x128xbf16>
    %c0_8 = arith.constant 0 : index
    %c0_9 = arith.constant 0 : index
    %c0_10 = arith.constant 0 : index
    %11 = vector.load %arg5[%c0_8, %c0_9, %c0_10] : memref<1x16x356xbf16, #tpu.memory_space<vmem>>, vector<1x16x128xbf16>
    %12 = vector.shape_cast %11 : vector<1x16x128xbf16> to vector<16x128xbf16>
    %13 = vector.shape_cast %10 : vector<16x128xbf16> to vector<1x16x128xbf16>
    tpu.vector_store %arg5[%c0_8, %c0_9, %c0_10], %13 {strides = array<i32>} : memref<1x16x356xbf16, #tpu.memory_space<vmem>>, vector<1x16x128xbf16>,
    %14 = arith.truncf %9 : vector<16x100xf32> to vector<16x100xbf16>
    %c0_11 = arith.constant 0 : index
    %c0_12 = arith.constant 0 : index
    %c128_13 = arith.constant 128 : index
    %15 = vector.load %arg5[%c0_11, %c0_12, %c128_13] : memref<1x16x356xbf16, #tpu.memory_space<vmem>>, vector<1x16x100xbf16>
    %16 = vector.shape_cast %15 : vector<1x16x100xbf16> to vector<16x100xbf16>
    %17 = vector.shape_cast %14 : vector<16x100xbf16> to vector<1x16x100xbf16>
    tpu.vector_store %arg5[%c0_11, %c0_12, %c128_13], %17 {strides = array<i32>} : memref<1x16x356xbf16, #tpu.memory_space<vmem>>, vector<1x16x100xbf16>,
    %cst_14 = arith.constant 0.000000e+00 : bf16
    %18 = vector.broadcast %cst_14 : bf16 to vector<16x128xbf16>
    %c0_15 = arith.constant 0 : index
    %c0_16 = arith.constant 0 : index
    %c228 = arith.constant 228 : index
    %19 = vector.load %arg5[%c0_15, %c0_16, %c228] : memref<1x16x356xbf16, #tpu.memory_space<vmem>>, vector<1x16x128xbf16>
    %20 = vector.shape_cast %19 : vector<1x16x128xbf16> to vector<16x128xbf16>
    %21 = vector.shape_cast %18 : vector<16x128xbf16> to vector<1x16x128xbf16>
    tpu.vector_store %arg5[%c0_15, %c0_16, %c228], %21 {strides = array<i32>} : memref<1x16x356xbf16, #tpu.memory_space<vmem>>, vector<1x16x128xbf16>,
    return
  }
  func.func @transform_0(%arg0: i32) -> (i32, i32, i32) {
    %c0_i32 = arith.constant 0 : i32
    %c0_i32_0 = arith.constant 0 : i32
    %c0_i32_1 = arith.constant 0 : i32
    return %arg0, %c0_i32, %c0_i32_0 : i32, i32, i32
  }
  func.func @transform_1(%arg0: i32) -> (i32, i32) {
    %c0_i32 = arith.constant 0 : i32
    %c0_i32_0 = arith.constant 0 : i32
    %c0_i32_1 = arith.constant 0 : i32
    return %c0_i32, %c0_i32_0 : i32, i32
  }
  func.func @transform_2(%arg0: i32) -> (i32, i32) {
    %c0_i32 = arith.constant 0 : i32
    %c0_i32_0 = arith.constant 0 : i32
    %c0_i32_1 = arith.constant 0 : i32
    return %c0_i32, %c0_i32_0 : i32, i32
  }
  func.func @transform_3(%arg0: i32) -> (i32, i32) {
    %c0_i32 = arith.constant 0 : i32
    %c0_i32_0 = arith.constant 0 : i32
    %c0_i32_1 = arith.constant 0 : i32
    return %c0_i32, %c0_i32_0 : i32, i32
  }
  func.func @transform_4(%arg0: i32) -> (i32, i32, i32) {
    %c0_i32 = arith.constant 0 : i32
    %c0_i32_0 = arith.constant 0 : i32
    %c0_i32_1 = arith.constant 0 : i32
    return %arg0, %c0_i32, %c0_i32_0 : i32, i32, i32
  }
}

module attributes {stable_mosaic.version = 11 : i64} {
  func.func @_conv_kernel(%arg0: i32, %arg1: memref<1x16x580xbf16, #tpu.memory_space<vmem>>, %arg2: memref<16x16xbf16, #tpu.memory_space<vmem>>, %arg3: memref<16x1xf32, #tpu.memory_space<vmem>>, %arg4: memref<1x324xf32, #tpu.memory_space<vmem>>, %arg5: memref<1x16x580xbf16, #tpu.memory_space<vmem>>) attributes {dimension_semantics = [#tpu.dimension_semantics<parallel>], iteration_bounds = array<i64: 2>, scalar_prefetch = 0 : i64, scratch_operands = 0 : i64, tpu.core_type = #tpu.core_type<tc>, window_params = [{transform_indices = @transform_0, window_bounds = array<i64: 1, 16, 580>}, {pipeline_mode = #tpu.pipeline_mode<synchronous>, transform_indices = @transform_1, window_bounds = array<i64: 16, 16>}, {pipeline_mode = #tpu.pipeline_mode<synchronous>, transform_indices = @transform_2, window_bounds = array<i64: 16, 1>}, {pipeline_mode = #tpu.pipeline_mode<synchronous>, transform_indices = @transform_3, window_bounds = array<i64: 1, 324>}, {transform_indices = @transform_4, window_bounds = array<i64: 1, 16, 580>}]} {
    %c0 = arith.constant 0 : index
    %c0_0 = arith.constant 0 : index
    %c128 = arith.constant 128 : index
    %0 = vector.load %arg1[%c0, %c0_0, %c128] : memref<1x16x580xbf16, #tpu.memory_space<vmem>>, vector<1x16x324xbf16>
    %1 = vector.shape_cast %0 : vector<1x16x324xbf16> to vector<16x324xbf16>
    %c0_1 = arith.constant 0 : index
    %c0_2 = arith.constant 0 : index
    %2 = vector.load %arg2[%c0_1, %c0_2] : memref<16x16xbf16, #tpu.memory_space<vmem>>, vector<16x16xbf16>
    %cst = arith.constant dense<0.000000e+00> : vector<16x324xf32>
    %3 = tpu.matmul %2, %1, %cst {dimension_numbers = #tpu.dot_dimension_numbers<[1], [0], [0], [1], [0, 0, 1, 1], [], []>} : vector<16x16xbf16>, vector<16x324xbf16>, vector<16x324xf32> -> vector<16x324xf32>
    %c0_3 = arith.constant 0 : index
    %c0_4 = arith.constant 0 : index
    %4 = vector.load %arg3[%c0_3, %c0_4] : memref<16x1xf32, #tpu.memory_space<vmem>>, vector<16x1xf32>
    %5 = vector.broadcast %4 : vector<16x1xf32> to vector<16x324xf32>
    %6 = arith.addf %3, %5 : vector<16x324xf32>
    %c0_5 = arith.constant 0 : index
    %c0_6 = arith.constant 0 : index
    %7 = vector.load %arg4[%c0_5, %c0_6] : memref<1x324xf32, #tpu.memory_space<vmem>>, vector<1x324xf32>
    %8 = vector.broadcast %7 : vector<1x324xf32> to vector<16x324xf32>
    %9 = arith.mulf %6, %8 : vector<16x324xf32>
    %cst_7 = arith.constant 0.000000e+00 : bf16
    %10 = vector.broadcast %cst_7 : bf16 to vector<16x128xbf16>
    %c0_8 = arith.constant 0 : index
    %c0_9 = arith.constant 0 : index
    %c0_10 = arith.constant 0 : index
    %11 = vector.load %arg5[%c0_8, %c0_9, %c0_10] : memref<1x16x580xbf16, #tpu.memory_space<vmem>>, vector<1x16x128xbf16>
    %12 = vector.shape_cast %11 : vector<1x16x128xbf16> to vector<16x128xbf16>
    %13 = vector.shape_cast %10 : vector<16x128xbf16> to vector<1x16x128xbf16>
    tpu.vector_store %arg5[%c0_8, %c0_9, %c0_10], %13 {strides = array<i32>} : memref<1x16x580xbf16, #tpu.memory_space<vmem>>, vector<1x16x128xbf16>,
    %14 = arith.truncf %9 : vector<16x324xf32> to vector<16x324xbf16>
    %c0_11 = arith.constant 0 : index
    %c0_12 = arith.constant 0 : index
    %c128_13 = arith.constant 128 : index
    %15 = vector.load %arg5[%c0_11, %c0_12, %c128_13] : memref<1x16x580xbf16, #tpu.memory_space<vmem>>, vector<1x16x324xbf16>
    %16 = vector.shape_cast %15 : vector<1x16x324xbf16> to vector<16x324xbf16>
    %17 = vector.shape_cast %14 : vector<16x324xbf16> to vector<1x16x324xbf16>
    tpu.vector_store %arg5[%c0_11, %c0_12, %c128_13], %17 {strides = array<i32>} : memref<1x16x580xbf16, #tpu.memory_space<vmem>>, vector<1x16x324xbf16>,
    %cst_14 = arith.constant 0.000000e+00 : bf16
    %18 = vector.broadcast %cst_14 : bf16 to vector<16x128xbf16>
    %c0_15 = arith.constant 0 : index
    %c0_16 = arith.constant 0 : index
    %c452 = arith.constant 452 : index
    %19 = vector.load %arg5[%c0_15, %c0_16, %c452] : memref<1x16x580xbf16, #tpu.memory_space<vmem>>, vector<1x16x128xbf16>
    %20 = vector.shape_cast %19 : vector<1x16x128xbf16> to vector<16x128xbf16>
    %21 = vector.shape_cast %18 : vector<16x128xbf16> to vector<1x16x128xbf16>
    tpu.vector_store %arg5[%c0_15, %c0_16, %c452], %21 {strides = array<i32>} : memref<1x16x580xbf16, #tpu.memory_space<vmem>>, vector<1x16x128xbf16>,
    return
  }
  func.func @transform_0(%arg0: i32) -> (i32, i32, i32) {
    %c0_i32 = arith.constant 0 : i32
    %c0_i32_0 = arith.constant 0 : i32
    %c0_i32_1 = arith.constant 0 : i32
    return %arg0, %c0_i32, %c0_i32_0 : i32, i32, i32
  }
  func.func @transform_1(%arg0: i32) -> (i32, i32) {
    %c0_i32 = arith.constant 0 : i32
    %c0_i32_0 = arith.constant 0 : i32
    %c0_i32_1 = arith.constant 0 : i32
    return %c0_i32, %c0_i32_0 : i32, i32
  }
  func.func @transform_2(%arg0: i32) -> (i32, i32) {
    %c0_i32 = arith.constant 0 : i32
    %c0_i32_0 = arith.constant 0 : i32
    %c0_i32_1 = arith.constant 0 : i32
    return %c0_i32, %c0_i32_0 : i32, i32
  }
  func.func @transform_3(%arg0: i32) -> (i32, i32) {
    %c0_i32 = arith.constant 0 : i32
    %c0_i32_0 = arith.constant 0 : i32
    %c0_i32_1 = arith.constant 0 : i32
    return %c0_i32, %c0_i32_0 : i32, i32
  }
  func.func @transform_4(%arg0: i32) -> (i32, i32, i32) {
    %c0_i32 = arith.constant 0 : i32
    %c0_i32_0 = arith.constant 0 : i32
    %c0_i32_1 = arith.constant 0 : i32
    return %arg0, %c0_i32, %c0_i32_0 : i32, i32, i32
  }
}

module attributes {stable_mosaic.version = 11 : i64} {
  func.func @_conv_kernel(%arg0: i32, %arg1: memref<1x16x580xbf16, #tpu.memory_space<vmem>>, %arg2: memref<16x144xbf16, #tpu.memory_space<vmem>>, %arg3: memref<16x1xf32, #tpu.memory_space<vmem>>, %arg4: memref<16x1xf32, #tpu.memory_space<vmem>>, %arg5: memref<16x1xf32, #tpu.memory_space<vmem>>, %arg6: memref<1x324xf32, #tpu.memory_space<vmem>>, %arg7: memref<1x16x580xbf16, #tpu.memory_space<vmem>>) attributes {dimension_semantics = [#tpu.dimension_semantics<parallel>], iteration_bounds = array<i64: 2>, scalar_prefetch = 0 : i64, scratch_operands = 0 : i64, tpu.core_type = #tpu.core_type<tc>, window_params = [{transform_indices = @transform_0, window_bounds = array<i64: 1, 16, 580>}, {pipeline_mode = #tpu.pipeline_mode<synchronous>, transform_indices = @transform_1, window_bounds = array<i64: 16, 144>}, {pipeline_mode = #tpu.pipeline_mode<synchronous>, transform_indices = @transform_2, window_bounds = array<i64: 16, 1>}, {pipeline_mode = #tpu.pipeline_mode<synchronous>, transform_indices = @transform_3, window_bounds = array<i64: 16, 1>}, {pipeline_mode = #tpu.pipeline_mode<synchronous>, transform_indices = @transform_4, window_bounds = array<i64: 16, 1>}, {pipeline_mode = #tpu.pipeline_mode<synchronous>, transform_indices = @transform_5, window_bounds = array<i64: 1, 324>}, {transform_indices = @transform_6, window_bounds = array<i64: 1, 16, 580>}]} {
    %c0 = arith.constant 0 : index
    %c0_0 = arith.constant 0 : index
    %c109 = arith.constant 109 : index
    %0 = vector.load %arg1[%c0, %c0_0, %c109] : memref<1x16x580xbf16, #tpu.memory_space<vmem>>, vector<1x16x324xbf16>
    %1 = vector.shape_cast %0 : vector<1x16x324xbf16> to vector<16x324xbf16>
    %c0_1 = arith.constant 0 : index
    %c0_2 = arith.constant 0 : index
    %c110 = arith.constant 110 : index
    %2 = vector.load %arg1[%c0_1, %c0_2, %c110] : memref<1x16x580xbf16, #tpu.memory_space<vmem>>, vector<1x16x324xbf16>
    %3 = vector.shape_cast %2 : vector<1x16x324xbf16> to vector<16x324xbf16>
    %c0_3 = arith.constant 0 : index
    %c0_4 = arith.constant 0 : index
    %c111 = arith.constant 111 : index
    %4 = vector.load %arg1[%c0_3, %c0_4, %c111] : memref<1x16x580xbf16, #tpu.memory_space<vmem>>, vector<1x16x324xbf16>
    %5 = vector.shape_cast %4 : vector<1x16x324xbf16> to vector<16x324xbf16>
    %c0_5 = arith.constant 0 : index
    %c0_6 = arith.constant 0 : index
    %c127 = arith.constant 127 : index
    %6 = vector.load %arg1[%c0_5, %c0_6, %c127] : memref<1x16x580xbf16, #tpu.memory_space<vmem>>, vector<1x16x324xbf16>
    %7 = vector.shape_cast %6 : vector<1x16x324xbf16> to vector<16x324xbf16>
    %c0_7 = arith.constant 0 : index
    %c0_8 = arith.constant 0 : index
    %c128 = arith.constant 128 : index
    %8 = vector.load %arg1[%c0_7, %c0_8, %c128] : memref<1x16x580xbf16, #tpu.memory_space<vmem>>, vector<1x16x324xbf16>
    %9 = vector.shape_cast %8 : vector<1x16x324xbf16> to vector<16x324xbf16>
    %c0_9 = arith.constant 0 : index
    %c0_10 = arith.constant 0 : index
    %c129 = arith.constant 129 : index
    %10 = vector.load %arg1[%c0_9, %c0_10, %c129] : memref<1x16x580xbf16, #tpu.memory_space<vmem>>, vector<1x16x324xbf16>
    %11 = vector.shape_cast %10 : vector<1x16x324xbf16> to vector<16x324xbf16>
    %c0_11 = arith.constant 0 : index
    %c0_12 = arith.constant 0 : index
    %c145 = arith.constant 145 : index
    %12 = vector.load %arg1[%c0_11, %c0_12, %c145] : memref<1x16x580xbf16, #tpu.memory_space<vmem>>, vector<1x16x324xbf16>
    %13 = vector.shape_cast %12 : vector<1x16x324xbf16> to vector<16x324xbf16>
    %c0_13 = arith.constant 0 : index
    %c0_14 = arith.constant 0 : index
    %c146 = arith.constant 146 : index
    %14 = vector.load %arg1[%c0_13, %c0_14, %c146] : memref<1x16x580xbf16, #tpu.memory_space<vmem>>, vector<1x16x324xbf16>
    %15 = vector.shape_cast %14 : vector<1x16x324xbf16> to vector<16x324xbf16>
    %c0_15 = arith.constant 0 : index
    %c0_16 = arith.constant 0 : index
    %c147 = arith.constant 147 : index
    %16 = vector.load %arg1[%c0_15, %c0_16, %c147] : memref<1x16x580xbf16, #tpu.memory_space<vmem>>, vector<1x16x324xbf16>
    %17 = vector.shape_cast %16 : vector<1x16x324xbf16> to vector<16x324xbf16>
    %18 = tpu.concatenate %1, %3, %5, %7, %9, %11, %13, %15, %17 in 0 : vector<16x324xbf16>, vector<16x324xbf16>, vector<16x324xbf16>, vector<16x324xbf16>, vector<16x324xbf16>, vector<16x324xbf16>, vector<16x324xbf16>, vector<16x324xbf16>, vector<16x324xbf16> -> vector<144x324xbf16>
    %c0_17 = arith.constant 0 : index
    %c0_18 = arith.constant 0 : index
    %19 = vector.load %arg2[%c0_17, %c0_18] : memref<16x144xbf16, #tpu.memory_space<vmem>>, vector<16x144xbf16>
    %cst = arith.constant dense<0.000000e+00> : vector<16x324xf32>
    %20 = tpu.matmul %19, %18, %cst {dimension_numbers = #tpu.dot_dimension_numbers<[1], [0], [0], [1], [0, 0, 1, 1], [], []>} : vector<16x144xbf16>, vector<144x324xbf16>, vector<16x324xf32> -> vector<16x324xf32>
    %c0_19 = arith.constant 0 : index
    %c0_20 = arith.constant 0 : index
    %21 = vector.load %arg3[%c0_19, %c0_20] : memref<16x1xf32, #tpu.memory_space<vmem>>, vector<16x1xf32>
    %22 = vector.broadcast %21 : vector<16x1xf32> to vector<16x324xf32>
    %23 = arith.addf %20, %22 : vector<16x324xf32>
    %c0_21 = arith.constant 0 : index
    %c0_22 = arith.constant 0 : index
    %24 = vector.load %arg6[%c0_21, %c0_22] : memref<1x324xf32, #tpu.memory_space<vmem>>, vector<1x324xf32>
    %25 = vector.broadcast %24 : vector<1x324xf32> to vector<16x324xf32>
    %26 = arith.mulf %23, %25 : vector<16x324xf32>
    %cst_23 = arith.constant dense<0.000000e+00> : vector<16xf32>
    %27 = vector.multi_reduction <add>, %26, %cst_23 [1] : vector<16x324xf32> to vector<16xf32>
    %28 = vector.shape_cast %27 : vector<16xf32> to vector<16x1xf32>
    %29 = arith.mulf %26, %23 : vector<16x324xf32>
    %cst_24 = arith.constant dense<0.000000e+00> : vector<16xf32>
    %30 = vector.multi_reduction <add>, %29, %cst_24 [1] : vector<16x324xf32> to vector<16xf32>
    %31 = vector.shape_cast %30 : vector<16xf32> to vector<16x1xf32>
    %32 = tpu.iota {dimensions = array<i32: 0>} : vector<16x1xi32>
    %cst_25 = arith.constant 0.000000e+00 : f32
    %33 = vector.broadcast %cst_25 : f32 to vector<16x1xf32>
    %cst_26 = arith.constant 0.000000e+00 : f32
    %34 = vector.broadcast %cst_26 : f32 to vector<16x1xf32>
    %c0_i32 = arith.constant 0 : i32
    %35 = vector.broadcast %c0_i32 : i32 to vector<16x1xi32>
    %36 = arith.cmpi sge, %32, %35 : vector<16x1xi32>
    %c4_i32 = arith.constant 4 : i32
    %37 = vector.broadcast %c4_i32 : i32 to vector<16x1xi32>
    %38 = arith.cmpi slt, %32, %37 : vector<16x1xi32>
    %39 = arith.andi %36, %38 : vector<16x1xi1>
    %40 = arith.extui %39 : vector<16x1xi1> to vector<16x1xi32>
    %41 = arith.sitofp %40 : vector<16x1xi32> to vector<16x1xf32>
    %42 = arith.mulf %28, %41 : vector<16x1xf32>
    %cst_27 = arith.constant dense<0.000000e+00> : vector<1xf32>
    %43 = vector.multi_reduction <add>, %42, %cst_27 [0] : vector<16x1xf32> to vector<1xf32>
    %44 = vector.shape_cast %43 : vector<1xf32> to vector<1x1xf32>
    %45 = arith.mulf %31, %41 : vector<16x1xf32>
    %cst_28 = arith.constant dense<0.000000e+00> : vector<1xf32>
    %46 = vector.multi_reduction <add>, %45, %cst_28 [0] : vector<16x1xf32> to vector<1xf32>
    %47 = vector.shape_cast %46 : vector<1xf32> to vector<1x1xf32>
    %cst_29 = arith.constant 9.765625E-4 : f32
    %48 = vector.broadcast %cst_29 : f32 to vector<1x1xf32>
    %49 = arith.mulf %44, %48 : vector<1x1xf32>
    %cst_30 = arith.constant 9.765625E-4 : f32
    %50 = vector.broadcast %cst_30 : f32 to vector<1x1xf32>
    %51 = arith.mulf %47, %50 : vector<1x1xf32>
    %52 = arith.mulf %49, %49 : vector<1x1xf32>
    %53 = arith.subf %51, %52 : vector<1x1xf32>
    %cst_31 = arith.constant 0.000000e+00 : f32
    %54 = vector.broadcast %cst_31 : f32 to vector<1x1xf32>
    %55 = arith.maximumf %53, %54 : vector<1x1xf32>
    %cst_32 = arith.constant 9.99999974E-6 : f32
    %56 = vector.broadcast %cst_32 : f32 to vector<1x1xf32>
    %57 = arith.addf %55, %56 : vector<1x1xf32>
    %58 = math.rsqrt %57 : vector<1x1xf32>
    %59 = vector.broadcast %49 : vector<1x1xf32> to vector<16x1xf32>
    %60 = arith.mulf %41, %59 : vector<16x1xf32>
    %61 = arith.addf %33, %60 : vector<16x1xf32>
    %62 = vector.broadcast %58 : vector<1x1xf32> to vector<16x1xf32>
    %63 = arith.mulf %41, %62 : vector<16x1xf32>
    %64 = arith.addf %34, %63 : vector<16x1xf32>
    %c4_i32_33 = arith.constant 4 : i32
    %65 = vector.broadcast %c4_i32_33 : i32 to vector<16x1xi32>
    %66 = arith.cmpi sge, %32, %65 : vector<16x1xi32>
    %c8_i32 = arith.constant 8 : i32
    %67 = vector.broadcast %c8_i32 : i32 to vector<16x1xi32>
    %68 = arith.cmpi slt, %32, %67 : vector<16x1xi32>
    %69 = arith.andi %66, %68 : vector<16x1xi1>
    %70 = arith.extui %69 : vector<16x1xi1> to vector<16x1xi32>
    %71 = arith.sitofp %70 : vector<16x1xi32> to vector<16x1xf32>
    %72 = arith.mulf %28, %71 : vector<16x1xf32>
    %cst_34 = arith.constant dense<0.000000e+00> : vector<1xf32>
    %73 = vector.multi_reduction <add>, %72, %cst_34 [0] : vector<16x1xf32> to vector<1xf32>
    %74 = vector.shape_cast %73 : vector<1xf32> to vector<1x1xf32>
    %75 = arith.mulf %31, %71 : vector<16x1xf32>
    %cst_35 = arith.constant dense<0.000000e+00> : vector<1xf32>
    %76 = vector.multi_reduction <add>, %75, %cst_35 [0] : vector<16x1xf32> to vector<1xf32>
    %77 = vector.shape_cast %76 : vector<1xf32> to vector<1x1xf32>
    %cst_36 = arith.constant 9.765625E-4 : f32
    %78 = vector.broadcast %cst_36 : f32 to vector<1x1xf32>
    %79 = arith.mulf %74, %78 : vector<1x1xf32>
    %cst_37 = arith.constant 9.765625E-4 : f32
    %80 = vector.broadcast %cst_37 : f32 to vector<1x1xf32>
    %81 = arith.mulf %77, %80 : vector<1x1xf32>
    %82 = arith.mulf %79, %79 : vector<1x1xf32>
    %83 = arith.subf %81, %82 : vector<1x1xf32>
    %cst_38 = arith.constant 0.000000e+00 : f32
    %84 = vector.broadcast %cst_38 : f32 to vector<1x1xf32>
    %85 = arith.maximumf %83, %84 : vector<1x1xf32>
    %cst_39 = arith.constant 9.99999974E-6 : f32
    %86 = vector.broadcast %cst_39 : f32 to vector<1x1xf32>
    %87 = arith.addf %85, %86 : vector<1x1xf32>
    %88 = math.rsqrt %87 : vector<1x1xf32>
    %89 = vector.broadcast %79 : vector<1x1xf32> to vector<16x1xf32>
    %90 = arith.mulf %71, %89 : vector<16x1xf32>
    %91 = arith.addf %61, %90 : vector<16x1xf32>
    %92 = vector.broadcast %88 : vector<1x1xf32> to vector<16x1xf32>
    %93 = arith.mulf %71, %92 : vector<16x1xf32>
    %94 = arith.addf %64, %93 : vector<16x1xf32>
    %c8_i32_40 = arith.constant 8 : i32
    %95 = vector.broadcast %c8_i32_40 : i32 to vector<16x1xi32>
    %96 = arith.cmpi sge, %32, %95 : vector<16x1xi32>
    %c12_i32 = arith.constant 12 : i32
    %97 = vector.broadcast %c12_i32 : i32 to vector<16x1xi32>
    %98 = arith.cmpi slt, %32, %97 : vector<16x1xi32>
    %99 = arith.andi %96, %98 : vector<16x1xi1>
    %100 = arith.extui %99 : vector<16x1xi1> to vector<16x1xi32>
    %101 = arith.sitofp %100 : vector<16x1xi32> to vector<16x1xf32>
    %102 = arith.mulf %28, %101 : vector<16x1xf32>
    %cst_41 = arith.constant dense<0.000000e+00> : vector<1xf32>
    %103 = vector.multi_reduction <add>, %102, %cst_41 [0] : vector<16x1xf32> to vector<1xf32>
    %104 = vector.shape_cast %103 : vector<1xf32> to vector<1x1xf32>
    %105 = arith.mulf %31, %101 : vector<16x1xf32>
    %cst_42 = arith.constant dense<0.000000e+00> : vector<1xf32>
    %106 = vector.multi_reduction <add>, %105, %cst_42 [0] : vector<16x1xf32> to vector<1xf32>
    %107 = vector.shape_cast %106 : vector<1xf32> to vector<1x1xf32>
    %cst_43 = arith.constant 9.765625E-4 : f32
    %108 = vector.broadcast %cst_43 : f32 to vector<1x1xf32>
    %109 = arith.mulf %104, %108 : vector<1x1xf32>
    %cst_44 = arith.constant 9.765625E-4 : f32
    %110 = vector.broadcast %cst_44 : f32 to vector<1x1xf32>
    %111 = arith.mulf %107, %110 : vector<1x1xf32>
    %112 = arith.mulf %109, %109 : vector<1x1xf32>
    %113 = arith.subf %111, %112 : vector<1x1xf32>
    %cst_45 = arith.constant 0.000000e+00 : f32
    %114 = vector.broadcast %cst_45 : f32 to vector<1x1xf32>
    %115 = arith.maximumf %113, %114 : vector<1x1xf32>
    %cst_46 = arith.constant 9.99999974E-6 : f32
    %116 = vector.broadcast %cst_46 : f32 to vector<1x1xf32>
    %117 = arith.addf %115, %116 : vector<1x1xf32>
    %118 = math.rsqrt %117 : vector<1x1xf32>
    %119 = vector.broadcast %109 : vector<1x1xf32> to vector<16x1xf32>
    %120 = arith.mulf %101, %119 : vector<16x1xf32>
    %121 = arith.addf %91, %120 : vector<16x1xf32>
    %122 = vector.broadcast %118 : vector<1x1xf32> to vector<16x1xf32>
    %123 = arith.mulf %101, %122 : vector<16x1xf32>
    %124 = arith.addf %94, %123 : vector<16x1xf32>
    %c12_i32_47 = arith.constant 12 : i32
    %125 = vector.broadcast %c12_i32_47 : i32 to vector<16x1xi32>
    %126 = arith.cmpi sge, %32, %125 : vector<16x1xi32>
    %c16_i32 = arith.constant 16 : i32
    %127 = vector.broadcast %c16_i32 : i32 to vector<16x1xi32>
    %128 = arith.cmpi slt, %32, %127 : vector<16x1xi32>
    %129 = arith.andi %126, %128 : vector<16x1xi1>
    %130 = arith.extui %129 : vector<16x1xi1> to vector<16x1xi32>
    %131 = arith.sitofp %130 : vector<16x1xi32> to vector<16x1xf32>
    %132 = arith.mulf %28, %131 : vector<16x1xf32>
    %cst_48 = arith.constant dense<0.000000e+00> : vector<1xf32>
    %133 = vector.multi_reduction <add>, %132, %cst_48 [0] : vector<16x1xf32> to vector<1xf32>
    %134 = vector.shape_cast %133 : vector<1xf32> to vector<1x1xf32>
    %135 = arith.mulf %31, %131 : vector<16x1xf32>
    %cst_49 = arith.constant dense<0.000000e+00> : vector<1xf32>
    %136 = vector.multi_reduction <add>, %135, %cst_49 [0] : vector<16x1xf32> to vector<1xf32>
    %137 = vector.shape_cast %136 : vector<1xf32> to vector<1x1xf32>
    %cst_50 = arith.constant 9.765625E-4 : f32
    %138 = vector.broadcast %cst_50 : f32 to vector<1x1xf32>
    %139 = arith.mulf %134, %138 : vector<1x1xf32>
    %cst_51 = arith.constant 9.765625E-4 : f32
    %140 = vector.broadcast %cst_51 : f32 to vector<1x1xf32>
    %141 = arith.mulf %137, %140 : vector<1x1xf32>
    %142 = arith.mulf %139, %139 : vector<1x1xf32>
    %143 = arith.subf %141, %142 : vector<1x1xf32>
    %cst_52 = arith.constant 0.000000e+00 : f32
    %144 = vector.broadcast %cst_52 : f32 to vector<1x1xf32>
    %145 = arith.maximumf %143, %144 : vector<1x1xf32>
    %cst_53 = arith.constant 9.99999974E-6 : f32
    %146 = vector.broadcast %cst_53 : f32 to vector<1x1xf32>
    %147 = arith.addf %145, %146 : vector<1x1xf32>
    %148 = math.rsqrt %147 : vector<1x1xf32>
    %149 = vector.broadcast %139 : vector<1x1xf32> to vector<16x1xf32>
    %150 = arith.mulf %131, %149 : vector<16x1xf32>
    %151 = arith.addf %121, %150 : vector<16x1xf32>
    %152 = vector.broadcast %148 : vector<1x1xf32> to vector<16x1xf32>
    %153 = arith.mulf %131, %152 : vector<16x1xf32>
    %154 = arith.addf %124, %153 : vector<16x1xf32>
    %155 = vector.broadcast %151 : vector<16x1xf32> to vector<16x324xf32>
    %156 = arith.subf %23, %155 : vector<16x324xf32>
    %c0_54 = arith.constant 0 : index
    %c0_55 = arith.constant 0 : index
    %157 = vector.load %arg4[%c0_54, %c0_55] : memref<16x1xf32, #tpu.memory_space<vmem>>, vector<16x1xf32>
    %158 = arith.mulf %154, %157 : vector<16x1xf32>
    %159 = vector.broadcast %158 : vector<16x1xf32> to vector<16x324xf32>
    %160 = arith.mulf %156, %159 : vector<16x324xf32>
    %c0_56 = arith.constant 0 : index
    %c0_57 = arith.constant 0 : index
    %161 = vector.load %arg5[%c0_56, %c0_57] : memref<16x1xf32, #tpu.memory_space<vmem>>, vector<16x1xf32>
    %162 = vector.broadcast %161 : vector<16x1xf32> to vector<16x324xf32>
    %163 = arith.addf %160, %162 : vector<16x324xf32>
    %cst_58 = arith.constant 0.000000e+00 : f32
    %164 = vector.broadcast %cst_58 : f32 to vector<16x324xf32>
    %165 = arith.maximumf %163, %164 : vector<16x324xf32>
    %166 = vector.broadcast %24 : vector<1x324xf32> to vector<16x324xf32>
    %167 = arith.mulf %165, %166 : vector<16x324xf32>
    %cst_59 = arith.constant 0.000000e+00 : bf16
    %168 = vector.broadcast %cst_59 : bf16 to vector<16x128xbf16>
    %c0_60 = arith.constant 0 : index
    %c0_61 = arith.constant 0 : index
    %c0_62 = arith.constant 0 : index
    %169 = vector.load %arg7[%c0_60, %c0_61, %c0_62] : memref<1x16x580xbf16, #tpu.memory_space<vmem>>, vector<1x16x128xbf16>
    %170 = vector.shape_cast %169 : vector<1x16x128xbf16> to vector<16x128xbf16>
    %171 = vector.shape_cast %168 : vector<16x128xbf16> to vector<1x16x128xbf16>
    tpu.vector_store %arg7[%c0_60, %c0_61, %c0_62], %171 {strides = array<i32>} : memref<1x16x580xbf16, #tpu.memory_space<vmem>>, vector<1x16x128xbf16>,
    %172 = arith.truncf %167 : vector<16x324xf32> to vector<16x324xbf16>
    %c0_63 = arith.constant 0 : index
    %c0_64 = arith.constant 0 : index
    %c128_65 = arith.constant 128 : index
    %173 = vector.load %arg7[%c0_63, %c0_64, %c128_65] : memref<1x16x580xbf16, #tpu.memory_space<vmem>>, vector<1x16x324xbf16>
    %174 = vector.shape_cast %173 : vector<1x16x324xbf16> to vector<16x324xbf16>
    %175 = vector.shape_cast %172 : vector<16x324xbf16> to vector<1x16x324xbf16>
    tpu.vector_store %arg7[%c0_63, %c0_64, %c128_65], %175 {strides = array<i32>} : memref<1x16x580xbf16, #tpu.memory_space<vmem>>, vector<1x16x324xbf16>,
    %cst_66 = arith.constant 0.000000e+00 : bf16
    %176 = vector.broadcast %cst_66 : bf16 to vector<16x128xbf16>
    %c0_67 = arith.constant 0 : index
    %c0_68 = arith.constant 0 : index
    %c452 = arith.constant 452 : index
    %177 = vector.load %arg7[%c0_67, %c0_68, %c452] : memref<1x16x580xbf16, #tpu.memory_space<vmem>>, vector<1x16x128xbf16>
    %178 = vector.shape_cast %177 : vector<1x16x128xbf16> to vector<16x128xbf16>
    %179 = vector.shape_cast %176 : vector<16x128xbf16> to vector<1x16x128xbf16>
    tpu.vector_store %arg7[%c0_67, %c0_68, %c452], %179 {strides = array<i32>} : memref<1x16x580xbf16, #tpu.memory_space<vmem>>, vector<1x16x128xbf16>,
    return
  }
  func.func @transform_0(%arg0: i32) -> (i32, i32, i32) {
    %c0_i32 = arith.constant 0 : i32
    %c0_i32_0 = arith.constant 0 : i32
    %c0_i32_1 = arith.constant 0 : i32
    return %arg0, %c0_i32, %c0_i32_0 : i32, i32, i32
  }
  func.func @transform_1(%arg0: i32) -> (i32, i32) {
    %c0_i32 = arith.constant 0 : i32
    %c0_i32_0 = arith.constant 0 : i32
    %c0_i32_1 = arith.constant 0 : i32
    return %c0_i32, %c0_i32_0 : i32, i32
  }
  func.func @transform_2(%arg0: i32) -> (i32, i32) {
    %c0_i32 = arith.constant 0 : i32
    %c0_i32_0 = arith.constant 0 : i32
    %c0_i32_1 = arith.constant 0 : i32
    return %c0_i32, %c0_i32_0 : i32, i32
  }
  func.func @transform_3(%arg0: i32) -> (i32, i32) {
    %c0_i32 = arith.constant 0 : i32
    %c0_i32_0 = arith.constant 0 : i32
    %c0_i32_1 = arith.constant 0 : i32
    return %c0_i32, %c0_i32_0 : i32, i32
  }
  func.func @transform_4(%arg0: i32) -> (i32, i32) {
    %c0_i32 = arith.constant 0 : i32
    %c0_i32_0 = arith.constant 0 : i32
    %c0_i32_1 = arith.constant 0 : i32
    return %c0_i32, %c0_i32_0 : i32, i32
  }
  func.func @transform_5(%arg0: i32) -> (i32, i32) {
    %c0_i32 = arith.constant 0 : i32
    %c0_i32_0 = arith.constant 0 : i32
    %c0_i32_1 = arith.constant 0 : i32
    return %c0_i32, %c0_i32_0 : i32, i32
  }
  func.func @transform_6(%arg0: i32) -> (i32, i32, i32) {
    %c0_i32 = arith.constant 0 : i32
    %c0_i32_0 = arith.constant 0 : i32
    %c0_i32_1 = arith.constant 0 : i32
    return %arg0, %c0_i32, %c0_i32_0 : i32, i32, i32
  }
}

module attributes {stable_mosaic.version = 11 : i64} {
  func.func @_conv_kernel(%arg0: i32, %arg1: memref<1x16x580xbf16, #tpu.memory_space<vmem>>, %arg2: memref<16x144xbf16, #tpu.memory_space<vmem>>, %arg3: memref<16x1xf32, #tpu.memory_space<vmem>>, %arg4: memref<1x324xf32, #tpu.memory_space<vmem>>, %arg5: memref<1x16x580xbf16, #tpu.memory_space<vmem>>) attributes {dimension_semantics = [#tpu.dimension_semantics<parallel>], iteration_bounds = array<i64: 2>, scalar_prefetch = 0 : i64, scratch_operands = 0 : i64, tpu.core_type = #tpu.core_type<tc>, window_params = [{transform_indices = @transform_0, window_bounds = array<i64: 1, 16, 580>}, {pipeline_mode = #tpu.pipeline_mode<synchronous>, transform_indices = @transform_1, window_bounds = array<i64: 16, 144>}, {pipeline_mode = #tpu.pipeline_mode<synchronous>, transform_indices = @transform_2, window_bounds = array<i64: 16, 1>}, {pipeline_mode = #tpu.pipeline_mode<synchronous>, transform_indices = @transform_3, window_bounds = array<i64: 1, 324>}, {transform_indices = @transform_4, window_bounds = array<i64: 1, 16, 580>}]} {
    %c0 = arith.constant 0 : index
    %c0_0 = arith.constant 0 : index
    %c109 = arith.constant 109 : index
    %0 = vector.load %arg1[%c0, %c0_0, %c109] : memref<1x16x580xbf16, #tpu.memory_space<vmem>>, vector<1x16x324xbf16>
    %1 = vector.shape_cast %0 : vector<1x16x324xbf16> to vector<16x324xbf16>
    %c0_1 = arith.constant 0 : index
    %c0_2 = arith.constant 0 : index
    %c110 = arith.constant 110 : index
    %2 = vector.load %arg1[%c0_1, %c0_2, %c110] : memref<1x16x580xbf16, #tpu.memory_space<vmem>>, vector<1x16x324xbf16>
    %3 = vector.shape_cast %2 : vector<1x16x324xbf16> to vector<16x324xbf16>
    %c0_3 = arith.constant 0 : index
    %c0_4 = arith.constant 0 : index
    %c111 = arith.constant 111 : index
    %4 = vector.load %arg1[%c0_3, %c0_4, %c111] : memref<1x16x580xbf16, #tpu.memory_space<vmem>>, vector<1x16x324xbf16>
    %5 = vector.shape_cast %4 : vector<1x16x324xbf16> to vector<16x324xbf16>
    %c0_5 = arith.constant 0 : index
    %c0_6 = arith.constant 0 : index
    %c127 = arith.constant 127 : index
    %6 = vector.load %arg1[%c0_5, %c0_6, %c127] : memref<1x16x580xbf16, #tpu.memory_space<vmem>>, vector<1x16x324xbf16>
    %7 = vector.shape_cast %6 : vector<1x16x324xbf16> to vector<16x324xbf16>
    %c0_7 = arith.constant 0 : index
    %c0_8 = arith.constant 0 : index
    %c128 = arith.constant 128 : index
    %8 = vector.load %arg1[%c0_7, %c0_8, %c128] : memref<1x16x580xbf16, #tpu.memory_space<vmem>>, vector<1x16x324xbf16>
    %9 = vector.shape_cast %8 : vector<1x16x324xbf16> to vector<16x324xbf16>
    %c0_9 = arith.constant 0 : index
    %c0_10 = arith.constant 0 : index
    %c129 = arith.constant 129 : index
    %10 = vector.load %arg1[%c0_9, %c0_10, %c129] : memref<1x16x580xbf16, #tpu.memory_space<vmem>>, vector<1x16x324xbf16>
    %11 = vector.shape_cast %10 : vector<1x16x324xbf16> to vector<16x324xbf16>
    %c0_11 = arith.constant 0 : index
    %c0_12 = arith.constant 0 : index
    %c145 = arith.constant 145 : index
    %12 = vector.load %arg1[%c0_11, %c0_12, %c145] : memref<1x16x580xbf16, #tpu.memory_space<vmem>>, vector<1x16x324xbf16>
    %13 = vector.shape_cast %12 : vector<1x16x324xbf16> to vector<16x324xbf16>
    %c0_13 = arith.constant 0 : index
    %c0_14 = arith.constant 0 : index
    %c146 = arith.constant 146 : index
    %14 = vector.load %arg1[%c0_13, %c0_14, %c146] : memref<1x16x580xbf16, #tpu.memory_space<vmem>>, vector<1x16x324xbf16>
    %15 = vector.shape_cast %14 : vector<1x16x324xbf16> to vector<16x324xbf16>
    %c0_15 = arith.constant 0 : index
    %c0_16 = arith.constant 0 : index
    %c147 = arith.constant 147 : index
    %16 = vector.load %arg1[%c0_15, %c0_16, %c147] : memref<1x16x580xbf16, #tpu.memory_space<vmem>>, vector<1x16x324xbf16>
    %17 = vector.shape_cast %16 : vector<1x16x324xbf16> to vector<16x324xbf16>
    %18 = tpu.concatenate %1, %3, %5, %7, %9, %11, %13, %15, %17 in 0 : vector<16x324xbf16>, vector<16x324xbf16>, vector<16x324xbf16>, vector<16x324xbf16>, vector<16x324xbf16>, vector<16x324xbf16>, vector<16x324xbf16>, vector<16x324xbf16>, vector<16x324xbf16> -> vector<144x324xbf16>
    %c0_17 = arith.constant 0 : index
    %c0_18 = arith.constant 0 : index
    %19 = vector.load %arg2[%c0_17, %c0_18] : memref<16x144xbf16, #tpu.memory_space<vmem>>, vector<16x144xbf16>
    %cst = arith.constant dense<0.000000e+00> : vector<16x324xf32>
    %20 = tpu.matmul %19, %18, %cst {dimension_numbers = #tpu.dot_dimension_numbers<[1], [0], [0], [1], [0, 0, 1, 1], [], []>} : vector<16x144xbf16>, vector<144x324xbf16>, vector<16x324xf32> -> vector<16x324xf32>
    %c0_19 = arith.constant 0 : index
    %c0_20 = arith.constant 0 : index
    %21 = vector.load %arg3[%c0_19, %c0_20] : memref<16x1xf32, #tpu.memory_space<vmem>>, vector<16x1xf32>
    %22 = vector.broadcast %21 : vector<16x1xf32> to vector<16x324xf32>
    %23 = arith.addf %20, %22 : vector<16x324xf32>
    %c0_21 = arith.constant 0 : index
    %c0_22 = arith.constant 0 : index
    %24 = vector.load %arg4[%c0_21, %c0_22] : memref<1x324xf32, #tpu.memory_space<vmem>>, vector<1x324xf32>
    %25 = vector.broadcast %24 : vector<1x324xf32> to vector<16x324xf32>
    %26 = arith.mulf %23, %25 : vector<16x324xf32>
    %cst_23 = arith.constant 0.000000e+00 : bf16
    %27 = vector.broadcast %cst_23 : bf16 to vector<16x128xbf16>
    %c0_24 = arith.constant 0 : index
    %c0_25 = arith.constant 0 : index
    %c0_26 = arith.constant 0 : index
    %28 = vector.load %arg5[%c0_24, %c0_25, %c0_26] : memref<1x16x580xbf16, #tpu.memory_space<vmem>>, vector<1x16x128xbf16>
    %29 = vector.shape_cast %28 : vector<1x16x128xbf16> to vector<16x128xbf16>
    %30 = vector.shape_cast %27 : vector<16x128xbf16> to vector<1x16x128xbf16>
    tpu.vector_store %arg5[%c0_24, %c0_25, %c0_26], %30 {strides = array<i32>} : memref<1x16x580xbf16, #tpu.memory_space<vmem>>, vector<1x16x128xbf16>,
    %31 = arith.truncf %26 : vector<16x324xf32> to vector<16x324xbf16>
    %c0_27 = arith.constant 0 : index
    %c0_28 = arith.constant 0 : index
    %c128_29 = arith.constant 128 : index
    %32 = vector.load %arg5[%c0_27, %c0_28, %c128_29] : memref<1x16x580xbf16, #tpu.memory_space<vmem>>, vector<1x16x324xbf16>
    %33 = vector.shape_cast %32 : vector<1x16x324xbf16> to vector<16x324xbf16>
    %34 = vector.shape_cast %31 : vector<16x324xbf16> to vector<1x16x324xbf16>
    tpu.vector_store %arg5[%c0_27, %c0_28, %c128_29], %34 {strides = array<i32>} : memref<1x16x580xbf16, #tpu.memory_space<vmem>>, vector<1x16x324xbf16>,
    %cst_30 = arith.constant 0.000000e+00 : bf16
    %35 = vector.broadcast %cst_30 : bf16 to vector<16x128xbf16>
    %c0_31 = arith.constant 0 : index
    %c0_32 = arith.constant 0 : index
    %c452 = arith.constant 452 : index
    %36 = vector.load %arg5[%c0_31, %c0_32, %c452] : memref<1x16x580xbf16, #tpu.memory_space<vmem>>, vector<1x16x128xbf16>
    %37 = vector.shape_cast %36 : vector<1x16x128xbf16> to vector<16x128xbf16>
    %38 = vector.shape_cast %35 : vector<16x128xbf16> to vector<1x16x128xbf16>
    tpu.vector_store %arg5[%c0_31, %c0_32, %c452], %38 {strides = array<i32>} : memref<1x16x580xbf16, #tpu.memory_space<vmem>>, vector<1x16x128xbf16>,
    return
  }
  func.func @transform_0(%arg0: i32) -> (i32, i32, i32) {
    %c0_i32 = arith.constant 0 : i32
    %c0_i32_0 = arith.constant 0 : i32
    %c0_i32_1 = arith.constant 0 : i32
    return %arg0, %c0_i32, %c0_i32_0 : i32, i32, i32
  }
  func.func @transform_1(%arg0: i32) -> (i32, i32) {
    %c0_i32 = arith.constant 0 : i32
    %c0_i32_0 = arith.constant 0 : i32
    %c0_i32_1 = arith.constant 0 : i32
    return %c0_i32, %c0_i32_0 : i32, i32
  }
  func.func @transform_2(%arg0: i32) -> (i32, i32) {
    %c0_i32 = arith.constant 0 : i32
    %c0_i32_0 = arith.constant 0 : i32
    %c0_i32_1 = arith.constant 0 : i32
    return %c0_i32, %c0_i32_0 : i32, i32
  }
  func.func @transform_3(%arg0: i32) -> (i32, i32) {
    %c0_i32 = arith.constant 0 : i32
    %c0_i32_0 = arith.constant 0 : i32
    %c0_i32_1 = arith.constant 0 : i32
    return %c0_i32, %c0_i32_0 : i32, i32
  }
  func.func @transform_4(%arg0: i32) -> (i32, i32, i32) {
    %c0_i32 = arith.constant 0 : i32
    %c0_i32_0 = arith.constant 0 : i32
    %c0_i32_1 = arith.constant 0 : i32
    return %arg0, %c0_i32, %c0_i32_0 : i32, i32, i32
  }
}

module attributes {stable_mosaic.version = 11 : i64} {
  func.func @_conv_kernel(%arg0: i32, %arg1: memref<1x16x292xbf16, #tpu.memory_space<vmem>>, %arg2: memref<16x144xbf16, #tpu.memory_space<vmem>>, %arg3: memref<16x1xf32, #tpu.memory_space<vmem>>, %arg4: memref<1x36xf32, #tpu.memory_space<vmem>>, %arg5: memref<1x16x292xbf16, #tpu.memory_space<vmem>>) attributes {dimension_semantics = [#tpu.dimension_semantics<parallel>], iteration_bounds = array<i64: 2>, scalar_prefetch = 0 : i64, scratch_operands = 0 : i64, tpu.core_type = #tpu.core_type<tc>, window_params = [{transform_indices = @transform_0, window_bounds = array<i64: 1, 16, 292>}, {pipeline_mode = #tpu.pipeline_mode<synchronous>, transform_indices = @transform_1, window_bounds = array<i64: 16, 144>}, {pipeline_mode = #tpu.pipeline_mode<synchronous>, transform_indices = @transform_2, window_bounds = array<i64: 16, 1>}, {pipeline_mode = #tpu.pipeline_mode<synchronous>, transform_indices = @transform_3, window_bounds = array<i64: 1, 36>}, {transform_indices = @transform_4, window_bounds = array<i64: 1, 16, 292>}]} {
    %c0 = arith.constant 0 : index
    %c0_0 = arith.constant 0 : index
    %c121 = arith.constant 121 : index
    %0 = vector.load %arg1[%c0, %c0_0, %c121] : memref<1x16x292xbf16, #tpu.memory_space<vmem>>, vector<1x16x36xbf16>
    %1 = vector.shape_cast %0 : vector<1x16x36xbf16> to vector<16x36xbf16>
    %c0_1 = arith.constant 0 : index
    %c0_2 = arith.constant 0 : index
    %c122 = arith.constant 122 : index
    %2 = vector.load %arg1[%c0_1, %c0_2, %c122] : memref<1x16x292xbf16, #tpu.memory_space<vmem>>, vector<1x16x36xbf16>
    %3 = vector.shape_cast %2 : vector<1x16x36xbf16> to vector<16x36xbf16>
    %c0_3 = arith.constant 0 : index
    %c0_4 = arith.constant 0 : index
    %c123 = arith.constant 123 : index
    %4 = vector.load %arg1[%c0_3, %c0_4, %c123] : memref<1x16x292xbf16, #tpu.memory_space<vmem>>, vector<1x16x36xbf16>
    %5 = vector.shape_cast %4 : vector<1x16x36xbf16> to vector<16x36xbf16>
    %c0_5 = arith.constant 0 : index
    %c0_6 = arith.constant 0 : index
    %c127 = arith.constant 127 : index
    %6 = vector.load %arg1[%c0_5, %c0_6, %c127] : memref<1x16x292xbf16, #tpu.memory_space<vmem>>, vector<1x16x36xbf16>
    %7 = vector.shape_cast %6 : vector<1x16x36xbf16> to vector<16x36xbf16>
    %c0_7 = arith.constant 0 : index
    %c0_8 = arith.constant 0 : index
    %c128 = arith.constant 128 : index
    %8 = vector.load %arg1[%c0_7, %c0_8, %c128] : memref<1x16x292xbf16, #tpu.memory_space<vmem>>, vector<1x16x36xbf16>
    %9 = vector.shape_cast %8 : vector<1x16x36xbf16> to vector<16x36xbf16>
    %c0_9 = arith.constant 0 : index
    %c0_10 = arith.constant 0 : index
    %c129 = arith.constant 129 : index
    %10 = vector.load %arg1[%c0_9, %c0_10, %c129] : memref<1x16x292xbf16, #tpu.memory_space<vmem>>, vector<1x16x36xbf16>
    %11 = vector.shape_cast %10 : vector<1x16x36xbf16> to vector<16x36xbf16>
    %c0_11 = arith.constant 0 : index
    %c0_12 = arith.constant 0 : index
    %c133 = arith.constant 133 : index
    %12 = vector.load %arg1[%c0_11, %c0_12, %c133] : memref<1x16x292xbf16, #tpu.memory_space<vmem>>, vector<1x16x36xbf16>
    %13 = vector.shape_cast %12 : vector<1x16x36xbf16> to vector<16x36xbf16>
    %c0_13 = arith.constant 0 : index
    %c0_14 = arith.constant 0 : index
    %c134 = arith.constant 134 : index
    %14 = vector.load %arg1[%c0_13, %c0_14, %c134] : memref<1x16x292xbf16, #tpu.memory_space<vmem>>, vector<1x16x36xbf16>
    %15 = vector.shape_cast %14 : vector<1x16x36xbf16> to vector<16x36xbf16>
    %c0_15 = arith.constant 0 : index
    %c0_16 = arith.constant 0 : index
    %c135 = arith.constant 135 : index
    %16 = vector.load %arg1[%c0_15, %c0_16, %c135] : memref<1x16x292xbf16, #tpu.memory_space<vmem>>, vector<1x16x36xbf16>
    %17 = vector.shape_cast %16 : vector<1x16x36xbf16> to vector<16x36xbf16>
    %18 = tpu.concatenate %1, %3, %5, %7, %9, %11, %13, %15, %17 in 0 : vector<16x36xbf16>, vector<16x36xbf16>, vector<16x36xbf16>, vector<16x36xbf16>, vector<16x36xbf16>, vector<16x36xbf16>, vector<16x36xbf16>, vector<16x36xbf16>, vector<16x36xbf16> -> vector<144x36xbf16>
    %c0_17 = arith.constant 0 : index
    %c0_18 = arith.constant 0 : index
    %19 = vector.load %arg2[%c0_17, %c0_18] : memref<16x144xbf16, #tpu.memory_space<vmem>>, vector<16x144xbf16>
    %cst = arith.constant dense<0.000000e+00> : vector<16x36xf32>
    %20 = tpu.matmul %19, %18, %cst {dimension_numbers = #tpu.dot_dimension_numbers<[1], [0], [0], [1], [0, 0, 1, 1], [], []>} : vector<16x144xbf16>, vector<144x36xbf16>, vector<16x36xf32> -> vector<16x36xf32>
    %c0_19 = arith.constant 0 : index
    %c0_20 = arith.constant 0 : index
    %21 = vector.load %arg3[%c0_19, %c0_20] : memref<16x1xf32, #tpu.memory_space<vmem>>, vector<16x1xf32>
    %22 = vector.broadcast %21 : vector<16x1xf32> to vector<16x36xf32>
    %23 = arith.addf %20, %22 : vector<16x36xf32>
    %c0_21 = arith.constant 0 : index
    %c0_22 = arith.constant 0 : index
    %24 = vector.load %arg4[%c0_21, %c0_22] : memref<1x36xf32, #tpu.memory_space<vmem>>, vector<1x36xf32>
    %25 = vector.broadcast %24 : vector<1x36xf32> to vector<16x36xf32>
    %26 = arith.mulf %23, %25 : vector<16x36xf32>
    %cst_23 = arith.constant 0.000000e+00 : bf16
    %27 = vector.broadcast %cst_23 : bf16 to vector<16x128xbf16>
    %c0_24 = arith.constant 0 : index
    %c0_25 = arith.constant 0 : index
    %c0_26 = arith.constant 0 : index
    %28 = vector.load %arg5[%c0_24, %c0_25, %c0_26] : memref<1x16x292xbf16, #tpu.memory_space<vmem>>, vector<1x16x128xbf16>
    %29 = vector.shape_cast %28 : vector<1x16x128xbf16> to vector<16x128xbf16>
    %30 = vector.shape_cast %27 : vector<16x128xbf16> to vector<1x16x128xbf16>
    tpu.vector_store %arg5[%c0_24, %c0_25, %c0_26], %30 {strides = array<i32>} : memref<1x16x292xbf16, #tpu.memory_space<vmem>>, vector<1x16x128xbf16>,
    %31 = arith.truncf %26 : vector<16x36xf32> to vector<16x36xbf16>
    %c0_27 = arith.constant 0 : index
    %c0_28 = arith.constant 0 : index
    %c128_29 = arith.constant 128 : index
    %32 = vector.load %arg5[%c0_27, %c0_28, %c128_29] : memref<1x16x292xbf16, #tpu.memory_space<vmem>>, vector<1x16x36xbf16>
    %33 = vector.shape_cast %32 : vector<1x16x36xbf16> to vector<16x36xbf16>
    %34 = vector.shape_cast %31 : vector<16x36xbf16> to vector<1x16x36xbf16>
    tpu.vector_store %arg5[%c0_27, %c0_28, %c128_29], %34 {strides = array<i32>} : memref<1x16x292xbf16, #tpu.memory_space<vmem>>, vector<1x16x36xbf16>,
    %cst_30 = arith.constant 0.000000e+00 : bf16
    %35 = vector.broadcast %cst_30 : bf16 to vector<16x128xbf16>
    %c0_31 = arith.constant 0 : index
    %c0_32 = arith.constant 0 : index
    %c164 = arith.constant 164 : index
    %36 = vector.load %arg5[%c0_31, %c0_32, %c164] : memref<1x16x292xbf16, #tpu.memory_space<vmem>>, vector<1x16x128xbf16>
    %37 = vector.shape_cast %36 : vector<1x16x128xbf16> to vector<16x128xbf16>
    %38 = vector.shape_cast %35 : vector<16x128xbf16> to vector<1x16x128xbf16>
    tpu.vector_store %arg5[%c0_31, %c0_32, %c164], %38 {strides = array<i32>} : memref<1x16x292xbf16, #tpu.memory_space<vmem>>, vector<1x16x128xbf16>,
    return
  }
  func.func @transform_0(%arg0: i32) -> (i32, i32, i32) {
    %c0_i32 = arith.constant 0 : i32
    %c0_i32_0 = arith.constant 0 : i32
    %c0_i32_1 = arith.constant 0 : i32
    return %arg0, %c0_i32, %c0_i32_0 : i32, i32, i32
  }
  func.func @transform_1(%arg0: i32) -> (i32, i32) {
    %c0_i32 = arith.constant 0 : i32
    %c0_i32_0 = arith.constant 0 : i32
    %c0_i32_1 = arith.constant 0 : i32
    return %c0_i32, %c0_i32_0 : i32, i32
  }
  func.func @transform_2(%arg0: i32) -> (i32, i32) {
    %c0_i32 = arith.constant 0 : i32
    %c0_i32_0 = arith.constant 0 : i32
    %c0_i32_1 = arith.constant 0 : i32
    return %c0_i32, %c0_i32_0 : i32, i32
  }
  func.func @transform_3(%arg0: i32) -> (i32, i32) {
    %c0_i32 = arith.constant 0 : i32
    %c0_i32_0 = arith.constant 0 : i32
    %c0_i32_1 = arith.constant 0 : i32
    return %c0_i32, %c0_i32_0 : i32, i32
  }
  func.func @transform_4(%arg0: i32) -> (i32, i32, i32) {
    %c0_i32 = arith.constant 0 : i32
    %c0_i32_0 = arith.constant 0 : i32
    %c0_i32_1 = arith.constant 0 : i32
    return %arg0, %c0_i32, %c0_i32_0 : i32, i32, i32
  }
}

module attributes {stable_mosaic.version = 11 : i64} {
  func.func @_conv_kernel(%arg0: i32, %arg1: memref<1x16x356xbf16, #tpu.memory_space<vmem>>, %arg2: memref<16x144xbf16, #tpu.memory_space<vmem>>, %arg3: memref<16x1xf32, #tpu.memory_space<vmem>>, %arg4: memref<1x100xf32, #tpu.memory_space<vmem>>, %arg5: memref<1x16x356xbf16, #tpu.memory_space<vmem>>) attributes {dimension_semantics = [#tpu.dimension_semantics<parallel>], iteration_bounds = array<i64: 2>, scalar_prefetch = 0 : i64, scratch_operands = 0 : i64, tpu.core_type = #tpu.core_type<tc>, window_params = [{transform_indices = @transform_0, window_bounds = array<i64: 1, 16, 356>}, {pipeline_mode = #tpu.pipeline_mode<synchronous>, transform_indices = @transform_1, window_bounds = array<i64: 16, 144>}, {pipeline_mode = #tpu.pipeline_mode<synchronous>, transform_indices = @transform_2, window_bounds = array<i64: 16, 1>}, {pipeline_mode = #tpu.pipeline_mode<synchronous>, transform_indices = @transform_3, window_bounds = array<i64: 1, 100>}, {transform_indices = @transform_4, window_bounds = array<i64: 1, 16, 356>}]} {
    %c0 = arith.constant 0 : index
    %c0_0 = arith.constant 0 : index
    %c117 = arith.constant 117 : index
    %0 = vector.load %arg1[%c0, %c0_0, %c117] : memref<1x16x356xbf16, #tpu.memory_space<vmem>>, vector<1x16x100xbf16>
    %1 = vector.shape_cast %0 : vector<1x16x100xbf16> to vector<16x100xbf16>
    %c0_1 = arith.constant 0 : index
    %c0_2 = arith.constant 0 : index
    %c118 = arith.constant 118 : index
    %2 = vector.load %arg1[%c0_1, %c0_2, %c118] : memref<1x16x356xbf16, #tpu.memory_space<vmem>>, vector<1x16x100xbf16>
    %3 = vector.shape_cast %2 : vector<1x16x100xbf16> to vector<16x100xbf16>
    %c0_3 = arith.constant 0 : index
    %c0_4 = arith.constant 0 : index
    %c119 = arith.constant 119 : index
    %4 = vector.load %arg1[%c0_3, %c0_4, %c119] : memref<1x16x356xbf16, #tpu.memory_space<vmem>>, vector<1x16x100xbf16>
    %5 = vector.shape_cast %4 : vector<1x16x100xbf16> to vector<16x100xbf16>
    %c0_5 = arith.constant 0 : index
    %c0_6 = arith.constant 0 : index
    %c127 = arith.constant 127 : index
    %6 = vector.load %arg1[%c0_5, %c0_6, %c127] : memref<1x16x356xbf16, #tpu.memory_space<vmem>>, vector<1x16x100xbf16>
    %7 = vector.shape_cast %6 : vector<1x16x100xbf16> to vector<16x100xbf16>
    %c0_7 = arith.constant 0 : index
    %c0_8 = arith.constant 0 : index
    %c128 = arith.constant 128 : index
    %8 = vector.load %arg1[%c0_7, %c0_8, %c128] : memref<1x16x356xbf16, #tpu.memory_space<vmem>>, vector<1x16x100xbf16>
    %9 = vector.shape_cast %8 : vector<1x16x100xbf16> to vector<16x100xbf16>
    %c0_9 = arith.constant 0 : index
    %c0_10 = arith.constant 0 : index
    %c129 = arith.constant 129 : index
    %10 = vector.load %arg1[%c0_9, %c0_10, %c129] : memref<1x16x356xbf16, #tpu.memory_space<vmem>>, vector<1x16x100xbf16>
    %11 = vector.shape_cast %10 : vector<1x16x100xbf16> to vector<16x100xbf16>
    %c0_11 = arith.constant 0 : index
    %c0_12 = arith.constant 0 : index
    %c137 = arith.constant 137 : index
    %12 = vector.load %arg1[%c0_11, %c0_12, %c137] : memref<1x16x356xbf16, #tpu.memory_space<vmem>>, vector<1x16x100xbf16>
    %13 = vector.shape_cast %12 : vector<1x16x100xbf16> to vector<16x100xbf16>
    %c0_13 = arith.constant 0 : index
    %c0_14 = arith.constant 0 : index
    %c138 = arith.constant 138 : index
    %14 = vector.load %arg1[%c0_13, %c0_14, %c138] : memref<1x16x356xbf16, #tpu.memory_space<vmem>>, vector<1x16x100xbf16>
    %15 = vector.shape_cast %14 : vector<1x16x100xbf16> to vector<16x100xbf16>
    %c0_15 = arith.constant 0 : index
    %c0_16 = arith.constant 0 : index
    %c139 = arith.constant 139 : index
    %16 = vector.load %arg1[%c0_15, %c0_16, %c139] : memref<1x16x356xbf16, #tpu.memory_space<vmem>>, vector<1x16x100xbf16>
    %17 = vector.shape_cast %16 : vector<1x16x100xbf16> to vector<16x100xbf16>
    %18 = tpu.concatenate %1, %3, %5, %7, %9, %11, %13, %15, %17 in 0 : vector<16x100xbf16>, vector<16x100xbf16>, vector<16x100xbf16>, vector<16x100xbf16>, vector<16x100xbf16>, vector<16x100xbf16>, vector<16x100xbf16>, vector<16x100xbf16>, vector<16x100xbf16> -> vector<144x100xbf16>
    %c0_17 = arith.constant 0 : index
    %c0_18 = arith.constant 0 : index
    %19 = vector.load %arg2[%c0_17, %c0_18] : memref<16x144xbf16, #tpu.memory_space<vmem>>, vector<16x144xbf16>
    %cst = arith.constant dense<0.000000e+00> : vector<16x100xf32>
    %20 = tpu.matmul %19, %18, %cst {dimension_numbers = #tpu.dot_dimension_numbers<[1], [0], [0], [1], [0, 0, 1, 1], [], []>} : vector<16x144xbf16>, vector<144x100xbf16>, vector<16x100xf32> -> vector<16x100xf32>
    %c0_19 = arith.constant 0 : index
    %c0_20 = arith.constant 0 : index
    %21 = vector.load %arg3[%c0_19, %c0_20] : memref<16x1xf32, #tpu.memory_space<vmem>>, vector<16x1xf32>
    %22 = vector.broadcast %21 : vector<16x1xf32> to vector<16x100xf32>
    %23 = arith.addf %20, %22 : vector<16x100xf32>
    %c0_21 = arith.constant 0 : index
    %c0_22 = arith.constant 0 : index
    %24 = vector.load %arg4[%c0_21, %c0_22] : memref<1x100xf32, #tpu.memory_space<vmem>>, vector<1x100xf32>
    %25 = vector.broadcast %24 : vector<1x100xf32> to vector<16x100xf32>
    %26 = arith.mulf %23, %25 : vector<16x100xf32>
    %cst_23 = arith.constant 0.000000e+00 : bf16
    %27 = vector.broadcast %cst_23 : bf16 to vector<16x128xbf16>
    %c0_24 = arith.constant 0 : index
    %c0_25 = arith.constant 0 : index
    %c0_26 = arith.constant 0 : index
    %28 = vector.load %arg5[%c0_24, %c0_25, %c0_26] : memref<1x16x356xbf16, #tpu.memory_space<vmem>>, vector<1x16x128xbf16>
    %29 = vector.shape_cast %28 : vector<1x16x128xbf16> to vector<16x128xbf16>
    %30 = vector.shape_cast %27 : vector<16x128xbf16> to vector<1x16x128xbf16>
    tpu.vector_store %arg5[%c0_24, %c0_25, %c0_26], %30 {strides = array<i32>} : memref<1x16x356xbf16, #tpu.memory_space<vmem>>, vector<1x16x128xbf16>,
    %31 = arith.truncf %26 : vector<16x100xf32> to vector<16x100xbf16>
    %c0_27 = arith.constant 0 : index
    %c0_28 = arith.constant 0 : index
    %c128_29 = arith.constant 128 : index
    %32 = vector.load %arg5[%c0_27, %c0_28, %c128_29] : memref<1x16x356xbf16, #tpu.memory_space<vmem>>, vector<1x16x100xbf16>
    %33 = vector.shape_cast %32 : vector<1x16x100xbf16> to vector<16x100xbf16>
    %34 = vector.shape_cast %31 : vector<16x100xbf16> to vector<1x16x100xbf16>
    tpu.vector_store %arg5[%c0_27, %c0_28, %c128_29], %34 {strides = array<i32>} : memref<1x16x356xbf16, #tpu.memory_space<vmem>>, vector<1x16x100xbf16>,
    %cst_30 = arith.constant 0.000000e+00 : bf16
    %35 = vector.broadcast %cst_30 : bf16 to vector<16x128xbf16>
    %c0_31 = arith.constant 0 : index
    %c0_32 = arith.constant 0 : index
    %c228 = arith.constant 228 : index
    %36 = vector.load %arg5[%c0_31, %c0_32, %c228] : memref<1x16x356xbf16, #tpu.memory_space<vmem>>, vector<1x16x128xbf16>
    %37 = vector.shape_cast %36 : vector<1x16x128xbf16> to vector<16x128xbf16>
    %38 = vector.shape_cast %35 : vector<16x128xbf16> to vector<1x16x128xbf16>
    tpu.vector_store %arg5[%c0_31, %c0_32, %c228], %38 {strides = array<i32>} : memref<1x16x356xbf16, #tpu.memory_space<vmem>>, vector<1x16x128xbf16>,
    return
  }
  func.func @transform_0(%arg0: i32) -> (i32, i32, i32) {
    %c0_i32 = arith.constant 0 : i32
    %c0_i32_0 = arith.constant 0 : i32
    %c0_i32_1 = arith.constant 0 : i32
    return %arg0, %c0_i32, %c0_i32_0 : i32, i32, i32
  }
  func.func @transform_1(%arg0: i32) -> (i32, i32) {
    %c0_i32 = arith.constant 0 : i32
    %c0_i32_0 = arith.constant 0 : i32
    %c0_i32_1 = arith.constant 0 : i32
    return %c0_i32, %c0_i32_0 : i32, i32
  }
  func.func @transform_2(%arg0: i32) -> (i32, i32) {
    %c0_i32 = arith.constant 0 : i32
    %c0_i32_0 = arith.constant 0 : i32
    %c0_i32_1 = arith.constant 0 : i32
    return %c0_i32, %c0_i32_0 : i32, i32
  }
  func.func @transform_3(%arg0: i32) -> (i32, i32) {
    %c0_i32 = arith.constant 0 : i32
    %c0_i32_0 = arith.constant 0 : i32
    %c0_i32_1 = arith.constant 0 : i32
    return %c0_i32, %c0_i32_0 : i32, i32
  }
  func.func @transform_4(%arg0: i32) -> (i32, i32, i32) {
    %c0_i32 = arith.constant 0 : i32
    %c0_i32_0 = arith.constant 0 : i32
    %c0_i32_1 = arith.constant 0 : i32
    return %arg0, %c0_i32, %c0_i32_0 : i32, i32, i32
  }
}

module attributes {stable_mosaic.version = 11 : i64} {
  func.func @_conv_kernel(%arg0: i32, %arg1: memref<1x16x580xbf16, #tpu.memory_space<vmem>>, %arg2: memref<1x16x580xbf16, #tpu.memory_space<vmem>>, %arg3: memref<1x16x580xbf16, #tpu.memory_space<vmem>>, %arg4: memref<1x16x580xbf16, #tpu.memory_space<vmem>>, %arg5: memref<4x16xbf16, #tpu.memory_space<vmem>>, %arg6: memref<4x1xf32, #tpu.memory_space<vmem>>, %arg7: memref<1x324xf32, #tpu.memory_space<vmem>>, %arg8: memref<1x4x580xf32, #tpu.memory_space<vmem>>) attributes {dimension_semantics = [#tpu.dimension_semantics<parallel>], iteration_bounds = array<i64: 2>, scalar_prefetch = 0 : i64, scratch_operands = 0 : i64, tpu.core_type = #tpu.core_type<tc>, window_params = [{transform_indices = @transform_0, window_bounds = array<i64: 1, 16, 580>}, {transform_indices = @transform_1, window_bounds = array<i64: 1, 16, 580>}, {transform_indices = @transform_2, window_bounds = array<i64: 1, 16, 580>}, {transform_indices = @transform_3, window_bounds = array<i64: 1, 16, 580>}, {pipeline_mode = #tpu.pipeline_mode<synchronous>, transform_indices = @transform_4, window_bounds = array<i64: 4, 16>}, {pipeline_mode = #tpu.pipeline_mode<synchronous>, transform_indices = @transform_5, window_bounds = array<i64: 4, 1>}, {pipeline_mode = #tpu.pipeline_mode<synchronous>, transform_indices = @transform_6, window_bounds = array<i64: 1, 324>}, {transform_indices = @transform_7, window_bounds = array<i64: 1, 4, 580>}]} {
    %c0 = arith.constant 0 : index
    %c0_0 = arith.constant 0 : index
    %c128 = arith.constant 128 : index
    %0 = vector.load %arg1[%c0, %c0_0, %c128] : memref<1x16x580xbf16, #tpu.memory_space<vmem>>, vector<1x16x324xbf16>
    %1 = vector.shape_cast %0 : vector<1x16x324xbf16> to vector<16x324xbf16>
    %2 = arith.extf %1 : vector<16x324xbf16> to vector<16x324xf32>
    %c0_1 = arith.constant 0 : index
    %c0_2 = arith.constant 0 : index
    %c128_3 = arith.constant 128 : index
    %3 = vector.load %arg2[%c0_1, %c0_2, %c128_3] : memref<1x16x580xbf16, #tpu.memory_space<vmem>>, vector<1x16x324xbf16>
    %4 = vector.shape_cast %3 : vector<1x16x324xbf16> to vector<16x324xbf16>
    %5 = arith.extf %4 : vector<16x324xbf16> to vector<16x324xf32>
    %6 = arith.addf %2, %5 : vector<16x324xf32>
    %c0_4 = arith.constant 0 : index
    %c0_5 = arith.constant 0 : index
    %c128_6 = arith.constant 128 : index
    %7 = vector.load %arg3[%c0_4, %c0_5, %c128_6] : memref<1x16x580xbf16, #tpu.memory_space<vmem>>, vector<1x16x324xbf16>
    %8 = vector.shape_cast %7 : vector<1x16x324xbf16> to vector<16x324xbf16>
    %9 = arith.extf %8 : vector<16x324xbf16> to vector<16x324xf32>
    %10 = arith.addf %6, %9 : vector<16x324xf32>
    %c0_7 = arith.constant 0 : index
    %c0_8 = arith.constant 0 : index
    %c128_9 = arith.constant 128 : index
    %11 = vector.load %arg4[%c0_7, %c0_8, %c128_9] : memref<1x16x580xbf16, #tpu.memory_space<vmem>>, vector<1x16x324xbf16>
    %12 = vector.shape_cast %11 : vector<1x16x324xbf16> to vector<16x324xbf16>
    %13 = arith.extf %12 : vector<16x324xbf16> to vector<16x324xf32>
    %14 = arith.addf %10, %13 : vector<16x324xf32>
    %15 = arith.truncf %14 : vector<16x324xf32> to vector<16x324xbf16>
    %c0_10 = arith.constant 0 : index
    %c0_11 = arith.constant 0 : index
    %16 = vector.load %arg5[%c0_10, %c0_11] : memref<4x16xbf16, #tpu.memory_space<vmem>>, vector<4x16xbf16>
    %cst = arith.constant dense<0.000000e+00> : vector<4x324xf32>
    %17 = tpu.matmul %16, %15, %cst {dimension_numbers = #tpu.dot_dimension_numbers<[1], [0], [0], [1], [0, 0, 1, 1], [], []>} : vector<4x16xbf16>, vector<16x324xbf16>, vector<4x324xf32> -> vector<4x324xf32>
    %c0_12 = arith.constant 0 : index
    %c0_13 = arith.constant 0 : index
    %18 = vector.load %arg6[%c0_12, %c0_13] : memref<4x1xf32, #tpu.memory_space<vmem>>, vector<4x1xf32>
    %19 = vector.broadcast %18 : vector<4x1xf32> to vector<4x324xf32>
    %20 = arith.addf %17, %19 : vector<4x324xf32>
    %c0_14 = arith.constant 0 : index
    %c0_15 = arith.constant 0 : index
    %21 = vector.load %arg7[%c0_14, %c0_15] : memref<1x324xf32, #tpu.memory_space<vmem>>, vector<1x324xf32>
    %22 = vector.broadcast %21 : vector<1x324xf32> to vector<4x324xf32>
    %23 = arith.mulf %20, %22 : vector<4x324xf32>
    %cst_16 = arith.constant 0.000000e+00 : f32
    %24 = vector.broadcast %cst_16 : f32 to vector<4x128xf32>
    %c0_17 = arith.constant 0 : index
    %c0_18 = arith.constant 0 : index
    %c0_19 = arith.constant 0 : index
    %25 = vector.load %arg8[%c0_17, %c0_18, %c0_19] : memref<1x4x580xf32, #tpu.memory_space<vmem>>, vector<1x4x128xf32>
    %26 = vector.shape_cast %25 : vector<1x4x128xf32> to vector<4x128xf32>
    %27 = vector.shape_cast %24 : vector<4x128xf32> to vector<1x4x128xf32>
    tpu.vector_store %arg8[%c0_17, %c0_18, %c0_19], %27 {strides = array<i32>} : memref<1x4x580xf32, #tpu.memory_space<vmem>>, vector<1x4x128xf32>,
    %c0_20 = arith.constant 0 : index
    %c0_21 = arith.constant 0 : index
    %c128_22 = arith.constant 128 : index
    %28 = vector.load %arg8[%c0_20, %c0_21, %c128_22] : memref<1x4x580xf32, #tpu.memory_space<vmem>>, vector<1x4x324xf32>
    %29 = vector.shape_cast %28 : vector<1x4x324xf32> to vector<4x324xf32>
    %30 = vector.shape_cast %23 : vector<4x324xf32> to vector<1x4x324xf32>
    tpu.vector_store %arg8[%c0_20, %c0_21, %c128_22], %30 {strides = array<i32>} : memref<1x4x580xf32, #tpu.memory_space<vmem>>, vector<1x4x324xf32>,
    %cst_23 = arith.constant 0.000000e+00 : f32
    %31 = vector.broadcast %cst_23 : f32 to vector<4x128xf32>
    %c0_24 = arith.constant 0 : index
    %c0_25 = arith.constant 0 : index
    %c452 = arith.constant 452 : index
    %32 = vector.load %arg8[%c0_24, %c0_25, %c452] : memref<1x4x580xf32, #tpu.memory_space<vmem>>, vector<1x4x128xf32>
    %33 = vector.shape_cast %32 : vector<1x4x128xf32> to vector<4x128xf32>
    %34 = vector.shape_cast %31 : vector<4x128xf32> to vector<1x4x128xf32>
    tpu.vector_store %arg8[%c0_24, %c0_25, %c452], %34 {strides = array<i32>} : memref<1x4x580xf32, #tpu.memory_space<vmem>>, vector<1x4x128xf32>,
    return
  }
  func.func @transform_0(%arg0: i32) -> (i32, i32, i32) {
    %c0_i32 = arith.constant 0 : i32
    %c0_i32_0 = arith.constant 0 : i32
    %c0_i32_1 = arith.constant 0 : i32
    return %arg0, %c0_i32, %c0_i32_0 : i32, i32, i32
  }
  func.func @transform_1(%arg0: i32) -> (i32, i32, i32) {
    %c0_i32 = arith.constant 0 : i32
    %c0_i32_0 = arith.constant 0 : i32
    %c0_i32_1 = arith.constant 0 : i32
    return %arg0, %c0_i32, %c0_i32_0 : i32, i32, i32
  }
  func.func @transform_2(%arg0: i32) -> (i32, i32, i32) {
    %c0_i32 = arith.constant 0 : i32
    %c0_i32_0 = arith.constant 0 : i32
    %c0_i32_1 = arith.constant 0 : i32
    return %arg0, %c0_i32, %c0_i32_0 : i32, i32, i32
  }
  func.func @transform_3(%arg0: i32) -> (i32, i32, i32) {
    %c0_i32 = arith.constant 0 : i32
    %c0_i32_0 = arith.constant 0 : i32
    %c0_i32_1 = arith.constant 0 : i32
    return %arg0, %c0_i32, %c0_i32_0 : i32, i32, i32
  }
  func.func @transform_4(%arg0: i32) -> (i32, i32) {
    %c0_i32 = arith.constant 0 : i32
    %c0_i32_0 = arith.constant 0 : i32
    %c0_i32_1 = arith.constant 0 : i32
    return %c0_i32, %c0_i32_0 : i32, i32
  }
  func.func @transform_5(%arg0: i32) -> (i32, i32) {
    %c0_i32 = arith.constant 0 : i32
    %c0_i32_0 = arith.constant 0 : i32
    %c0_i32_1 = arith.constant 0 : i32
    return %c0_i32, %c0_i32_0 : i32, i32
  }
  func.func @transform_6(%arg0: i32) -> (i32, i32) {
    %c0_i32 = arith.constant 0 : i32
    %c0_i32_0 = arith.constant 0 : i32
    %c0_i32_1 = arith.constant 0 : i32
    return %c0_i32, %c0_i32_0 : i32, i32
  }
  func.func @transform_7(%arg0: i32) -> (i32, i32, i32) {
    %c0_i32 = arith.constant 0 : i32
    %c0_i32_0 = arith.constant 0 : i32
    %c0_i32_1 = arith.constant 0 : i32
    return %arg0, %c0_i32, %c0_i32_0 : i32, i32, i32
  }
}

</mosaic_0001>

<bundles_post_ra>
// kernel: semantic_fpn_forward.21
= control target key start
LH: loop header
LB: loop body
LE: loop exit
PB: predicated region body
PF: predicated region fallthrough
CT: control target
= control target key end

     0   :  { %s1217_s15 = smov 0   ;;  %s1738_s0 = inlined_call_operand.vmem [shape: bf16[2,32,1412], index: 0, kind: input, shape index: {}]   ;;  %s1739_s1 = inlined_call_operand.vmem [shape: bf16[8,72], index: 1, kind: input, shape index: {}]   ;;  %s1740_s2 = inlined_call_operand.vmem [shape: f32[8,1], index: 2, kind: input, shape index: {}]   ;;  %s1741_s3 = inlined_call_operand.vmem [shape: f32[1,1156], index: 3, kind: input, shape index: {}]   ;;  %s1742_s4 = inlined_call_operand.vmem [shape: bf16[2,8,1412], index: 4, kind: output, shape index: {}]  }
   0x1 LB: > { %s1144_s16 = sadd.s32 4294967295, %s1185_s15   ;;  %p1148_p0 = scmp.ge.s32.totalorder %s1185_s15, 1  ;;  %s1185_s15 = sphi %s1217_s15, %s14_s15  }
   0x2   : > { %p162_p1 = scmp.lt.s32.totalorder %s1185_s15, 3 }
   0x4   : > { %p163_p2 = pnand %p1148_p0, %p162_p1 }
   0x5   : > { %p188_p3 = scmp.lt.s32.totalorder (!%p163_p2), %s1144_s16, 1  ;;  %s1187_s21 = smov (!%p163_p2), 127  }
   0x6   : > { %166 = sbr.rel (%p163_p2) target bundleno = 573 (0x23d), region = 36  ;;  %s1188_s22 = smov (!%p163_p2), 93  }
   0x7   : > { %s1189_s23 = smov (!%p163_p2), 94   ;;  %s1190_s24 = smov (!%p163_p2), 35  }
   0xb   : > { %s1744_s16 = smov (!%p188_p3, %s1144_s16), 1  ;;  %vm296_vm0 = vcmask 1039360   ;;  %vm511_vm1 = vcmask 1043456   ;;  %vm501_vm2 = vcmask 760832   ;;  %vm410_vm3 = vcmask 769024  }
   0xc   : > { %s1163_s17 = smul.u32 192, %s1744_s16  ;;  %vm779_vm4 = vcmask 285696   ;;  %vm865_vm5 = vcmask 588800   ;;  %vm1083_vm6 = vcmask 31748   ;;  %vm1086_vm7 = vcmask 1043488  }
   0xd   : > { %s1164_s27 = smul.u32 48, %s1744_s16  ;;  %vm1084_vm8 = vmor %vm1083_vm6, %vm511_vm1 }
   0xe   : > { %s1231_s20 = scalar_lea.vmem %s1738_s0, %s1163_s17  ;;  %vm1087_vm9 = vmor %vm1083_vm6, %vm1086_vm7 }
   0xf   : > { %v200_v0 = vld [vmem:[%s1231_s20 + $0x8] sm:$0xff]  ;;  %v199_v1 = vld [vmem:[%s1231_s20] sm:$0xff]  ;;  %v201_v2 = vld [vmem:[%s1231_s20 + $0x10] sm:$0xff]  ;;  %s1679_s6 = scalar_lea.vmem %s1742_s4, %s1164_s27 }
  0x10   : > { %v233_v3 = vunpack.c.l.b16 %v200_v0  ;;  %v231_v4 = vunpack.c.l.b16 %v199_v1  ;;  %v235_v5 = vunpack.c.l.b16 %v201_v2  ;;  %v234_v9 = vunpack.c.h.b16 %v200_v0  ;;  %v202_v15 = vld [vmem:[%s1231_s20 + $0x18] sm:$0xff]  ;;  %v203_v16 = vld [vmem:[%s1231_s20 + $0x20] sm:$0xff]  ;;  %v210_v30 = vld [vmem:[%s1231_s20 + $0x68] sm:$0xff] }
  0x11   : > { %v232_v10 = vunpack.c.h.b16 %v199_v1  ;;  %v236_v11 = vunpack.c.h.b16 %v201_v2  ;;  %v238_v17 = vunpack.c.h.b16 %v202_v15  ;;  %v237_v18 = vunpack.c.l.b16 %v202_v15  ;;  %v209_v23 = vld [vmem:[%s1231_s20 + $0x60] sm:$0xff]  ;;  %v1283_v31 = vld [vmem:[%s1231_s20 + $0x70] sm:$0xff]  ;;  %v205_v51 = vld [vmem:[%s1231_s20 + $0x38] sm:$0xff] }
  0x12   : > { %v1236_v6 = vpack.c.b16 %v233_v3, %v233_v3  ;;  %v1238_v7 = vpack.c.b16 %v231_v4, %v231_v4  ;;  %v1240_v8 = vpack.c.b16 %v235_v5, %v235_v5  ;;  %v1248_v12 = vpack.c.b16 %v234_v9, %v234_v9  ;;  %v221_v38 = vld [vmem:[%s1231_s20 + $0x4] sm:$0xff]  ;;  %v222_v39 = vld [vmem:[%s1231_s20 + $0xc] sm:$0xff]  ;;  %v223_v58 = vld [vmem:[%s1231_s20 + $0x14] sm:$0xff] }
  0x13   : > { %v1250_v13 = vpack.c.b16 %v232_v10, %v232_v10  ;;  %v1252_v14 = vpack.c.b16 %v236_v11, %v236_v11  ;;  %v239_v19 = vunpack.c.l.b16 %v203_v16  ;;  %v1262_v20 = vpack.c.b16 %v238_v17, %v238_v17  ;;  %v204_v46 = vld [vmem:[%s1231_s20 + $0x30] sm:$0xff]  ;;  %v206_v61 = vld [vmem:[%s1231_s20 + $0x40] sm:$0xff]  ;;  %v207_v15 = vld [vmem:[%s1231_s20 + $0x48] sm:$0xff] }
  0x14   : > { %280 = vrot.lane.b32.xlu1 %v1236_v6, %s1187_s21  ;;  %276 = vrot.lane.b32.xlu0 %v1238_v7, %s1187_s21  ;;  %v1264_v21 = vpack.c.b16 %v237_v18, %v237_v18  ;;  %v311_v24 = vunpack.c.l.b16 %v209_v23  ;;  %v240_v25 = vunpack.c.h.b16 %v203_v16  ;;  %v312_v26 = vunpack.c.h.b16 %v209_v23  ;;  %v224_v3 = vld [vmem:[%s1231_s20 + $0x1c] sm:$0xff] }
  0x15   : > { %284 = vrot.lane.b32.xlu2 %v1240_v8, %s1187_s21  ;;  %v1266_v22 = vpack.c.b16 %v239_v19, %v239_v19  ;;  %v314_v32 = vunpack.c.h.b16 %v210_v30  ;;  %v313_v33 = vunpack.c.l.b16 %v210_v30  ;;  %v315_v34 = vunpack.c.l.b16 %v1283_v31  ;;  %v212_v23 = vld [vmem:[%s1231_s20 + $0x78] sm:$0xff] }
  0x16   : > { %v1275_v27 = vpack.c.b16 %v311_v24, %v311_v24  ;;  %v1277_v28 = vpack.c.b16 %v240_v25, %v240_v25  ;;  %v1279_v29 = vpack.c.b16 %v312_v26, %v312_v26  ;;  %v462_v40 = vunpack.c.h.b16 %v221_v38 }
  0x17   : > { %v1292_v35 = vpack.c.b16 %v314_v32, %v314_v32  ;;  %v1294_v36 = vpack.c.b16 %v313_v33, %v313_v33  ;;  %v1296_v37 = vpack.c.b16 %v315_v34, %v315_v34  ;;  %v461_v41 = vunpack.c.l.b16 %v221_v38  ;;  %v225_v38 = vld [vmem:[%s1231_s20 + $0x24] sm:$0xff] }
  0x18   : > { %v463_v42 = vunpack.c.l.b16 %v222_v39  ;;  %v472_v43 = vpack.c.b16 %v462_v40, %v462_v40  ;;  %v256_v47 = vunpack.c.l.b16 %v204_v46  ;;  %v257_v48 = vunpack.c.h.b16 %v204_v46 }
  0x19   : > { %v471_v44 = vpack.c.b16 %v461_v41, %v461_v41  ;;  %v259_v52 = vunpack.c.h.b16 %v205_v51  ;;  %v258_v53 = vunpack.c.l.b16 %v205_v51  ;;  %v464_v54 = vunpack.c.h.b16 %v222_v39 }
  0x1a   : > { %v473_v45 = vpack.c.b16 %v463_v42, %v463_v42  ;;  %v1316_v49 = vpack.c.b16 %v256_v47, %v256_v47  ;;  %v1318_v50 = vpack.c.b16 %v257_v48, %v257_v48  ;;  %v465_v59 = vunpack.c.l.b16 %v223_v58  ;;  %v208_v42 = vld [vmem:[%s1231_s20 + $0x50] sm:$0xff] }
  0x1b   : > { %v1327_v55 = vpack.c.b16 %v259_v52, %v259_v52  ;;  %v1329_v56 = vpack.c.b16 %v258_v53, %v258_v53  ;;  %v474_v57 = vpack.c.b16 %v464_v54, %v464_v54  ;;  %v261_v62 = vunpack.c.h.b16 %v206_v61  ;;  %v213_v53 = vld [vmem:[%s1231_s20 + $0x80] sm:$0xff] }
  0x1c   : > { %282 = vrot.lane.b32.xlu1 %v1248_v12, %s1187_s21  ;;  %278 = vrot.lane.b32.xlu0 %v1250_v13, %s1187_s21  ;;  %v475_v60 = vpack.c.b16 %v465_v59, %v465_v59  ;;  %v260_v63 = vunpack.c.l.b16 %v206_v61  ;;  %v466_v0 = vunpack.c.h.b16 %v223_v58  ;;  %v316_v5 = vunpack.c.h.b16 %v1283_v31 }
  0x1d   : > { %286 = vrot.lane.b32.xlu2 %v1252_v14, %s1187_s21  ;;  %v1343_v1 = vpack.c.b16 %v261_v62, %v261_v62  ;;  %v467_v9 = vunpack.c.l.b16 %v224_v3  ;;  %v262_v16 = vunpack.c.l.b16 %v207_v15  ;;  %v263_v17 = vunpack.c.h.b16 %v207_v15 }
  0x1e   : > { %v1345_v2 = vpack.c.b16 %v260_v63, %v260_v63  ;;  %v476_v4 = vpack.c.b16 %v466_v0, %v466_v0  ;;  %v1354_v10 = vpack.c.b16 %v316_v5, %v316_v5  ;;  %v317_v25 = vunpack.c.l.b16 %v212_v23 }
  0x1f   : > { %v477_v11 = vpack.c.b16 %v467_v9, %v467_v9  ;;  %v1362_v19 = vpack.c.b16 %v262_v16, %v262_v16  ;;  %v1365_v24 = vpack.c.b16 %v263_v17, %v263_v17  ;;  %v318_v26 = vunpack.c.h.b16 %v212_v23  ;;  %v220_v9 = vld [vmem:[%s1231_s20 + $0x58] sm:$0xf] }
  0x20   : > { %v468_v30 = vunpack.c.h.b16 %v224_v3  ;;  %v327_v33 = vpack.c.b16 %v317_v25, %v317_v25  ;;  %v469_v40 = vunpack.c.l.b16 %v225_v38  ;;  %v319_v58 = vunpack.c.l.b16 %v213_v53 }
  0x21   : > { %v328_v34 = vpack.c.b16 %v318_v26, %v318_v26  ;;  %v320_v62 = vunpack.c.h.b16 %v213_v53  ;;  %v422_v17 = vunpack.c.l.b16 %v220_v9 }
  0x22   : > { %v478_v39 = vpack.c.b16 %v468_v30, %v468_v30  ;;  %v479_v41 = vpack.c.b16 %v469_v40, %v469_v40  ;;  %v329_v5 = vpack.c.b16 %v319_v58, %v319_v58 }
  0x23   : > { %v330_v15 = vpack.c.b16 %v320_v62, %v320_v62 }
  0x24   : > { %290 = vrot.lane.b32.xlu1 %v1262_v20, %s1187_s21  ;;  %288 = vrot.lane.b32.xlu0 %v1264_v21, %s1187_s21 }
  0x25   : > { %292 = vrot.lane.b32.xlu2 %v1266_v22, %s1187_s21 }
  0x2c   : > { %356 = vrot.lane.b32.xlu1 %v1275_v27, %s1187_s21  ;;  %294 = vrot.lane.b32.xlu0 %v1277_v28, %s1187_s21 }
  0x2d   : > { %358 = vrot.lane.b32.xlu2 %v1279_v29, %s1187_s21 }
  0x34   : > { %362 = vrot.lane.b32.xlu1 %v1292_v35, %s1187_s21  ;;  %360 = vrot.lane.b32.xlu0 %v1294_v36, %s1187_s21 }
  0x35   : > { %364 = vrot.lane.b32.xlu2 %v1296_v37, %s1187_s21 }
  0x3c   : > { %483 = vrot.lane.b32.xlu1 %v472_v43, %s1188_s22  ;;  %481 = vrot.lane.b32.xlu0 %v471_v44, %s1188_s22  ;;  %v264_v43 = vunpack.c.l.b16 %v208_v42  ;;  %v265_v44 = vunpack.c.h.b16 %v208_v42 }
  0x3d   : > { %485 = vrot.lane.b32.xlu2 %v473_v45, %s1188_s22  ;;  %v470_v45 = vunpack.c.h.b16 %v225_v38  ;;  %v423_v38 = vpack.c.b16 %v422_v17, %v422_v17 }
  0x3e   : > { %v1386_v48 = vpack.c.b16 %v264_v43, %v264_v43  ;;  %v1388_v51 = vpack.c.b16 %v265_v44, %v265_v44 }
  0x3f   : > { %v480_v54 = vpack.c.b16 %v470_v45, %v470_v45 }
  0x44   : > { %390 = vrot.lane.b32.xlu1 %v1250_v13, %s1189_s23  ;;  %388 = vrot.lane.b32.xlu0 %v1238_v7, %s1189_s23 }
  0x45   : > { %392 = vrot.lane.b32.xlu2 %v1236_v6, %s1189_s23 }
  0x4c   : > { %424 = vrot.lane.b32.xlu1 %v1316_v49, %s1189_s23  ;;  %394 = vrot.lane.b32.xlu0 %v1248_v12, %s1189_s23 }
  0x4d   : > { %426 = vrot.lane.b32.xlu2 %v1318_v50, %s1189_s23 }
  0x54   : > { %430 = vrot.lane.b32.xlu1 %v1327_v55, %s1189_s23  ;;  %428 = vrot.lane.b32.xlu0 %v1329_v56, %s1189_s23 }
  0x55   : > { %487 = vrot.lane.b32.xlu2 %v474_v57, %s1188_s22  ;;  %v219_v57 = vld [vmem:[%s1231_s20 + $0x28] sm:$0xf] }
  0x56   : > { %v386_v59 = vunpack.c.l.b16 %v219_v57 }
  0x5c   : > { %396 = vrot.lane.b32.xlu1 %v1240_v8, %s1189_s23  ;;  %489 = vrot.lane.b32.xlu0 %v475_v60, %s1188_s22 }
  0x5d   : > { %398 = vrot.lane.b32.xlu2 %v1252_v14, %s1189_s23 }
  0x64   : > { %434 = vrot.lane.b32.xlu1 %v1343_v1, %s1189_s23  ;;  %432 = vrot.lane.b32.xlu0 %v1345_v2, %s1189_s23 }
  0x65   : > { %491 = vrot.lane.b32.xlu2 %v476_v4, %s1188_s22 }
  0x6c   : > { %366 = vrot.lane.b32.xlu1 %v1354_v10, %s1187_s21  ;;  %493 = vrot.lane.b32.xlu0 %v477_v11, %s1188_s22  ;;  %v387_v11 = vpack.c.b16 %v386_v59, %v386_v59 }
  0x6d   : > { %400 = vrot.lane.b32.xlu2 %v1264_v21, %s1189_s23 }
  0x6f   : > { %v285_v18 = vpop.permute.xlu2 %284 }
  0x74   : > { %436 = vrot.lane.b32.xlu1 %v1362_v19, %s1189_s23  ;;  %402 = vrot.lane.b32.xlu0 %v1262_v20, %s1189_s23 }
  0x75   : > { %438 = vrot.lane.b32.xlu2 %v1365_v24, %s1189_s23 }
  0x77   : > { %v287_v31 = vpop.permute.xlu2 %286 }
  0x78   : > { %v1374_v32 = vsel %vm296_vm0, %v285_v18, %v287_v31 }
  0x7c   : > { %368 = vrot.lane.b32.xlu0 %v327_v33, %s1187_s21  ;;  %370 = vrot.lane.b32.xlu1 %v328_v34, %s1187_s21 }
  0x7d   : > { %495 = vrot.lane.b32.xlu2 %v478_v39, %s1188_s22 }
  0x7f   : > { %v293_v52 = vpop.permute.xlu2 %292 }
  0x84   : > { %497 = vrot.lane.b32.xlu0 %v479_v41, %s1188_s22  ;;  %404 = vrot.lane.b32.xlu1 %v1266_v22, %s1189_s23 }
  0x85   : > { %406 = vrot.lane.b32.xlu2 %v1277_v28, %s1189_s23 }
  0x86   : > { %v281_v46 = vpop.permute.xlu1 %280  ;;  %v277_v47 = vpop.permute.xlu0 %276 }
  0x87   : > { %v1410_v16 = vpop.permute.xlu2 %358 }
  0x8c   : > { %440 = vrot.lane.b32.xlu0 %v1386_v48, %s1189_s23  ;;  %442 = vrot.lane.b32.xlu1 %v1388_v51, %s1189_s23 }
  0x8d   : > { %499 = vrot.lane.b32.xlu2 %v480_v54, %s1188_s22 }
  0x8e   : > { %v283_v60 = vpop.permute.xlu1 %282  ;;  %v279_v61 = vpop.permute.xlu0 %278 }
  0x8f   : > { %v1398_v63 = vsel %vm296_vm0, %v281_v46, %v283_v60  ;;  %v1401_v0 = vsel %vm296_vm0, %v283_v60, %v285_v18  ;;  %v1404_v3 = vsel %vm296_vm0, %v277_v47, %v279_v61  ;;  %v1407_v4 = vsel %vm296_vm0, %v279_v61, %v281_v46  ;;  %v1429_v42 = vpop.permute.xlu2 %364  ;;  %v214_v61 = vld [vmem:[%s1231_s20 + $0x90] sm:$0xff] }
  0x90   : > { %v336_v17 = vunpack.c.l.b16 %v214_v61 }
  0x94   : > { %372 = vrot.lane.b32.xlu0 %v329_v5, %s1187_s21  ;;  %374 = vrot.lane.b32.xlu1 %v330_v15, %s1187_s21 }
  0x95   : > { %408 = vrot.lane.b32.xlu2 %v387_v11, %s1189_s23 }
  0x96   : > { %v291_v18 = vpop.permute.xlu1 %290  ;;  %v289_v23 = vpop.permute.xlu0 %288 }
  0x97   : > { %v304_v25 = vsel %vm296_vm0, %v291_v18, %v293_v52  ;;  %v302_v26 = vsel %vm296_vm0, %v287_v31, %v289_v23  ;;  %v303_v30 = vsel %vm296_vm0, %v289_v23, %v291_v18  ;;  %v346_v18 = vpack.c.b16 %v336_v17, %v336_v17 }
  0x98   : > { %v1420_v39 = vsel %vm511_vm1, %v302_v26, %v1354_v10  ;;  %v1423_v40 = vsel %vm511_vm1, %v303_v30, %v327_v33  ;;  %v1426_v41 = vsel %vm511_vm1, %v304_v25, %v328_v34  ;;  %v486_v34 = vpop.permute.xlu2 %485  ;;  %v215_v26 = vld [vmem:[%s1231_s20 + $0x98] sm:$0xff] }
  0x9c   : > { %444 = vrot.lane.b32.xlu0 %v423_v38, %s1189_s23 }
  0x9e   : > { %v357_v43 = vpop.permute.xlu1 %356  ;;  %v295_v31 = vpop.permute.xlu0 %294 }
  0x9f   : > { %v305_v44 = vsel %vm296_vm0, %v293_v52, %v295_v31  ;;  %v1433_v45 = vsel %vm511_vm1, %v295_v31, %v330_v15  ;;  %v376_v23 = vsel %vm296_vm0, %v357_v43, %v1410_v16  ;;  %v337_v43 = vunpack.c.h.b16 %v214_v61 }
  0xa0   : > { %v1436_v10 = vsel %vm511_vm1, %v305_v44, %v329_v5  ;;  %v393_v57 = vpop.permute.xlu2 %392 }
  0xa6   : > { %v1438_v46 = vpop.permute.xlu1 %362  ;;  %v361_v33 = vpop.permute.xlu0 %360 }
  0xa8   : > { %v427_v60 = vpop.permute.xlu2 %426 }
  0xae   : > { %v484_v47 = vpop.permute.xlu1 %483  ;;  %v482_v53 = vpop.permute.xlu0 %481 }
  0xaf   : > { %759 = vrot.lane.b32.xlu1 %v482_v53, %s1190_s24  ;;  %v503_v54 = vsel %vm501_vm2, %v484_v47, %v486_v34  ;;  %v502_v52 = vsel %vm501_vm2, %v482_v53, %v484_v47 }
  0xb0   : > { %763 = vrot.lane.b32.xlu0 %v503_v54, %s1190_s24  ;;  %761 = vrot.lane.b32.xlu2 %v502_v52, %s1190_s24  ;;  %v488_v25 = vpop.permute.xlu2 %487  ;;  %v574_v54 = vsel %vm511_vm1, %v346_v18, %v376_v23 }
  0xb1   : > { %v504_v18 = vsel %vm501_vm2, %v486_v34, %v488_v25 }
  0xb6   : > { %v391_v58 = vpop.permute.xlu1 %390  ;;  %v389_v59 = vpop.permute.xlu0 %388 }
  0xb7   : > { %v411_v9 = vsel %vm410_vm3, %v389_v59, %v391_v58  ;;  %v412_v31 = vsel %vm410_vm3, %v391_v58, %v393_v57 }
  0xbe   : > { %v425_v62 = vpop.permute.xlu1 %424  ;;  %v395_v5 = vpop.permute.xlu0 %394 }
  0xbf   : > { %v446_v11 = vsel %vm410_vm3, %v425_v62, %v427_v60  ;;  %v413_v44 = vsel %vm410_vm3, %v393_v57, %v395_v5  ;;  %v338_v62 = vunpack.c.l.b16 %v215_v26  ;;  %v378_v57 = vsel %vm296_vm0, %v361_v33, %v1438_v46 }
  0xc0   : > { %v604_v15 = vsel %vm511_vm1, %v411_v9, %v446_v11  ;;  %v377_v9 = vsel %vm296_vm0, %v1410_v16, %v361_v33  ;;  %v399_v11 = vpop.permute.xlu2 %398  ;;  %v547_v16 = vsel %vm511_vm1, %v1407_v4, %v1279_v29  ;;  %v544_v33 = vsel %vm511_vm1, %v1404_v3, %v1275_v27 }
  0xc1   : > { %739 = vrot.lane.b32.xlu1 %v604_v15, %s1190_s24  ;;  %v348_v58 = vpack.c.b16 %v338_v62, %v338_v62  ;;  %v339_v62 = vunpack.c.h.b16 %v215_v26  ;;  %v517_v26 = vsel %vm511_vm1, %v1250_v13, %v1318_v50 }
  0xc3   : > { %v580_v23 = vsel %vm511_vm1, %v348_v58, %v378_v57  ;;  %v349_v58 = vpack.c.b16 %v339_v62, %v339_v62  ;;  %v379_v57 = vsel %vm296_vm0, %v1438_v46, %v1429_v42  ;;  %v523_v62 = vsel %vm511_vm1, %v1248_v12, %v1327_v55 }
  0xc6   : > { %v431_v30 = vpop.permute.xlu1 %430  ;;  %v429_v38 = vpop.permute.xlu0 %428 }
  0xc7   : > { %v447_v47 = vsel %vm410_vm3, %v427_v60, %v429_v38  ;;  %v448_v53 = vsel %vm410_vm3, %v429_v38, %v431_v30  ;;  %v347_v60 = vpack.c.b16 %v337_v43, %v337_v43 }
  0xc8   : > { %v610_v52 = vsel %vm511_vm1, %v413_v44, %v448_v53  ;;  %v607_v59 = vsel %vm511_vm1, %v412_v31, %v447_v47  ;;  %v492_v31 = vpop.permute.xlu2 %491 }
  0xc9   : > { %719 = vrot.lane.b32.xlu1 %v574_v54, %s1190_s24  ;;  %743 = vrot.lane.b32.xlu0 %v610_v52, %s1190_s24  ;;  %v577_v61 = vsel %vm511_vm1, %v347_v60, %v377_v9  ;;  %v514_v52 = vsel %vm511_vm1, %v1238_v7, %v1316_v49  ;;  %v520_v7 = vsel %vm511_vm1, %v1236_v6, %v1329_v56  ;;  %v216_v49 = vld [vmem:[%s1231_s20 + $0xa0] sm:$0xff] }
  0xca   : > { %741 = vrot.lane.b32.xlu2 %v607_v59, %s1190_s24  ;;  %v583_v60 = vsel %vm511_vm1, %v349_v58, %v379_v57  ;;  %v340_v9 = vunpack.c.l.b16 %v216_v49 }
  0xce   : > { %v490_v15 = vpop.permute.xlu0 %489  ;;  %v397_v17 = vpop.permute.xlu1 %396 }
  0xcf   : > { %v505_v34 = vsel %vm501_vm2, %v488_v25, %v490_v15  ;;  %v415_v47 = vsel %vm410_vm3, %v397_v17, %v399_v11  ;;  %v414_v29 = vsel %vm410_vm3, %v395_v5, %v397_v17  ;;  %v550_v25 = vsel %vm511_vm1, %v1398_v63, %v1294_v36 }
  0xd0   : > { %v506_v43 = vsel %vm501_vm2, %v490_v15, %v492_v31 }
  0xd1   : > { %765 = vrot.lane.b32.xlu1 %v504_v18, %s1190_s24  ;;  %723 = vrot.lane.b32.xlu0 %v580_v23, %s1190_s24  ;;  %v350_v18 = vpack.c.b16 %v340_v9, %v340_v9 }
  0xd2   : > { %721 = vrot.lane.b32.xlu2 %v577_v61, %s1190_s24 }
  0xd6   : > { %v433_v38 = vpop.permute.xlu0 %432  ;;  %v435_v44 = vpop.permute.xlu1 %434 }
  0xd7   : > { %v449_v53 = vsel %vm410_vm3, %v431_v30, %v433_v38  ;;  %v450_v54 = vsel %vm410_vm3, %v433_v38, %v435_v44  ;;  %v401_v30 = vpop.permute.xlu2 %400 }
  0xd8   : > { %v616_v27 = vsel %vm511_vm1, %v415_v47, %v450_v54  ;;  %v613_v3 = vsel %vm511_vm1, %v414_v29, %v449_v53  ;;  %v416_v23 = vsel %vm410_vm3, %v399_v11, %v401_v30  ;;  %v1539_v47 = vld [vmem:[%s1231_s20 + $0xa8] sm:$0xff]  ;;  %v556_v53 = vsel %vm511_vm1, %v1374_v32, %v1296_v37 }
  0xd9   : > { %701 = vrot.lane.b32.xlu1 %v547_v16, %s1190_s24  ;;  %699 = vrot.lane.b32.xlu0 %v544_v33, %s1190_s24  ;;  %v553_v29 = vsel %vm511_vm1, %v1401_v0, %v1292_v35 }
  0xda   : > { %767 = vrot.lane.b32.xlu2 %v505_v34, %s1190_s24 }
  0xde   : > { %v1487_v4 = vpop.permute.xlu0 %493  ;;  %v367_v59 = vpop.permute.xlu1 %366 }
  0xdf   : > { %v507_v5 = vsel %vm501_vm2, %v492_v31, %v1487_v4  ;;  %v439_v63 = vpop.permute.xlu2 %438  ;;  %v380_v13 = vsel %vm296_vm0, %v1429_v42, %v367_v59  ;;  %v341_v31 = vunpack.c.h.b16 %v216_v49 }
  0xe0   : > { %v586_v16 = vsel %vm511_vm1, %v350_v18, %v380_v13 }
  0xe1   : > { %747 = vrot.lane.b32.xlu1 %v616_v27, %s1190_s24  ;;  %745 = vrot.lane.b32.xlu0 %v613_v3, %s1190_s24  ;;  %v351_v33 = vpack.c.b16 %v341_v31, %v341_v31  ;;  %v342_v27 = vunpack.c.l.b16 %v1539_v47 }
  0xe2   : > { %703 = vrot.lane.b32.xlu2 %v550_v25, %s1190_s24 }
  0xe3   : > { %v352_v3 = vpack.c.b16 %v342_v27, %v342_v27 }
  0xe6   : > { %v1505_v36 = vpop.permute.xlu0 %402  ;;  %v437_v15 = vpop.permute.xlu1 %436 }
  0xe7   : > { %v451_v17 = vsel %vm410_vm3, %v435_v44, %v437_v15  ;;  %v452_v6 = vsel %vm410_vm3, %v437_v15, %v439_v63  ;;  %v417_v56 = vsel %vm410_vm3, %v401_v30, %v1505_v36  ;;  %v496_v50 = vpop.permute.xlu2 %495 }
  0xe8   : > { %v619_v61 = vsel %vm511_vm1, %v416_v23, %v451_v17  ;;  %v622_v38 = vsel %vm511_vm1, %v417_v56, %v452_v6  ;;  %v508_v35 = vsel %vm501_vm2, %v1487_v4, %v496_v50 }
  0xe9   : > { %771 = vrot.lane.b32.xlu0 %v507_v5, %s1190_s24  ;;  %679 = vrot.lane.b32.xlu1 %v514_v52, %s1190_s24  ;;  %v526_v52 = vsel %vm511_vm1, %v1240_v8, %v1345_v2 }
  0xea   : > { %769 = vrot.lane.b32.xlu2 %v506_v43, %s1190_s24 }
  0xee   : > { %v369_v46 = vpop.permute.xlu0 %368  ;;  %v1536_v42 = vpop.permute.xlu1 %370 }
  0xef   : > { %v381_v34 = vsel %vm296_vm0, %v367_v59, %v369_v46  ;;  %v407_v44 = vpop.permute.xlu2 %406  ;;  %v382_v25 = vsel %vm296_vm0, %v369_v46, %v1536_v42 }
  0xf0   : > { %v589_v54 = vsel %vm511_vm1, %v351_v33, %v381_v34  ;;  %v592_v0 = vsel %vm511_vm1, %v352_v3, %v382_v25 }
  0xf1   : > { %683 = vrot.lane.b32.xlu0 %v520_v7, %s1190_s24  ;;  %725 = vrot.lane.b32.xlu1 %v583_v60, %s1190_s24 }
  0xf2   : > { %681 = vrot.lane.b32.xlu2 %v517_v26, %s1190_s24  ;;  %v529_v26 = vsel %vm511_vm1, %v1252_v14, %v1343_v1 }
  0xf6   : > { %v498_v11 = vpop.permute.xlu0 %497  ;;  %v405_v32 = vpop.permute.xlu1 %404 }
  0xf7   : > { %v509_v37 = vsel %vm501_vm2, %v496_v50, %v498_v11  ;;  %v500_v30 = vpop.permute.xlu2 %499  ;;  %v419_v58 = vsel %vm410_vm3, %v405_v32, %v407_v44  ;;  %v418_v2 = vsel %vm410_vm3, %v1505_v36, %v405_v32  ;;  %v532_v36 = vsel %vm511_vm1, %v1264_v21, %v1362_v19 }
  0xf8   : > { %v510_v15 = vsel %vm501_vm2, %v498_v11, %v500_v30 }
  0xf9   : > { %749 = vrot.lane.b32.xlu0 %v619_v61, %s1190_s24  ;;  %751 = vrot.lane.b32.xlu1 %v622_v38, %s1190_s24 }
  0xfa   : > { %727 = vrot.lane.b32.xlu2 %v586_v16, %s1190_s24 }
  0xfe   : > { %v441_v5 = vpop.permute.xlu0 %440  ;;  %v443_v59 = vpop.permute.xlu1 %442 }
  0xff   : > { %v409_v4 = vpop.permute.xlu2 %408  ;;  %v453_v57 = vsel %vm410_vm3, %v439_v63, %v441_v5  ;;  %v454_v8 = vsel %vm410_vm3, %v441_v5, %v443_v59  ;;  %v218_v63 = vld [vmem:[%s1231_s20 + $0xb0] sm:$0xff] }
 0x100   : > { %v625_v55 = vsel %vm511_vm1, %v418_v2, %v453_v57  ;;  %v628_v7 = vsel %vm511_vm1, %v419_v58, %v454_v8  ;;  %v344_v60 = vunpack.c.l.b16 %v218_v63  ;;  %v420_v56 = vsel %vm410_vm3, %v407_v44, %v409_v4 }
 0x101   : > { %707 = vrot.lane.b32.xlu0 %v556_v53, %s1190_s24  ;;  %729 = vrot.lane.b32.xlu1 %v589_v54, %s1190_s24  ;;  %v345_v31 = vunpack.c.h.b16 %v218_v63  ;;  %v538_v53 = vsel %vm511_vm1, %v1266_v22, %v1386_v48  ;;  %v535_v54 = vsel %vm511_vm1, %v1262_v20, %v1365_v24  ;;  %v541_v20 = vsel %vm511_vm1, %v1277_v28, %v1388_v51 }
 0x102   : > { %705 = vrot.lane.b32.xlu2 %v553_v29, %s1190_s24  ;;  %v354_v6 = vpack.c.b16 %v344_v60, %v344_v60 }
 0x103   : > { %v355_v34 = vpack.c.b16 %v345_v31, %v345_v31 }
 0x106   : > { %v373_v43 = vpop.permute.xlu0 %372  ;;  %v375_v12 = vpop.permute.xlu1 %374 }
 0x107   : > { %v384_v13 = vsel %vm296_vm0, %v373_v43, %v375_v12  ;;  %v383_v23 = vsel %vm296_vm0, %v1536_v42, %v373_v43  ;;  %v601_v44 = vsel %vm511_vm1, %v355_v34, %v375_v12  ;;  %v633_v34 = vld [vmem:[%s1740_s2] sm:$0xff] }
 0x108   : > { %v598_v61 = vsel %vm511_vm1, %v354_v6, %v384_v13 }
 0x109   : > { %773 = vrot.lane.b32.xlu0 %v508_v35, %s1190_s24  ;;  %775 = vrot.lane.b32.xlu1 %v509_v37, %s1190_s24 }
 0x10a   : > { %731 = vrot.lane.b32.xlu2 %v592_v0, %s1190_s24  ;;  %v762_v49 = vpop.permute.xlu2 %761 }
 0x111   : > { %687 = vrot.lane.b32.xlu0 %v526_v52, %s1190_s24  ;;  %709 = vrot.lane.b32.xlu1 %v1420_v39, %s1190_s24  ;;  %v445_v39 = vpop.permute.xlu0 %444 }
 0x112   : > { %685 = vrot.lane.b32.xlu2 %v523_v62, %s1190_s24  ;;  %v455_v18 = vsel %vm410_vm3, %v443_v59, %v445_v39 }
 0x113   : > { %v631_v38 = vsel %vm511_vm1, %v420_v56, %v455_v18 }
 0x119   : > { %753 = vrot.lane.b32.xlu0 %v625_v55, %s1190_s24  ;;  %755 = vrot.lane.b32.xlu1 %v628_v7, %s1190_s24 }
 0x11a   : > { %711 = vrot.lane.b32.xlu2 %v1423_v40, %s1190_s24  ;;  %v343_v40 = vunpack.c.h.b16 %v1539_v47 }
 0x11c   : > { %v353_v50 = vpack.c.b16 %v343_v40, %v343_v40 }
 0x11e   : > { %v595_v16 = vsel %vm511_vm1, %v353_v50, %v383_v23 }
 0x121   : > { %v760_v9 = vpop.permute.xlu1 %759  ;;  %689 = vrot.lane.b32.xlu0 %v529_v26, %s1190_s24  ;;  %691 = vrot.lane.b32.xlu1 %v532_v36, %s1190_s24 }
 0x122   : > { %777 = vrot.lane.b32.xlu2 %v510_v15, %s1190_s24  ;;  %v764_v46 = vpop.permute.xlu0 %763  ;;  %v816_v14 = vsel %vm779_vm4, %v760_v9, %v762_v49 }
 0x123   : > { %v870_v1 = vsel %vm511_vm1, %v816_v14, 0  ;;  %v817_v21 = vsel %vm779_vm4, %v762_v49, %v764_v46 }
 0x124   : > { %v742_v19 = vpop.permute.xlu2 %741  ;;  %902 = vmatpush.bf16.msra.mxu0 %v870_v1  ;;  %v873_v17 = vsel %vm511_vm1, %v817_v21, 0 }
 0x125   : > { %915 = vmatpush.bf16.msra.mxu1 %v873_v17 }
 0x129   : > { %735 = vrot.lane.b32.xlu0 %v598_v61, %s1190_s24  ;;  %757 = vrot.lane.b32.xlu1 %v631_v38, %s1190_s24 }
 0x12a   : > { %733 = vrot.lane.b32.xlu2 %v595_v16, %s1190_s24 }
 0x12c   : > { %v722_v33 = vpop.permute.xlu2 %721 }
 0x131   : > { %715 = vrot.lane.b32.xlu0 %v1436_v10, %s1190_s24  ;;  %737 = vrot.lane.b32.xlu1 %v601_v44, %s1190_s24  ;;  %v1191_v44 = vmov 0  }
 0x132   : > { %713 = vrot.lane.b32.xlu2 %v1426_v41, %s1190_s24  ;;  %1178 = vset.pattern.permute.xlu0 %v1191_v44  ;;  %1073 = vst [vmem:[%s1679_s6] sm:$0xf] %v1191_v44 }
 0x133   : > { %v740_v42 = vpop.permute.xlu1 %739 }
 0x134   : > { %v768_v11 = vpop.permute.xlu2 %767  ;;  %v807_v47 = vsel %vm779_vm4, %v740_v42, %v742_v19 }
 0x135   : > { %903 = vmatpush.bf16.msra.mxu0 %v807_v47 }
 0x139   : > { %695 = vrot.lane.b32.xlu0 %v538_v53, %s1190_s24  ;;  %717 = vrot.lane.b32.xlu1 %v1433_v45, %s1190_s24 }
 0x13a   : > { %693 = vrot.lane.b32.xlu2 %v535_v54, %s1190_s24 }
 0x13b   : > { %v720_v41 = vpop.permute.xlu1 %719  ;;  %v744_v10 = vpop.permute.xlu0 %743 }
 0x13c   : > { %v704_v29 = vpop.permute.xlu2 %703  ;;  %v798_v27 = vsel %vm779_vm4, %v720_v41, %v722_v33  ;;  %v808_v3 = vsel %vm779_vm4, %v742_v19, %v744_v10  ;;  %v1657_v19 = vld [vmem:[%s1739_s1] sm:$0xf] }
 0x13d   : > { %904 = vmatpush.bf16.msra.mxu0 %v798_v27  ;;  %916 = vmatpush.bf16.msra.mxu1 %v808_v3 }
 0x141   : > { %636 = vperm.xlu0 %1178, %v633_v34  }
 0x142   : > { %697 = vrot.lane.b32.xlu2 %v541_v20, %s1190_s24 }
 0x143   : > { %v766_v22 = vpop.permute.xlu1 %765  ;;  %v724_v24 = vpop.permute.xlu0 %723 }
 0x144   : > { %v770_v48 = vpop.permute.xlu2 %769  ;;  %v799_v45 = vsel %vm779_vm4, %v722_v33, %v724_v24  ;;  %v818_v25 = vsel %vm779_vm4, %v764_v46, %v766_v22  ;;  %v819_v37 = vsel %vm779_vm4, %v766_v22, %v768_v11 }
 0x145   : > { %917 = vmatpush.bf16.msra.mxu1 %v799_v45  ;;  %v876_v32 = vsel %vm511_vm1, %v818_v25, 0  ;;  %v879_v30 = vsel %vm511_vm1, %v819_v37, 0  ;;  %v820_v58 = vsel %vm779_vm4, %v768_v11, %v770_v48 }
 0x146   : > { %928 = vmatpush.bf16.msra.mxu2 %v876_v32  ;;  %941 = vmatpush.bf16.msra.mxu3 %v879_v30  ;;  %v882_v55 = vsel %vm511_vm1, %v820_v58, 0 }
 0x14b   : > { %v702_v5 = vpop.permute.xlu1 %701  ;;  %v700_v28 = vpop.permute.xlu0 %699 }
 0x14c   : > { %v682_v51 = vpop.permute.xlu2 %681  ;;  %v789_v35 = vsel %vm779_vm4, %v700_v28, %v702_v5  ;;  %v790_v0 = vsel %vm779_vm4, %v702_v5, %v704_v29 }
 0x14d   : > { %905 = vmatpush.bf16.msra.mxu0 %v789_v35  ;;  %918 = vmatpush.bf16.msra.mxu1 %v790_v0 }
 0x153   : > { %v748_v52 = vpop.permute.xlu1 %747  ;;  %v746_v59 = vpop.permute.xlu0 %745 }
 0x154   : > { %v728_v62 = vpop.permute.xlu2 %727  ;;  %v809_v4 = vsel %vm779_vm4, %v744_v10, %v746_v59  ;;  %v810_v43 = vsel %vm779_vm4, %v746_v59, %v748_v52 }
 0x155   : > { %929 = vmatpush.bf16.msra.mxu2 %v809_v4  ;;  %942 = vmatpush.bf16.msra.mxu3 %v810_v43 }
 0x15b   : > { %v772_v57 = vpop.permute.xlu0 %771  ;;  %v680_v8 = vpop.permute.xlu1 %679 }
 0x15c   : > { %v706_v2 = vpop.permute.xlu2 %705  ;;  %v780_v12 = vsel %vm779_vm4, %v680_v8, %v682_v51  ;;  %v821_v7 = vsel %vm779_vm4, %v770_v48, %v772_v57 }
 0x15d   : > { %906 = vmatpush.bf16.msra.mxu0 %v780_v12  ;;  %v885_v9 = vsel %vm511_vm1, %v821_v7, 0  ;;  %v791_v15 = vsel %vm779_vm4, %v704_v29, %v706_v2 }
 0x160   : > { %1151 = vmatmul.msk.bf16.vlgmr.msra.gmra.mxu0 %vm865_vm5, %v1657_v19 }
 0x161   : > { %954 = vmatpush.bf16.msrb.mxu0 %v882_v55 }
 0x163   : > { %v684_v39 = vpop.permute.xlu0 %683  ;;  %v726_v49 = vpop.permute.xlu1 %725 }
 0x164   : > { %v1645_v63 = vpop.permute.xlu2 %731  ;;  %v781_v26 = vsel %vm779_vm4, %v682_v51, %v684_v39  ;;  %v800_v36 = vsel %vm779_vm4, %v724_v24, %v726_v49  ;;  %v801_v60 = vsel %vm779_vm4, %v726_v49, %v728_v62 }
 0x165   : > { %919 = vmatpush.bf16.msra.mxu1 %v781_v26  ;;  %930 = vmatpush.bf16.msra.mxu2 %v800_v36 }
 0x166   : > { %943 = vmatpush.bf16.msra.mxu3 %v801_v60 }
 0x168   : > { %1152 = vmatmul.msk.bf16.vlgmr.msra.gmra.mxu1 %vm865_vm5, %v1657_v19 }
 0x169   : > { %967 = vmatpush.bf16.msrb.mxu1 %v885_v9  ;;  %931 = vmatpush.bf16.msra.mxu2 %v791_v15 }
 0x16b   : > { %v750_v40 = vpop.permute.xlu0 %749  ;;  %v752_v46 = vpop.permute.xlu1 %751 }
 0x16c   : > { %v686_v14 = vpop.permute.xlu2 %685  ;;  %v811_v1 = vsel %vm779_vm4, %v748_v52, %v750_v40  ;;  %v812_v21 = vsel %vm779_vm4, %v750_v40, %v752_v46 }
 0x16d   : > { %v782_v17 = vsel %vm779_vm4, %v684_v39, %v686_v14  ;;  %955 = vmatpush.bf16.msrb.mxu0 %v811_v1  ;;  %968 = vmatpush.bf16.msrb.mxu1 %v812_v21  ;;  %v1029_v1 = vld [vmem:[%s1741_s3] sm:$0xff] }
 0x16e   : > { %932 = vmatpush.bf16.msra.mxu2 %v782_v17  ;;  %v1043_v21 = vperm.slane %v1029_v1, 0  ;;  %v1044_v17 = vperm.slane %v1029_v1, 1 }
 0x171   : > { %1153 = vmatmul.msk.bf16.vlgmr.msra.gmra.mxu2 %vm865_vm5, %v1657_v19 }
 0x173   : > { %v708_v6 = vpop.permute.xlu0 %707  ;;  %v730_v56 = vpop.permute.xlu1 %729 }
 0x174   : > { %v712_v18 = vpop.permute.xlu2 %711  ;;  %v792_v13 = vsel %vm779_vm4, %v706_v2, %v708_v6  ;;  %v802_v50 = vsel %vm779_vm4, %v728_v62, %v730_v56  ;;  %v803_v23 = vsel %vm779_vm4, %v730_v56, %v1645_v63 }
 0x175   : > { %944 = vmatpush.bf16.msra.mxu3 %v792_v13  ;;  %956 = vmatpush.bf16.msrb.mxu0 %v802_v50 }
 0x176   : > { %969 = vmatpush.bf16.msrb.mxu1 %v803_v23 }
 0x17b   : > { %v774_v61 = vpop.permute.xlu0 %773  ;;  %v776_v38 = vpop.permute.xlu1 %775 }
 0x17c   : > { %v778_v31 = vpop.permute.xlu2 %777  ;;  %v822_v16 = vsel %vm779_vm4, %v772_v57, %v774_v61  ;;  %v823_v42 = vsel %vm779_vm4, %v774_v61, %v776_v38  ;;  %v1045_v61 = vperm.slane %v1029_v1, 2 }
 0x17d   : > { %v888_v33 = vsel %vm511_vm1, %v822_v16, 0  ;;  %v891_v29 = vsel %vm511_vm1, %v823_v42, 0  ;;  %v824_v45 = vsel %vm779_vm4, %v776_v38, %v778_v31  ;;  %v897_v51 = vsel %vm511_vm1, %v778_v31, 0 }
 0x17e   : > { %980 = vmatpush.bf16.msrb.mxu2 %v888_v33  ;;  %v894_v5 = vsel %vm511_vm1, %v824_v45, 0  ;;  %v1046_v16 = vperm.slane %v1029_v1, 3 }
 0x183   : > { %v688_v11 = vpop.permute.xlu0 %687  ;;  %v710_v47 = vpop.permute.xlu1 %709 }
 0x184   : > { %v734_v53 = vpop.permute.xlu2 %733  ;;  %v783_v54 = vsel %vm779_vm4, %v686_v14, %v688_v11  ;;  %v793_v41 = vsel %vm779_vm4, %v708_v6, %v710_v47  ;;  %v794_v10 = vsel %vm779_vm4, %v710_v47, %v712_v18 }
 0x185   : > { %945 = vmatpush.bf16.msra.mxu3 %v783_v54  ;;  %957 = vmatpush.bf16.msrb.mxu0 %v793_v41  ;;  %v804_v48 = vsel %vm779_vm4, %v1645_v63, %v734_v53 }
 0x186   : > { %970 = vmatpush.bf16.msrb.mxu1 %v794_v10  ;;  %v1047_v10 = vperm.slane %v1029_v1, 4 }
 0x188   : > { %1154 = vmatmul.msk.bf16.vlgmr.msra.gmra.mxu3 %vm865_vm5, %v1657_v19 }
 0x189   : > { %993 = vmatpush.bf16.msrb.mxu3 %v891_v29 }
 0x18b   : > { %v754_v27 = vpop.permute.xlu0 %753  ;;  %v756_v3 = vpop.permute.xlu1 %755 }
 0x18c   : > { %v714_v20 = vpop.permute.xlu2 %713  ;;  %v813_v22 = vsel %vm779_vm4, %v752_v46, %v754_v27  ;;  %v814_v24 = vsel %vm779_vm4, %v754_v27, %v756_v3  ;;  %v1048_v27 = vperm.slane %v1029_v1, 5 }
 0x18d   : > { %981 = vmatpush.bf16.msrb.mxu2 %v813_v22  ;;  %994 = vmatpush.bf16.msrb.mxu3 %v814_v24  ;;  %v795_v28 = vsel %vm779_vm4, %v712_v18, %v714_v20 }
 0x191   : > { %982 = vmatpush.bf16.msrb.mxu2 %v804_v48 }
 0x193   : > { %v690_v25 = vpop.permute.xlu0 %689  ;;  %v692_v37 = vpop.permute.xlu1 %691 }
 0x194   : > { %v784_v32 = vsel %vm779_vm4, %v688_v11, %v690_v25  ;;  %v785_v30 = vsel %vm779_vm4, %v690_v25, %v692_v37  ;;  %v694_v35 = vpop.permute.xlu2 %693 }
 0x195   : > { %958 = vmatpush.bf16.msrb.mxu0 %v784_v32  ;;  %971 = vmatpush.bf16.msrb.mxu1 %v785_v30  ;;  %v786_v0 = vsel %vm779_vm4, %v692_v37, %v694_v35  ;;  %v1049_v30 = vperm.slane %v1029_v1, 6 }
 0x196   : > { %983 = vmatpush.bf16.msrb.mxu2 %v795_v28 }
 0x198   : > { %1155 = vmatmul.msk.bf16.vlgmr.msrb.gmra.mxu0 %vm865_vm5, %v1657_v19  ;;  %1156 = vmatmul.msk.bf16.vlgmr.msrb.gmra.mxu1 %vm865_vm5, %v1657_v19 }
 0x199   : > { %1006 = vmatpush.bf16.msra.mxu0 %v894_v5  ;;  %1019 = vmatpush.bf16.msra.mxu1 %v897_v51 }
 0x19a   : > { %984 = vmatpush.bf16.msrb.mxu2 %v786_v0 }
 0x19b   : > { %v736_v52 = vpop.permute.xlu0 %735  ;;  %v758_v59 = vpop.permute.xlu1 %757 }
 0x19c   : > { %v805_v62 = vsel %vm779_vm4, %v734_v53, %v736_v52  ;;  %v815_v4 = vsel %vm779_vm4, %v756_v3, %v758_v59  ;;  %v698_v39 = vpop.permute.xlu2 %697 }
 0x19d   : > { %1020 = vmatpush.bf16.msra.mxu1 %v758_v59  ;;  %995 = vmatpush.bf16.msrb.mxu3 %v805_v62 }
 0x19e   : > { %1007 = vmatpush.bf16.msra.mxu0 %v815_v4  ;;  %1157 = vmatmul.msk.bf16.vlgmr.msrb.gmra.mxu2 %vm865_vm5, %v1657_v19 }
 0x1a3   : > { %v716_v43 = vpop.permute.xlu0 %715  ;;  %v738_v58 = vpop.permute.xlu1 %737 }
 0x1a4   : > { %1021 = vmatpush.bf16.msra.mxu1 %v738_v58  ;;  %v796_v57 = vsel %vm779_vm4, %v714_v20, %v716_v43  ;;  %v806_v8 = vsel %vm779_vm4, %v736_v52, %v738_v58 }
 0x1a5   : > { %996 = vmatpush.bf16.msrb.mxu3 %v796_v57  ;;  %1008 = vmatpush.bf16.msra.mxu0 %v806_v8 }
 0x1ab   : > { %v696_v2 = vpop.permute.xlu0 %695  ;;  %v718_v12 = vpop.permute.xlu1 %717 }
 0x1ac   : > { %1022 = vmatpush.bf16.msra.mxu1 %v718_v12  ;;  %v787_v55 = vsel %vm779_vm4, %v694_v35, %v696_v2  ;;  %v797_v7 = vsel %vm779_vm4, %v716_v43, %v718_v12  ;;  %v788_v49 = vsel %vm779_vm4, %v696_v2, %v698_v39  ;;  %v1030_v35 = vld [vmem:[%s1741_s3 + $0x8] sm:$0x3]  ;;  %v1050_v12 = vperm.slane %v1029_v1, 7 }
 0x1ad   : > { %997 = vmatpush.bf16.msrb.mxu3 %v787_v55  ;;  %1009 = vmatpush.bf16.msra.mxu0 %v797_v7  ;;  %v1052_v59 = vperm.slane %v1030_v35, 1  ;;  %v1051_v43 = vperm.slane %v1030_v35, 0 }
 0x1b0   : > { %1158 = vmatmul.msk.bf16.vlgmr.msrb.gmra.mxu3 %vm865_vm5, %v1657_v19  ;;  %1023 = vmatpush.bf16.msra.mxu1 %v698_v39 }
 0x1b1   : > { %1010 = vmatpush.bf16.msra.mxu0 %v788_v49 }
 0x1b3   : > { %1160 = vmatmul.msk.bf16.vlgmr.msra.gmra.mxu1 %vm865_vm5, %v1657_v19  ;;  %v637_v36 = vpop.permute.xlu0 %636 }
 0x1b4   : > { %1159 = vmatmul.msk.bf16.vlgmr.msra.gmra.mxu0 %vm865_vm5, %v1657_v19 }
 0x1dd   : > { %v908_v63 = vpop.f32.mrf.mxu0 }
 0x1de   : > { %v909_v60 = vadd.f32 %v908_v63, %v637_v36 }
 0x1e0   : > { %v1031_v46 = vmax.f32 %v909_v60, 0.0 }
 0x1e2   : > { %v1063_v6 = vmul.f32 %v1043_v21, %v1031_v46 }
 0x1e5   : > { %v921_v26 = vpop.f32.mrf.mxu1  ;;  %v910_v15 = vpop.f32.mrf.mxu0 }
 0x1e6   : > { %v922_v9 = vadd.f32 %v921_v26, %v637_v36 }
 0x1e8   : > { %v1032_v14 = vmax.f32 %v922_v9, 0.0 }
 0x1ea   : > { %v1064_v56 = vmul.f32 %v1044_v17, %v1032_v14 }
 0x1ec   : > { %v1074_v19 = vpack.c.bf16 %v1064_v56, %v1063_v6 }
 0x1ed   : > { %v923_v40 = vpop.f32.mrf.mxu1 }
 0x1ee   : > { %1079 = vst [vmem:[%s1679_s6 + $0x4] sm:$0xff] %v1074_v19 }
 0x1f4   : > { %v934_v18 = vpop.f32.mrf.mxu2 }
 0x1f5   : > { %v935_v50 = vadd.f32 %v934_v18, %v637_v36 }
 0x1f7   : > { %v1033_v23 = vmax.f32 %v935_v50, 0.0 }
 0x1f9   : > { %v1065_v33 = vmul.f32 %v1045_v61, %v1033_v23 }
 0x1fc   : > { %v936_v13 = vpop.f32.mrf.mxu2 }
 0x20b   : > { %v947_v38 = vpop.f32.mrf.mxu3 }
 0x20c   : > { %v948_v31 = vadd.f32 %v947_v38, %v637_v36 }
 0x20e   : > { %v1034_v34 = vmax.f32 %v948_v31, 0.0 }
 0x210   : > { %v1066_v42 = vmul.f32 %v1046_v16, %v1034_v34 }
 0x212   : > { %v1075_v11 = vpack.c.bf16 %v1066_v42, %v1065_v33 }
 0x213   : > { %v949_v47 = vpop.f32.mrf.mxu3 }
 0x214   : > { %1080 = vst [vmem:[%s1679_s6 + $0xc] sm:$0xff] %v1075_v11 }
 0x215   : > { %v960_v53 = vpop.f32.mrf.mxu0  ;;  %v973_v54 = vpop.f32.mrf.mxu1 }
 0x216   : > { %v961_v41 = vadd.f32 %v960_v53, %v637_v36  ;;  %v974_v29 = vadd.f32 %v973_v54, %v637_v36 }
 0x218   : > { %v1035_v3 = vmax.f32 %v961_v41, 0.0  ;;  %v1036_v20 = vmax.f32 %v974_v29, 0.0 }
 0x21a   : > { %v1067_v22 = vmul.f32 %v1047_v10, %v1035_v3  ;;  %v1068_v24 = vmul.f32 %v1048_v27, %v1036_v20 }
 0x21c   : > { %v1076_v48 = vpack.c.bf16 %v1068_v24, %v1067_v22 }
 0x21d   : > { %v962_v45 = vpop.f32.mrf.mxu0  ;;  %v975_v25 = vpop.f32.mrf.mxu1 }
 0x21e   : > { %1081 = vst [vmem:[%s1679_s6 + $0x14] sm:$0xff] %v1076_v48 }
 0x221   : > { %v986_v37 = vpop.f32.mrf.mxu2 }
 0x222   : > { %v987_v32 = vadd.f32 %v986_v37, %v637_v36 }
 0x224   : > { %v1037_v5 = vmax.f32 %v987_v32, 0.0 }
 0x226   : > { %v1069_v28 = vmul.f32 %v1049_v30, %v1037_v5 }
 0x229   : > { %v988_v51 = vpop.f32.mrf.mxu2 }
 0x230   : > { %v1025_v0 = vpop.f32.mrf.mxu1 }
 0x231   : > { %v1026_v52 = vadd.f32 %v1025_v0, %v637_v36  ;;  %v1012_v62 = vpop.f32.mrf.mxu0 }
 0x232   : > { %v1013_v4 = vadd.f32 %v1012_v62, %v637_v36 }
 0x233   : > { %v1040_v58 = vmax.f32 %v1026_v52, 0.0  ;;  %v999_v57 = vpop.f32.mrf.mxu3 }
 0x234   : > { %v1039_v8 = vmax.f32 %v1013_v4, 0.0  ;;  %v1000_v2 = vadd.f32 %v999_v57, %v637_v36 }
 0x235   : > { %v1072_v55 = vmul.f32 %v1052_v59, %v1040_v58 }
 0x236   : > { %v1071_v7 = vmul.f32 %v1051_v43, %v1039_v8  ;;  %v1038_v39 = vmax.f32 %v1000_v2, 0.0 }
 0x238   : > { %v1078_v49 = vpack.c.bf16 %v1072_v55, %v1071_v7  ;;  %v1070_v63 = vmul.f32 %v1050_v12, %v1038_v39  ;;  %v1027_v26 = vpop.f32.mrf.mxu1 }
 0x239   : > { %v1014_v60 = vpop.f32.mrf.mxu0 }
 0x23a   : > { %1085 = vst.msk [vmem:[%s1679_s6 + $0x24] sm:$0xff] %vm1084_vm8, %v1078_v49  ;;  %v1077_v9 = vpack.c.bf16 %v1070_v63, %v1069_v28 }
 0x23b   : > { %1088 = vst.msk [vmem:[%s1679_s6 + $0x28] sm:$0xff] %vm1087_vm9, %v1191_v44  ;;  %v1001_v15 = vpop.f32.mrf.mxu3 }
 0x23c   : > { %1082 = vst [vmem:[%s1679_s6 + $0x1c] sm:$0xff] %v1077_v9 }
 0x23d PF: > { %s14_s15 = sadd.s32 1, %s1185_s15  }
 0x23e   : > { %p11_p4 = scmp.ge.s32.totalorder %s14_s15, 4  }
 0x240   :  { %13 = sbr.rel (!%p11_p4) target bundleno = 1 (0x1), region = 66 }

// kernel: semantic_fpn_forward.22
= control target key start
LH: loop header
LB: loop body
LE: loop exit
PB: predicated region body
PF: predicated region fallthrough
CT: control target
= control target key end

     0   :  { %s682_s15 = smov 0   ;;  %s865_s0 = inlined_call_operand.vmem [shape: bf16[2,32,580], index: 0, kind: input, shape index: {}]   ;;  %s866_s1 = inlined_call_operand.vmem [shape: bf16[16,72], index: 1, kind: input, shape index: {}]   ;;  %s867_s2 = inlined_call_operand.vmem [shape: f32[16,1], index: 2, kind: input, shape index: {}]   ;;  %s868_s3 = inlined_call_operand.vmem [shape: f32[1,324], index: 3, kind: input, shape index: {}]   ;;  %s869_s4 = inlined_call_operand.vmem [shape: bf16[2,16,580], index: 4, kind: output, shape index: {}]  }
   0x1 LB: > { %s610_s16 = sadd.s32 4294967295, %s650_s15   ;;  %p614_p0 = scmp.ge.s32.totalorder %s650_s15, 1  ;;  %s650_s15 = sphi %s682_s15, %s14_s15  }
   0x2   : > { %p162_p1 = scmp.lt.s32.totalorder %s650_s15, 3 }
   0x4   : > { %p163_p2 = pnand %p614_p0, %p162_p1 }
   0x5   : > { %p188_p3 = scmp.lt.s32.totalorder (!%p163_p2), %s610_s16, 1  ;;  %s652_s21 = smov (!%p163_p2), 109  }
   0x6   : > { %166 = sbr.rel (%p163_p2) target bundleno = 451 (0x1c3), region = 36  ;;  %s653_s22 = smov (!%p163_p2), 110  }
   0x7   : > { %s654_s23 = smov (!%p163_p2), 127   ;;  %s655_s24 = smov (!%p163_p2), 19  }
   0xb   : > { %s873_s16 = smov (!%p188_p3, %s610_s16), 1  ;;  %vm312_vm0 = vcmask 1043456   ;;  %vm309_vm1 = vcmask 891904   ;;  %vm237_vm2 = vcmask 1039360   ;;  %vm280_vm3 = vcmask 900096  }
   0xc   : > { %s627_s17 = smul.u32 80, %s873_s16  ;;  %vm436_vm4 = vcmask 154624   ;;  %vm464_vm5 = vcmask 588800   ;;  %vm550_vm6 = vcmask 1044000   ;;  %vm551_vm7 = vcmask 556036  }
   0xd   : > { %s628_s25 = smul.u32 40, %s873_s16  ;;  %vm546_vm8 = vcmask 551936   ;;  %vm844_vm9 = vmor %vm551_vm7, %vm550_vm6 }
   0xe   : > { %s696_s20 = scalar_lea.vmem %s865_s0, %s627_s17 }
   0xf   : > { %v207_v0 = vld [vmem:[%s696_s20 + $0x4] sm:$0xff]  ;;  %v202_v4 = vld [vmem:[%s696_s20 + $0x1c] sm:$0xff]  ;;  %v208_v5 = vld [vmem:[%s696_s20 + $0xc] sm:$0xf]  ;;  %s810_s28 = scalar_lea.vmem %s869_s4, %s628_s25 }
  0x10   : > { %v200_v1 = vld [vmem:[%s696_s20 + $0x8] sm:$0xff]  ;;  %v298_v2 = vunpack.c.h.b16 %v207_v0  ;;  %v223_v6 = vunpack.c.l.b16 %v202_v4  ;;  %v299_v10 = vunpack.c.l.b16 %v208_v5  ;;  %v224_v12 = vunpack.c.h.b16 %v202_v4  ;;  %v204_v15 = vld [vmem:[%s696_s20 + $0x30] sm:$0xff]  ;;  %v199_v22 = vld [vmem:[%s696_s20] sm:$0xff] }
  0x11   : > { %v213_v3 = vunpack.c.l.b16 %v200_v1  ;;  %v214_v11 = vunpack.c.h.b16 %v200_v1  ;;  %v297_v17 = vunpack.c.l.b16 %v207_v0  ;;  %v245_v18 = vunpack.c.l.b16 %v204_v15  ;;  %v201_v26 = vld [vmem:[%s696_s20 + $0x14] sm:$0xff]  ;;  %v203_v33 = vld [vmem:[%s696_s20 + $0x28] sm:$0xff] }
  0x12   : > { %v301_v7 = vpack.c.b16 %v298_v2, %v298_v2  ;;  %v227_v9 = vpack.c.b16 %v223_v6, %v223_v6  ;;  %v302_v13 = vpack.c.b16 %v299_v10, %v299_v10  ;;  %v228_v16 = vpack.c.b16 %v224_v12, %v224_v12  ;;  %v206_v49 = vld [vmem:[%s696_s20 + $0x44] sm:$0xff]  ;;  %v205_v2 = vld [vmem:[%s696_s20 + $0x3c] sm:$0xff] }
  0x13   : > { %v217_v8 = vpack.c.b16 %v213_v3, %v213_v3  ;;  %v218_v14 = vpack.c.b16 %v214_v11, %v214_v11  ;;  %v246_v19 = vunpack.c.h.b16 %v204_v15  ;;  %v300_v20 = vpack.c.b16 %v297_v17, %v297_v17 }
  0x14   : > { %305 = vrot.lane.b32.xlu0 %v301_v7, %s652_s21  ;;  %288 = vrot.lane.b32.xlu2 %v227_v9, %s653_s22  ;;  %v707_v21 = vpack.c.b16 %v245_v18, %v245_v18  ;;  %v212_v24 = vunpack.c.h.b16 %v199_v22  ;;  %v211_v25 = vunpack.c.l.b16 %v199_v22  ;;  %v221_v27 = vunpack.c.l.b16 %v201_v26 }
  0x15   : > { %276 = vrot.lane.b32.xlu1 %v217_v8, %s653_s22  ;;  %v710_v23 = vpack.c.b16 %v246_v19, %v246_v19  ;;  %v222_v31 = vunpack.c.h.b16 %v201_v26  ;;  %v244_v34 = vunpack.c.h.b16 %v203_v33  ;;  %v243_v35 = vunpack.c.l.b16 %v203_v33 }
  0x16   : > { %v715_v28 = vpack.c.b16 %v212_v24, %v212_v24  ;;  %v717_v29 = vpack.c.b16 %v211_v25, %v211_v25  ;;  %v719_v30 = vpack.c.b16 %v221_v27, %v221_v27  ;;  %v324_v38 = vsel %vm312_vm0, %v218_v14, %v228_v16 }
  0x17   : > { %v727_v32 = vpack.c.b16 %v222_v31, %v222_v31  ;;  %v732_v36 = vpack.c.b16 %v244_v34, %v244_v34  ;;  %v734_v37 = vpack.c.b16 %v243_v35, %v243_v35  ;;  %v321_v39 = vsel %vm312_vm0, %v217_v8, %v227_v9 }
  0x18   : > { %v256_v52 = vunpack.c.h.b16 %v206_v49  ;;  %v255_v55 = vunpack.c.l.b16 %v206_v49  ;;  %v254_v12 = vunpack.c.h.b16 %v205_v2  ;;  %v315_v33 = vsel %vm312_vm0, %v717_v29, %v719_v30 }
  0x1a   : > { %v260_v57 = vpack.c.b16 %v256_v52, %v256_v52  ;;  %v259_v58 = vpack.c.b16 %v255_v55, %v255_v55  ;;  %v258_v15 = vpack.c.b16 %v254_v12, %v254_v12  ;;  %v656_v52 = vmov 0  }
  0x1b   : > { %642 = vset.pattern.permute.xlu0 %v656_v52  ;;  %539 = vst [vmem:[%s810_s28] sm:$0xf] %v656_v52  ;;  %643 = vset.pattern.permute.xlu1 %v656_v52 }
  0x1c   : > { %307 = vrot.lane.b32.xlu0 %v302_v13, %s652_s21  ;;  %290 = vrot.lane.b32.xlu2 %v228_v16, %s653_s22  ;;  %v253_v13 = vunpack.c.l.b16 %v205_v2  ;;  %540 = vst [vmem:[%s810_s28 + $0x14] sm:$0xf] %v656_v52 }
  0x1d   : > { %278 = vrot.lane.b32.xlu1 %v218_v14, %s653_s22 }
  0x1e   : > { %v257_v16 = vpack.c.b16 %v253_v13, %v253_v13 }
  0x24   : > { %303 = vrot.lane.b32.xlu0 %v300_v20, %s652_s21  ;;  %267 = vrot.lane.b32.xlu2 %v710_v23, %s654_s23 }
  0x25   : > { %265 = vrot.lane.b32.xlu1 %v707_v21, %s654_s23 }
  0x2c   : > { %272 = vrot.lane.b32.xlu0 %v717_v29, %s653_s22  ;;  %284 = vrot.lane.b32.xlu2 %v719_v30, %s653_s22 }
  0x2d   : > { %274 = vrot.lane.b32.xlu1 %v715_v28, %s653_s22 }
  0x34   : > { %286 = vrot.lane.b32.xlu0 %v727_v32, %s653_s22  ;;  %235 = vrot.lane.b32.xlu2 %v218_v14, %s654_s23 }
  0x35   : > { %233 = vrot.lane.b32.xlu1 %v217_v8, %s654_s23 }
  0x3c   : > { %261 = vrot.lane.b32.xlu0 %v734_v37, %s654_s23  ;;  %229 = vrot.lane.b32.xlu2 %v717_v29, %s654_s23 }
  0x3d   : > { %263 = vrot.lane.b32.xlu1 %v732_v36, %s654_s23 }
  0x44   : > { %231 = vrot.lane.b32.xlu0 %v715_v28, %s654_s23 }
  0x45   : > { %402 = vrot.lane.b32.xlu1 %v324_v38, %s655_s24  ;;  %v318_v38 = vsel %vm312_vm0, %v715_v28, %v727_v32 }
  0x4c   : > { %400 = vrot.lane.b32.xlu0 %v321_v39, %s655_s24 }
  0x6e   : > { %v289_v40 = vpop.permute.xlu2 %288 }
  0x76   : > { %v291_v41 = vpop.permute.xlu2 %290 }
  0x77   : > { %v294_v3 = vsel %vm280_vm3, %v289_v40, %v291_v41 }
  0x7e   : > { %v268_v42 = vpop.permute.xlu2 %267 }
  0x7f   : > { %v348_v63 = vsel %vm312_vm0, %v260_v57, %v268_v42 }
  0x86   : > { %v306_v43 = vpop.permute.xlu0 %305  ;;  %v285_v48 = vpop.permute.xlu2 %284 }
  0x87   : > { %v277_v44 = vpop.permute.xlu1 %276 }
  0x8e   : > { %v308_v45 = vpop.permute.xlu0 %307  ;;  %v236_v56 = vpop.permute.xlu2 %235 }
  0x8f   : > { %v279_v46 = vpop.permute.xlu1 %278  ;;  %434 = vrot.lane.b32.xlu2 %v308_v45, %s655_s24  ;;  %v311_v47 = vsel %vm309_vm1, %v306_v43, %v308_v45  ;;  %v336_v60 = vsel %vm312_vm0, %v236_v56, %v710_v23 }
  0x90   : > { %432 = vrot.lane.b32.xlu1 %v311_v47, %s655_s24  ;;  %v360_v53 = vsel %vm312_vm0, %v279_v46, %v291_v41  ;;  %v283_v1 = vsel %vm280_vm3, %v277_v44, %v279_v46 }
  0x91   : > { %v357_v9 = vsel %vm312_vm0, %v283_v1, %v294_v3  ;;  %v626_v3 = vld [vmem:[%s866_s1] sm:$0xff] }
  0x96   : > { %v304_v50 = vpop.permute.xlu0 %303  ;;  %v230_v25 = vpop.permute.xlu2 %229 }
  0x97   : > { %v266_v51 = vpop.permute.xlu1 %265  ;;  %428 = vrot.lane.b32.xlu2 %v304_v50, %s655_s24  ;;  %v310_v54 = vsel %vm309_vm1, %v304_v50, %v306_v43  ;;  %v363_v50 = vld [vmem:[%s867_s2] sm:$0xff] }
  0x98   : > { %426 = vrot.lane.b32.xlu1 %v360_v53, %s655_s24  ;;  %430 = vrot.lane.b32.xlu0 %v310_v54, %s655_s24  ;;  %v271_v59 = vsel %vm237_vm2, %v266_v51, %v268_v42 }
  0x99   : > { %v345_v0 = vsel %vm312_vm0, %v259_v58, %v271_v59 }
  0x9e   : > { %v273_v62 = vpop.permute.xlu0 %272 }
  0x9f   : > { %v275_v61 = vpop.permute.xlu1 %274  ;;  %418 = vrot.lane.b32.xlu2 %v348_v63, %s655_s24 }
  0xa0   : > { %416 = vrot.lane.b32.xlu1 %v345_v0, %s655_s24  ;;  %410 = vrot.lane.b32.xlu0 %v336_v60, %s655_s24  ;;  %v282_v6 = vsel %vm280_vm3, %v275_v61, %v277_v44  ;;  %v281_v17 = vsel %vm280_vm3, %v273_v62, %v275_v61 }
  0xa6   : > { %v287_v5 = vpop.permute.xlu0 %286 }
  0xa7   : > { %v234_v4 = vpop.permute.xlu1 %233  ;;  %v293_v8 = vsel %vm280_vm3, %v287_v5, %v289_v40  ;;  %v292_v14 = vsel %vm280_vm3, %v285_v48, %v287_v5 }
  0xa8   : > { %v240_v7 = vsel %vm237_vm2, %v234_v4, %v236_v56  ;;  %424 = vrot.lane.b32.xlu0 %v357_v9, %s655_s24  ;;  %v354_v11 = vsel %vm312_vm0, %v282_v6, %v293_v8  ;;  %v351_v22 = vsel %vm312_vm0, %v281_v17, %v292_v14 }
  0xa9   : > { %v333_v10 = vsel %vm312_vm0, %v240_v7, %v707_v21  ;;  %422 = vrot.lane.b32.xlu1 %v354_v11, %s655_s24  ;;  %v519_v11 = vld [vmem:[%s868_s3] sm:$0x7] }
  0xaa   : > { %408 = vrot.lane.b32.xlu2 %v333_v10, %s655_s24  ;;  %v529_v14 = vperm.slane %v519_v11, 2 }
  0xae   : > { %v262_v19 = vpop.permute.xlu0 %261 }
  0xaf   : > { %v264_v18 = vpop.permute.xlu1 %263 }
  0xb0   : > { %v270_v20 = vsel %vm237_vm2, %v264_v18, %v266_v51  ;;  %v269_v21 = vsel %vm237_vm2, %v262_v19, %v264_v18  ;;  %420 = vrot.lane.b32.xlu0 %v351_v22, %s655_s24  ;;  %v364_v51 = vld [vmem:[%s867_s2 + $0x8] sm:$0xff]  ;;  %v528_v22 = vperm.slane %v519_v11, 1 }
  0xb1   : > { %v342_v23 = vsel %vm312_vm0, %v258_v15, %v270_v20  ;;  %v339_v24 = vsel %vm312_vm0, %v257_v16, %v269_v21  ;;  %v527_v20 = vperm.slane %v519_v11, 0 }
  0xb2   : > { %414 = vrot.lane.b32.xlu2 %v342_v23, %s655_s24  ;;  %412 = vrot.lane.b32.xlu1 %v339_v24, %s655_s24 }
  0xb6   : > { %v232_v26 = vpop.permute.xlu0 %231 }
  0xb7   : > { %v238_v27 = vsel %vm237_vm2, %v230_v25, %v232_v26  ;;  %v239_v31 = vsel %vm237_vm2, %v232_v26, %v234_v4  ;;  %v403_v29 = vpop.permute.xlu1 %402 }
  0xb8   : > { %v330_v34 = vsel %vm312_vm0, %v239_v31, %v732_v36  ;;  %v327_v35 = vsel %vm312_vm0, %v238_v27, %v734_v37 }
  0xb9   : > { %406 = vrot.lane.b32.xlu0 %v330_v34, %s655_s24 }
  0xba   : > { %404 = vrot.lane.b32.xlu2 %v327_v35, %s655_s24  ;;  %396 = vrot.lane.b32.xlu1 %v315_v33, %s655_s24 }
  0xbe   : > { %v798_v40 = vpop.permute.xlu0 %400 }
  0xbf   : > { %v439_v2 = vsel %vm436_vm4, %v798_v40, %v403_v29 }
  0xc1   : > { %367 = vperm.xlu0 %642, %v363_v50  }
  0xc2   : > { %398 = vrot.lane.b32.xlu2 %v318_v38, %s655_s24  ;;  %372 = vperm.xlu1 %643, %v364_v51  }
  0xe9   : > { %v435_v39 = vpop.permute.xlu2 %434 }
  0xf1   : > { %v429_v30 = vpop.permute.xlu2 %428 }
  0xf9   : > { %v419_v42 = vpop.permute.xlu2 %418 }
 0x102   : > { %v433_v36 = vpop.permute.xlu1 %432 }
 0x103   : > { %v451_v37 = vsel %vm436_vm4, %v433_v36, %v435_v39 }
 0x104   : > { %v475_v41 = vsel %vm312_vm0, %v451_v37, 0  ;;  %v409_v47 = vpop.permute.xlu2 %408 }
 0x105   : > { %508 = vmatpush.bf16.msra.mxu2 %v475_v41 }
 0x10a   : > { %v427_v43 = vpop.permute.xlu1 %426  ;;  %v431_v44 = vpop.permute.xlu0 %430 }
 0x10b   : > { %v449_v28 = vsel %vm436_vm4, %v429_v30, %v431_v44  ;;  %v450_v32 = vsel %vm436_vm4, %v431_v44, %v433_v36 }
 0x10c   : > { %v469_v45 = vsel %vm312_vm0, %v449_v28, 0  ;;  %v472_v46 = vsel %vm312_vm0, %v450_v32, 0  ;;  %v415_v53 = vpop.permute.xlu2 %414 }
 0x10d   : > { %480 = vmatpush.bf16.msra.mxu0 %v469_v45  ;;  %494 = vmatpush.bf16.msra.mxu1 %v472_v46 }
 0x112   : > { %v417_v48 = vpop.permute.xlu1 %416  ;;  %v411_v49 = vpop.permute.xlu0 %410 }
 0x113   : > { %v445_v58 = vsel %vm436_vm4, %v417_v48, %v419_v42  ;;  %v444_v59 = vsel %vm436_vm4, %v415_v53, %v417_v48  ;;  %v442_v63 = vsel %vm436_vm4, %v409_v47, %v411_v49 }
 0x114   : > { %v405_v61 = vpop.permute.xlu2 %404 }
 0x11a   : > { %v425_v54 = vpop.permute.xlu0 %424 }
 0x11b   : > { %v423_v55 = vpop.permute.xlu1 %422  ;;  %v448_v56 = vsel %vm436_vm4, %v425_v54, %v427_v43 }
 0x11c   : > { %509 = vmatpush.bf16.msra.mxu2 %v448_v56  ;;  %v447_v57 = vsel %vm436_vm4, %v423_v55, %v425_v54  ;;  %v399_v8 = vpop.permute.xlu2 %398 }
 0x11d   : > { %495 = vmatpush.bf16.msra.mxu1 %v447_v57  ;;  %v438_v10 = vsel %vm436_vm4, %v399_v8, %v798_v40 }
 0x120   : > { %510 = vmatpush.bf16.msra.mxu2 %v445_v58 }
 0x121   : > { %496 = vmatpush.bf16.msra.mxu1 %v444_v59 }
 0x122   : > { %v421_v60 = vpop.permute.xlu0 %420 }
 0x123   : > { %v446_v62 = vsel %vm436_vm4, %v421_v60, %v423_v55 }
 0x124   : > { %v413_v0 = vpop.permute.xlu1 %412  ;;  %481 = vmatpush.bf16.msra.mxu0 %v446_v62  ;;  %511 = vmatpush.bf16.msra.mxu2 %v442_v63 }
 0x125   : > { %v443_v1 = vsel %vm436_vm4, %v413_v0, %v415_v53 }
 0x128   : > { %482 = vmatpush.bf16.msra.mxu0 %v443_v1  ;;  %512 = vmatpush.bf16.msra.mxu2 %v439_v2 }
 0x12b   : > { %623 = vmatmul.msk.bf16.vlgmr.msra.gmra.mxu2 %vm464_vm5, %v626_v3  ;;  %v407_v4 = vpop.permute.xlu0 %406 }
 0x12c   : > { %v440_v5 = vsel %vm436_vm4, %v405_v61, %v407_v4  ;;  %v441_v6 = vsel %vm436_vm4, %v407_v4, %v409_v47  ;;  %v397_v7 = vpop.permute.xlu1 %396 }
 0x12d   : > { %483 = vmatpush.bf16.msra.mxu0 %v440_v5  ;;  %497 = vmatpush.bf16.msra.mxu1 %v441_v6  ;;  %v437_v9 = vsel %vm436_vm4, %v397_v7, %v399_v8 }
 0x131   : > { %484 = vmatpush.bf16.msra.mxu0 %v437_v9  ;;  %498 = vmatpush.bf16.msra.mxu1 %v438_v10 }
 0x133   : > { %v368_v12 = vpop.permute.xlu0 %367 }
 0x134   : > { %621 = vmatmul.msk.bf16.vlgmr.msra.gmra.mxu0 %vm464_vm5, %v626_v3  ;;  %622 = vmatmul.msk.bf16.vlgmr.msra.gmra.mxu1 %vm464_vm5, %v626_v3  ;;  %v373_v26 = vpop.permute.xlu1 %372 }
 0x1ae   : > { %v514_v13 = vpop.f32.mrf.mxu2 }
 0x1af   : > { %v515_v15 = vadd.f32 %v514_v13, %v368_v12 }
 0x1b1   : > { %v522_v16 = vmax.f32 %v515_v15, 0.0  ;;  %v486_v17 = vpop.f32.mrf.mxu0  ;;  %v500_v18 = vpop.f32.mrf.mxu1 }
 0x1b2   : > { %v487_v19 = vadd.f32 %v486_v17, %v368_v12  ;;  %v501_v21 = vadd.f32 %v500_v18, %v368_v12 }
 0x1b3   : > { %v535_v23 = vmul.f32 %v529_v14, %v522_v16 }
 0x1b4   : > { %v520_v24 = vmax.f32 %v487_v19, 0.0  ;;  %v521_v25 = vmax.f32 %v501_v21, 0.0 }
 0x1b5   : > { %v542_v31 = vpack.c.bf16 %v535_v23, %v535_v23 }
 0x1b6   : > { %v533_v33 = vmul.f32 %v527_v20, %v520_v24  ;;  %v534_v34 = vmul.f32 %v528_v22, %v521_v25  ;;  %v516_v35 = vpop.f32.mrf.mxu2 }
 0x1b7   : > { %547 = vst.msk [vmem:[%s810_s28 + $0xc] sm:$0xf] %vm546_vm8, %v542_v31  ;;  %v517_v38 = vadd.f32 %v516_v35, %v373_v26 }
 0x1b8   : > { %553 = vst.msk [vmem:[%s810_s28 + $0xc] sm:$0xff] %vm844_vm9, %v656_v52  ;;  %v541_v39 = vpack.c.bf16 %v534_v34, %v533_v33 }
 0x1b9   : > { %v525_v29 = vmax.f32 %v517_v38, 0.0  ;;  %v488_v30 = vpop.f32.mrf.mxu0  ;;  %v502_v40 = vpop.f32.mrf.mxu1 }
 0x1ba   : > { %545 = vst [vmem:[%s810_s28 + $0x4] sm:$0xff] %v541_v39  ;;  %v489_v36 = vadd.f32 %v488_v30, %v373_v26  ;;  %v503_v37 = vadd.f32 %v502_v40, %v373_v26 }
 0x1bb   : > { %v538_v41 = vmul.f32 %v529_v14, %v525_v29 }
 0x1bc   : > { %v523_v42 = vmax.f32 %v489_v36, 0.0  ;;  %v524_v43 = vmax.f32 %v503_v37, 0.0 }
 0x1bd   : > { %v544_v44 = vpack.c.bf16 %v538_v41, %v538_v41 }
 0x1be   : > { %v536_v28 = vmul.f32 %v527_v20, %v523_v42  ;;  %v537_v32 = vmul.f32 %v528_v22, %v524_v43 }
 0x1bf   : > { %549 = vst.msk [vmem:[%s810_s28 + $0x20] sm:$0xf] %vm546_vm8, %v544_v44 }
 0x1c0   : > { %554 = vst.msk [vmem:[%s810_s28 + $0x20] sm:$0xff] %vm844_vm9, %v656_v52  ;;  %v543_v45 = vpack.c.bf16 %v537_v32, %v536_v28 }
 0x1c2   : > { %548 = vst [vmem:[%s810_s28 + $0x18] sm:$0xff] %v543_v45 }
 0x1c3 PF: > { %s14_s15 = sadd.s32 1, %s650_s15  }
 0x1c4   : > { %p11_p4 = scmp.ge.s32.totalorder %s14_s15, 4  }
 0x1c6   :  { %13 = sbr.rel (!%p11_p4) target bundleno = 1 (0x1), region = 66 }

// kernel: semantic_fpn_forward.23
= control target key start
LH: loop header
LB: loop body
LE: loop exit
PB: predicated region body
PF: predicated region fallthrough
CT: control target
= control target key end

     0   :  { %s573_s15 = smov 0   ;;  %s678_s0 = inlined_call_operand.vmem [shape: bf16[2,64,356], index: 0, kind: input, shape index: {}]   ;;  %s679_s1 = inlined_call_operand.vmem [shape: bf16[16,144], index: 1, kind: input, shape index: {}]   ;;  %s680_s2 = inlined_call_operand.vmem [shape: f32[16,1], index: 2, kind: input, shape index: {}]   ;;  %s681_s3 = inlined_call_operand.vmem [shape: f32[1,100], index: 3, kind: input, shape index: {}]   ;;  %s682_s4 = inlined_call_operand.vmem [shape: bf16[2,16,356], index: 4, kind: output, shape index: {}]  }
   0x1 LB: > { %s452_s16 = sadd.s32 4294967295, %s541_s15   ;;  %p456_p0 = scmp.ge.s32.totalorder %s541_s15, 1  ;;  %s541_s15 = sphi %s573_s15, %s14_s15  }
   0x2   : > { %p162_p1 = scmp.lt.s32.totalorder %s541_s15, 3 }
   0x4   : > { %p163_p2 = pnand %p456_p0, %p162_p1 }
   0x5   : > { %p188_p3 = scmp.lt.s32.totalorder (!%p163_p2), %s452_s16, 1  ;;  %s543_s21 = smov (!%p163_p2), 118  }
   0x6   : > { %166 = sbr.rel (%p163_p2) target bundleno = 447 (0x1bf), region = 36  ;;  %s544_s22 = smov (!%p163_p2), 127  }
   0x7   : > { %s545_s23 = smov (!%p163_p2), 117   ;;  %s546_s24 = smov (!%p163_p2), 11  }
   0xb   : > { %s684_s16 = smov (!%p188_p3, %s452_s16), 1  ;;  %vm256_vm0 = vcmask 965632   ;;  %vm229_vm1 = vcmask 1039360   ;;  %vm327_vm2 = vcmask 89088   ;;  %v273_v48 = vld [vmem:[%s680_s2 + $0x8] sm:$0xff]  ;;  %v272_v49 = vld [vmem:[%s680_s2] sm:$0xff] }
   0xc   : > { %s517_s17 = smul.u32 96, %s684_s16  ;;  %v547_v50 = vmov 0   ;;  %vm345_vm3 = vcmask 130048   ;;  %vm392_vm4 = vcmask 1044256   ;;  %vm393_vm5 = vcmask 818180  }
   0xd   : > { %s518_s25 = smul.u32 24, %s684_s16  ;;  %533 = vset.pattern.permute.xlu0 %v547_v50  ;;  %532 = vset.pattern.permute.xlu2 %v547_v50  ;;  %vm389_vm6 = vcmask 814080   ;;  %vm394_vm7 = vmor %vm393_vm5, %vm392_vm4 }
   0xe   : > { %s587_s20 = scalar_lea.vmem %s678_s0, %s517_s17 }
   0xf   : > { %v469_v0 = vld [vmem:[%s587_s20 + $0x18] sm:$0xf]  ;;  %v509_v1 = vld [vmem:[%s587_s20 + $0x20] sm:$0xf0]  ;;  %v461_v2 = vld [vmem:[%s587_s20] sm:$0xf]  ;;  %s634_s28 = scalar_lea.vmem %s682_s4, %s518_s25 }
  0x10   : > { %v592_v3 = vor.u32 %v509_v1, %v469_v0  ;;  %v507_v4 = vld [vmem:[%s587_s20 + $0x8] sm:$0xf0]  ;;  %v477_v6 = vld [vmem:[%s587_s20 + $0x30] sm:$0xf]  ;;  %v511_v7 = vld [vmem:[%s587_s20 + $0x38] sm:$0xf0] }
  0x11   : > { %v462_v5 = vor.u32 %v507_v4, %v461_v2  ;;  %v508_v8 = vld [vmem:[%s587_s20 + $0x1c] sm:$0xf]  ;;  %v471_v9 = vld [vmem:[%s587_s20 + $0x24] sm:$0xf0]  ;;  %v478_v10 = vor.u32 %v511_v7, %v477_v6  ;;  %v506_v11 = vld [vmem:[%s587_s20 + $0x4] sm:$0xf] }
  0x12   : > { %258 = vrot.lane.b32.xlu0 %v592_v3, %s543_s21  ;;  %v463_v12 = vld [vmem:[%s587_s20 + $0xc] sm:$0xf0]  ;;  %v474_v13 = vor.u32 %v508_v8, %v471_v9  ;;  %v510_v14 = vld [vmem:[%s587_s20 + $0x34] sm:$0xf]  ;;  %v479_v15 = vld [vmem:[%s587_s20 + $0x3c] sm:$0xf0] }
  0x13   : > { %252 = vrot.lane.b32.xlu1 %v462_v5, %s543_s21  ;;  %247 = vrot.lane.b32.xlu2 %v478_v10, %s544_s22  ;;  %v466_v16 = vor.u32 %v506_v11, %v463_v12  ;;  %v482_v17 = vor.u32 %v510_v14, %v479_v15  ;;  %v493_v18 = vld [vmem:[%s587_s20 + $0x4] sm:$0xf]  ;;  %v514_v19 = vld [vmem:[%s587_s20 + $0xc] sm:$0xf0] }
  0x14   : > { %v494_v20 = vor.u32 %v514_v19, %v493_v18  ;;  %v512_v28 = vld [vmem:[%s587_s20 + $0x4c] sm:$0xf]  ;;  %v487_v29 = vld [vmem:[%s587_s20 + $0x54] sm:$0xf0]  ;;  %v485_v32 = vld [vmem:[%s587_s20 + $0x48] sm:$0xf] }
  0x15   : > { %v490_v30 = vor.u32 %v512_v28, %v487_v29  ;;  %v513_v33 = vld [vmem:[%s587_s20 + $0x50] sm:$0xf0]  ;;  %385 = vst [vmem:[%s634_s28] sm:$0xf] %v547_v50  ;;  %v515_v0 = vld [vmem:[%s679_s1 + $0x4] sm:$0xf] }
  0x16   : > { %v486_v34 = vor.u32 %v513_v33, %v485_v32  ;;  %386 = vst [vmem:[%s634_s28 + $0xc] sm:$0xf] %v547_v50  ;;  %v499_v1 = vld [vmem:[%s679_s1 + $0x8] sm:$0xf0]  ;;  %v516_v4 = vld [vmem:[%s679_s1 + $0x4] sm:$0xf0] }
  0x17   : > { %v502_v6 = vor.u32 %v515_v0, %v499_v1  ;;  %v534_v15 = vld [vmem:[%s681_s3] ss:$0 sm:$0xff] }
  0x1a   : > { %260 = vrot.lane.b32.xlu0 %v474_v13, %s543_s21 }
  0x1b   : > { %254 = vrot.lane.b32.xlu1 %v466_v16, %s543_s21  ;;  %249 = vrot.lane.b32.xlu2 %v482_v17, %s544_s22 }
  0x22   : > { %225 = vrot.lane.b32.xlu0 %v462_v5, %s544_s22 }
  0x23   : > { %227 = vrot.lane.b32.xlu1 %v466_v16, %s544_s22  ;;  %268 = vrot.lane.b32.xlu2 %v494_v20, %s545_s23 }
  0x6d   : > { %v248_v21 = vpop.permute.xlu2 %247 }
  0x75   : > { %v250_v22 = vpop.permute.xlu2 %249 }
  0x76   : > { %315 = vrot.lane.b32.xlu2 %v250_v22, %s546_s24  ;;  %v251_v35 = vsel %vm229_vm1, %v248_v21, %v250_v22 }
  0x7d   : > { %v269_v39 = vpop.permute.xlu2 %268 }
  0x84   : > { %v259_v23 = vpop.permute.xlu0 %258 }
  0x85   : > { %v253_v24 = vpop.permute.xlu1 %252 }
  0x8c   : > { %v261_v25 = vpop.permute.xlu0 %260 }
  0x8d   : > { %v255_v26 = vpop.permute.xlu1 %254  ;;  %323 = vrot.lane.b32.xlu1 %v261_v25, %s546_s24  ;;  %v262_v31 = vsel %vm256_vm0, %v259_v23, %v261_v25 }
  0x8e   : > { %319 = vrot.lane.b32.xlu0 %v255_v26, %s546_s24  ;;  %v257_v27 = vsel %vm256_vm0, %v253_v24, %v255_v26 }
  0x8f   : > { %317 = vrot.lane.b32.xlu2 %v257_v27, %s546_s24 }
  0x94   : > { %v226_v37 = vpop.permute.xlu0 %225 }
  0x95   : > { %311 = vrot.lane.b32.xlu1 %v490_v30, %s546_s24  ;;  %v228_v36 = vpop.permute.xlu1 %227 }
  0x96   : > { %321 = vrot.lane.b32.xlu0 %v262_v31, %s546_s24  ;;  %v230_v38 = vsel %vm229_vm1, %v226_v37, %v228_v36 }
  0x97   : > { %305 = vrot.lane.b32.xlu2 %v478_v10, %s546_s24 }
  0x9d   : > { %313 = vrot.lane.b32.xlu1 %v251_v35, %s546_s24 }
  0x9e   : > { %309 = vrot.lane.b32.xlu0 %v486_v34, %s546_s24 }
  0x9f   : > { %303 = vrot.lane.b32.xlu2 %v228_v36, %s546_s24 }
  0xa5   : > { %301 = vrot.lane.b32.xlu1 %v230_v38, %s546_s24 }
  0xa6   : > { %307 = vrot.lane.b32.xlu0 %v482_v17, %s546_s24 }
  0xa7   : > { %293 = vrot.lane.b32.xlu2 %v462_v5, %s546_s24 }
  0xad   : > { %299 = vrot.lane.b32.xlu1 %v474_v13, %s546_s24 }
  0xae   : > { %297 = vrot.lane.b32.xlu0 %v592_v3, %s546_s24  ;;  %v497_v3 = vld [vmem:[%s679_s1] sm:$0xf] }
  0xaf   : > { %276 = vperm.xlu2 %532, %v272_v49   ;;  %v498_v9 = vor.u32 %v516_v4, %v497_v3 }
  0xb5   : > { %325 = vrot.lane.b32.xlu1 %v269_v39, %s546_s24 }
  0xb6   : > { %295 = vrot.lane.b32.xlu0 %v466_v16, %s546_s24 }
  0xbe   : > { %281 = vperm.xlu0 %533, %v273_v48  }
  0xd0   : > { %v316_v41 = vpop.permute.xlu2 %315 }
  0xe9   : > { %v318_v46 = vpop.permute.xlu2 %317 }
  0xf1   : > { %v306_v54 = vpop.permute.xlu2 %305 }
  0xf9   : > { %v304_v59 = vpop.permute.xlu2 %303 }
  0xff   : > { %v324_v40 = vpop.permute.xlu1 %323 }
 0x100   : > { %v320_v42 = vpop.permute.xlu0 %319 }
 0x101   : > { %v334_v47 = vsel %vm327_vm2, %v318_v46, %v320_v42  ;;  %v294_v2 = vpop.permute.xlu2 %293 }
 0x107   : > { %v312_v43 = vpop.permute.xlu1 %311 }
 0x108   : > { %v322_v44 = vpop.permute.xlu0 %321 }
 0x109   : > { %v335_v45 = vsel %vm327_vm2, %v322_v44, %v324_v40  ;;  %v277_v10 = vpop.permute.xlu2 %276 }
 0x10a   : > { %349 = vmatpush.bf16.msra.mxu0 %v335_v45 }
 0x10e   : > { %350 = vmatpush.bf16.msra.mxu0 %v334_v47 }
 0x10f   : > { %v314_v51 = vpop.permute.xlu1 %313 }
 0x110   : > { %v310_v52 = vpop.permute.xlu0 %309  ;;  %v333_v53 = vsel %vm327_vm2, %v314_v51, %v316_v41 }
 0x111   : > { %v332_v55 = vsel %vm327_vm2, %v310_v52, %v312_v43 }
 0x112   : > { %351 = vmatpush.bf16.msra.mxu0 %v333_v53 }
 0x116   : > { %352 = vmatpush.bf16.msra.mxu0 %v332_v55 }
 0x117   : > { %v302_v56 = vpop.permute.xlu1 %301 }
 0x118   : > { %v308_v57 = vpop.permute.xlu0 %307  ;;  %v330_v60 = vsel %vm327_vm2, %v302_v56, %v304_v59 }
 0x119   : > { %v331_v58 = vsel %vm327_vm2, %v306_v54, %v308_v57 }
 0x11a   : > { %353 = vmatpush.bf16.msra.mxu0 %v331_v58 }
 0x11e   : > { %354 = vmatpush.bf16.msra.mxu0 %v330_v60 }
 0x11f   : > { %v300_v61 = vpop.permute.xlu1 %299 }
 0x120   : > { %v298_v62 = vpop.permute.xlu0 %297 }
 0x121   : > { %v329_v63 = vsel %vm327_vm2, %v298_v62, %v300_v61 }
 0x122   : > { %355 = vmatpush.bf16.msra.mxu0 %v329_v63 }
 0x127   : > { %v326_v5 = vpop.permute.xlu1 %325 }
 0x128   : > { %v296_v7 = vpop.permute.xlu0 %295  ;;  %370 = vmatpush.bf16.msra.mxu1 %v326_v5 }
 0x129   : > { %v328_v8 = vsel %vm327_vm2, %v294_v2, %v296_v7 }
 0x12a   : > { %356 = vmatpush.bf16.msra.mxu0 %v328_v8 }
 0x12b   : > { %503 = vmatmul.msk.bf16.vlgmr.msra.gmra.mxu1 %vm345_vm3, %v502_v6 }
 0x12d   : > { %357 = vmatmul.bf16.vlgmr.msra.gmra.mxu0 %v498_v9 }
 0x130   : > { %v282_v17 = vpop.permute.xlu0 %281 }
 0x1a8   : > { %v372_v11 = vpop.f32.mrf.mxu1 }
 0x1aa   : > { %v358_v12 = vpop.f32.mrf.mxu0 }
 0x1ab   : > { %v359_v13 = vadd.f32 %v358_v12, %v277_v10 }
 0x1ad   : > { %v373_v14 = vadd.f32 %v372_v11, %v359_v13 }
 0x1af   : > { %v378_v16 = vmax.f32 %v373_v14, 0.0 }
 0x1b0   : > { %v374_v22 = vpop.f32.mrf.mxu1 }
 0x1b1   : > { %v383_v18 = vmul.f32 %v534_v15, %v378_v16 }
 0x1b2   : > { %v360_v19 = vpop.f32.mrf.mxu0 }
 0x1b3   : > { %v387_v20 = vpack.c.bf16 %v383_v18, %v383_v18  ;;  %v361_v21 = vadd.f32 %v360_v19, %v282_v17 }
 0x1b5   : > { %390 = vst.msk [vmem:[%s634_s28 + $0x4] sm:$0xf] %vm389_vm6, %v387_v20  ;;  %v375_v23 = vadd.f32 %v374_v22, %v361_v21 }
 0x1b6   : > { %395 = vst.msk [vmem:[%s634_s28 + $0x4] sm:$0xff] %vm394_vm7, %v547_v50 }
 0x1b7   : > { %v379_v24 = vmax.f32 %v375_v23, 0.0 }
 0x1b9   : > { %v384_v25 = vmul.f32 %v534_v15, %v379_v24 }
 0x1bb   : > { %v388_v26 = vpack.c.bf16 %v384_v25, %v384_v25 }
 0x1bd   : > { %391 = vst.msk [vmem:[%s634_s28 + $0x10] sm:$0xf] %vm389_vm6, %v388_v26 }
 0x1be   : > { %396 = vst.msk [vmem:[%s634_s28 + $0x10] sm:$0xff] %vm394_vm7, %v547_v50 }
 0x1bf PF: > { %s14_s15 = sadd.s32 1, %s541_s15  }
 0x1c0   : > { %p11_p4 = scmp.ge.s32.totalorder %s14_s15, 4  }
 0x1c2   :  { %13 = sbr.rel (!%p11_p4) target bundleno = 1 (0x1), region = 66 }

// kernel: semantic_fpn_forward.24
= control target key start
LH: loop header
LB: loop body
LE: loop exit
PB: predicated region body
PF: predicated region fallthrough
CT: control target
= control target key end

     0   :  { %s573_s15 = smov 0   ;;  %s678_s0 = inlined_call_operand.vmem [shape: bf16[2,64,292], index: 0, kind: input, shape index: {}]   ;;  %s679_s1 = inlined_call_operand.vmem [shape: bf16[16,144], index: 1, kind: input, shape index: {}]   ;;  %s680_s2 = inlined_call_operand.vmem [shape: f32[16,1], index: 2, kind: input, shape index: {}]   ;;  %s681_s3 = inlined_call_operand.vmem [shape: f32[1,36], index: 3, kind: input, shape index: {}]   ;;  %s682_s4 = inlined_call_operand.vmem [shape: bf16[2,16,292], index: 4, kind: output, shape index: {}]  }
   0x1 LB: > { %s452_s16 = sadd.s32 4294967295, %s541_s15   ;;  %p456_p0 = scmp.ge.s32.totalorder %s541_s15, 1  ;;  %s541_s15 = sphi %s573_s15, %s14_s15  }
   0x2   : > { %p162_p1 = scmp.lt.s32.totalorder %s541_s15, 3 }
   0x4   : > { %p163_p2 = pnand %p456_p0, %p162_p1 }
   0x5   : > { %p188_p3 = scmp.lt.s32.totalorder (!%p163_p2), %s452_s16, 1  ;;  %s543_s21 = smov (!%p163_p2), 122  }
   0x6   : > { %166 = sbr.rel (%p163_p2) target bundleno = 447 (0x1bf), region = 36  ;;  %s544_s22 = smov (!%p163_p2), 127  }
   0x7   : > { %s545_s23 = smov (!%p163_p2), 121   ;;  %s546_s24 = smov (!%p163_p2), 7  }
   0xb   : > { %s684_s16 = smov (!%p188_p3, %s452_s16), 1  ;;  %vm256_vm0 = vcmask 998400   ;;  %vm229_vm1 = vcmask 1039360   ;;  %vm327_vm2 = vcmask 56320   ;;  %v273_v48 = vld [vmem:[%s680_s2 + $0x8] sm:$0xff]  ;;  %v272_v49 = vld [vmem:[%s680_s2] sm:$0xff] }
   0xc   : > { %s517_s17 = smul.u32 96, %s684_s16  ;;  %v547_v50 = vmov 0   ;;  %vm345_vm3 = vcmask 130048   ;;  %vm392_vm4 = vcmask 1043744   ;;  %vm393_vm5 = vcmask 293892  }
   0xd   : > { %s518_s25 = smul.u32 24, %s684_s16  ;;  %533 = vset.pattern.permute.xlu0 %v547_v50  ;;  %532 = vset.pattern.permute.xlu2 %v547_v50  ;;  %vm389_vm6 = vcmask 289792   ;;  %vm394_vm7 = vmor %vm393_vm5, %vm392_vm4 }
   0xe   : > { %s587_s20 = scalar_lea.vmem %s678_s0, %s517_s17 }
   0xf   : > { %v469_v0 = vld [vmem:[%s587_s20 + $0x18] sm:$0xf]  ;;  %v509_v1 = vld [vmem:[%s587_s20 + $0x20] sm:$0xf0]  ;;  %v461_v2 = vld [vmem:[%s587_s20] sm:$0xf]  ;;  %s634_s28 = scalar_lea.vmem %s682_s4, %s518_s25 }
  0x10   : > { %v592_v3 = vor.u32 %v509_v1, %v469_v0  ;;  %v507_v4 = vld [vmem:[%s587_s20 + $0x8] sm:$0xf0]  ;;  %v477_v6 = vld [vmem:[%s587_s20 + $0x30] sm:$0xf]  ;;  %v511_v7 = vld [vmem:[%s587_s20 + $0x38] sm:$0xf0] }
  0x11   : > { %v462_v5 = vor.u32 %v507_v4, %v461_v2  ;;  %v508_v8 = vld [vmem:[%s587_s20 + $0x1c] sm:$0xf]  ;;  %v471_v9 = vld [vmem:[%s587_s20 + $0x24] sm:$0xf0]  ;;  %v478_v10 = vor.u32 %v511_v7, %v477_v6  ;;  %v506_v11 = vld [vmem:[%s587_s20 + $0x4] sm:$0xf] }
  0x12   : > { %258 = vrot.lane.b32.xlu0 %v592_v3, %s543_s21  ;;  %v463_v12 = vld [vmem:[%s587_s20 + $0xc] sm:$0xf0]  ;;  %v474_v13 = vor.u32 %v508_v8, %v471_v9  ;;  %v510_v14 = vld [vmem:[%s587_s20 + $0x34] sm:$0xf]  ;;  %v479_v15 = vld [vmem:[%s587_s20 + $0x3c] sm:$0xf0] }
  0x13   : > { %252 = vrot.lane.b32.xlu1 %v462_v5, %s543_s21  ;;  %247 = vrot.lane.b32.xlu2 %v478_v10, %s544_s22  ;;  %v466_v16 = vor.u32 %v506_v11, %v463_v12  ;;  %v482_v17 = vor.u32 %v510_v14, %v479_v15  ;;  %v493_v18 = vld [vmem:[%s587_s20 + $0x4] sm:$0xf]  ;;  %v514_v19 = vld [vmem:[%s587_s20 + $0xc] sm:$0xf0] }
  0x14   : > { %v494_v20 = vor.u32 %v514_v19, %v493_v18  ;;  %v512_v28 = vld [vmem:[%s587_s20 + $0x4c] sm:$0xf]  ;;  %v487_v29 = vld [vmem:[%s587_s20 + $0x54] sm:$0xf0]  ;;  %v485_v32 = vld [vmem:[%s587_s20 + $0x48] sm:$0xf] }
  0x15   : > { %v490_v30 = vor.u32 %v512_v28, %v487_v29  ;;  %v513_v33 = vld [vmem:[%s587_s20 + $0x50] sm:$0xf0]  ;;  %385 = vst [vmem:[%s634_s28] sm:$0xf] %v547_v50  ;;  %v515_v0 = vld [vmem:[%s679_s1 + $0x4] sm:$0xf] }
  0x16   : > { %v486_v34 = vor.u32 %v513_v33, %v485_v32  ;;  %386 = vst [vmem:[%s634_s28 + $0xc] sm:$0xf] %v547_v50  ;;  %v499_v1 = vld [vmem:[%s679_s1 + $0x8] sm:$0xf0]  ;;  %v516_v4 = vld [vmem:[%s679_s1 + $0x4] sm:$0xf0] }
  0x17   : > { %v502_v6 = vor.u32 %v515_v0, %v499_v1  ;;  %v534_v15 = vld [vmem:[%s681_s3] ss:$0 sm:$0xff] }
  0x1a   : > { %260 = vrot.lane.b32.xlu0 %v474_v13, %s543_s21 }
  0x1b   : > { %254 = vrot.lane.b32.xlu1 %v466_v16, %s543_s21  ;;  %249 = vrot.lane.b32.xlu2 %v482_v17, %s544_s22 }
  0x22   : > { %225 = vrot.lane.b32.xlu0 %v462_v5, %s544_s22 }
  0x23   : > { %227 = vrot.lane.b32.xlu1 %v466_v16, %s544_s22  ;;  %268 = vrot.lane.b32.xlu2 %v494_v20, %s545_s23 }
  0x6d   : > { %v248_v21 = vpop.permute.xlu2 %247 }
  0x75   : > { %v250_v22 = vpop.permute.xlu2 %249 }
  0x76   : > { %315 = vrot.lane.b32.xlu2 %v250_v22, %s546_s24  ;;  %v251_v35 = vsel %vm229_vm1, %v248_v21, %v250_v22 }
  0x7d   : > { %v269_v39 = vpop.permute.xlu2 %268 }
  0x84   : > { %v259_v23 = vpop.permute.xlu0 %258 }
  0x85   : > { %v253_v24 = vpop.permute.xlu1 %252 }
  0x8c   : > { %v261_v25 = vpop.permute.xlu0 %260 }
  0x8d   : > { %v255_v26 = vpop.permute.xlu1 %254  ;;  %323 = vrot.lane.b32.xlu1 %v261_v25, %s546_s24  ;;  %v262_v31 = vsel %vm256_vm0, %v259_v23, %v261_v25 }
  0x8e   : > { %319 = vrot.lane.b32.xlu0 %v255_v26, %s546_s24  ;;  %v257_v27 = vsel %vm256_vm0, %v253_v24, %v255_v26 }
  0x8f   : > { %317 = vrot.lane.b32.xlu2 %v257_v27, %s546_s24 }
  0x94   : > { %v226_v37 = vpop.permute.xlu0 %225 }
  0x95   : > { %311 = vrot.lane.b32.xlu1 %v490_v30, %s546_s24  ;;  %v228_v36 = vpop.permute.xlu1 %227 }
  0x96   : > { %321 = vrot.lane.b32.xlu0 %v262_v31, %s546_s24  ;;  %v230_v38 = vsel %vm229_vm1, %v226_v37, %v228_v36 }
  0x97   : > { %305 = vrot.lane.b32.xlu2 %v478_v10, %s546_s24 }
  0x9d   : > { %313 = vrot.lane.b32.xlu1 %v251_v35, %s546_s24 }
  0x9e   : > { %309 = vrot.lane.b32.xlu0 %v486_v34, %s546_s24 }
  0x9f   : > { %303 = vrot.lane.b32.xlu2 %v228_v36, %s546_s24 }
  0xa5   : > { %301 = vrot.lane.b32.xlu1 %v230_v38, %s546_s24 }
  0xa6   : > { %307 = vrot.lane.b32.xlu0 %v482_v17, %s546_s24 }
  0xa7   : > { %293 = vrot.lane.b32.xlu2 %v462_v5, %s546_s24 }
  0xad   : > { %299 = vrot.lane.b32.xlu1 %v474_v13, %s546_s24 }
  0xae   : > { %297 = vrot.lane.b32.xlu0 %v592_v3, %s546_s24  ;;  %v497_v3 = vld [vmem:[%s679_s1] sm:$0xf] }
  0xaf   : > { %276 = vperm.xlu2 %532, %v272_v49   ;;  %v498_v9 = vor.u32 %v516_v4, %v497_v3 }
  0xb5   : > { %325 = vrot.lane.b32.xlu1 %v269_v39, %s546_s24 }
  0xb6   : > { %295 = vrot.lane.b32.xlu0 %v466_v16, %s546_s24 }
  0xbe   : > { %281 = vperm.xlu0 %533, %v273_v48  }
  0xd0   : > { %v316_v41 = vpop.permute.xlu2 %315 }
  0xe9   : > { %v318_v46 = vpop.permute.xlu2 %317 }
  0xf1   : > { %v306_v54 = vpop.permute.xlu2 %305 }
  0xf9   : > { %v304_v59 = vpop.permute.xlu2 %303 }
  0xff   : > { %v324_v40 = vpop.permute.xlu1 %323 }
 0x100   : > { %v320_v42 = vpop.permute.xlu0 %319 }
 0x101   : > { %v334_v47 = vsel %vm327_vm2, %v318_v46, %v320_v42  ;;  %v294_v2 = vpop.permute.xlu2 %293 }
 0x107   : > { %v312_v43 = vpop.permute.xlu1 %311 }
 0x108   : > { %v322_v44 = vpop.permute.xlu0 %321 }
 0x109   : > { %v335_v45 = vsel %vm327_vm2, %v322_v44, %v324_v40  ;;  %v277_v10 = vpop.permute.xlu2 %276 }
 0x10a   : > { %349 = vmatpush.bf16.msra.mxu0 %v335_v45 }
 0x10e   : > { %350 = vmatpush.bf16.msra.mxu0 %v334_v47 }
 0x10f   : > { %v314_v51 = vpop.permute.xlu1 %313 }
 0x110   : > { %v310_v52 = vpop.permute.xlu0 %309  ;;  %v333_v53 = vsel %vm327_vm2, %v314_v51, %v316_v41 }
 0x111   : > { %v332_v55 = vsel %vm327_vm2, %v310_v52, %v312_v43 }
 0x112   : > { %351 = vmatpush.bf16.msra.mxu0 %v333_v53 }
 0x116   : > { %352 = vmatpush.bf16.msra.mxu0 %v332_v55 }
 0x117   : > { %v302_v56 = vpop.permute.xlu1 %301 }
 0x118   : > { %v308_v57 = vpop.permute.xlu0 %307  ;;  %v330_v60 = vsel %vm327_vm2, %v302_v56, %v304_v59 }
 0x119   : > { %v331_v58 = vsel %vm327_vm2, %v306_v54, %v308_v57 }
 0x11a   : > { %353 = vmatpush.bf16.msra.mxu0 %v331_v58 }
 0x11e   : > { %354 = vmatpush.bf16.msra.mxu0 %v330_v60 }
 0x11f   : > { %v300_v61 = vpop.permute.xlu1 %299 }
 0x120   : > { %v298_v62 = vpop.permute.xlu0 %297 }
 0x121   : > { %v329_v63 = vsel %vm327_vm2, %v298_v62, %v300_v61 }
 0x122   : > { %355 = vmatpush.bf16.msra.mxu0 %v329_v63 }
 0x127   : > { %v326_v5 = vpop.permute.xlu1 %325 }
 0x128   : > { %v296_v7 = vpop.permute.xlu0 %295  ;;  %370 = vmatpush.bf16.msra.mxu1 %v326_v5 }
 0x129   : > { %v328_v8 = vsel %vm327_vm2, %v294_v2, %v296_v7 }
 0x12a   : > { %356 = vmatpush.bf16.msra.mxu0 %v328_v8 }
 0x12b   : > { %503 = vmatmul.msk.bf16.vlgmr.msra.gmra.mxu1 %vm345_vm3, %v502_v6 }
 0x12d   : > { %357 = vmatmul.bf16.vlgmr.msra.gmra.mxu0 %v498_v9 }
 0x130   : > { %v282_v17 = vpop.permute.xlu0 %281 }
 0x1a8   : > { %v372_v11 = vpop.f32.mrf.mxu1 }
 0x1aa   : > { %v358_v12 = vpop.f32.mrf.mxu0 }
 0x1ab   : > { %v359_v13 = vadd.f32 %v358_v12, %v277_v10 }
 0x1ad   : > { %v373_v14 = vadd.f32 %v372_v11, %v359_v13 }
 0x1af   : > { %v378_v16 = vmax.f32 %v373_v14, 0.0 }
 0x1b0   : > { %v374_v22 = vpop.f32.mrf.mxu1 }
 0x1b1   : > { %v383_v18 = vmul.f32 %v534_v15, %v378_v16 }
 0x1b2   : > { %v360_v19 = vpop.f32.mrf.mxu0 }
 0x1b3   : > { %v387_v20 = vpack.c.bf16 %v383_v18, %v383_v18  ;;  %v361_v21 = vadd.f32 %v360_v19, %v282_v17 }
 0x1b5   : > { %390 = vst.msk [vmem:[%s634_s28 + $0x4] sm:$0xf] %vm389_vm6, %v387_v20  ;;  %v375_v23 = vadd.f32 %v374_v22, %v361_v21 }
 0x1b6   : > { %395 = vst.msk [vmem:[%s634_s28 + $0x4] sm:$0xff] %vm394_vm7, %v547_v50 }
 0x1b7   : > { %v379_v24 = vmax.f32 %v375_v23, 0.0 }
 0x1b9   : > { %v384_v25 = vmul.f32 %v534_v15, %v379_v24 }
 0x1bb   : > { %v388_v26 = vpack.c.bf16 %v384_v25, %v384_v25 }
 0x1bd   : > { %391 = vst.msk [vmem:[%s634_s28 + $0x10] sm:$0xf] %vm389_vm6, %v388_v26 }
 0x1be   : > { %396 = vst.msk [vmem:[%s634_s28 + $0x10] sm:$0xff] %vm394_vm7, %v547_v50 }
 0x1bf PF: > { %s14_s15 = sadd.s32 1, %s541_s15  }
 0x1c0   : > { %p11_p4 = scmp.ge.s32.totalorder %s14_s15, 4  }
 0x1c2   :  { %13 = sbr.rel (!%p11_p4) target bundleno = 1 (0x1), region = 66 }

// kernel: semantic_fpn_forward.29
= control target key start
LH: loop header
LB: loop body
LE: loop exit
PB: predicated region body
PF: predicated region fallthrough
CT: control target
= control target key end

     0   :  { %s383_s15 = smov 0   ;;  %s412_s0 = inlined_call_operand.vmem [shape: bf16[2,16,272], index: 0, kind: input, shape index: {}]   ;;  %s413_s1 = inlined_call_operand.vmem [shape: bf16[16,16], index: 1, kind: input, shape index: {}]   ;;  %s414_s2 = inlined_call_operand.vmem [shape: f32[16,1], index: 2, kind: input, shape index: {}]   ;;  %s415_s3 = inlined_call_operand.vmem [shape: f32[1,16], index: 3, kind: input, shape index: {}]   ;;  %s416_s4 = inlined_call_operand.vmem [shape: bf16[2,16,272], index: 4, kind: output, shape index: {}]  }
   0x1 LB: > { %s317_s16 = sadd.s32 4294967295, %s355_s15   ;;  %p321_p0 = scmp.ge.s32.totalorder %s355_s15, 1  ;;  %s355_s15 = sphi %s383_s15, %s14_s15  }
   0x2   : > { %p162_p1 = scmp.lt.s32.totalorder %s355_s15, 3 }
   0x4   : > { %p163_p2 = pnand %p321_p0, %p162_p1 }
   0x5   : > { %p188_p3 = scmp.lt.s32.totalorder (!%p163_p2), %s317_s16, 1 }
   0x6   : > { %166 = sbr.rel (%p163_p2) target bundleno = 163 (0xa3), region = 36 }
   0xb   : > { %v203_v0 = vld [vmem:[%s414_s2] sm:$0xff]  ;;  %v357_v1 = vmov 0   ;;  %s418_s16 = smov (!%p188_p3, %s317_s16), 1  ;;  %v204_v4 = vld [vmem:[%s414_s2 + $0x8] sm:$0xff]  ;;  %vm226_vm0 = vcmask 130048   ;;  %vm257_vm1 = vcmask 1043584  }
   0xc   : > { %347 = vset.pattern.permute.xlu0 %v357_v1  ;;  %s337_s19 = smul.u32 24, %s418_s16  ;;  %v336_v6 = vld [vmem:[%s413_s1] sm:$0xff]  ;;  %vm258_vm2 = vcmask 130052   ;;  %vm254_vm3 = vcmask 125952  }
   0xd   : > { %207 = vperm.xlu0 %347, %v203_v0   ;;  %v348_v8 = vld [vmem:[%s415_s3] ss:$0 sm:$0xff]  ;;  %vm259_vm4 = vmor %vm258_vm2, %vm257_vm1 }
   0xe   : > { %s192_s22 = scalar_lea.vmem %s412_s0, %s337_s19  ;;  %s197_s25 = scalar_lea.vmem %s416_s4, %s337_s19 }
   0xf   : > { %v330_v2 = vld [vmem:[%s192_s22 + $0x4] sm:$0xf]  ;;  %v335_v3 = vld [vmem:[%s192_s22 + $0xc] sm:$0xf0]  ;;  %250 = vst [vmem:[%s197_s25] sm:$0xf] %v357_v1 }
  0x10   : > { %v331_v5 = vor.u32 %v335_v3, %v330_v2  ;;  %251 = vst [vmem:[%s197_s25 + $0xc] sm:$0xf] %v357_v1 }
  0x12   : > { %237 = vmatpush.bf16.msra.mxu0 %v331_v5 }
  0x15   : > { %212 = vperm.xlu0 %347, %v204_v4   ;;  %332 = vmatmul.msk.bf16.vlgmr.msra.gmra.mxu0 %vm226_vm0, %v336_v6 }
  0x7f   : > { %v208_v7 = vpop.permute.xlu0 %207 }
  0x87   : > { %v213_v13 = vpop.permute.xlu0 %212 }
  0x92   : > { %v239_v9 = vpop.f32.mrf.mxu0 }
  0x93   : > { %v240_v10 = vadd.f32 %v239_v9, %v208_v7 }
  0x95   : > { %v248_v11 = vmul.f32 %v348_v8, %v240_v10 }
  0x97   : > { %v252_v12 = vpack.c.bf16 %v248_v11, %v248_v11 }
  0x99   : > { %255 = vst.msk [vmem:[%s197_s25 + $0x4] sm:$0xf] %vm254_vm3, %v252_v12 }
  0x9a   : > { %260 = vst.msk [vmem:[%s197_s25 + $0x4] sm:$0xff] %vm259_vm4, %v357_v1  ;;  %v241_v14 = vpop.f32.mrf.mxu0 }
  0x9b   : > { %v242_v15 = vadd.f32 %v241_v14, %v213_v13 }
  0x9d   : > { %v249_v16 = vmul.f32 %v348_v8, %v242_v15 }
  0x9f   : > { %v253_v17 = vpack.c.bf16 %v249_v16, %v249_v16 }
  0xa1   : > { %256 = vst.msk [vmem:[%s197_s25 + $0x10] sm:$0xf] %vm254_vm3, %v253_v17 }
  0xa2   : > { %261 = vst.msk [vmem:[%s197_s25 + $0x10] sm:$0xff] %vm259_vm4, %v357_v1 }
  0xa3 PF: > { %s14_s15 = sadd.s32 1, %s355_s15  }
  0xa4   : > { %p11_p4 = scmp.ge.s32.totalorder %s14_s15, 4  }
  0xa6   :  { %13 = sbr.rel (!%p11_p4) target bundleno = 1 (0x1), region = 66 }

// kernel: semantic_fpn_forward.30
= control target key start
LH: loop header
LB: loop body
LE: loop exit
PB: predicated region body
PF: predicated region fallthrough
CT: control target
= control target key end

     0   :  { %s512_s15 = smov 0   ;;  %s565_s0 = inlined_call_operand.vmem [shape: bf16[2,16,272], index: 0, kind: input, shape index: {}]   ;;  %s566_s1 = inlined_call_operand.vmem [shape: bf16[16,144], index: 1, kind: input, shape index: {}]   ;;  %s567_s2 = inlined_call_operand.vmem [shape: f32[16,1], index: 2, kind: input, shape index: {}]   ;;  %s568_s3 = inlined_call_operand.vmem [shape: f32[1,16], index: 3, kind: input, shape index: {}]   ;;  %s569_s4 = inlined_call_operand.vmem [shape: bf16[2,16,272], index: 4, kind: output, shape index: {}]  }
   0x1 LB: > { %s412_s16 = sadd.s32 4294967295, %s475_s15   ;;  %p416_p0 = scmp.ge.s32.totalorder %s475_s15, 1  ;;  %s475_s15 = sphi %s512_s15, %s14_s15  }
   0x2   : > { %p162_p1 = scmp.lt.s32.totalorder %s475_s15, 3 }
   0x4   : > { %p163_p2 = pnand %p416_p0, %p162_p1 }
   0x5   : > { %p188_p3 = scmp.lt.s32.totalorder (!%p163_p2), %s412_s16, 1  ;;  %s477_s21 = smov (!%p163_p2), 122  }
   0x6   : > { %166 = sbr.rel (%p163_p2) target bundleno = 429 (0x1ad), region = 36  ;;  %s478_s22 = smov (!%p163_p2), 119  }
   0x7   : > { %s479_s23 = smov (!%p163_p2), 124   ;;  %s480_s24 = smov (!%p163_p2), 123  }
   0x8   : > { %s481_s25 = smov (!%p163_p2), 120   ;;  %s482_s26 = smov (!%p163_p2), 126  }
   0x9   : > { %s483_s27 = smov (!%p163_p2), 127   ;;  %s484_s28 = smov (!%p163_p2), 118  }
   0xa   : > { %s485_s29 = smov (!%p163_p2), 5  }
   0xb   : > { %s571_s16 = smov (!%p188_p3, %s412_s16), 1  ;;  %vm227_vm0 = vcmask 1014784   ;;  %vm221_vm1 = vcmask 1031168   ;;  %vm215_vm2 = vcmask 1039360   ;;  %v445_v28 = vld [vmem:[%s566_s1 + $0x4] sm:$0xf] }
   0xc   : > { %s447_s17 = smul.u32 24, %s571_s16  ;;  %v435_v29 = vld [vmem:[%s566_s1 + $0x8] sm:$0xf0]  ;;  %v246_v30 = vld [vmem:[%s567_s2] sm:$0xff]  ;;  %v486_v32 = vmov 0   ;;  %vm307_vm3 = vcmask 130048  }
   0xd   : > { %v247_v31 = vld [vmem:[%s567_s2 + $0x8] sm:$0xff]  ;;  %466 = vset.pattern.permute.xlu0 %v486_v32  ;;  %467 = vset.pattern.permute.xlu1 %v486_v32  ;;  %v438_v35 = vor.u32 %v445_v28, %v435_v29  ;;  %vm293_vm4 = vcmask 39936   ;;  %v433_v43 = vld [vmem:[%s566_s1] sm:$0xf]  ;;  %vm352_vm5 = vcmask 1043584   ;;  %vm353_vm6 = vcmask 130052  }
   0xe   : > { %s192_s20 = scalar_lea.vmem %s565_s0, %s447_s17  ;;  %s539_s10 = scalar_lea.vmem %s569_s4, %s447_s17  ;;  %v446_v44 = vld [vmem:[%s566_s1 + $0x4] sm:$0xf0]  ;;  %v468_v53 = vld [vmem:[%s568_s3] ss:$0 sm:$0xff]  ;;  %vm349_vm7 = vcmask 125952   ;;  %vm354_vm8 = vmor %vm353_vm6, %vm352_vm5 }
   0xf   : > { %v429_v0 = vld [vmem:[%s192_s20 + $0x4] sm:$0xf]  ;;  %v444_v1 = vld [vmem:[%s192_s20 + $0xc] sm:$0xf0]  ;;  %v421_v2 = vld [vmem:[%s192_s20] sm:$0xf]  ;;  %v434_v48 = vor.u32 %v446_v44, %v433_v43 }
  0x10   : > { %v430_v3 = vor.u32 %v444_v1, %v429_v0  ;;  %v443_v4 = vld [vmem:[%s192_s20 + $0x8] sm:$0xf0]  ;;  %v442_v6 = vld [vmem:[%s192_s20 + $0x4] sm:$0xf]  ;;  %v423_v7 = vld [vmem:[%s192_s20 + $0xc] sm:$0xf0] }
  0x11   : > { %v422_v5 = vor.u32 %v443_v4, %v421_v2  ;;  %v426_v8 = vor.u32 %v442_v6, %v423_v7  ;;  %345 = vst [vmem:[%s539_s10] sm:$0xf] %v486_v32 }
  0x12   : > { %236 = vrot.lane.b32.xlu1 %v430_v3, %s477_s21  ;;  %240 = vrot.lane.b32.xlu0 %v430_v3, %s478_s22  ;;  %346 = vst [vmem:[%s539_s10 + $0xc] sm:$0xf] %v486_v32 }
  0x13   : > { %223 = vrot.lane.b32.xlu2 %v422_v5, %s479_s23 }
  0x1a   : > { %234 = vrot.lane.b32.xlu1 %v430_v3, %s480_s24  ;;  %238 = vrot.lane.b32.xlu0 %v430_v3, %s481_s25 }
  0x1b   : > { %225 = vrot.lane.b32.xlu2 %v426_v8, %s479_s23 }
  0x22   : > { %217 = vrot.lane.b32.xlu0 %v422_v5, %s482_s26  ;;  %219 = vrot.lane.b32.xlu1 %v426_v8, %s482_s26 }
  0x23   : > { %211 = vrot.lane.b32.xlu2 %v422_v5, %s483_s27 }
  0x2a   : > { %213 = vrot.lane.b32.xlu0 %v426_v8, %s483_s27  ;;  %242 = vrot.lane.b32.xlu1 %v430_v3, %s484_s28 }
  0x6d   : > { %v224_v9 = vpop.permute.xlu2 %223 }
  0x75   : > { %v226_v14 = vpop.permute.xlu2 %225 }
  0x76   : > { %v228_v17 = vsel %vm227_vm0, %v224_v9, %v226_v14 }
  0x7d   : > { %v212_v19 = vpop.permute.xlu2 %211 }
  0x84   : > { %v237_v10 = vpop.permute.xlu1 %236  ;;  %v241_v11 = vpop.permute.xlu0 %240 }
  0x85   : > { %289 = vrot.lane.b32.xlu2 %v241_v11, %s485_s29  ;;  %285 = vrot.lane.b32.xlu1 %v237_v10, %s485_s29 }
  0x8c   : > { %v235_v12 = vpop.permute.xlu1 %234  ;;  %v239_v13 = vpop.permute.xlu0 %238 }
  0x8d   : > { %287 = vrot.lane.b32.xlu0 %v239_v13, %s485_s29  ;;  %283 = vrot.lane.b32.xlu2 %v235_v12, %s485_s29 }
  0x8e   : > { %281 = vrot.lane.b32.xlu1 %v226_v14, %s485_s29 }
  0x94   : > { %v218_v15 = vpop.permute.xlu0 %217  ;;  %v220_v16 = vpop.permute.xlu1 %219 }
  0x95   : > { %279 = vrot.lane.b32.xlu0 %v228_v17, %s485_s29  ;;  %v222_v18 = vsel %vm221_vm1, %v218_v15, %v220_v16 }
  0x96   : > { %275 = vrot.lane.b32.xlu2 %v222_v18, %s485_s29 }
  0x9c   : > { %v214_v20 = vpop.permute.xlu0 %213  ;;  %v243_v22 = vpop.permute.xlu1 %242 }
  0x9d   : > { %277 = vrot.lane.b32.xlu0 %v220_v16, %s485_s29  ;;  %v216_v21 = vsel %vm215_vm2, %v212_v19, %v214_v20 }
  0x9e   : > { %273 = vrot.lane.b32.xlu2 %v214_v20, %s485_s29  ;;  %271 = vrot.lane.b32.xlu1 %v216_v21, %s485_s29 }
  0xa5   : > { %267 = vrot.lane.b32.xlu0 %v422_v5, %s485_s29 }
  0xa6   : > { %269 = vrot.lane.b32.xlu1 %v426_v8, %s485_s29  ;;  %291 = vrot.lane.b32.xlu2 %v243_v22, %s485_s29 }
  0xad   : > { %250 = vperm.xlu0 %466, %v246_v30  }
  0xae   : > { %255 = vperm.xlu1 %467, %v247_v31  }
  0xdf   : > { %v290_v23 = vpop.permute.xlu2 %289 }
  0xe0   : > { %311 = vmatpush.bf16.msra.mxu0 %v290_v23 }
  0xe7   : > { %v284_v24 = vpop.permute.xlu2 %283 }
  0xf0   : > { %v276_v25 = vpop.permute.xlu2 %275 }
  0xf7   : > { %v286_v27 = vpop.permute.xlu1 %285 }
  0xf8   : > { %v274_v26 = vpop.permute.xlu2 %273 }
  0xff   : > { %v288_v33 = vpop.permute.xlu0 %287 }
 0x100   : > { %312 = vmatpush.bf16.msra.mxu0 %v288_v33  ;;  %v292_v34 = vpop.permute.xlu2 %291  ;;  %v282_v36 = vpop.permute.xlu1 %281 }
 0x101   : > { %332 = vmatpush.bf16.msra.mxu1 %v292_v34 }
 0x104   : > { %313 = vmatpush.bf16.msra.mxu0 %v286_v27  ;;  %439 = vmatmul.msk.bf16.vlgmr.msra.gmra.mxu1 %vm307_vm3, %v438_v35 }
 0x107   : > { %v280_v37 = vpop.permute.xlu0 %279 }
 0x108   : > { %314 = vmatpush.bf16.msra.mxu0 %v284_v24  ;;  %v297_v38 = vsel %vm293_vm4, %v280_v37, %v282_v36 }
 0x10c   : > { %315 = vmatpush.bf16.msra.mxu0 %v297_v38 }
 0x10f   : > { %v278_v39 = vpop.permute.xlu0 %277 }
 0x110   : > { %v272_v40 = vpop.permute.xlu1 %271  ;;  %v296_v41 = vsel %vm293_vm4, %v276_v25, %v278_v39 }
 0x111   : > { %316 = vmatpush.bf16.msra.mxu0 %v296_v41  ;;  %v295_v42 = vsel %vm293_vm4, %v272_v40, %v274_v26 }
 0x115   : > { %317 = vmatpush.bf16.msra.mxu0 %v295_v42 }
 0x117   : > { %v268_v45 = vpop.permute.xlu0 %267 }
 0x118   : > { %v270_v46 = vpop.permute.xlu1 %269 }
 0x119   : > { %v294_v47 = vsel %vm293_vm4, %v268_v45, %v270_v46 }
 0x11a   : > { %318 = vmatpush.bf16.msra.mxu0 %v294_v47 }
 0x11d   : > { %319 = vmatmul.bf16.vlgmr.msra.gmra.mxu0 %v434_v48 }
 0x11f   : > { %v251_v49 = vpop.permute.xlu0 %250 }
 0x120   : > { %v256_v56 = vpop.permute.xlu1 %255 }
 0x181   : > { %v334_v50 = vpop.f32.mrf.mxu1 }
 0x189   : > { %v336_v60 = vpop.f32.mrf.mxu1 }
 0x19a   : > { %v320_v51 = vpop.f32.mrf.mxu0 }
 0x19b   : > { %v321_v52 = vadd.f32 %v320_v51, %v251_v49 }
 0x19d   : > { %v335_v54 = vadd.f32 %v334_v50, %v321_v52 }
 0x19f   : > { %v343_v55 = vmul.f32 %v468_v53, %v335_v54 }
 0x1a1   : > { %v347_v57 = vpack.c.bf16 %v343_v55, %v343_v55 }
 0x1a2   : > { %v322_v58 = vpop.f32.mrf.mxu0 }
 0x1a3   : > { %350 = vst.msk [vmem:[%s539_s10 + $0x4] sm:$0xf] %vm349_vm7, %v347_v57  ;;  %v323_v59 = vadd.f32 %v322_v58, %v256_v56 }
 0x1a4   : > { %355 = vst.msk [vmem:[%s539_s10 + $0x4] sm:$0xff] %vm354_vm8, %v486_v32 }
 0x1a5   : > { %v337_v61 = vadd.f32 %v336_v60, %v323_v59 }
 0x1a7   : > { %v344_v62 = vmul.f32 %v468_v53, %v337_v61 }
 0x1a9   : > { %v348_v63 = vpack.c.bf16 %v344_v62, %v344_v62 }
 0x1ab   : > { %351 = vst.msk [vmem:[%s539_s10 + $0x10] sm:$0xf] %vm349_vm7, %v348_v63 }
 0x1ac   : > { %356 = vst.msk [vmem:[%s539_s10 + $0x10] sm:$0xff] %vm354_vm8, %v486_v32 }
 0x1ad PF: > { %s14_s15 = sadd.s32 1, %s475_s15  }
 0x1ae   : > { %p11_p4 = scmp.ge.s32.totalorder %s14_s15, 4  }
 0x1b0   :  { %13 = sbr.rel (!%p11_p4) target bundleno = 1 (0x1), region = 66 }

// kernel: semantic_fpn_forward.25
= control target key start
LH: loop header
LB: loop body
LE: loop exit
PB: predicated region body
PF: predicated region fallthrough
CT: control target
= control target key end

     0   :  { %s573_s15 = smov 0   ;;  %s678_s0 = inlined_call_operand.vmem [shape: bf16[2,64,272], index: 0, kind: input, shape index: {}]   ;;  %s679_s1 = inlined_call_operand.vmem [shape: bf16[16,144], index: 1, kind: input, shape index: {}]   ;;  %s680_s2 = inlined_call_operand.vmem [shape: f32[16,1], index: 2, kind: input, shape index: {}]   ;;  %s681_s3 = inlined_call_operand.vmem [shape: f32[1,16], index: 3, kind: input, shape index: {}]   ;;  %s682_s4 = inlined_call_operand.vmem [shape: bf16[2,16,272], index: 4, kind: output, shape index: {}]  }
   0x1 LB: > { %s452_s16 = sadd.s32 4294967295, %s541_s15   ;;  %p456_p0 = scmp.ge.s32.totalorder %s541_s15, 1  ;;  %s541_s15 = sphi %s573_s15, %s14_s15  }
   0x2   : > { %p162_p1 = scmp.lt.s32.totalorder %s541_s15, 3 }
   0x4   : > { %p163_p2 = pnand %p456_p0, %p162_p1 }
   0x5   : > { %p188_p3 = scmp.lt.s32.totalorder (!%p163_p2), %s452_s16, 1  ;;  %s543_s21 = smov (!%p163_p2), 124  }
   0x6   : > { %166 = sbr.rel (%p163_p2) target bundleno = 447 (0x1bf), region = 36  ;;  %s544_s22 = smov (!%p163_p2), 127  }
   0x7   : > { %s545_s23 = smov (!%p163_p2), 123   ;;  %s546_s24 = smov (!%p163_p2), 5  }
   0xb   : > { %s684_s16 = smov (!%p188_p3, %s452_s16), 1  ;;  %vm256_vm0 = vcmask 1014784   ;;  %vm229_vm1 = vcmask 1039360   ;;  %vm327_vm2 = vcmask 39936   ;;  %v273_v48 = vld [vmem:[%s680_s2 + $0x8] sm:$0xff]  ;;  %v272_v49 = vld [vmem:[%s680_s2] sm:$0xff] }
   0xc   : > { %s517_s17 = smul.u32 96, %s684_s16  ;;  %v547_v50 = vmov 0   ;;  %vm345_vm3 = vcmask 130048   ;;  %vm392_vm4 = vcmask 1043584   ;;  %vm393_vm5 = vcmask 130052  }
   0xd   : > { %s518_s25 = smul.u32 24, %s684_s16  ;;  %533 = vset.pattern.permute.xlu0 %v547_v50  ;;  %532 = vset.pattern.permute.xlu2 %v547_v50  ;;  %vm389_vm6 = vcmask 125952   ;;  %vm394_vm7 = vmor %vm393_vm5, %vm392_vm4 }
   0xe   : > { %s587_s20 = scalar_lea.vmem %s678_s0, %s517_s17 }
   0xf   : > { %v469_v0 = vld [vmem:[%s587_s20 + $0x18] sm:$0xf]  ;;  %v509_v1 = vld [vmem:[%s587_s20 + $0x20] sm:$0xf0]  ;;  %v461_v2 = vld [vmem:[%s587_s20] sm:$0xf]  ;;  %s634_s28 = scalar_lea.vmem %s682_s4, %s518_s25 }
  0x10   : > { %v592_v3 = vor.u32 %v509_v1, %v469_v0  ;;  %v507_v4 = vld [vmem:[%s587_s20 + $0x8] sm:$0xf0]  ;;  %v477_v6 = vld [vmem:[%s587_s20 + $0x30] sm:$0xf]  ;;  %v511_v7 = vld [vmem:[%s587_s20 + $0x38] sm:$0xf0] }
  0x11   : > { %v462_v5 = vor.u32 %v507_v4, %v461_v2  ;;  %v508_v8 = vld [vmem:[%s587_s20 + $0x1c] sm:$0xf]  ;;  %v471_v9 = vld [vmem:[%s587_s20 + $0x24] sm:$0xf0]  ;;  %v478_v10 = vor.u32 %v511_v7, %v477_v6  ;;  %v506_v11 = vld [vmem:[%s587_s20 + $0x4] sm:$0xf] }
  0x12   : > { %258 = vrot.lane.b32.xlu0 %v592_v3, %s543_s21  ;;  %v463_v12 = vld [vmem:[%s587_s20 + $0xc] sm:$0xf0]  ;;  %v474_v13 = vor.u32 %v508_v8, %v471_v9  ;;  %v510_v14 = vld [vmem:[%s587_s20 + $0x34] sm:$0xf]  ;;  %v479_v15 = vld [vmem:[%s587_s20 + $0x3c] sm:$0xf0] }
  0x13   : > { %252 = vrot.lane.b32.xlu1 %v462_v5, %s543_s21  ;;  %247 = vrot.lane.b32.xlu2 %v478_v10, %s544_s22  ;;  %v466_v16 = vor.u32 %v506_v11, %v463_v12  ;;  %v482_v17 = vor.u32 %v510_v14, %v479_v15  ;;  %v493_v18 = vld [vmem:[%s587_s20 + $0x4] sm:$0xf]  ;;  %v514_v19 = vld [vmem:[%s587_s20 + $0xc] sm:$0xf0] }
  0x14   : > { %v494_v20 = vor.u32 %v514_v19, %v493_v18  ;;  %v512_v28 = vld [vmem:[%s587_s20 + $0x4c] sm:$0xf]  ;;  %v487_v29 = vld [vmem:[%s587_s20 + $0x54] sm:$0xf0]  ;;  %v485_v32 = vld [vmem:[%s587_s20 + $0x48] sm:$0xf] }
  0x15   : > { %v490_v30 = vor.u32 %v512_v28, %v487_v29  ;;  %v513_v33 = vld [vmem:[%s587_s20 + $0x50] sm:$0xf0]  ;;  %385 = vst [vmem:[%s634_s28] sm:$0xf] %v547_v50  ;;  %v515_v0 = vld [vmem:[%s679_s1 + $0x4] sm:$0xf] }
  0x16   : > { %v486_v34 = vor.u32 %v513_v33, %v485_v32  ;;  %386 = vst [vmem:[%s634_s28 + $0xc] sm:$0xf] %v547_v50  ;;  %v499_v1 = vld [vmem:[%s679_s1 + $0x8] sm:$0xf0]  ;;  %v516_v4 = vld [vmem:[%s679_s1 + $0x4] sm:$0xf0] }
  0x17   : > { %v502_v6 = vor.u32 %v515_v0, %v499_v1  ;;  %v534_v15 = vld [vmem:[%s681_s3] ss:$0 sm:$0xff] }
  0x1a   : > { %260 = vrot.lane.b32.xlu0 %v474_v13, %s543_s21 }
  0x1b   : > { %254 = vrot.lane.b32.xlu1 %v466_v16, %s543_s21  ;;  %249 = vrot.lane.b32.xlu2 %v482_v17, %s544_s22 }
  0x22   : > { %225 = vrot.lane.b32.xlu0 %v462_v5, %s544_s22 }
  0x23   : > { %227 = vrot.lane.b32.xlu1 %v466_v16, %s544_s22  ;;  %268 = vrot.lane.b32.xlu2 %v494_v20, %s545_s23 }
  0x6d   : > { %v248_v21 = vpop.permute.xlu2 %247 }
  0x75   : > { %v250_v22 = vpop.permute.xlu2 %249 }
  0x76   : > { %315 = vrot.lane.b32.xlu2 %v250_v22, %s546_s24  ;;  %v251_v35 = vsel %vm229_vm1, %v248_v21, %v250_v22 }
  0x7d   : > { %v269_v39 = vpop.permute.xlu2 %268 }
  0x84   : > { %v259_v23 = vpop.permute.xlu0 %258 }
  0x85   : > { %v253_v24 = vpop.permute.xlu1 %252 }
  0x8c   : > { %v261_v25 = vpop.permute.xlu0 %260 }
  0x8d   : > { %v255_v26 = vpop.permute.xlu1 %254  ;;  %323 = vrot.lane.b32.xlu1 %v261_v25, %s546_s24  ;;  %v262_v31 = vsel %vm256_vm0, %v259_v23, %v261_v25 }
  0x8e   : > { %319 = vrot.lane.b32.xlu0 %v255_v26, %s546_s24  ;;  %v257_v27 = vsel %vm256_vm0, %v253_v24, %v255_v26 }
  0x8f   : > { %317 = vrot.lane.b32.xlu2 %v257_v27, %s546_s24 }
  0x94   : > { %v226_v37 = vpop.permute.xlu0 %225 }
  0x95   : > { %311 = vrot.lane.b32.xlu1 %v490_v30, %s546_s24  ;;  %v228_v36 = vpop.permute.xlu1 %227 }
  0x96   : > { %321 = vrot.lane.b32.xlu0 %v262_v31, %s546_s24  ;;  %v230_v38 = vsel %vm229_vm1, %v226_v37, %v228_v36 }
  0x97   : > { %305 = vrot.lane.b32.xlu2 %v478_v10, %s546_s24 }
  0x9d   : > { %313 = vrot.lane.b32.xlu1 %v251_v35, %s546_s24 }
  0x9e   : > { %309 = vrot.lane.b32.xlu0 %v486_v34, %s546_s24 }
  0x9f   : > { %303 = vrot.lane.b32.xlu2 %v228_v36, %s546_s24 }
  0xa5   : > { %301 = vrot.lane.b32.xlu1 %v230_v38, %s546_s24 }
  0xa6   : > { %307 = vrot.lane.b32.xlu0 %v482_v17, %s546_s24 }
  0xa7   : > { %293 = vrot.lane.b32.xlu2 %v462_v5, %s546_s24 }
  0xad   : > { %299 = vrot.lane.b32.xlu1 %v474_v13, %s546_s24 }
  0xae   : > { %297 = vrot.lane.b32.xlu0 %v592_v3, %s546_s24  ;;  %v497_v3 = vld [vmem:[%s679_s1] sm:$0xf] }
  0xaf   : > { %276 = vperm.xlu2 %532, %v272_v49   ;;  %v498_v9 = vor.u32 %v516_v4, %v497_v3 }
  0xb5   : > { %325 = vrot.lane.b32.xlu1 %v269_v39, %s546_s24 }
  0xb6   : > { %295 = vrot.lane.b32.xlu0 %v466_v16, %s546_s24 }
  0xbe   : > { %281 = vperm.xlu0 %533, %v273_v48  }
  0xd0   : > { %v316_v41 = vpop.permute.xlu2 %315 }
  0xe9   : > { %v318_v46 = vpop.permute.xlu2 %317 }
  0xf1   : > { %v306_v54 = vpop.permute.xlu2 %305 }
  0xf9   : > { %v304_v59 = vpop.permute.xlu2 %303 }
  0xff   : > { %v324_v40 = vpop.permute.xlu1 %323 }
 0x100   : > { %v320_v42 = vpop.permute.xlu0 %319 }
 0x101   : > { %v334_v47 = vsel %vm327_vm2, %v318_v46, %v320_v42  ;;  %v294_v2 = vpop.permute.xlu2 %293 }
 0x107   : > { %v312_v43 = vpop.permute.xlu1 %311 }
 0x108   : > { %v322_v44 = vpop.permute.xlu0 %321 }
 0x109   : > { %v335_v45 = vsel %vm327_vm2, %v322_v44, %v324_v40  ;;  %v277_v10 = vpop.permute.xlu2 %276 }
 0x10a   : > { %349 = vmatpush.bf16.msra.mxu0 %v335_v45 }
 0x10e   : > { %350 = vmatpush.bf16.msra.mxu0 %v334_v47 }
 0x10f   : > { %v314_v51 = vpop.permute.xlu1 %313 }
 0x110   : > { %v310_v52 = vpop.permute.xlu0 %309  ;;  %v333_v53 = vsel %vm327_vm2, %v314_v51, %v316_v41 }
 0x111   : > { %v332_v55 = vsel %vm327_vm2, %v310_v52, %v312_v43 }
 0x112   : > { %351 = vmatpush.bf16.msra.mxu0 %v333_v53 }
 0x116   : > { %352 = vmatpush.bf16.msra.mxu0 %v332_v55 }
 0x117   : > { %v302_v56 = vpop.permute.xlu1 %301 }
 0x118   : > { %v308_v57 = vpop.permute.xlu0 %307  ;;  %v330_v60 = vsel %vm327_vm2, %v302_v56, %v304_v59 }
 0x119   : > { %v331_v58 = vsel %vm327_vm2, %v306_v54, %v308_v57 }
 0x11a   : > { %353 = vmatpush.bf16.msra.mxu0 %v331_v58 }
 0x11e   : > { %354 = vmatpush.bf16.msra.mxu0 %v330_v60 }
 0x11f   : > { %v300_v61 = vpop.permute.xlu1 %299 }
 0x120   : > { %v298_v62 = vpop.permute.xlu0 %297 }
 0x121   : > { %v329_v63 = vsel %vm327_vm2, %v298_v62, %v300_v61 }
 0x122   : > { %355 = vmatpush.bf16.msra.mxu0 %v329_v63 }
 0x127   : > { %v326_v5 = vpop.permute.xlu1 %325 }
 0x128   : > { %v296_v7 = vpop.permute.xlu0 %295  ;;  %370 = vmatpush.bf16.msra.mxu1 %v326_v5 }
 0x129   : > { %v328_v8 = vsel %vm327_vm2, %v294_v2, %v296_v7 }
 0x12a   : > { %356 = vmatpush.bf16.msra.mxu0 %v328_v8 }
 0x12b   : > { %503 = vmatmul.msk.bf16.vlgmr.msra.gmra.mxu1 %vm345_vm3, %v502_v6 }
 0x12d   : > { %357 = vmatmul.bf16.vlgmr.msra.gmra.mxu0 %v498_v9 }
 0x130   : > { %v282_v17 = vpop.permute.xlu0 %281 }
 0x1a8   : > { %v372_v11 = vpop.f32.mrf.mxu1 }
 0x1aa   : > { %v358_v12 = vpop.f32.mrf.mxu0 }
 0x1ab   : > { %v359_v13 = vadd.f32 %v358_v12, %v277_v10 }
 0x1ad   : > { %v373_v14 = vadd.f32 %v372_v11, %v359_v13 }
 0x1af   : > { %v378_v16 = vmax.f32 %v373_v14, 0.0 }
 0x1b0   : > { %v374_v22 = vpop.f32.mrf.mxu1 }
 0x1b1   : > { %v383_v18 = vmul.f32 %v534_v15, %v378_v16 }
 0x1b2   : > { %v360_v19 = vpop.f32.mrf.mxu0 }
 0x1b3   : > { %v387_v20 = vpack.c.bf16 %v383_v18, %v383_v18  ;;  %v361_v21 = vadd.f32 %v360_v19, %v282_v17 }
 0x1b5   : > { %390 = vst.msk [vmem:[%s634_s28 + $0x4] sm:$0xf] %vm389_vm6, %v387_v20  ;;  %v375_v23 = vadd.f32 %v374_v22, %v361_v21 }
 0x1b6   : > { %395 = vst.msk [vmem:[%s634_s28 + $0x4] sm:$0xff] %vm394_vm7, %v547_v50 }
 0x1b7   : > { %v379_v24 = vmax.f32 %v375_v23, 0.0 }
 0x1b9   : > { %v384_v25 = vmul.f32 %v534_v15, %v379_v24 }
 0x1bb   : > { %v388_v26 = vpack.c.bf16 %v384_v25, %v384_v25 }
 0x1bd   : > { %391 = vst.msk [vmem:[%s634_s28 + $0x10] sm:$0xf] %vm389_vm6, %v388_v26 }
 0x1be   : > { %396 = vst.msk [vmem:[%s634_s28 + $0x10] sm:$0xff] %vm394_vm7, %v547_v50 }
 0x1bf PF: > { %s14_s15 = sadd.s32 1, %s541_s15  }
 0x1c0   : > { %p11_p4 = scmp.ge.s32.totalorder %s14_s15, 4  }
 0x1c2   :  { %13 = sbr.rel (!%p11_p4) target bundleno = 1 (0x1), region = 66 }

// kernel: semantic_fpn_forward.38
= control target key start
LH: loop header
LB: loop body
LE: loop exit
PB: predicated region body
PF: predicated region fallthrough
CT: control target
= control target key end

     0   :  { %s852_s21 = smov 0   ;;  %s975_s0 = inlined_call_operand.vmem [shape: bf16[2,16,272], index: 0, kind: input, shape index: {}]   ;;  %s976_s1 = inlined_call_operand.vmem [shape: bf16[16,144], index: 1, kind: input, shape index: {}]   ;;  %s977_s2 = inlined_call_operand.vmem [shape: f32[16,1], index: 2, kind: input, shape index: {}]   ;;  %s978_s3 = inlined_call_operand.vmem [shape: f32[16,1], index: 3, kind: input, shape index: {}]   ;;  %s979_s4 = inlined_call_operand.vmem [shape: f32[16,1], index: 4, kind: input, shape index: {}]   ;;  %s980_s5 = inlined_call_operand.vmem [shape: f32[1,16], index: 5, kind: input, shape index: {}]   ;;  %s981_s6 = inlined_call_operand.vmem [shape: bf16[2,16,272], index: 6, kind: output, shape index: {}]  }
   0x1 LB: > { %s727_s22 = sadd.s32 4294967295, %s804_s21   ;;  %p731_p0 = scmp.ge.s32.totalorder %s804_s21, 1  ;;  %s804_s21 = sphi %s852_s21, %s16_s21  }
   0x2   : > { %p212_p1 = scmp.lt.s32.totalorder %s804_s21, 3 }
   0x4   : > { %p213_p2 = pnand %p731_p0, %p212_p1 }
   0x5   : > { %p242_p3 = scmp.lt.s32.totalorder (!%p213_p2), %s727_s22, 1  ;;  %s806_s27 = smov (!%p213_p2), 122  }
   0x6   : > { %216 = sbr.rel (%p213_p2) target bundleno = 725 (0x2d5), region = 44  ;;  %s807_s28 = smov (!%p213_p2), 119  }
   0x7   : > { %s808_s29 = smov (!%p213_p2), 124   ;;  %s809_s30 = smov (!%p213_p2), 123  }
   0x8   : > { %s810_s7 = smov (!%p213_p2), 120   ;;  %s811_s8 = smov (!%p213_p2), 126  }
   0x9   : > { %s812_s9 = smov (!%p213_p2), 127   ;;  %s813_s10 = smov (!%p213_p2), 118  }
   0xa   : > { %s814_s11 = smov (!%p213_p2), 5  }
   0xb   : > { %s983_s22 = smov (!%p242_p3, %s727_s22), 1  ;;  %vm281_vm0 = vcmask 1014784   ;;  %vm275_vm1 = vcmask 1031168   ;;  %vm269_vm2 = vcmask 1039360   ;;  %v764_v28 = vld [vmem:[%s976_s1 + $0x4] sm:$0xf] }
   0xc   : > { %s766_s23 = smul.u32 24, %s983_s22  ;;  %v750_v29 = vld [vmem:[%s976_s1 + $0x8] sm:$0xf0]  ;;  %v300_v30 = vld [vmem:[%s977_s2] sm:$0xff]  ;;  %v815_v32 = vmov 0   ;;  %vm361_vm3 = vcmask 130048  }
   0xd   : > { %v301_v31 = vld [vmem:[%s977_s2 + $0x8] sm:$0xff]  ;;  %786 = vset.pattern.permute.xlu0 %v815_v32  ;;  %787 = vset.pattern.permute.xlu1 %v815_v32  ;;  %v753_v35 = vor.u32 %v764_v28, %v750_v29  ;;  %vm347_vm4 = vcmask 39936   ;;  %v748_v43 = vld [vmem:[%s976_s1] sm:$0xf] }
   0xe   : > { %s246_s26 = scalar_lea.vmem %s975_s0, %s766_s23  ;;  %788 = vset.pattern.permute.xlu2 %v815_v32  ;;  %v765_v44 = vld [vmem:[%s976_s1 + $0x4] sm:$0xf0]  ;;  %v893_v53 = vld [vmem:[%s980_s5] ss:$0 sm:$0xff] }
   0xf   : > { %v744_v0 = vld [vmem:[%s246_s26 + $0x4] sm:$0xf]  ;;  %v763_v1 = vld [vmem:[%s246_s26 + $0xc] sm:$0xf0]  ;;  %v736_v2 = vld [vmem:[%s246_s26] sm:$0xf]  ;;  %v749_v48 = vor.u32 %v765_v44, %v748_v43 }
  0x10   : > { %v745_v3 = vor.u32 %v763_v1, %v744_v0  ;;  %v762_v4 = vld [vmem:[%s246_s26 + $0x8] sm:$0xf0]  ;;  %v761_v6 = vld [vmem:[%s246_s26 + $0x4] sm:$0xf]  ;;  %v738_v7 = vld [vmem:[%s246_s26 + $0xc] sm:$0xf0] }
  0x11   : > { %v737_v5 = vor.u32 %v762_v4, %v736_v2  ;;  %v741_v8 = vor.u32 %v761_v6, %v738_v7  ;;  %v642_v4 = vld [vmem:[%s979_s4] sm:$0xff] }
  0x12   : > { %290 = vrot.lane.b32.xlu1 %v745_v3, %s806_s27  ;;  %294 = vrot.lane.b32.xlu0 %v745_v3, %s807_s28 }
  0x13   : > { %277 = vrot.lane.b32.xlu2 %v737_v5, %s808_s29 }
  0x1a   : > { %288 = vrot.lane.b32.xlu1 %v745_v3, %s809_s30  ;;  %292 = vrot.lane.b32.xlu0 %v745_v3, %s810_s7 }
  0x1b   : > { %279 = vrot.lane.b32.xlu2 %v741_v8, %s808_s29 }
  0x22   : > { %271 = vrot.lane.b32.xlu0 %v737_v5, %s811_s8  ;;  %273 = vrot.lane.b32.xlu1 %v741_v8, %s811_s8 }
  0x23   : > { %265 = vrot.lane.b32.xlu2 %v737_v5, %s812_s9 }
  0x2a   : > { %267 = vrot.lane.b32.xlu0 %v741_v8, %s812_s9  ;;  %296 = vrot.lane.b32.xlu1 %v745_v3, %s813_s10  ;;  %s917_s9 = scalar_lea.vmem %s981_s6, %s766_s23 }
  0x2b   : > { %660 = vst [vmem:[%s917_s9] sm:$0xf] %v815_v32 }
  0x2c   : > { %661 = vst [vmem:[%s917_s9 + $0xc] sm:$0xf] %v815_v32 }
  0x6d   : > { %v278_v9 = vpop.permute.xlu2 %277 }
  0x75   : > { %v280_v14 = vpop.permute.xlu2 %279 }
  0x76   : > { %v282_v17 = vsel %vm281_vm0, %v278_v9, %v280_v14  ;;  %v816_v9 = vmov 0.0  }
  0x7d   : > { %v266_v19 = vpop.permute.xlu2 %265 }
  0x84   : > { %v291_v10 = vpop.permute.xlu1 %290  ;;  %v295_v11 = vpop.permute.xlu0 %294 }
  0x85   : > { %343 = vrot.lane.b32.xlu2 %v295_v11, %s814_s11  ;;  %339 = vrot.lane.b32.xlu1 %v291_v10, %s814_s11 }
  0x8c   : > { %v289_v12 = vpop.permute.xlu1 %288  ;;  %v293_v13 = vpop.permute.xlu0 %292 }
  0x8d   : > { %341 = vrot.lane.b32.xlu0 %v293_v13, %s814_s11  ;;  %337 = vrot.lane.b32.xlu2 %v289_v12, %s814_s11 }
  0x8e   : > { %335 = vrot.lane.b32.xlu1 %v280_v14, %s814_s11 }
  0x94   : > { %v272_v15 = vpop.permute.xlu0 %271  ;;  %v274_v16 = vpop.permute.xlu1 %273 }
  0x95   : > { %333 = vrot.lane.b32.xlu0 %v282_v17, %s814_s11  ;;  %v276_v18 = vsel %vm275_vm1, %v272_v15, %v274_v16 }
  0x96   : > { %329 = vrot.lane.b32.xlu2 %v276_v18, %s814_s11 }
  0x9c   : > { %v268_v20 = vpop.permute.xlu0 %267  ;;  %v297_v22 = vpop.permute.xlu1 %296 }
  0x9d   : > { %331 = vrot.lane.b32.xlu0 %v274_v16, %s814_s11  ;;  %v270_v21 = vsel %vm269_vm2, %v266_v19, %v268_v20 }
  0x9e   : > { %327 = vrot.lane.b32.xlu2 %v268_v20, %s814_s11  ;;  %325 = vrot.lane.b32.xlu1 %v270_v21, %s814_s11 }
  0xa5   : > { %321 = vrot.lane.b32.xlu0 %v737_v5, %s814_s11  ;;  %v413_v5 = vlaneseq }
  0xa6   : > { %323 = vrot.lane.b32.xlu1 %v741_v8, %s814_s11  ;;  %345 = vrot.lane.b32.xlu2 %v297_v22, %s814_s11 }
  0xa7   : > { %v414_v6 = vshrl.u32 %v413_v5, 7 }
  0xa9   : > { %v415_v7 = vadd.s32 8, %v414_v6  ;;  %vm418_vm5 = vcmp.lt.s32.totalorder %v414_v6, 4  ;;  %vm468_vm6 = vcmp.ge.s32.totalorder %v414_v6, 4 }
  0xaa   : > { %v923_v10 = vsel %vm418_vm5, 1.0, %v816_v9  ;;  %v925_v11 = vsel %vm468_vm6, 1.0, %v816_v9  ;;  %vm667_vm5 = vcmask 1043584   ;;  %vm668_vm6 = vcmask 130052  }
  0xab   : > { %vm523_vm7 = vcmp.lt.s32.totalorder %v415_v7, 12  ;;  %vm573_vm8 = vcmp.ge.s32.totalorder %v415_v7, 12 }
  0xac   : > { %v927_v12 = vsel %vm523_vm7, 1.0, %v816_v9  ;;  %v929_v13 = vsel %vm573_vm8, 1.0, %v816_v9  ;;  %vm664_vm7 = vcmask 125952   ;;  %vm669_vm8 = vmor %vm668_vm6, %vm667_vm5 }
  0xad   : > { %304 = vperm.xlu0 %786, %v300_v30  }
  0xae   : > { %309 = vperm.xlu1 %787, %v301_v31  }
  0xdf   : > { %v344_v23 = vpop.permute.xlu2 %343 }
  0xe0   : > { %365 = vmatpush.bf16.msra.mxu0 %v344_v23 }
  0xe7   : > { %v338_v24 = vpop.permute.xlu2 %337 }
  0xf0   : > { %v330_v25 = vpop.permute.xlu2 %329 }
  0xf7   : > { %v340_v27 = vpop.permute.xlu1 %339 }
  0xf8   : > { %v328_v26 = vpop.permute.xlu2 %327 }
  0xff   : > { %v342_v33 = vpop.permute.xlu0 %341 }
 0x100   : > { %366 = vmatpush.bf16.msra.mxu0 %v342_v33  ;;  %v346_v34 = vpop.permute.xlu2 %345  ;;  %v336_v36 = vpop.permute.xlu1 %335 }
 0x101   : > { %386 = vmatpush.bf16.msra.mxu1 %v346_v34 }
 0x104   : > { %367 = vmatpush.bf16.msra.mxu0 %v340_v27  ;;  %754 = vmatmul.msk.bf16.vlgmr.msra.gmra.mxu1 %vm361_vm3, %v753_v35 }
 0x107   : > { %v334_v37 = vpop.permute.xlu0 %333 }
 0x108   : > { %368 = vmatpush.bf16.msra.mxu0 %v338_v24  ;;  %v351_v38 = vsel %vm347_vm4, %v334_v37, %v336_v36 }
 0x10c   : > { %369 = vmatpush.bf16.msra.mxu0 %v351_v38 }
 0x10f   : > { %v332_v39 = vpop.permute.xlu0 %331 }
 0x110   : > { %v326_v40 = vpop.permute.xlu1 %325  ;;  %v350_v41 = vsel %vm347_vm4, %v330_v25, %v332_v39 }
 0x111   : > { %370 = vmatpush.bf16.msra.mxu0 %v350_v41  ;;  %v349_v42 = vsel %vm347_vm4, %v326_v40, %v328_v26 }
 0x115   : > { %371 = vmatpush.bf16.msra.mxu0 %v349_v42 }
 0x117   : > { %v322_v45 = vpop.permute.xlu0 %321 }
 0x118   : > { %v324_v46 = vpop.permute.xlu1 %323 }
 0x119   : > { %v348_v47 = vsel %vm347_vm4, %v322_v45, %v324_v46 }
 0x11a   : > { %372 = vmatpush.bf16.msra.mxu0 %v348_v47 }
 0x11d   : > { %373 = vmatmul.bf16.vlgmr.msra.gmra.mxu0 %v749_v48 }
 0x11f   : > { %v305_v49 = vpop.permute.xlu0 %304 }
 0x120   : > { %v310_v56 = vpop.permute.xlu1 %309 }
 0x181   : > { %v388_v50 = vpop.f32.mrf.mxu1 }
 0x189   : > { %v390_v62 = vpop.f32.mrf.mxu1 }
 0x19a   : > { %v374_v51 = vpop.f32.mrf.mxu0 }
 0x19b   : > { %v375_v52 = vadd.f32 %v374_v51, %v305_v49 }
 0x19d   : > { %v895_v54 = vadd.f32 %v388_v50, %v375_v52 }
 0x19f   : > { %v397_v55 = vmul.f32 %v893_v53, %v895_v54 }
 0x1a1   : > { %v399_v57 = vsel %vm361_vm3, %v397_v55, 0.0  ;;  %v405_v58 = vmul.f32 %v397_v55, %v895_v54 }
 0x1a2   : > { %v376_v59 = vpop.f32.mrf.mxu0  ;;  %400 = vadd.xlane.f32.xlu2 %v399_v57 }
 0x1a3   : > { %v377_v60 = vadd.f32 %v376_v59, %v310_v56  ;;  %v407_v61 = vsel %vm361_vm3, %v405_v58, 0.0 }
 0x1a4   : > { %408 = vadd.xlane.f32.xlu0 %v407_v61 }
 0x1a5   : > { %v902_v63 = vadd.f32 %v390_v62, %v377_v60 }
 0x1a7   : > { %v398_v0 = vmul.f32 %v893_v53, %v902_v63 }
 0x1a9   : > { %v402_v1 = vsel %vm361_vm3, %v398_v0, 0.0  ;;  %v406_v2 = vmul.f32 %v398_v0, %v902_v63 }
 0x1aa   : > { %403 = vadd.xlane.f32.xlu1 %v402_v1 }
 0x1ab   : > { %v410_v3 = vsel %vm361_vm3, %v406_v2, 0.0 }
 0x1ac   : > { %411 = vadd.xlane.f32.xlu2 %v410_v3 }
 0x1b8   : > { %646 = vperm.xlu0 %786, %v642_v4  }
 0x215   : > { %v401_v8 = vpop.xlane.xlu2 %400 }
 0x216   : > { %v426_v15 = vmul.f32 %v923_v10, %v401_v8  ;;  %v478_v16 = vmul.f32 %v925_v11, %v401_v8  ;;  %v530_v18 = vmul.f32 0.0, %v401_v8 }
 0x217   : > { %v409_v14 = vpop.xlane.xlu0 %408 }
 0x218   : > { %v435_v22 = vmul.f32 %v923_v10, %v409_v14  ;;  %v487_v23 = vmul.f32 %v925_v11, %v409_v14  ;;  %v539_v29 = vmul.f32 0.0, %v409_v14 }
 0x21d   : > { %v404_v17 = vpop.xlane.xlu1 %403 }
 0x21e   : > { %v427_v19 = vmul.f32 0.0, %v404_v17  ;;  %v531_v20 = vmul.f32 %v927_v12, %v404_v17  ;;  %v583_v21 = vmul.f32 %v929_v13, %v404_v17 }
 0x21f   : > { %v412_v24 = vpop.xlane.xlu2 %411 }
 0x220   : > { %v428_v25 = vadd.f32 %v427_v19, %v426_v15  ;;  %v480_v26 = vadd.f32 %v478_v16, %v427_v19  ;;  %v532_v27 = vadd.f32 %v531_v20, %v530_v18  ;;  %v584_v28 = vadd.f32 %v583_v21, %v530_v18 }
 0x221   : > { %v436_v30 = vmul.f32 0.0, %v412_v24  ;;  %v540_v31 = vmul.f32 %v927_v12, %v412_v24  ;;  %v592_v33 = vmul.f32 %v929_v13, %v412_v24 }
 0x222   : > { %v429_v34 = vrot.slane %v428_v25, 4  ;;  %v481_v35 = vrot.slane %v480_v26, 4  ;;  %v533_v36 = vrot.slane %v532_v27, 4  ;;  %v585_v37 = vrot.slane %v584_v28, 4 }
 0x223   : > { %v437_v38 = vadd.f32 %v436_v30, %v435_v22  ;;  %v489_v39 = vadd.f32 %v487_v23, %v436_v30  ;;  %v541_v40 = vadd.f32 %v540_v31, %v539_v29  ;;  %v593_v41 = vadd.f32 %v592_v33, %v539_v29 }
 0x224   : > { %v430_v42 = vadd.f32 %v429_v34, %v428_v25  ;;  %v482_v43 = vadd.f32 %v481_v35, %v480_v26  ;;  %v534_v44 = vadd.f32 %v533_v36, %v532_v27  ;;  %v586_v45 = vadd.f32 %v585_v37, %v584_v28 }
 0x225   : > { %v438_v46 = vrot.slane %v437_v38, 4  ;;  %v490_v47 = vrot.slane %v489_v39, 4  ;;  %v542_v48 = vrot.slane %v541_v40, 4  ;;  %v594_v49 = vrot.slane %v593_v41, 4 }
 0x226   : > { %v431_v50 = vrot.slane %v430_v42, 2  ;;  %v483_v51 = vrot.slane %v482_v43, 2  ;;  %v535_v52 = vrot.slane %v534_v44, 2  ;;  %v587_v55 = vrot.slane %v586_v45, 2 }
 0x227   : > { %v439_v56 = vadd.f32 %v438_v46, %v437_v38  ;;  %v491_v57 = vadd.f32 %v490_v47, %v489_v39  ;;  %v543_v58 = vadd.f32 %v542_v48, %v541_v40  ;;  %v595_v59 = vadd.f32 %v594_v49, %v593_v41 }
 0x228   : > { %v432_v60 = vadd.f32 %v431_v50, %v430_v42  ;;  %v484_v61 = vadd.f32 %v483_v51, %v482_v43  ;;  %v536_v62 = vadd.f32 %v535_v52, %v534_v44  ;;  %v588_v0 = vadd.f32 %v587_v55, %v586_v45 }
 0x229   : > { %v440_v1 = vrot.slane %v439_v56, 2  ;;  %v492_v2 = vrot.slane %v491_v57, 2  ;;  %v544_v3 = vrot.slane %v543_v58, 2  ;;  %v596_v4 = vrot.slane %v595_v59, 2 }
 0x22a   : > { %v433_v5 = vrot.slane %v432_v60, 1  ;;  %v485_v6 = vrot.slane %v484_v61, 1  ;;  %v537_v7 = vrot.slane %v536_v62, 1  ;;  %v589_v8 = vrot.slane %v588_v0, 1 }
 0x22b   : > { %v441_v9 = vadd.f32 %v440_v1, %v439_v56  ;;  %v493_v14 = vadd.f32 %v492_v2, %v491_v57  ;;  %v545_v15 = vadd.f32 %v544_v3, %v543_v58  ;;  %v597_v16 = vadd.f32 %v596_v4, %v595_v59 }
 0x22c   : > { %v434_v17 = vadd.f32 %v433_v5, %v432_v60  ;;  %v486_v18 = vadd.f32 %v485_v6, %v484_v61  ;;  %v538_v19 = vadd.f32 %v537_v7, %v536_v62  ;;  %v590_v20 = vadd.f32 %v589_v8, %v588_v0 }
 0x22d   : > { %v442_v21 = vrot.slane %v441_v9, 1  ;;  %v494_v22 = vrot.slane %v493_v14, 1  ;;  %v546_v23 = vrot.slane %v545_v15, 1  ;;  %v598_v24 = vrot.slane %v597_v16, 1 }
 0x22e   : > { %v444_v25 = vmul.f32 0.0625, %v434_v17  ;;  %v496_v26 = vmul.f32 0.0625, %v486_v18  ;;  %v548_v27 = vmul.f32 0.0625, %v538_v19  ;;  %v600_v28 = vmul.f32 0.0625, %v590_v20 }
 0x22f   : > { %v443_v29 = vadd.f32 %v442_v21, %v441_v9  ;;  %v495_v30 = vadd.f32 %v494_v22, %v493_v14  ;;  %v547_v31 = vadd.f32 %v546_v23, %v545_v15  ;;  %v599_v33 = vadd.f32 %v598_v24, %v597_v16 }
 0x230   : > { %v446_v34 = vmul.f32 %v444_v25, %v444_v25  ;;  %v498_v35 = vmul.f32 %v496_v26, %v496_v26  ;;  %v550_v36 = vmul.f32 %v548_v27, %v548_v27  ;;  %v602_v37 = vmul.f32 %v600_v28, %v600_v28 }
 0x231   : > { %v445_v38 = vmul.f32 0.0625, %v443_v29  ;;  %v497_v39 = vmul.f32 0.0625, %v495_v30  ;;  %v549_v40 = vmul.f32 0.0625, %v547_v31  ;;  %v601_v41 = vmul.f32 0.0625, %v599_v33 }
 0x232   : > { %v460_v42 = vmul.f32 %v923_v10, %v444_v25  ;;  %v512_v43 = vmul.f32 %v925_v11, %v496_v26  ;;  %v564_v44 = vmul.f32 0.0, %v548_v27  ;;  %v461_v50 = vmul.f32 0.0, %v444_v25 }
 0x233   : > { %v447_v45 = vsub.f32 %v445_v38, %v446_v34  ;;  %v499_v46 = vsub.f32 %v497_v39, %v498_v35  ;;  %v551_v47 = vsub.f32 %v549_v40, %v550_v36  ;;  %v603_v48 = vsub.f32 %v601_v41, %v602_v37 }
 0x234   : > { %v514_v49 = vadd.f32 %v512_v43, %v460_v42  ;;  %v513_v51 = vmul.f32 0.0, %v496_v26  ;;  %v565_v52 = vmul.f32 %v927_v12, %v548_v27  ;;  %v616_v60 = vmul.f32 0.0, %v600_v28 }
 0x235   : > { %v448_v55 = vmax.f32 %v447_v45, 0.0  ;;  %v500_v56 = vmax.f32 %v499_v46, 0.0  ;;  %v552_v57 = vmax.f32 %v551_v47, 0.0  ;;  %v604_v58 = vmax.f32 %v603_v48, 0.0 }
 0x236   : > { %v566_v59 = vadd.f32 %v564_v44, %v514_v49  ;;  %v515_v61 = vadd.f32 %v513_v51, %v461_v50  ;;  %v617_v62 = vmul.f32 %v929_v13, %v600_v28 }
 0x237   : > { %v449_v0 = vadd.f32 1e-05, %v448_v55  ;;  %v501_v1 = vadd.f32 1e-05, %v500_v56  ;;  %v553_v2 = vadd.f32 1e-05, %v552_v57 }
 0x238   : > { %v605_v3 = vadd.f32 1e-05, %v604_v58  ;;  %v943_v4 = vadd.f32 %v616_v60, %v566_v59  ;;  %v567_v5 = vadd.f32 %v565_v52, %v515_v61  ;;  %v626_v52 = vld [vmem:[%s978_s3] sm:$0xff]  ;;  %v647_v60 = vpop.permute.xlu0 %646 }
 0x239   : > { %790 = vrsqrt.f32 %v449_v0  ;;  %vm456_vm11 = vweird.f32 %v449_v0  ;;  %vm508_vm14 = vweird.f32 %v501_v1  ;;  %vm560_vm1 = vweird.f32 %v553_v2 }
 0x23a   : > { %792 = vrsqrt.f32 %v501_v1  ;;  %v945_v6 = vadd.f32 %v617_v62, %v567_v5  ;;  %vm612_vm2 = vweird.f32 %v605_v3 }
 0x23b   : > { %794 = vrsqrt.f32 %v553_v2 }
 0x23c   : > { %796 = vrsqrt.f32 %v605_v3 }
 0x23f   : > { %v791_v7 = vpop.eup %790 }
 0x240   : > { %v793_v8 = vpop.eup %792  ;;  %v451_v9 = vmul.f32 %v791_v7, %v449_v0  ;;  %vm457_vm9 = vweird.f32 %v791_v7 }
 0x241   : > { %v795_v14 = vpop.eup %794  ;;  %v503_v15 = vmul.f32 %v793_v8, %v501_v1  ;;  %vm509_vm10 = vweird.f32 %v793_v8  ;;  %vm458_vm13 = vmor %vm456_vm11, %vm457_vm9 }
 0x242   : > { %v797_v16 = vpop.eup %796  ;;  %v555_v17 = vmul.f32 %v795_v14, %v553_v2  ;;  %v452_v18 = vmul.f32 %v791_v7, %v451_v9  ;;  %vm561_vm12 = vweird.f32 %v795_v14  ;;  %vm510_vm0 = vmor %vm508_vm14, %vm509_vm10 }
 0x243   : > { %v504_v19 = vmul.f32 %v793_v8, %v503_v15  ;;  %v607_v20 = vmul.f32 %v797_v16, %v605_v3  ;;  %vm613_vm15 = vweird.f32 %v797_v16  ;;  %vm562_vm3 = vmor %vm560_vm1, %vm561_vm12 }
 0x244   : > { %v453_v21 = vmul.f32 0.5, %v452_v18  ;;  %v556_v22 = vmul.f32 %v795_v14, %v555_v17  ;;  %vm614_vm4 = vmor %vm612_vm2, %vm613_vm15 }
 0x245   : > { %v505_v23 = vmul.f32 0.5, %v504_v19  ;;  %v608_v24 = vmul.f32 %v797_v16, %v607_v20 }
 0x246   : > { %v454_v25 = vsub.f32 1.5, %v453_v21  ;;  %v557_v26 = vmul.f32 0.5, %v556_v22 }
 0x247   : > { %v506_v27 = vsub.f32 1.5, %v505_v23  ;;  %v609_v28 = vmul.f32 0.5, %v608_v24 }
 0x248   : > { %v455_v29 = vmul.f32 %v791_v7, %v454_v25  ;;  %v558_v30 = vsub.f32 1.5, %v557_v26 }
 0x249   : > { %v507_v31 = vmul.f32 %v793_v8, %v506_v27  ;;  %v610_v33 = vsub.f32 1.5, %v609_v28 }
 0x24a   : > { %v459_v34 = vsel %vm458_vm13, %v791_v7, %v455_v29  ;;  %v559_v35 = vmul.f32 %v795_v14, %v558_v30 }
 0x24b   : > { %v465_v36 = vmul.f32 0.0, %v459_v34  ;;  %v511_v37 = vsel %vm510_vm0, %v793_v8, %v507_v31  ;;  %v611_v38 = vmul.f32 %v797_v16, %v610_v33  ;;  %v464_v39 = vmul.f32 %v923_v10, %v459_v34  ;;  %v627_v10 = vld [vmem:[%s978_s3 + $0x8] sm:$0xff] }
 0x24c   : > { %v517_v40 = vmul.f32 0.0, %v511_v37  ;;  %v563_v41 = vsel %vm562_vm3, %v795_v14, %v559_v35  ;;  %v516_v42 = vmul.f32 %v925_v11, %v511_v37 }
 0x24d   : > { %v615_v43 = vsel %vm614_vm4, %v797_v16, %v611_v38  ;;  %v569_v45 = vmul.f32 %v927_v12, %v563_v41  ;;  %v568_v47 = vmul.f32 0.0, %v563_v41  ;;  %v643_v12 = vld [vmem:[%s979_s4 + $0x8] sm:$0xff] }
 0x24e   : > { %v519_v44 = vadd.f32 %v517_v40, %v465_v36  ;;  %v518_v46 = vadd.f32 %v516_v42, %v464_v39  ;;  %v621_v49 = vmul.f32 %v929_v13, %v615_v43  ;;  %v620_v51 = vmul.f32 0.0, %v615_v43 }
 0x24f   : > { %v624_v13 = vsub.f32 %v895_v54, %v943_v4  ;;  %v625_v54 = vsub.f32 %v902_v63, %v945_v6 }
 0x250   : > { %v571_v48 = vadd.f32 %v569_v45, %v519_v44  ;;  %v570_v50 = vadd.f32 %v568_v47, %v518_v46 }
 0x252   : > { %v623_v11 = vadd.f32 %v621_v49, %v571_v48  ;;  %v622_v55 = vadd.f32 %v620_v51, %v570_v50 }
 0x254   : > { %v629_v56 = vmul.f32 %v627_v10, %v623_v11  ;;  %v628_v57 = vmul.f32 %v626_v52, %v622_v55 }
 0x256   : > { %637 = vperm.xlu1 %787, %v629_v56   ;;  %632 = vperm.xlu2 %788, %v628_v57  }
 0x25e   : > { %651 = vperm.xlu2 %788, %v643_v12  }
 0x2b0   : > { %v633_v58 = vpop.permute.xlu2 %632 }
 0x2b1   : > { %v640_v59 = vmul.f32 %v633_v58, %v624_v13 }
 0x2b3   : > { %v654_v61 = vadd.f32 %v647_v60, %v640_v59 }
 0x2b5   : > { %v656_v62 = vmax.f32 %v654_v61, 0.0 }
 0x2b7   : > { %v658_v0 = vmul.f32 %v893_v53, %v656_v62 }
 0x2b8   : > { %v652_v4 = vpop.permute.xlu2 %651 }
 0x2b9   : > { %v662_v1 = vpack.c.bf16 %v658_v0, %v658_v0 }
 0x2bb   : > { %665 = vst.msk [vmem:[%s917_s9 + $0x4] sm:$0xf] %vm664_vm7, %v662_v1 }
 0x2bc   : > { %670 = vst.msk [vmem:[%s917_s9 + $0x4] sm:$0xff] %vm669_vm8, %v815_v32 }
 0x2c8   : > { %v638_v2 = vpop.permute.xlu1 %637 }
 0x2c9   : > { %v641_v3 = vmul.f32 %v638_v2, %v625_v54 }
 0x2cb   : > { %v655_v5 = vadd.f32 %v652_v4, %v641_v3 }
 0x2cd   : > { %v657_v7 = vmax.f32 %v655_v5, 0.0 }
 0x2cf   : > { %v659_v8 = vmul.f32 %v893_v53, %v657_v7 }
 0x2d1   : > { %v663_v9 = vpack.c.bf16 %v659_v8, %v659_v8 }
 0x2d3   : > { %666 = vst.msk [vmem:[%s917_s9 + $0x10] sm:$0xf] %vm664_vm7, %v663_v9 }
 0x2d4   : > { %671 = vst.msk [vmem:[%s917_s9 + $0x10] sm:$0xff] %vm669_vm8, %v815_v32 }
 0x2d5 PF: > { %s16_s21 = sadd.s32 1, %s804_s21  }
 0x2d6   : > { %p13_p4 = scmp.ge.s32.totalorder %s16_s21, 4  }
 0x2d8   :  { %15 = sbr.rel (!%p13_p4) target bundleno = 1 (0x1), region = 74 }

// kernel: semantic_fpn_forward.39
= control target key start
LH: loop header
LB: loop body
LE: loop exit
PB: predicated region body
PF: predicated region fallthrough
CT: control target
= control target key end

     0   :  { %s853_s21 = smov 0   ;;  %s975_s0 = inlined_call_operand.vmem [shape: bf16[2,16,292], index: 0, kind: input, shape index: {}]   ;;  %s976_s1 = inlined_call_operand.vmem [shape: bf16[16,144], index: 1, kind: input, shape index: {}]   ;;  %s977_s2 = inlined_call_operand.vmem [shape: f32[16,1], index: 2, kind: input, shape index: {}]   ;;  %s978_s3 = inlined_call_operand.vmem [shape: f32[16,1], index: 3, kind: input, shape index: {}]   ;;  %s979_s4 = inlined_call_operand.vmem [shape: f32[16,1], index: 4, kind: input, shape index: {}]   ;;  %s980_s5 = inlined_call_operand.vmem [shape: f32[1,36], index: 5, kind: input, shape index: {}]   ;;  %s981_s6 = inlined_call_operand.vmem [shape: bf16[2,16,292], index: 6, kind: output, shape index: {}]  }
   0x1 LB: > { %s728_s22 = sadd.s32 4294967295, %s805_s21   ;;  %p732_p0 = scmp.ge.s32.totalorder %s805_s21, 1  ;;  %s805_s21 = sphi %s853_s21, %s16_s21  }
   0x2   : > { %p212_p1 = scmp.lt.s32.totalorder %s805_s21, 3 }
   0x4   : > { %p213_p2 = pnand %p732_p0, %p212_p1 }
   0x5   : > { %p242_p3 = scmp.lt.s32.totalorder (!%p213_p2), %s728_s22, 1  ;;  %s807_s27 = smov (!%p213_p2), 120  }
   0x6   : > { %216 = sbr.rel (%p213_p2) target bundleno = 725 (0x2d5), region = 44  ;;  %s808_s28 = smov (!%p213_p2), 115  }
   0x7   : > { %s809_s29 = smov (!%p213_p2), 122   ;;  %s810_s30 = smov (!%p213_p2), 121  }
   0x8   : > { %s811_s7 = smov (!%p213_p2), 116   ;;  %s812_s8 = smov (!%p213_p2), 126  }
   0x9   : > { %s813_s9 = smov (!%p213_p2), 127   ;;  %s814_s10 = smov (!%p213_p2), 114  }
   0xa   : > { %s815_s11 = smov (!%p213_p2), 7  }
   0xb   : > { %s983_s22 = smov (!%p242_p3, %s728_s22), 1  ;;  %vm281_vm0 = vcmask 998400   ;;  %vm275_vm1 = vcmask 1031168   ;;  %vm269_vm2 = vcmask 1039360   ;;  %v765_v28 = vld [vmem:[%s976_s1 + $0x4] sm:$0xf] }
   0xc   : > { %s767_s23 = smul.u32 24, %s983_s22  ;;  %v751_v29 = vld [vmem:[%s976_s1 + $0x8] sm:$0xf0]  ;;  %v300_v30 = vld [vmem:[%s977_s2] sm:$0xff]  ;;  %v816_v32 = vmov 0   ;;  %vm361_vm3 = vcmask 130048  }
   0xd   : > { %v301_v31 = vld [vmem:[%s977_s2 + $0x8] sm:$0xff]  ;;  %787 = vset.pattern.permute.xlu0 %v816_v32  ;;  %788 = vset.pattern.permute.xlu1 %v816_v32  ;;  %v754_v35 = vor.u32 %v765_v28, %v751_v29  ;;  %vm347_vm4 = vcmask 56320   ;;  %v749_v43 = vld [vmem:[%s976_s1] sm:$0xf]  ;;  %vm399_vm5 = vcmask 293888  }
   0xe   : > { %s246_s26 = scalar_lea.vmem %s975_s0, %s767_s23  ;;  %789 = vset.pattern.permute.xlu2 %v816_v32  ;;  %v766_v44 = vld [vmem:[%s976_s1 + $0x4] sm:$0xf0]  ;;  %v893_v53 = vld [vmem:[%s980_s5] ss:$0 sm:$0xff] }
   0xf   : > { %v745_v0 = vld [vmem:[%s246_s26 + $0x4] sm:$0xf]  ;;  %v764_v1 = vld [vmem:[%s246_s26 + $0xc] sm:$0xf0]  ;;  %v737_v2 = vld [vmem:[%s246_s26] sm:$0xf]  ;;  %v750_v48 = vor.u32 %v766_v44, %v749_v43 }
  0x10   : > { %v746_v3 = vor.u32 %v764_v1, %v745_v0  ;;  %v763_v4 = vld [vmem:[%s246_s26 + $0x8] sm:$0xf0]  ;;  %v762_v6 = vld [vmem:[%s246_s26 + $0x4] sm:$0xf]  ;;  %v739_v7 = vld [vmem:[%s246_s26 + $0xc] sm:$0xf0] }
  0x11   : > { %v738_v5 = vor.u32 %v763_v4, %v737_v2  ;;  %v742_v8 = vor.u32 %v762_v6, %v739_v7  ;;  %v643_v4 = vld [vmem:[%s979_s4] sm:$0xff] }
  0x12   : > { %290 = vrot.lane.b32.xlu1 %v746_v3, %s807_s27  ;;  %294 = vrot.lane.b32.xlu0 %v746_v3, %s808_s28 }
  0x13   : > { %277 = vrot.lane.b32.xlu2 %v738_v5, %s809_s29 }
  0x1a   : > { %288 = vrot.lane.b32.xlu1 %v746_v3, %s810_s30  ;;  %292 = vrot.lane.b32.xlu0 %v746_v3, %s811_s7 }
  0x1b   : > { %279 = vrot.lane.b32.xlu2 %v742_v8, %s809_s29 }
  0x22   : > { %271 = vrot.lane.b32.xlu0 %v738_v5, %s812_s8  ;;  %273 = vrot.lane.b32.xlu1 %v742_v8, %s812_s8 }
  0x23   : > { %265 = vrot.lane.b32.xlu2 %v738_v5, %s813_s9 }
  0x2a   : > { %267 = vrot.lane.b32.xlu0 %v742_v8, %s813_s9  ;;  %296 = vrot.lane.b32.xlu1 %v746_v3, %s814_s10  ;;  %s917_s9 = scalar_lea.vmem %s981_s6, %s767_s23 }
  0x2b   : > { %661 = vst [vmem:[%s917_s9] sm:$0xf] %v816_v32 }
  0x2c   : > { %662 = vst [vmem:[%s917_s9 + $0xc] sm:$0xf] %v816_v32 }
  0x6d   : > { %v278_v9 = vpop.permute.xlu2 %277 }
  0x75   : > { %v280_v14 = vpop.permute.xlu2 %279 }
  0x76   : > { %v282_v17 = vsel %vm281_vm0, %v278_v9, %v280_v14  ;;  %v817_v9 = vmov 0.0  }
  0x7d   : > { %v266_v19 = vpop.permute.xlu2 %265 }
  0x84   : > { %v291_v10 = vpop.permute.xlu1 %290  ;;  %v295_v11 = vpop.permute.xlu0 %294 }
  0x85   : > { %343 = vrot.lane.b32.xlu2 %v295_v11, %s815_s11  ;;  %339 = vrot.lane.b32.xlu1 %v291_v10, %s815_s11 }
  0x8c   : > { %v289_v12 = vpop.permute.xlu1 %288  ;;  %v293_v13 = vpop.permute.xlu0 %292 }
  0x8d   : > { %341 = vrot.lane.b32.xlu0 %v293_v13, %s815_s11  ;;  %337 = vrot.lane.b32.xlu2 %v289_v12, %s815_s11 }
  0x8e   : > { %335 = vrot.lane.b32.xlu1 %v280_v14, %s815_s11 }
  0x94   : > { %v272_v15 = vpop.permute.xlu0 %271  ;;  %v274_v16 = vpop.permute.xlu1 %273 }
  0x95   : > { %333 = vrot.lane.b32.xlu0 %v282_v17, %s815_s11  ;;  %v276_v18 = vsel %vm275_vm1, %v272_v15, %v274_v16 }
  0x96   : > { %329 = vrot.lane.b32.xlu2 %v276_v18, %s815_s11 }
  0x9c   : > { %v268_v20 = vpop.permute.xlu0 %267  ;;  %v297_v22 = vpop.permute.xlu1 %296 }
  0x9d   : > { %331 = vrot.lane.b32.xlu0 %v274_v16, %s815_s11  ;;  %v270_v21 = vsel %vm269_vm2, %v266_v19, %v268_v20 }
  0x9e   : > { %327 = vrot.lane.b32.xlu2 %v268_v20, %s815_s11  ;;  %325 = vrot.lane.b32.xlu1 %v270_v21, %s815_s11 }
  0xa5   : > { %321 = vrot.lane.b32.xlu0 %v738_v5, %s815_s11  ;;  %v414_v5 = vlaneseq }
  0xa6   : > { %323 = vrot.lane.b32.xlu1 %v742_v8, %s815_s11  ;;  %345 = vrot.lane.b32.xlu2 %v297_v22, %s815_s11 }
  0xa7   : > { %v415_v6 = vshrl.u32 %v414_v5, 7 }
  0xa9   : > { %v416_v7 = vadd.s32 8, %v415_v6  ;;  %vm419_vm6 = vcmp.lt.s32.totalorder %v415_v6, 4  ;;  %vm469_vm7 = vcmp.ge.s32.totalorder %v415_v6, 4 }
  0xaa   : > { %v923_v10 = vsel %vm419_vm6, 1.0, %v817_v9  ;;  %v925_v11 = vsel %vm469_vm7, 1.0, %v817_v9  ;;  %vm668_vm6 = vcmask 1043744   ;;  %vm669_vm7 = vcmask 293892  }
  0xab   : > { %vm524_vm8 = vcmp.lt.s32.totalorder %v416_v7, 12  ;;  %vm574_vm9 = vcmp.ge.s32.totalorder %v416_v7, 12 }
  0xac   : > { %v927_v12 = vsel %vm524_vm8, 1.0, %v817_v9  ;;  %v929_v13 = vsel %vm574_vm9, 1.0, %v817_v9  ;;  %vm665_vm8 = vcmask 289792   ;;  %vm670_vm9 = vmor %vm669_vm7, %vm668_vm6 }
  0xad   : > { %304 = vperm.xlu0 %787, %v300_v30  }
  0xae   : > { %309 = vperm.xlu1 %788, %v301_v31  }
  0xdf   : > { %v344_v23 = vpop.permute.xlu2 %343 }
  0xe0   : > { %365 = vmatpush.bf16.msra.mxu0 %v344_v23 }
  0xe7   : > { %v338_v24 = vpop.permute.xlu2 %337 }
  0xf0   : > { %v330_v25 = vpop.permute.xlu2 %329 }
  0xf7   : > { %v340_v27 = vpop.permute.xlu1 %339 }
  0xf8   : > { %v328_v26 = vpop.permute.xlu2 %327 }
  0xff   : > { %v342_v33 = vpop.permute.xlu0 %341 }
 0x100   : > { %366 = vmatpush.bf16.msra.mxu0 %v342_v33  ;;  %v346_v34 = vpop.permute.xlu2 %345  ;;  %v336_v36 = vpop.permute.xlu1 %335 }
 0x101   : > { %386 = vmatpush.bf16.msra.mxu1 %v346_v34 }
 0x104   : > { %367 = vmatpush.bf16.msra.mxu0 %v340_v27  ;;  %755 = vmatmul.msk.bf16.vlgmr.msra.gmra.mxu1 %vm361_vm3, %v754_v35 }
 0x107   : > { %v334_v37 = vpop.permute.xlu0 %333 }
 0x108   : > { %368 = vmatpush.bf16.msra.mxu0 %v338_v24  ;;  %v351_v38 = vsel %vm347_vm4, %v334_v37, %v336_v36 }
 0x10c   : > { %369 = vmatpush.bf16.msra.mxu0 %v351_v38 }
 0x10f   : > { %v332_v39 = vpop.permute.xlu0 %331 }
 0x110   : > { %v326_v40 = vpop.permute.xlu1 %325  ;;  %v350_v41 = vsel %vm347_vm4, %v330_v25, %v332_v39 }
 0x111   : > { %370 = vmatpush.bf16.msra.mxu0 %v350_v41  ;;  %v349_v42 = vsel %vm347_vm4, %v326_v40, %v328_v26 }
 0x115   : > { %371 = vmatpush.bf16.msra.mxu0 %v349_v42 }
 0x117   : > { %v322_v45 = vpop.permute.xlu0 %321 }
 0x118   : > { %v324_v46 = vpop.permute.xlu1 %323 }
 0x119   : > { %v348_v47 = vsel %vm347_vm4, %v322_v45, %v324_v46 }
 0x11a   : > { %372 = vmatpush.bf16.msra.mxu0 %v348_v47 }
 0x11d   : > { %373 = vmatmul.bf16.vlgmr.msra.gmra.mxu0 %v750_v48 }
 0x11f   : > { %v305_v49 = vpop.permute.xlu0 %304 }
 0x120   : > { %v310_v56 = vpop.permute.xlu1 %309 }
 0x181   : > { %v388_v50 = vpop.f32.mrf.mxu1 }
 0x189   : > { %v390_v62 = vpop.f32.mrf.mxu1 }
 0x19a   : > { %v374_v51 = vpop.f32.mrf.mxu0 }
 0x19b   : > { %v375_v52 = vadd.f32 %v374_v51, %v305_v49 }
 0x19d   : > { %v895_v54 = vadd.f32 %v388_v50, %v375_v52 }
 0x19f   : > { %v397_v55 = vmul.f32 %v893_v53, %v895_v54 }
 0x1a1   : > { %v400_v57 = vsel %vm399_vm5, %v397_v55, 0.0  ;;  %v406_v58 = vmul.f32 %v397_v55, %v895_v54 }
 0x1a2   : > { %v376_v59 = vpop.f32.mrf.mxu0  ;;  %401 = vadd.xlane.f32.xlu2 %v400_v57 }
 0x1a3   : > { %v377_v60 = vadd.f32 %v376_v59, %v310_v56  ;;  %v408_v61 = vsel %vm399_vm5, %v406_v58, 0.0 }
 0x1a4   : > { %409 = vadd.xlane.f32.xlu0 %v408_v61 }
 0x1a5   : > { %v902_v63 = vadd.f32 %v390_v62, %v377_v60 }
 0x1a7   : > { %v398_v0 = vmul.f32 %v893_v53, %v902_v63 }
 0x1a9   : > { %v403_v1 = vsel %vm399_vm5, %v398_v0, 0.0  ;;  %v407_v2 = vmul.f32 %v398_v0, %v902_v63 }
 0x1aa   : > { %404 = vadd.xlane.f32.xlu1 %v403_v1 }
 0x1ab   : > { %v411_v3 = vsel %vm399_vm5, %v407_v2, 0.0 }
 0x1ac   : > { %412 = vadd.xlane.f32.xlu2 %v411_v3 }
 0x1b8   : > { %647 = vperm.xlu0 %787, %v643_v4  }
 0x215   : > { %v402_v8 = vpop.xlane.xlu2 %401 }
 0x216   : > { %v427_v15 = vmul.f32 %v923_v10, %v402_v8  ;;  %v479_v16 = vmul.f32 %v925_v11, %v402_v8  ;;  %v531_v18 = vmul.f32 0.0, %v402_v8 }
 0x217   : > { %v410_v14 = vpop.xlane.xlu0 %409 }
 0x218   : > { %v436_v22 = vmul.f32 %v923_v10, %v410_v14  ;;  %v488_v23 = vmul.f32 %v925_v11, %v410_v14  ;;  %v540_v29 = vmul.f32 0.0, %v410_v14 }
 0x21d   : > { %v405_v17 = vpop.xlane.xlu1 %404 }
 0x21e   : > { %v428_v19 = vmul.f32 0.0, %v405_v17  ;;  %v532_v20 = vmul.f32 %v927_v12, %v405_v17  ;;  %v584_v21 = vmul.f32 %v929_v13, %v405_v17 }
 0x21f   : > { %v413_v24 = vpop.xlane.xlu2 %412 }
 0x220   : > { %v429_v25 = vadd.f32 %v428_v19, %v427_v15  ;;  %v481_v26 = vadd.f32 %v479_v16, %v428_v19  ;;  %v533_v27 = vadd.f32 %v532_v20, %v531_v18  ;;  %v585_v28 = vadd.f32 %v584_v21, %v531_v18 }
 0x221   : > { %v437_v30 = vmul.f32 0.0, %v413_v24  ;;  %v541_v31 = vmul.f32 %v927_v12, %v413_v24  ;;  %v593_v33 = vmul.f32 %v929_v13, %v413_v24 }
 0x222   : > { %v430_v34 = vrot.slane %v429_v25, 4  ;;  %v482_v35 = vrot.slane %v481_v26, 4  ;;  %v534_v36 = vrot.slane %v533_v27, 4  ;;  %v586_v37 = vrot.slane %v585_v28, 4 }
 0x223   : > { %v438_v38 = vadd.f32 %v437_v30, %v436_v22  ;;  %v490_v39 = vadd.f32 %v488_v23, %v437_v30  ;;  %v542_v40 = vadd.f32 %v541_v31, %v540_v29  ;;  %v594_v41 = vadd.f32 %v593_v33, %v540_v29 }
 0x224   : > { %v431_v42 = vadd.f32 %v430_v34, %v429_v25  ;;  %v483_v43 = vadd.f32 %v482_v35, %v481_v26  ;;  %v535_v44 = vadd.f32 %v534_v36, %v533_v27  ;;  %v587_v45 = vadd.f32 %v586_v37, %v585_v28 }
 0x225   : > { %v439_v46 = vrot.slane %v438_v38, 4  ;;  %v491_v47 = vrot.slane %v490_v39, 4  ;;  %v543_v48 = vrot.slane %v542_v40, 4  ;;  %v595_v49 = vrot.slane %v594_v41, 4 }
 0x226   : > { %v432_v50 = vrot.slane %v431_v42, 2  ;;  %v484_v51 = vrot.slane %v483_v43, 2  ;;  %v536_v52 = vrot.slane %v535_v44, 2  ;;  %v588_v55 = vrot.slane %v587_v45, 2 }
 0x227   : > { %v440_v56 = vadd.f32 %v439_v46, %v438_v38  ;;  %v492_v57 = vadd.f32 %v491_v47, %v490_v39  ;;  %v544_v58 = vadd.f32 %v543_v48, %v542_v40  ;;  %v596_v59 = vadd.f32 %v595_v49, %v594_v41 }
 0x228   : > { %v433_v60 = vadd.f32 %v432_v50, %v431_v42  ;;  %v485_v61 = vadd.f32 %v484_v51, %v483_v43  ;;  %v537_v62 = vadd.f32 %v536_v52, %v535_v44  ;;  %v589_v0 = vadd.f32 %v588_v55, %v587_v45 }
 0x229   : > { %v441_v1 = vrot.slane %v440_v56, 2  ;;  %v493_v2 = vrot.slane %v492_v57, 2  ;;  %v545_v3 = vrot.slane %v544_v58, 2  ;;  %v597_v4 = vrot.slane %v596_v59, 2 }
 0x22a   : > { %v434_v5 = vrot.slane %v433_v60, 1  ;;  %v486_v6 = vrot.slane %v485_v61, 1  ;;  %v538_v7 = vrot.slane %v537_v62, 1  ;;  %v590_v8 = vrot.slane %v589_v0, 1 }
 0x22b   : > { %v442_v9 = vadd.f32 %v441_v1, %v440_v56  ;;  %v494_v14 = vadd.f32 %v493_v2, %v492_v57  ;;  %v546_v15 = vadd.f32 %v545_v3, %v544_v58  ;;  %v598_v16 = vadd.f32 %v597_v4, %v596_v59 }
 0x22c   : > { %v435_v17 = vadd.f32 %v434_v5, %v433_v60  ;;  %v487_v18 = vadd.f32 %v486_v6, %v485_v61  ;;  %v539_v19 = vadd.f32 %v538_v7, %v537_v62  ;;  %v591_v20 = vadd.f32 %v590_v8, %v589_v0 }
 0x22d   : > { %v443_v21 = vrot.slane %v442_v9, 1  ;;  %v495_v22 = vrot.slane %v494_v14, 1  ;;  %v547_v23 = vrot.slane %v546_v15, 1  ;;  %v599_v24 = vrot.slane %v598_v16, 1 }
 0x22e   : > { %v445_v25 = vmul.f32 0.015625, %v435_v17  ;;  %v497_v26 = vmul.f32 0.015625, %v487_v18  ;;  %v549_v27 = vmul.f32 0.015625, %v539_v19  ;;  %v601_v28 = vmul.f32 0.015625, %v591_v20 }
 0x22f   : > { %v444_v29 = vadd.f32 %v443_v21, %v442_v9  ;;  %v496_v30 = vadd.f32 %v495_v22, %v494_v14  ;;  %v548_v31 = vadd.f32 %v547_v23, %v546_v15  ;;  %v600_v33 = vadd.f32 %v599_v24, %v598_v16 }
 0x230   : > { %v447_v34 = vmul.f32 %v445_v25, %v445_v25  ;;  %v499_v35 = vmul.f32 %v497_v26, %v497_v26  ;;  %v551_v36 = vmul.f32 %v549_v27, %v549_v27  ;;  %v603_v37 = vmul.f32 %v601_v28, %v601_v28 }
 0x231   : > { %v446_v38 = vmul.f32 0.015625, %v444_v29  ;;  %v498_v39 = vmul.f32 0.015625, %v496_v30  ;;  %v550_v40 = vmul.f32 0.015625, %v548_v31  ;;  %v602_v41 = vmul.f32 0.015625, %v600_v33 }
 0x232   : > { %v461_v42 = vmul.f32 %v923_v10, %v445_v25  ;;  %v513_v43 = vmul.f32 %v925_v11, %v497_v26  ;;  %v565_v44 = vmul.f32 0.0, %v549_v27  ;;  %v462_v50 = vmul.f32 0.0, %v445_v25 }
 0x233   : > { %v448_v45 = vsub.f32 %v446_v38, %v447_v34  ;;  %v500_v46 = vsub.f32 %v498_v39, %v499_v35  ;;  %v552_v47 = vsub.f32 %v550_v40, %v551_v36  ;;  %v604_v48 = vsub.f32 %v602_v41, %v603_v37 }
 0x234   : > { %v515_v49 = vadd.f32 %v513_v43, %v461_v42  ;;  %v514_v51 = vmul.f32 0.0, %v497_v26  ;;  %v566_v52 = vmul.f32 %v927_v12, %v549_v27  ;;  %v617_v60 = vmul.f32 0.0, %v601_v28 }
 0x235   : > { %v449_v55 = vmax.f32 %v448_v45, 0.0  ;;  %v501_v56 = vmax.f32 %v500_v46, 0.0  ;;  %v553_v57 = vmax.f32 %v552_v47, 0.0  ;;  %v605_v58 = vmax.f32 %v604_v48, 0.0 }
 0x236   : > { %v567_v59 = vadd.f32 %v565_v44, %v515_v49  ;;  %v516_v61 = vadd.f32 %v514_v51, %v462_v50  ;;  %v618_v62 = vmul.f32 %v929_v13, %v601_v28 }
 0x237   : > { %v450_v0 = vadd.f32 1e-05, %v449_v55  ;;  %v502_v1 = vadd.f32 1e-05, %v501_v56  ;;  %v554_v2 = vadd.f32 1e-05, %v553_v57 }
 0x238   : > { %v606_v3 = vadd.f32 1e-05, %v605_v58  ;;  %v943_v4 = vadd.f32 %v617_v60, %v567_v59  ;;  %v568_v5 = vadd.f32 %v566_v52, %v516_v61  ;;  %v627_v52 = vld [vmem:[%s978_s3] sm:$0xff]  ;;  %v648_v60 = vpop.permute.xlu0 %647 }
 0x239   : > { %791 = vrsqrt.f32 %v450_v0  ;;  %vm457_vm12 = vweird.f32 %v450_v0  ;;  %vm509_vm15 = vweird.f32 %v502_v1  ;;  %vm561_vm2 = vweird.f32 %v554_v2 }
 0x23a   : > { %793 = vrsqrt.f32 %v502_v1  ;;  %v945_v6 = vadd.f32 %v618_v62, %v568_v5  ;;  %vm613_vm3 = vweird.f32 %v606_v3 }
 0x23b   : > { %795 = vrsqrt.f32 %v554_v2 }
 0x23c   : > { %797 = vrsqrt.f32 %v606_v3 }
 0x23f   : > { %v792_v7 = vpop.eup %791 }
 0x240   : > { %v794_v8 = vpop.eup %793  ;;  %v452_v9 = vmul.f32 %v792_v7, %v450_v0  ;;  %vm458_vm10 = vweird.f32 %v792_v7 }
 0x241   : > { %v796_v14 = vpop.eup %795  ;;  %v504_v15 = vmul.f32 %v794_v8, %v502_v1  ;;  %vm510_vm11 = vweird.f32 %v794_v8  ;;  %vm459_vm14 = vmor %vm457_vm12, %vm458_vm10 }
 0x242   : > { %v798_v16 = vpop.eup %797  ;;  %v556_v17 = vmul.f32 %v796_v14, %v554_v2  ;;  %v453_v18 = vmul.f32 %v792_v7, %v452_v9  ;;  %vm562_vm13 = vweird.f32 %v796_v14  ;;  %vm511_vm1 = vmor %vm509_vm15, %vm510_vm11 }
 0x243   : > { %v505_v19 = vmul.f32 %v794_v8, %v504_v15  ;;  %v608_v20 = vmul.f32 %v798_v16, %v606_v3  ;;  %vm614_vm0 = vweird.f32 %v798_v16  ;;  %vm563_vm4 = vmor %vm561_vm2, %vm562_vm13 }
 0x244   : > { %v454_v21 = vmul.f32 0.5, %v453_v18  ;;  %v557_v22 = vmul.f32 %v796_v14, %v556_v17  ;;  %vm615_vm5 = vmor %vm613_vm3, %vm614_vm0 }
 0x245   : > { %v506_v23 = vmul.f32 0.5, %v505_v19  ;;  %v609_v24 = vmul.f32 %v798_v16, %v608_v20 }
 0x246   : > { %v455_v25 = vsub.f32 1.5, %v454_v21  ;;  %v558_v26 = vmul.f32 0.5, %v557_v22 }
 0x247   : > { %v507_v27 = vsub.f32 1.5, %v506_v23  ;;  %v610_v28 = vmul.f32 0.5, %v609_v24 }
 0x248   : > { %v456_v29 = vmul.f32 %v792_v7, %v455_v25  ;;  %v559_v30 = vsub.f32 1.5, %v558_v26 }
 0x249   : > { %v508_v31 = vmul.f32 %v794_v8, %v507_v27  ;;  %v611_v33 = vsub.f32 1.5, %v610_v28 }
 0x24a   : > { %v460_v34 = vsel %vm459_vm14, %v792_v7, %v456_v29  ;;  %v560_v35 = vmul.f32 %v796_v14, %v559_v30 }
 0x24b   : > { %v466_v36 = vmul.f32 0.0, %v460_v34  ;;  %v512_v37 = vsel %vm511_vm1, %v794_v8, %v508_v31  ;;  %v612_v38 = vmul.f32 %v798_v16, %v611_v33  ;;  %v465_v39 = vmul.f32 %v923_v10, %v460_v34  ;;  %v628_v10 = vld [vmem:[%s978_s3 + $0x8] sm:$0xff] }
 0x24c   : > { %v518_v40 = vmul.f32 0.0, %v512_v37  ;;  %v564_v41 = vsel %vm563_vm4, %v796_v14, %v560_v35  ;;  %v517_v42 = vmul.f32 %v925_v11, %v512_v37 }
 0x24d   : > { %v616_v43 = vsel %vm615_vm5, %v798_v16, %v612_v38  ;;  %v570_v45 = vmul.f32 %v927_v12, %v564_v41  ;;  %v569_v47 = vmul.f32 0.0, %v564_v41  ;;  %v644_v12 = vld [vmem:[%s979_s4 + $0x8] sm:$0xff] }
 0x24e   : > { %v520_v44 = vadd.f32 %v518_v40, %v466_v36  ;;  %v519_v46 = vadd.f32 %v517_v42, %v465_v39  ;;  %v622_v49 = vmul.f32 %v929_v13, %v616_v43  ;;  %v621_v51 = vmul.f32 0.0, %v616_v43 }
 0x24f   : > { %v625_v13 = vsub.f32 %v895_v54, %v943_v4  ;;  %v626_v54 = vsub.f32 %v902_v63, %v945_v6 }
 0x250   : > { %v572_v48 = vadd.f32 %v570_v45, %v520_v44  ;;  %v571_v50 = vadd.f32 %v569_v47, %v519_v46 }
 0x252   : > { %v624_v11 = vadd.f32 %v622_v49, %v572_v48  ;;  %v623_v55 = vadd.f32 %v621_v51, %v571_v50 }
 0x254   : > { %v630_v56 = vmul.f32 %v628_v10, %v624_v11  ;;  %v629_v57 = vmul.f32 %v627_v52, %v623_v55 }
 0x256   : > { %638 = vperm.xlu1 %788, %v630_v56   ;;  %633 = vperm.xlu2 %789, %v629_v57  }
 0x25e   : > { %652 = vperm.xlu2 %789, %v644_v12  }
 0x2b0   : > { %v634_v58 = vpop.permute.xlu2 %633 }
 0x2b1   : > { %v641_v59 = vmul.f32 %v634_v58, %v625_v13 }
 0x2b3   : > { %v655_v61 = vadd.f32 %v648_v60, %v641_v59 }
 0x2b5   : > { %v657_v62 = vmax.f32 %v655_v61, 0.0 }
 0x2b7   : > { %v659_v0 = vmul.f32 %v893_v53, %v657_v62 }
 0x2b8   : > { %v653_v4 = vpop.permute.xlu2 %652 }
 0x2b9   : > { %v663_v1 = vpack.c.bf16 %v659_v0, %v659_v0 }
 0x2bb   : > { %666 = vst.msk [vmem:[%s917_s9 + $0x4] sm:$0xf] %vm665_vm8, %v663_v1 }
 0x2bc   : > { %671 = vst.msk [vmem:[%s917_s9 + $0x4] sm:$0xff] %vm670_vm9, %v816_v32 }
 0x2c8   : > { %v639_v2 = vpop.permute.xlu1 %638 }
 0x2c9   : > { %v642_v3 = vmul.f32 %v639_v2, %v626_v54 }
 0x2cb   : > { %v656_v5 = vadd.f32 %v653_v4, %v642_v3 }
 0x2cd   : > { %v658_v7 = vmax.f32 %v656_v5, 0.0 }
 0x2cf   : > { %v660_v8 = vmul.f32 %v893_v53, %v658_v7 }
 0x2d1   : > { %v664_v9 = vpack.c.bf16 %v660_v8, %v660_v8 }
 0x2d3   : > { %667 = vst.msk [vmem:[%s917_s9 + $0x10] sm:$0xf] %vm665_vm8, %v664_v9 }
 0x2d4   : > { %672 = vst.msk [vmem:[%s917_s9 + $0x10] sm:$0xff] %vm670_vm9, %v816_v32 }
 0x2d5 PF: > { %s16_s21 = sadd.s32 1, %s805_s21  }
 0x2d6   : > { %p13_p4 = scmp.ge.s32.totalorder %s16_s21, 4  }
 0x2d8   :  { %15 = sbr.rel (!%p13_p4) target bundleno = 1 (0x1), region = 74 }

// kernel: semantic_fpn_forward.40
= control target key start
LH: loop header
LB: loop body
LE: loop exit
PB: predicated region body
PF: predicated region fallthrough
CT: control target
= control target key end

     0   :  { %s853_s21 = smov 0   ;;  %s975_s0 = inlined_call_operand.vmem [shape: bf16[2,16,356], index: 0, kind: input, shape index: {}]   ;;  %s976_s1 = inlined_call_operand.vmem [shape: bf16[16,144], index: 1, kind: input, shape index: {}]   ;;  %s977_s2 = inlined_call_operand.vmem [shape: f32[16,1], index: 2, kind: input, shape index: {}]   ;;  %s978_s3 = inlined_call_operand.vmem [shape: f32[16,1], index: 3, kind: input, shape index: {}]   ;;  %s979_s4 = inlined_call_operand.vmem [shape: f32[16,1], index: 4, kind: input, shape index: {}]   ;;  %s980_s5 = inlined_call_operand.vmem [shape: f32[1,100], index: 5, kind: input, shape index: {}]   ;;  %s981_s6 = inlined_call_operand.vmem [shape: bf16[2,16,356], index: 6, kind: output, shape index: {}]  }
   0x1 LB: > { %s728_s22 = sadd.s32 4294967295, %s805_s21   ;;  %p732_p0 = scmp.ge.s32.totalorder %s805_s21, 1  ;;  %s805_s21 = sphi %s853_s21, %s16_s21  }
   0x2   : > { %p212_p1 = scmp.lt.s32.totalorder %s805_s21, 3 }
   0x4   : > { %p213_p2 = pnand %p732_p0, %p212_p1 }
   0x5   : > { %p242_p3 = scmp.lt.s32.totalorder (!%p213_p2), %s728_s22, 1  ;;  %s807_s27 = smov (!%p213_p2), 116  }
   0x6   : > { %216 = sbr.rel (%p213_p2) target bundleno = 725 (0x2d5), region = 44  ;;  %s808_s28 = smov (!%p213_p2), 107  }
   0x7   : > { %s809_s29 = smov (!%p213_p2), 118   ;;  %s810_s30 = smov (!%p213_p2), 117  }
   0x8   : > { %s811_s7 = smov (!%p213_p2), 108   ;;  %s812_s8 = smov (!%p213_p2), 126  }
   0x9   : > { %s813_s9 = smov (!%p213_p2), 127   ;;  %s814_s10 = smov (!%p213_p2), 106  }
   0xa   : > { %s815_s11 = smov (!%p213_p2), 11  }
   0xb   : > { %s983_s22 = smov (!%p242_p3, %s728_s22), 1  ;;  %vm281_vm0 = vcmask 965632   ;;  %vm275_vm1 = vcmask 1031168   ;;  %vm269_vm2 = vcmask 1039360   ;;  %v765_v28 = vld [vmem:[%s976_s1 + $0x4] sm:$0xf] }
   0xc   : > { %s767_s23 = smul.u32 24, %s983_s22  ;;  %v751_v29 = vld [vmem:[%s976_s1 + $0x8] sm:$0xf0]  ;;  %v300_v30 = vld [vmem:[%s977_s2] sm:$0xff]  ;;  %v816_v32 = vmov 0   ;;  %vm361_vm3 = vcmask 130048  }
   0xd   : > { %v301_v31 = vld [vmem:[%s977_s2 + $0x8] sm:$0xff]  ;;  %787 = vset.pattern.permute.xlu0 %v816_v32  ;;  %788 = vset.pattern.permute.xlu1 %v816_v32  ;;  %v754_v35 = vor.u32 %v765_v28, %v751_v29  ;;  %vm347_vm4 = vcmask 89088   ;;  %v749_v43 = vld [vmem:[%s976_s1] sm:$0xf]  ;;  %vm399_vm5 = vcmask 818176  }
   0xe   : > { %s246_s26 = scalar_lea.vmem %s975_s0, %s767_s23  ;;  %789 = vset.pattern.permute.xlu2 %v816_v32  ;;  %v766_v44 = vld [vmem:[%s976_s1 + $0x4] sm:$0xf0]  ;;  %v893_v53 = vld [vmem:[%s980_s5] ss:$0 sm:$0xff] }
   0xf   : > { %v745_v0 = vld [vmem:[%s246_s26 + $0x4] sm:$0xf]  ;;  %v764_v1 = vld [vmem:[%s246_s26 + $0xc] sm:$0xf0]  ;;  %v737_v2 = vld [vmem:[%s246_s26] sm:$0xf]  ;;  %v750_v48 = vor.u32 %v766_v44, %v749_v43 }
  0x10   : > { %v746_v3 = vor.u32 %v764_v1, %v745_v0  ;;  %v763_v4 = vld [vmem:[%s246_s26 + $0x8] sm:$0xf0]  ;;  %v762_v6 = vld [vmem:[%s246_s26 + $0x4] sm:$0xf]  ;;  %v739_v7 = vld [vmem:[%s246_s26 + $0xc] sm:$0xf0] }
  0x11   : > { %v738_v5 = vor.u32 %v763_v4, %v737_v2  ;;  %v742_v8 = vor.u32 %v762_v6, %v739_v7  ;;  %v643_v4 = vld [vmem:[%s979_s4] sm:$0xff] }
  0x12   : > { %290 = vrot.lane.b32.xlu1 %v746_v3, %s807_s27  ;;  %294 = vrot.lane.b32.xlu0 %v746_v3, %s808_s28 }
  0x13   : > { %277 = vrot.lane.b32.xlu2 %v738_v5, %s809_s29 }
  0x1a   : > { %288 = vrot.lane.b32.xlu1 %v746_v3, %s810_s30  ;;  %292 = vrot.lane.b32.xlu0 %v746_v3, %s811_s7 }
  0x1b   : > { %279 = vrot.lane.b32.xlu2 %v742_v8, %s809_s29 }
  0x22   : > { %271 = vrot.lane.b32.xlu0 %v738_v5, %s812_s8  ;;  %273 = vrot.lane.b32.xlu1 %v742_v8, %s812_s8 }
  0x23   : > { %265 = vrot.lane.b32.xlu2 %v738_v5, %s813_s9 }
  0x2a   : > { %267 = vrot.lane.b32.xlu0 %v742_v8, %s813_s9  ;;  %296 = vrot.lane.b32.xlu1 %v746_v3, %s814_s10  ;;  %s917_s9 = scalar_lea.vmem %s981_s6, %s767_s23 }
  0x2b   : > { %661 = vst [vmem:[%s917_s9] sm:$0xf] %v816_v32 }
  0x2c   : > { %662 = vst [vmem:[%s917_s9 + $0xc] sm:$0xf] %v816_v32 }
  0x6d   : > { %v278_v9 = vpop.permute.xlu2 %277 }
  0x75   : > { %v280_v14 = vpop.permute.xlu2 %279 }
  0x76   : > { %v282_v17 = vsel %vm281_vm0, %v278_v9, %v280_v14  ;;  %v817_v9 = vmov 0.0  }
  0x7d   : > { %v266_v19 = vpop.permute.xlu2 %265 }
  0x84   : > { %v291_v10 = vpop.permute.xlu1 %290  ;;  %v295_v11 = vpop.permute.xlu0 %294 }
  0x85   : > { %343 = vrot.lane.b32.xlu2 %v295_v11, %s815_s11  ;;  %339 = vrot.lane.b32.xlu1 %v291_v10, %s815_s11 }
  0x8c   : > { %v289_v12 = vpop.permute.xlu1 %288  ;;  %v293_v13 = vpop.permute.xlu0 %292 }
  0x8d   : > { %341 = vrot.lane.b32.xlu0 %v293_v13, %s815_s11  ;;  %337 = vrot.lane.b32.xlu2 %v289_v12, %s815_s11 }
  0x8e   : > { %335 = vrot.lane.b32.xlu1 %v280_v14, %s815_s11 }
  0x94   : > { %v272_v15 = vpop.permute.xlu0 %271  ;;  %v274_v16 = vpop.permute.xlu1 %273 }
  0x95   : > { %333 = vrot.lane.b32.xlu0 %v282_v17, %s815_s11  ;;  %v276_v18 = vsel %vm275_vm1, %v272_v15, %v274_v16 }
  0x96   : > { %329 = vrot.lane.b32.xlu2 %v276_v18, %s815_s11 }
  0x9c   : > { %v268_v20 = vpop.permute.xlu0 %267  ;;  %v297_v22 = vpop.permute.xlu1 %296 }
  0x9d   : > { %331 = vrot.lane.b32.xlu0 %v274_v16, %s815_s11  ;;  %v270_v21 = vsel %vm269_vm2, %v266_v19, %v268_v20 }
  0x9e   : > { %327 = vrot.lane.b32.xlu2 %v268_v20, %s815_s11  ;;  %325 = vrot.lane.b32.xlu1 %v270_v21, %s815_s11 }
  0xa5   : > { %321 = vrot.lane.b32.xlu0 %v738_v5, %s815_s11  ;;  %v414_v5 = vlaneseq }
  0xa6   : > { %323 = vrot.lane.b32.xlu1 %v742_v8, %s815_s11  ;;  %345 = vrot.lane.b32.xlu2 %v297_v22, %s815_s11 }
  0xa7   : > { %v415_v6 = vshrl.u32 %v414_v5, 7 }
  0xa9   : > { %v416_v7 = vadd.s32 8, %v415_v6  ;;  %vm419_vm6 = vcmp.lt.s32.totalorder %v415_v6, 4  ;;  %vm469_vm7 = vcmp.ge.s32.totalorder %v415_v6, 4 }
  0xaa   : > { %v923_v10 = vsel %vm419_vm6, 1.0, %v817_v9  ;;  %v925_v11 = vsel %vm469_vm7, 1.0, %v817_v9  ;;  %vm668_vm6 = vcmask 1044256   ;;  %vm669_vm7 = vcmask 818180  }
  0xab   : > { %vm524_vm8 = vcmp.lt.s32.totalorder %v416_v7, 12  ;;  %vm574_vm9 = vcmp.ge.s32.totalorder %v416_v7, 12 }
  0xac   : > { %v927_v12 = vsel %vm524_vm8, 1.0, %v817_v9  ;;  %v929_v13 = vsel %vm574_vm9, 1.0, %v817_v9  ;;  %vm665_vm8 = vcmask 814080   ;;  %vm670_vm9 = vmor %vm669_vm7, %vm668_vm6 }
  0xad   : > { %304 = vperm.xlu0 %787, %v300_v30  }
  0xae   : > { %309 = vperm.xlu1 %788, %v301_v31  }
  0xdf   : > { %v344_v23 = vpop.permute.xlu2 %343 }
  0xe0   : > { %365 = vmatpush.bf16.msra.mxu0 %v344_v23 }
  0xe7   : > { %v338_v24 = vpop.permute.xlu2 %337 }
  0xf0   : > { %v330_v25 = vpop.permute.xlu2 %329 }
  0xf7   : > { %v340_v27 = vpop.permute.xlu1 %339 }
  0xf8   : > { %v328_v26 = vpop.permute.xlu2 %327 }
  0xff   : > { %v342_v33 = vpop.permute.xlu0 %341 }
 0x100   : > { %366 = vmatpush.bf16.msra.mxu0 %v342_v33  ;;  %v346_v34 = vpop.permute.xlu2 %345  ;;  %v336_v36 = vpop.permute.xlu1 %335 }
 0x101   : > { %386 = vmatpush.bf16.msra.mxu1 %v346_v34 }
 0x104   : > { %367 = vmatpush.bf16.msra.mxu0 %v340_v27  ;;  %755 = vmatmul.msk.bf16.vlgmr.msra.gmra.mxu1 %vm361_vm3, %v754_v35 }
 0x107   : > { %v334_v37 = vpop.permute.xlu0 %333 }
 0x108   : > { %368 = vmatpush.bf16.msra.mxu0 %v338_v24  ;;  %v351_v38 = vsel %vm347_vm4, %v334_v37, %v336_v36 }
 0x10c   : > { %369 = vmatpush.bf16.msra.mxu0 %v351_v38 }
 0x10f   : > { %v332_v39 = vpop.permute.xlu0 %331 }
 0x110   : > { %v326_v40 = vpop.permute.xlu1 %325  ;;  %v350_v41 = vsel %vm347_vm4, %v330_v25, %v332_v39 }
 0x111   : > { %370 = vmatpush.bf16.msra.mxu0 %v350_v41  ;;  %v349_v42 = vsel %vm347_vm4, %v326_v40, %v328_v26 }
 0x115   : > { %371 = vmatpush.bf16.msra.mxu0 %v349_v42 }
 0x117   : > { %v322_v45 = vpop.permute.xlu0 %321 }
 0x118   : > { %v324_v46 = vpop.permute.xlu1 %323 }
 0x119   : > { %v348_v47 = vsel %vm347_vm4, %v322_v45, %v324_v46 }
 0x11a   : > { %372 = vmatpush.bf16.msra.mxu0 %v348_v47 }
 0x11d   : > { %373 = vmatmul.bf16.vlgmr.msra.gmra.mxu0 %v750_v48 }
 0x11f   : > { %v305_v49 = vpop.permute.xlu0 %304 }
 0x120   : > { %v310_v56 = vpop.permute.xlu1 %309 }
 0x181   : > { %v388_v50 = vpop.f32.mrf.mxu1 }
 0x189   : > { %v390_v62 = vpop.f32.mrf.mxu1 }
 0x19a   : > { %v374_v51 = vpop.f32.mrf.mxu0 }
 0x19b   : > { %v375_v52 = vadd.f32 %v374_v51, %v305_v49 }
 0x19d   : > { %v895_v54 = vadd.f32 %v388_v50, %v375_v52 }
 0x19f   : > { %v397_v55 = vmul.f32 %v893_v53, %v895_v54 }
 0x1a1   : > { %v400_v57 = vsel %vm399_vm5, %v397_v55, 0.0  ;;  %v406_v58 = vmul.f32 %v397_v55, %v895_v54 }
 0x1a2   : > { %v376_v59 = vpop.f32.mrf.mxu0  ;;  %401 = vadd.xlane.f32.xlu2 %v400_v57 }
 0x1a3   : > { %v377_v60 = vadd.f32 %v376_v59, %v310_v56  ;;  %v408_v61 = vsel %vm399_vm5, %v406_v58, 0.0 }
 0x1a4   : > { %409 = vadd.xlane.f32.xlu0 %v408_v61 }
 0x1a5   : > { %v902_v63 = vadd.f32 %v390_v62, %v377_v60 }
 0x1a7   : > { %v398_v0 = vmul.f32 %v893_v53, %v902_v63 }
 0x1a9   : > { %v403_v1 = vsel %vm399_vm5, %v398_v0, 0.0  ;;  %v407_v2 = vmul.f32 %v398_v0, %v902_v63 }
 0x1aa   : > { %404 = vadd.xlane.f32.xlu1 %v403_v1 }
 0x1ab   : > { %v411_v3 = vsel %vm399_vm5, %v407_v2, 0.0 }
 0x1ac   : > { %412 = vadd.xlane.f32.xlu2 %v411_v3 }
 0x1b8   : > { %647 = vperm.xlu0 %787, %v643_v4  }
 0x215   : > { %v402_v8 = vpop.xlane.xlu2 %401 }
 0x216   : > { %v427_v15 = vmul.f32 %v923_v10, %v402_v8  ;;  %v479_v16 = vmul.f32 %v925_v11, %v402_v8  ;;  %v531_v18 = vmul.f32 0.0, %v402_v8 }
 0x217   : > { %v410_v14 = vpop.xlane.xlu0 %409 }
 0x218   : > { %v436_v22 = vmul.f32 %v923_v10, %v410_v14  ;;  %v488_v23 = vmul.f32 %v925_v11, %v410_v14  ;;  %v540_v29 = vmul.f32 0.0, %v410_v14 }
 0x21d   : > { %v405_v17 = vpop.xlane.xlu1 %404 }
 0x21e   : > { %v428_v19 = vmul.f32 0.0, %v405_v17  ;;  %v532_v20 = vmul.f32 %v927_v12, %v405_v17  ;;  %v584_v21 = vmul.f32 %v929_v13, %v405_v17 }
 0x21f   : > { %v413_v24 = vpop.xlane.xlu2 %412 }
 0x220   : > { %v429_v25 = vadd.f32 %v428_v19, %v427_v15  ;;  %v481_v26 = vadd.f32 %v479_v16, %v428_v19  ;;  %v533_v27 = vadd.f32 %v532_v20, %v531_v18  ;;  %v585_v28 = vadd.f32 %v584_v21, %v531_v18 }
 0x221   : > { %v437_v30 = vmul.f32 0.0, %v413_v24  ;;  %v541_v31 = vmul.f32 %v927_v12, %v413_v24  ;;  %v593_v33 = vmul.f32 %v929_v13, %v413_v24 }
 0x222   : > { %v430_v34 = vrot.slane %v429_v25, 4  ;;  %v482_v35 = vrot.slane %v481_v26, 4  ;;  %v534_v36 = vrot.slane %v533_v27, 4  ;;  %v586_v37 = vrot.slane %v585_v28, 4 }
 0x223   : > { %v438_v38 = vadd.f32 %v437_v30, %v436_v22  ;;  %v490_v39 = vadd.f32 %v488_v23, %v437_v30  ;;  %v542_v40 = vadd.f32 %v541_v31, %v540_v29  ;;  %v594_v41 = vadd.f32 %v593_v33, %v540_v29 }
 0x224   : > { %v431_v42 = vadd.f32 %v430_v34, %v429_v25  ;;  %v483_v43 = vadd.f32 %v482_v35, %v481_v26  ;;  %v535_v44 = vadd.f32 %v534_v36, %v533_v27  ;;  %v587_v45 = vadd.f32 %v586_v37, %v585_v28 }
 0x225   : > { %v439_v46 = vrot.slane %v438_v38, 4  ;;  %v491_v47 = vrot.slane %v490_v39, 4  ;;  %v543_v48 = vrot.slane %v542_v40, 4  ;;  %v595_v49 = vrot.slane %v594_v41, 4 }
 0x226   : > { %v432_v50 = vrot.slane %v431_v42, 2  ;;  %v484_v51 = vrot.slane %v483_v43, 2  ;;  %v536_v52 = vrot.slane %v535_v44, 2  ;;  %v588_v55 = vrot.slane %v587_v45, 2 }
 0x227   : > { %v440_v56 = vadd.f32 %v439_v46, %v438_v38  ;;  %v492_v57 = vadd.f32 %v491_v47, %v490_v39  ;;  %v544_v58 = vadd.f32 %v543_v48, %v542_v40  ;;  %v596_v59 = vadd.f32 %v595_v49, %v594_v41 }
 0x228   : > { %v433_v60 = vadd.f32 %v432_v50, %v431_v42  ;;  %v485_v61 = vadd.f32 %v484_v51, %v483_v43  ;;  %v537_v62 = vadd.f32 %v536_v52, %v535_v44  ;;  %v589_v0 = vadd.f32 %v588_v55, %v587_v45 }
 0x229   : > { %v441_v1 = vrot.slane %v440_v56, 2  ;;  %v493_v2 = vrot.slane %v492_v57, 2  ;;  %v545_v3 = vrot.slane %v544_v58, 2  ;;  %v597_v4 = vrot.slane %v596_v59, 2 }
 0x22a   : > { %v434_v5 = vrot.slane %v433_v60, 1  ;;  %v486_v6 = vrot.slane %v485_v61, 1  ;;  %v538_v7 = vrot.slane %v537_v62, 1  ;;  %v590_v8 = vrot.slane %v589_v0, 1 }
 0x22b   : > { %v442_v9 = vadd.f32 %v441_v1, %v440_v56  ;;  %v494_v14 = vadd.f32 %v493_v2, %v492_v57  ;;  %v546_v15 = vadd.f32 %v545_v3, %v544_v58  ;;  %v598_v16 = vadd.f32 %v597_v4, %v596_v59 }
 0x22c   : > { %v435_v17 = vadd.f32 %v434_v5, %v433_v60  ;;  %v487_v18 = vadd.f32 %v486_v6, %v485_v61  ;;  %v539_v19 = vadd.f32 %v538_v7, %v537_v62  ;;  %v591_v20 = vadd.f32 %v590_v8, %v589_v0 }
 0x22d   : > { %v443_v21 = vrot.slane %v442_v9, 1  ;;  %v495_v22 = vrot.slane %v494_v14, 1  ;;  %v547_v23 = vrot.slane %v546_v15, 1  ;;  %v599_v24 = vrot.slane %v598_v16, 1 }
 0x22e   : > { %v445_v25 = vmul.f32 0.00390625, %v435_v17  ;;  %v497_v26 = vmul.f32 0.00390625, %v487_v18  ;;  %v549_v27 = vmul.f32 0.00390625, %v539_v19  ;;  %v601_v28 = vmul.f32 0.00390625, %v591_v20 }
 0x22f   : > { %v444_v29 = vadd.f32 %v443_v21, %v442_v9  ;;  %v496_v30 = vadd.f32 %v495_v22, %v494_v14  ;;  %v548_v31 = vadd.f32 %v547_v23, %v546_v15  ;;  %v600_v33 = vadd.f32 %v599_v24, %v598_v16 }
 0x230   : > { %v447_v34 = vmul.f32 %v445_v25, %v445_v25  ;;  %v499_v35 = vmul.f32 %v497_v26, %v497_v26  ;;  %v551_v36 = vmul.f32 %v549_v27, %v549_v27  ;;  %v603_v37 = vmul.f32 %v601_v28, %v601_v28 }
 0x231   : > { %v446_v38 = vmul.f32 0.00390625, %v444_v29  ;;  %v498_v39 = vmul.f32 0.00390625, %v496_v30  ;;  %v550_v40 = vmul.f32 0.00390625, %v548_v31  ;;  %v602_v41 = vmul.f32 0.00390625, %v600_v33 }
 0x232   : > { %v461_v42 = vmul.f32 %v923_v10, %v445_v25  ;;  %v513_v43 = vmul.f32 %v925_v11, %v497_v26  ;;  %v565_v44 = vmul.f32 0.0, %v549_v27  ;;  %v462_v50 = vmul.f32 0.0, %v445_v25 }
 0x233   : > { %v448_v45 = vsub.f32 %v446_v38, %v447_v34  ;;  %v500_v46 = vsub.f32 %v498_v39, %v499_v35  ;;  %v552_v47 = vsub.f32 %v550_v40, %v551_v36  ;;  %v604_v48 = vsub.f32 %v602_v41, %v603_v37 }
 0x234   : > { %v515_v49 = vadd.f32 %v513_v43, %v461_v42  ;;  %v514_v51 = vmul.f32 0.0, %v497_v26  ;;  %v566_v52 = vmul.f32 %v927_v12, %v549_v27  ;;  %v617_v60 = vmul.f32 0.0, %v601_v28 }
 0x235   : > { %v449_v55 = vmax.f32 %v448_v45, 0.0  ;;  %v501_v56 = vmax.f32 %v500_v46, 0.0  ;;  %v553_v57 = vmax.f32 %v552_v47, 0.0  ;;  %v605_v58 = vmax.f32 %v604_v48, 0.0 }
 0x236   : > { %v567_v59 = vadd.f32 %v565_v44, %v515_v49  ;;  %v516_v61 = vadd.f32 %v514_v51, %v462_v50  ;;  %v618_v62 = vmul.f32 %v929_v13, %v601_v28 }
 0x237   : > { %v450_v0 = vadd.f32 1e-05, %v449_v55  ;;  %v502_v1 = vadd.f32 1e-05, %v501_v56  ;;  %v554_v2 = vadd.f32 1e-05, %v553_v57 }
 0x238   : > { %v606_v3 = vadd.f32 1e-05, %v605_v58  ;;  %v943_v4 = vadd.f32 %v617_v60, %v567_v59  ;;  %v568_v5 = vadd.f32 %v566_v52, %v516_v61  ;;  %v627_v52 = vld [vmem:[%s978_s3] sm:$0xff]  ;;  %v648_v60 = vpop.permute.xlu0 %647 }
 0x239   : > { %791 = vrsqrt.f32 %v450_v0  ;;  %vm457_vm12 = vweird.f32 %v450_v0  ;;  %vm509_vm15 = vweird.f32 %v502_v1  ;;  %vm561_vm2 = vweird.f32 %v554_v2 }
 0x23a   : > { %793 = vrsqrt.f32 %v502_v1  ;;  %v945_v6 = vadd.f32 %v618_v62, %v568_v5  ;;  %vm613_vm3 = vweird.f32 %v606_v3 }
 0x23b   : > { %795 = vrsqrt.f32 %v554_v2 }
 0x23c   : > { %797 = vrsqrt.f32 %v606_v3 }
 0x23f   : > { %v792_v7 = vpop.eup %791 }
 0x240   : > { %v794_v8 = vpop.eup %793  ;;  %v452_v9 = vmul.f32 %v792_v7, %v450_v0  ;;  %vm458_vm10 = vweird.f32 %v792_v7 }
 0x241   : > { %v796_v14 = vpop.eup %795  ;;  %v504_v15 = vmul.f32 %v794_v8, %v502_v1  ;;  %vm510_vm11 = vweird.f32 %v794_v8  ;;  %vm459_vm14 = vmor %vm457_vm12, %vm458_vm10 }
 0x242   : > { %v798_v16 = vpop.eup %797  ;;  %v556_v17 = vmul.f32 %v796_v14, %v554_v2  ;;  %v453_v18 = vmul.f32 %v792_v7, %v452_v9  ;;  %vm562_vm13 = vweird.f32 %v796_v14  ;;  %vm511_vm1 = vmor %vm509_vm15, %vm510_vm11 }
 0x243   : > { %v505_v19 = vmul.f32 %v794_v8, %v504_v15  ;;  %v608_v20 = vmul.f32 %v798_v16, %v606_v3  ;;  %vm614_vm0 = vweird.f32 %v798_v16  ;;  %vm563_vm4 = vmor %vm561_vm2, %vm562_vm13 }
 0x244   : > { %v454_v21 = vmul.f32 0.5, %v453_v18  ;;  %v557_v22 = vmul.f32 %v796_v14, %v556_v17  ;;  %vm615_vm5 = vmor %vm613_vm3, %vm614_vm0 }
 0x245   : > { %v506_v23 = vmul.f32 0.5, %v505_v19  ;;  %v609_v24 = vmul.f32 %v798_v16, %v608_v20 }
 0x246   : > { %v455_v25 = vsub.f32 1.5, %v454_v21  ;;  %v558_v26 = vmul.f32 0.5, %v557_v22 }
 0x247   : > { %v507_v27 = vsub.f32 1.5, %v506_v23  ;;  %v610_v28 = vmul.f32 0.5, %v609_v24 }
 0x248   : > { %v456_v29 = vmul.f32 %v792_v7, %v455_v25  ;;  %v559_v30 = vsub.f32 1.5, %v558_v26 }
 0x249   : > { %v508_v31 = vmul.f32 %v794_v8, %v507_v27  ;;  %v611_v33 = vsub.f32 1.5, %v610_v28 }
 0x24a   : > { %v460_v34 = vsel %vm459_vm14, %v792_v7, %v456_v29  ;;  %v560_v35 = vmul.f32 %v796_v14, %v559_v30 }
 0x24b   : > { %v466_v36 = vmul.f32 0.0, %v460_v34  ;;  %v512_v37 = vsel %vm511_vm1, %v794_v8, %v508_v31  ;;  %v612_v38 = vmul.f32 %v798_v16, %v611_v33  ;;  %v465_v39 = vmul.f32 %v923_v10, %v460_v34  ;;  %v628_v10 = vld [vmem:[%s978_s3 + $0x8] sm:$0xff] }
 0x24c   : > { %v518_v40 = vmul.f32 0.0, %v512_v37  ;;  %v564_v41 = vsel %vm563_vm4, %v796_v14, %v560_v35  ;;  %v517_v42 = vmul.f32 %v925_v11, %v512_v37 }
 0x24d   : > { %v616_v43 = vsel %vm615_vm5, %v798_v16, %v612_v38  ;;  %v570_v45 = vmul.f32 %v927_v12, %v564_v41  ;;  %v569_v47 = vmul.f32 0.0, %v564_v41  ;;  %v644_v12 = vld [vmem:[%s979_s4 + $0x8] sm:$0xff] }
 0x24e   : > { %v520_v44 = vadd.f32 %v518_v40, %v466_v36  ;;  %v519_v46 = vadd.f32 %v517_v42, %v465_v39  ;;  %v622_v49 = vmul.f32 %v929_v13, %v616_v43  ;;  %v621_v51 = vmul.f32 0.0, %v616_v43 }
 0x24f   : > { %v625_v13 = vsub.f32 %v895_v54, %v943_v4  ;;  %v626_v54 = vsub.f32 %v902_v63, %v945_v6 }
 0x250   : > { %v572_v48 = vadd.f32 %v570_v45, %v520_v44  ;;  %v571_v50 = vadd.f32 %v569_v47, %v519_v46 }
 0x252   : > { %v624_v11 = vadd.f32 %v622_v49, %v572_v48  ;;  %v623_v55 = vadd.f32 %v621_v51, %v571_v50 }
 0x254   : > { %v630_v56 = vmul.f32 %v628_v10, %v624_v11  ;;  %v629_v57 = vmul.f32 %v627_v52, %v623_v55 }
 0x256   : > { %638 = vperm.xlu1 %788, %v630_v56   ;;  %633 = vperm.xlu2 %789, %v629_v57  }
 0x25e   : > { %652 = vperm.xlu2 %789, %v644_v12  }
 0x2b0   : > { %v634_v58 = vpop.permute.xlu2 %633 }
 0x2b1   : > { %v641_v59 = vmul.f32 %v634_v58, %v625_v13 }
 0x2b3   : > { %v655_v61 = vadd.f32 %v648_v60, %v641_v59 }
 0x2b5   : > { %v657_v62 = vmax.f32 %v655_v61, 0.0 }
 0x2b7   : > { %v659_v0 = vmul.f32 %v893_v53, %v657_v62 }
 0x2b8   : > { %v653_v4 = vpop.permute.xlu2 %652 }
 0x2b9   : > { %v663_v1 = vpack.c.bf16 %v659_v0, %v659_v0 }
 0x2bb   : > { %666 = vst.msk [vmem:[%s917_s9 + $0x4] sm:$0xf] %vm665_vm8, %v663_v1 }
 0x2bc   : > { %671 = vst.msk [vmem:[%s917_s9 + $0x4] sm:$0xff] %vm670_vm9, %v816_v32 }
 0x2c8   : > { %v639_v2 = vpop.permute.xlu1 %638 }
 0x2c9   : > { %v642_v3 = vmul.f32 %v639_v2, %v626_v54 }
 0x2cb   : > { %v656_v5 = vadd.f32 %v653_v4, %v642_v3 }
 0x2cd   : > { %v658_v7 = vmax.f32 %v656_v5, 0.0 }
 0x2cf   : > { %v660_v8 = vmul.f32 %v893_v53, %v658_v7 }
 0x2d1   : > { %v664_v9 = vpack.c.bf16 %v660_v8, %v660_v8 }
 0x2d3   : > { %667 = vst.msk [vmem:[%s917_s9 + $0x10] sm:$0xf] %vm665_vm8, %v664_v9 }
 0x2d4   : > { %672 = vst.msk [vmem:[%s917_s9 + $0x10] sm:$0xff] %vm670_vm9, %v816_v32 }
 0x2d5 PF: > { %s16_s21 = sadd.s32 1, %s805_s21  }
 0x2d6   : > { %p13_p4 = scmp.ge.s32.totalorder %s16_s21, 4  }
 0x2d8   :  { %15 = sbr.rel (!%p13_p4) target bundleno = 1 (0x1), region = 74 }

// kernel: semantic_fpn_forward.28
= control target key start
LH: loop header
LB: loop body
LE: loop exit
PB: predicated region body
PF: predicated region fallthrough
CT: control target
= control target key end

     0   :  { %s383_s15 = smov 0   ;;  %s412_s0 = inlined_call_operand.vmem [shape: bf16[2,16,292], index: 0, kind: input, shape index: {}]   ;;  %s413_s1 = inlined_call_operand.vmem [shape: bf16[16,16], index: 1, kind: input, shape index: {}]   ;;  %s414_s2 = inlined_call_operand.vmem [shape: f32[16,1], index: 2, kind: input, shape index: {}]   ;;  %s415_s3 = inlined_call_operand.vmem [shape: f32[1,36], index: 3, kind: input, shape index: {}]   ;;  %s416_s4 = inlined_call_operand.vmem [shape: bf16[2,16,292], index: 4, kind: output, shape index: {}]  }
   0x1 LB: > { %s317_s16 = sadd.s32 4294967295, %s355_s15   ;;  %p321_p0 = scmp.ge.s32.totalorder %s355_s15, 1  ;;  %s355_s15 = sphi %s383_s15, %s14_s15  }
   0x2   : > { %p162_p1 = scmp.lt.s32.totalorder %s355_s15, 3 }
   0x4   : > { %p163_p2 = pnand %p321_p0, %p162_p1 }
   0x5   : > { %p188_p3 = scmp.lt.s32.totalorder (!%p163_p2), %s317_s16, 1 }
   0x6   : > { %166 = sbr.rel (%p163_p2) target bundleno = 163 (0xa3), region = 36 }
   0xb   : > { %v203_v0 = vld [vmem:[%s414_s2] sm:$0xff]  ;;  %v357_v1 = vmov 0   ;;  %s418_s16 = smov (!%p188_p3, %s317_s16), 1  ;;  %v204_v4 = vld [vmem:[%s414_s2 + $0x8] sm:$0xff]  ;;  %vm226_vm0 = vcmask 130048   ;;  %vm257_vm1 = vcmask 1043744  }
   0xc   : > { %347 = vset.pattern.permute.xlu0 %v357_v1  ;;  %s337_s19 = smul.u32 24, %s418_s16  ;;  %v336_v6 = vld [vmem:[%s413_s1] sm:$0xff]  ;;  %vm258_vm2 = vcmask 293892   ;;  %vm254_vm3 = vcmask 289792  }
   0xd   : > { %207 = vperm.xlu0 %347, %v203_v0   ;;  %v348_v8 = vld [vmem:[%s415_s3] ss:$0 sm:$0xff]  ;;  %vm259_vm4 = vmor %vm258_vm2, %vm257_vm1 }
   0xe   : > { %s192_s22 = scalar_lea.vmem %s412_s0, %s337_s19  ;;  %s197_s25 = scalar_lea.vmem %s416_s4, %s337_s19 }
   0xf   : > { %v330_v2 = vld [vmem:[%s192_s22 + $0x4] sm:$0xf]  ;;  %v335_v3 = vld [vmem:[%s192_s22 + $0xc] sm:$0xf0]  ;;  %250 = vst [vmem:[%s197_s25] sm:$0xf] %v357_v1 }
  0x10   : > { %v331_v5 = vor.u32 %v335_v3, %v330_v2  ;;  %251 = vst [vmem:[%s197_s25 + $0xc] sm:$0xf] %v357_v1 }
  0x12   : > { %237 = vmatpush.bf16.msra.mxu0 %v331_v5 }
  0x15   : > { %212 = vperm.xlu0 %347, %v204_v4   ;;  %332 = vmatmul.msk.bf16.vlgmr.msra.gmra.mxu0 %vm226_vm0, %v336_v6 }
  0x7f   : > { %v208_v7 = vpop.permute.xlu0 %207 }
  0x87   : > { %v213_v13 = vpop.permute.xlu0 %212 }
  0x92   : > { %v239_v9 = vpop.f32.mrf.mxu0 }
  0x93   : > { %v240_v10 = vadd.f32 %v239_v9, %v208_v7 }
  0x95   : > { %v248_v11 = vmul.f32 %v348_v8, %v240_v10 }
  0x97   : > { %v252_v12 = vpack.c.bf16 %v248_v11, %v248_v11 }
  0x99   : > { %255 = vst.msk [vmem:[%s197_s25 + $0x4] sm:$0xf] %vm254_vm3, %v252_v12 }
  0x9a   : > { %260 = vst.msk [vmem:[%s197_s25 + $0x4] sm:$0xff] %vm259_vm4, %v357_v1  ;;  %v241_v14 = vpop.f32.mrf.mxu0 }
  0x9b   : > { %v242_v15 = vadd.f32 %v241_v14, %v213_v13 }
  0x9d   : > { %v249_v16 = vmul.f32 %v348_v8, %v242_v15 }
  0x9f   : > { %v253_v17 = vpack.c.bf16 %v249_v16, %v249_v16 }
  0xa1   : > { %256 = vst.msk [vmem:[%s197_s25 + $0x10] sm:$0xf] %vm254_vm3, %v253_v17 }
  0xa2   : > { %261 = vst.msk [vmem:[%s197_s25 + $0x10] sm:$0xff] %vm259_vm4, %v357_v1 }
  0xa3 PF: > { %s14_s15 = sadd.s32 1, %s355_s15  }
  0xa4   : > { %p11_p4 = scmp.ge.s32.totalorder %s14_s15, 4  }
  0xa6   :  { %13 = sbr.rel (!%p11_p4) target bundleno = 1 (0x1), region = 66 }

// kernel: semantic_fpn_forward.27
= control target key start
LH: loop header
LB: loop body
LE: loop exit
PB: predicated region body
PF: predicated region fallthrough
CT: control target
= control target key end

     0   :  { %s383_s15 = smov 0   ;;  %s412_s0 = inlined_call_operand.vmem [shape: bf16[2,16,356], index: 0, kind: input, shape index: {}]   ;;  %s413_s1 = inlined_call_operand.vmem [shape: bf16[16,16], index: 1, kind: input, shape index: {}]   ;;  %s414_s2 = inlined_call_operand.vmem [shape: f32[16,1], index: 2, kind: input, shape index: {}]   ;;  %s415_s3 = inlined_call_operand.vmem [shape: f32[1,100], index: 3, kind: input, shape index: {}]   ;;  %s416_s4 = inlined_call_operand.vmem [shape: bf16[2,16,356], index: 4, kind: output, shape index: {}]  }
   0x1 LB: > { %s317_s16 = sadd.s32 4294967295, %s355_s15   ;;  %p321_p0 = scmp.ge.s32.totalorder %s355_s15, 1  ;;  %s355_s15 = sphi %s383_s15, %s14_s15  }
   0x2   : > { %p162_p1 = scmp.lt.s32.totalorder %s355_s15, 3 }
   0x4   : > { %p163_p2 = pnand %p321_p0, %p162_p1 }
   0x5   : > { %p188_p3 = scmp.lt.s32.totalorder (!%p163_p2), %s317_s16, 1 }
   0x6   : > { %166 = sbr.rel (%p163_p2) target bundleno = 163 (0xa3), region = 36 }
   0xb   : > { %v203_v0 = vld [vmem:[%s414_s2] sm:$0xff]  ;;  %v357_v1 = vmov 0   ;;  %s418_s16 = smov (!%p188_p3, %s317_s16), 1  ;;  %v204_v4 = vld [vmem:[%s414_s2 + $0x8] sm:$0xff]  ;;  %vm226_vm0 = vcmask 130048   ;;  %vm257_vm1 = vcmask 1044256  }
   0xc   : > { %347 = vset.pattern.permute.xlu0 %v357_v1  ;;  %s337_s19 = smul.u32 24, %s418_s16  ;;  %v336_v6 = vld [vmem:[%s413_s1] sm:$0xff]  ;;  %vm258_vm2 = vcmask 818180   ;;  %vm254_vm3 = vcmask 814080  }
   0xd   : > { %207 = vperm.xlu0 %347, %v203_v0   ;;  %v348_v8 = vld [vmem:[%s415_s3] ss:$0 sm:$0xff]  ;;  %vm259_vm4 = vmor %vm258_vm2, %vm257_vm1 }
   0xe   : > { %s192_s22 = scalar_lea.vmem %s412_s0, %s337_s19  ;;  %s197_s25 = scalar_lea.vmem %s416_s4, %s337_s19 }
   0xf   : > { %v330_v2 = vld [vmem:[%s192_s22 + $0x4] sm:$0xf]  ;;  %v335_v3 = vld [vmem:[%s192_s22 + $0xc] sm:$0xf0]  ;;  %250 = vst [vmem:[%s197_s25] sm:$0xf] %v357_v1 }
  0x10   : > { %v331_v5 = vor.u32 %v335_v3, %v330_v2  ;;  %251 = vst [vmem:[%s197_s25 + $0xc] sm:$0xf] %v357_v1 }
  0x12   : > { %237 = vmatpush.bf16.msra.mxu0 %v331_v5 }
  0x15   : > { %212 = vperm.xlu0 %347, %v204_v4   ;;  %332 = vmatmul.msk.bf16.vlgmr.msra.gmra.mxu0 %vm226_vm0, %v336_v6 }
  0x7f   : > { %v208_v7 = vpop.permute.xlu0 %207 }
  0x87   : > { %v213_v13 = vpop.permute.xlu0 %212 }
  0x92   : > { %v239_v9 = vpop.f32.mrf.mxu0 }
  0x93   : > { %v240_v10 = vadd.f32 %v239_v9, %v208_v7 }
  0x95   : > { %v248_v11 = vmul.f32 %v348_v8, %v240_v10 }
  0x97   : > { %v252_v12 = vpack.c.bf16 %v248_v11, %v248_v11 }
  0x99   : > { %255 = vst.msk [vmem:[%s197_s25 + $0x4] sm:$0xf] %vm254_vm3, %v252_v12 }
  0x9a   : > { %260 = vst.msk [vmem:[%s197_s25 + $0x4] sm:$0xff] %vm259_vm4, %v357_v1  ;;  %v241_v14 = vpop.f32.mrf.mxu0 }
  0x9b   : > { %v242_v15 = vadd.f32 %v241_v14, %v213_v13 }
  0x9d   : > { %v249_v16 = vmul.f32 %v348_v8, %v242_v15 }
  0x9f   : > { %v253_v17 = vpack.c.bf16 %v249_v16, %v249_v16 }
  0xa1   : > { %256 = vst.msk [vmem:[%s197_s25 + $0x10] sm:$0xf] %vm254_vm3, %v253_v17 }
  0xa2   : > { %261 = vst.msk [vmem:[%s197_s25 + $0x10] sm:$0xff] %vm259_vm4, %v357_v1 }
  0xa3 PF: > { %s14_s15 = sadd.s32 1, %s355_s15  }
  0xa4   : > { %p11_p4 = scmp.ge.s32.totalorder %s14_s15, 4  }
  0xa6   :  { %13 = sbr.rel (!%p11_p4) target bundleno = 1 (0x1), region = 66 }

// kernel: semantic_fpn_forward.26
= control target key start
LH: loop header
LB: loop body
LE: loop exit
PB: predicated region body
PF: predicated region fallthrough
CT: control target
= control target key end

     0   :  { %s446_s15 = smov 0   ;;  %s490_s0 = inlined_call_operand.vmem [shape: bf16[2,16,580], index: 0, kind: input, shape index: {}]   ;;  %s491_s1 = inlined_call_operand.vmem [shape: bf16[16,16], index: 1, kind: input, shape index: {}]   ;;  %s492_s2 = inlined_call_operand.vmem [shape: f32[16,1], index: 2, kind: input, shape index: {}]   ;;  %s493_s3 = inlined_call_operand.vmem [shape: f32[1,324], index: 3, kind: input, shape index: {}]   ;;  %s494_s4 = inlined_call_operand.vmem [shape: bf16[2,16,580], index: 4, kind: output, shape index: {}]  }
   0x1 LB: > { %s369_s16 = sadd.s32 4294967295, %s418_s15   ;;  %p373_p0 = scmp.ge.s32.totalorder %s418_s15, 1  ;;  %s418_s15 = sphi %s446_s15, %s14_s15  }
   0x2   : > { %p162_p1 = scmp.lt.s32.totalorder %s418_s15, 3 }
   0x4   : > { %p163_p2 = pnand %p373_p0, %p162_p1 }
   0x5   : > { %p188_p3 = scmp.lt.s32.totalorder (!%p163_p2), %s369_s16, 1 }
   0x6   : > { %166 = sbr.rel (%p163_p2) target bundleno = 170 (0xaa), region = 36 }
   0xb   : > { %v205_v0 = vld [vmem:[%s492_s2] sm:$0xff]  ;;  %v420_v1 = vmov 0   ;;  %s496_s16 = smov (!%p188_p3, %s369_s16), 1  ;;  %v206_v2 = vld [vmem:[%s492_s2 + $0x8] sm:$0xff]  ;;  %vm238_vm0 = vcmask 130048   ;;  %vm309_vm1 = vcmask 1044000  }
   0xc   : > { %411 = vset.pattern.permute.xlu0 %v420_v1  ;;  %s401_s19 = smul.u32 40, %s496_s16  ;;  %v400_v12 = vld [vmem:[%s491_s1] sm:$0xff]  ;;  %vm310_vm2 = vcmask 556036   ;;  %vm305_vm3 = vcmask 551936  }
   0xd   : > { %209 = vperm.xlu0 %411, %v205_v0   ;;  %v284_v13 = vld [vmem:[%s493_s3] sm:$0x7]  ;;  %vm311_vm4 = vmor %vm310_vm2, %vm309_vm1 }
   0xe   : > { %s192_s22 = scalar_lea.vmem %s490_s0, %s401_s19  ;;  %s467_s27 = scalar_lea.vmem %s494_s4, %s401_s19  ;;  %v286_v15 = vperm.slane %v284_v13, 0  ;;  %v287_v17 = vperm.slane %v284_v13, 1  ;;  %v288_v24 = vperm.slane %v284_v13, 2 }
   0xf   : > { %v382_v3 = vld [vmem:[%s192_s22 + $0x4] sm:$0xf]  ;;  %v398_v4 = vld [vmem:[%s192_s22 + $0x14] sm:$0xf0]  ;;  %v397_v5 = vld [vmem:[%s192_s22 + $0x8] sm:$0xf] }
  0x10   : > { %v383_v6 = vor.u32 %v398_v4, %v382_v3  ;;  %v384_v7 = vld [vmem:[%s192_s22 + $0x18] sm:$0xf0]  ;;  %v390_v8 = vld [vmem:[%s192_s22 + $0xc] sm:$0xf]  ;;  %v399_v9 = vld [vmem:[%s192_s22 + $0x1c] sm:$0xf0] }
  0x11   : > { %v387_v10 = vor.u32 %v397_v5, %v384_v7  ;;  %v391_v11 = vor.u32 %v399_v9, %v390_v8  ;;  %298 = vst [vmem:[%s467_s27] sm:$0xf] %v420_v1 }
  0x12   : > { %249 = vmatpush.bf16.msra.mxu0 %v383_v6  ;;  %299 = vst [vmem:[%s467_s27 + $0x14] sm:$0xf] %v420_v1 }
  0x13   : > { %263 = vmatpush.bf16.msra.mxu1 %v387_v10  ;;  %277 = vmatpush.bf16.msra.mxu2 %v391_v11 }
  0x15   : > { %214 = vperm.xlu0 %411, %v206_v2   ;;  %392 = vmatmul.msk.bf16.vlgmr.msra.gmra.mxu0 %vm238_vm0, %v400_v12 }
  0x16   : > { %393 = vmatmul.msk.bf16.vlgmr.msra.gmra.mxu1 %vm238_vm0, %v400_v12  ;;  %394 = vmatmul.msk.bf16.vlgmr.msra.gmra.mxu2 %vm238_vm0, %v400_v12 }
  0x7f   : > { %v210_v14 = vpop.permute.xlu0 %209 }
  0x87   : > { %v215_v26 = vpop.permute.xlu0 %214 }
  0x92   : > { %v251_v16 = vpop.f32.mrf.mxu0 }
  0x93   : > { %v252_v18 = vadd.f32 %v251_v16, %v210_v14  ;;  %v265_v19 = vpop.f32.mrf.mxu1 }
  0x94   : > { %v266_v20 = vadd.f32 %v265_v19, %v210_v14 }
  0x95   : > { %v292_v21 = vmul.f32 %v286_v15, %v252_v18 }
  0x96   : > { %v293_v22 = vmul.f32 %v287_v17, %v266_v20 }
  0x98   : > { %v300_v23 = vpack.c.bf16 %v293_v22, %v292_v21 }
  0x99   : > { %v279_v25 = vpop.f32.mrf.mxu2 }
  0x9a   : > { %304 = vst [vmem:[%s467_s27 + $0x4] sm:$0xff] %v300_v23  ;;  %v280_v27 = vadd.f32 %v279_v25, %v210_v14  ;;  %v253_v28 = vpop.f32.mrf.mxu0 }
  0x9b   : > { %v254_v29 = vadd.f32 %v253_v28, %v215_v26  ;;  %v267_v30 = vpop.f32.mrf.mxu1 }
  0x9c   : > { %v294_v31 = vmul.f32 %v288_v24, %v280_v27  ;;  %v268_v32 = vadd.f32 %v267_v30, %v215_v26 }
  0x9d   : > { %v295_v33 = vmul.f32 %v286_v15, %v254_v29 }
  0x9e   : > { %v301_v34 = vpack.c.bf16 %v294_v31, %v294_v31  ;;  %v296_v35 = vmul.f32 %v287_v17, %v268_v32 }
  0xa0   : > { %306 = vst.msk [vmem:[%s467_s27 + $0xc] sm:$0xf] %vm305_vm3, %v301_v34  ;;  %v302_v36 = vpack.c.bf16 %v296_v35, %v295_v33 }
  0xa1   : > { %312 = vst.msk [vmem:[%s467_s27 + $0xc] sm:$0xff] %vm311_vm4, %v420_v1  ;;  %v281_v37 = vpop.f32.mrf.mxu2 }
  0xa2   : > { %307 = vst [vmem:[%s467_s27 + $0x18] sm:$0xff] %v302_v36  ;;  %v282_v38 = vadd.f32 %v281_v37, %v215_v26 }
  0xa4   : > { %v297_v39 = vmul.f32 %v288_v24, %v282_v38 }
  0xa6   : > { %v303_v40 = vpack.c.bf16 %v297_v39, %v297_v39 }
  0xa8   : > { %308 = vst.msk [vmem:[%s467_s27 + $0x20] sm:$0xf] %vm305_vm3, %v303_v40 }
  0xa9   : > { %313 = vst.msk [vmem:[%s467_s27 + $0x20] sm:$0xff] %vm311_vm4, %v420_v1 }
  0xaa PF: > { %s14_s15 = sadd.s32 1, %s418_s15  }
  0xab   : > { %p11_p4 = scmp.ge.s32.totalorder %s14_s15, 4  }
  0xad   :  { %13 = sbr.rel (!%p11_p4) target bundleno = 1 (0x1), region = 66 }

// kernel: semantic_fpn_forward.33
= control target key start
LH: loop header
LB: loop body
LE: loop exit
PB: predicated region body
PF: predicated region fallthrough
CT: control target
= control target key end

     0   :  { %s761_s15 = smov 0   ;;  %s958_s0 = inlined_call_operand.vmem [shape: bf16[2,16,580], index: 0, kind: input, shape index: {}]   ;;  %s959_s1 = inlined_call_operand.vmem [shape: bf16[16,144], index: 1, kind: input, shape index: {}]   ;;  %s960_s2 = inlined_call_operand.vmem [shape: f32[16,1], index: 2, kind: input, shape index: {}]   ;;  %s961_s3 = inlined_call_operand.vmem [shape: f32[1,324], index: 3, kind: input, shape index: {}]   ;;  %s962_s4 = inlined_call_operand.vmem [shape: bf16[2,16,580], index: 4, kind: output, shape index: {}]  }
   0x1 LB: > { %s640_s16 = sadd.s32 4294967295, %s724_s15   ;;  %p644_p0 = scmp.ge.s32.totalorder %s724_s15, 1  ;;  %s724_s15 = sphi %s761_s15, %s14_s15  }
   0x2   : > { %p162_p1 = scmp.lt.s32.totalorder %s724_s15, 3 }
   0x4   : > { %p163_p2 = pnand %p644_p0, %p162_p1 }
   0x5   : > { %p188_p3 = scmp.lt.s32.totalorder (!%p163_p2), %s640_s16, 1  ;;  %s726_s21 = smov (!%p163_p2), 91  }
   0x6   : > { %166 = sbr.rel (%p163_p2) target bundleno = 509 (0x1fd), region = 36  ;;  %s727_s22 = smov (!%p163_p2), 92  }
   0x7   : > { %s728_s23 = smov (!%p163_p2), 108   ;;  %s729_s24 = smov (!%p163_p2), 109  }
   0x8   : > { %s730_s25 = smov (!%p163_p2), 90   ;;  %s731_s26 = smov (!%p163_p2), 110  }
   0x9   : > { %s732_s27 = smov (!%p163_p2), 126   ;;  %s733_s28 = smov (!%p163_p2), 127  }
   0xa   : > { %s734_s29 = smov (!%p163_p2), 19  }
   0xb   : > { %s964_s16 = smov (!%p188_p3, %s640_s16), 1  ;;  %vm296_vm0 = vcmask 752640   ;;  %vm305_vm1 = vcmask 744448   ;;  %vm278_vm2 = vcmask 891904   ;;  %vm314_vm3 = vcmask 736256  }
   0xc   : > { %s697_s17 = smul.u32 40, %s964_s16  ;;  %vm287_vm4 = vcmask 883712   ;;  %vm255_vm5 = vcmask 900096   ;;  %vm243_vm6 = vcmask 1031168   ;;  %vm231_vm7 = vcmask 1039360  }
   0xd   : > { %vm412_vm8 = vcmask 154624   ;;  %vm467_vm9 = vcmask 130048   ;;  %vm580_vm10 = vcmask 1044000   ;;  %vm581_vm11 = vcmask 556036  }
   0xe   : > { %s777_s20 = scalar_lea.vmem %s958_s0, %s697_s17  ;;  %s907_s10 = scalar_lea.vmem %s962_s4, %s697_s17  ;;  %vm576_vm12 = vcmask 551936   ;;  %vm582_vm13 = vmor %vm581_vm11, %vm580_vm10 }
   0xf   : > { %v673_v0 = vld [vmem:[%s777_s20 + $0xc] sm:$0xf]  ;;  %v694_v1 = vld [vmem:[%s777_s20 + $0x1c] sm:$0xf0]  ;;  %v665_v2 = vld [vmem:[%s777_s20 + $0x4] sm:$0xf] }
  0x10   : > { %v674_v3 = vor.u32 %v694_v1, %v673_v0  ;;  %v693_v4 = vld [vmem:[%s777_s20 + $0x14] sm:$0xf0]  ;;  %v692_v5 = vld [vmem:[%s777_s20 + $0x8] sm:$0xf]  ;;  %v667_v6 = vld [vmem:[%s777_s20 + $0x18] sm:$0xf0] }
  0x11   : > { %v666_v7 = vor.u32 %v693_v4, %v665_v2  ;;  %v670_v8 = vor.u32 %v692_v5, %v667_v6  ;;  %v657_v9 = vld [vmem:[%s777_s20 + $0x8] sm:$0xf]  ;;  %v691_v10 = vld [vmem:[%s777_s20 + $0x18] sm:$0xf0]  ;;  %v688_v11 = vld [vmem:[%s777_s20 + $0x4] sm:$0xf] }
  0x12   : > { %303 = vrot.lane.b32.xlu1 %v674_v3, %s726_s21  ;;  %v651_v12 = vld [vmem:[%s777_s20 + $0x14] sm:$0xf0]  ;;  %v789_v13 = vor.u32 %v691_v10, %v657_v9  ;;  %v689_v14 = vld [vmem:[%s777_s20 + $0xc] sm:$0xf]  ;;  %v659_v15 = vld [vmem:[%s777_s20 + $0x1c] sm:$0xf0] }
  0x13   : > { %299 = vrot.lane.b32.xlu0 %v666_v7, %s726_s21  ;;  %292 = vrot.lane.b32.xlu2 %v670_v8, %s727_s22  ;;  %v793_v16 = vor.u32 %v688_v11, %v651_v12  ;;  %v795_v17 = vor.u32 %v689_v14, %v659_v15  ;;  %v649_v18 = vld [vmem:[%s777_s20] sm:$0xf]  ;;  %v690_v19 = vld [vmem:[%s777_s20 + $0x10] sm:$0xf0] }
  0x14   : > { %v805_v20 = vor.u32 %v690_v19, %v649_v18 }
  0x1a   : > { %290 = vrot.lane.b32.xlu1 %v666_v7, %s727_s22 }
  0x1b   : > { %301 = vrot.lane.b32.xlu0 %v670_v8, %s726_s21  ;;  %294 = vrot.lane.b32.xlu2 %v674_v3, %s727_s22 }
  0x22   : > { %283 = vrot.lane.b32.xlu1 %v670_v8, %s728_s23 }
  0x23   : > { %281 = vrot.lane.b32.xlu0 %v666_v7, %s728_s23  ;;  %285 = vrot.lane.b32.xlu2 %v674_v3, %s728_s23 }
  0x2a   : > { %274 = vrot.lane.b32.xlu1 %v670_v8, %s729_s24 }
  0x2b   : > { %272 = vrot.lane.b32.xlu0 %v666_v7, %s729_s24  ;;  %276 = vrot.lane.b32.xlu2 %v674_v3, %s729_s24 }
  0x32   : > { %310 = vrot.lane.b32.xlu1 %v670_v8, %s730_s25 }
  0x33   : > { %308 = vrot.lane.b32.xlu0 %v666_v7, %s730_s25  ;;  %312 = vrot.lane.b32.xlu2 %v674_v3, %s730_s25 }
  0x3a   : > { %251 = vrot.lane.b32.xlu1 %v789_v13, %s731_s26 }
  0x3b   : > { %249 = vrot.lane.b32.xlu0 %v793_v16, %s731_s26  ;;  %253 = vrot.lane.b32.xlu2 %v795_v17, %s731_s26 }
  0x42   : > { %239 = vrot.lane.b32.xlu1 %v789_v13, %s732_s27 }
  0x43   : > { %237 = vrot.lane.b32.xlu0 %v793_v16, %s732_s27  ;;  %241 = vrot.lane.b32.xlu2 %v795_v17, %s732_s27 }
  0x4a   : > { %225 = vrot.lane.b32.xlu1 %v793_v16, %s733_s28 }
  0x4b   : > { %247 = vrot.lane.b32.xlu0 %v805_v20, %s731_s26  ;;  %227 = vrot.lane.b32.xlu2 %v789_v13, %s733_s28 }
  0x52   : > { %235 = vrot.lane.b32.xlu1 %v805_v20, %s732_s27 }
  0x53   : > { %229 = vrot.lane.b32.xlu0 %v795_v17, %s733_s28  ;;  %223 = vrot.lane.b32.xlu2 %v805_v20, %s733_s28 }
  0x6d   : > { %v293_v21 = vpop.permute.xlu2 %292 }
  0x75   : > { %v295_v24 = vpop.permute.xlu2 %294 }
  0x76   : > { %v298_v42 = vsel %vm296_vm0, %v293_v21, %v295_v24 }
  0x7d   : > { %v286_v27 = vpop.permute.xlu2 %285 }
  0x84   : > { %v304_v22 = vpop.permute.xlu1 %303 }
  0x85   : > { %v300_v23 = vpop.permute.xlu0 %299  ;;  %402 = vrot.lane.b32.xlu1 %v304_v22, %s734_s29  ;;  %v277_v31 = vpop.permute.xlu2 %276 }
  0x86   : > { %396 = vrot.lane.b32.xlu2 %v300_v23, %s734_s29 }
  0x8c   : > { %v291_v25 = vpop.permute.xlu1 %290 }
  0x8d   : > { %v302_v26 = vpop.permute.xlu0 %301  ;;  %388 = vrot.lane.b32.xlu0 %v291_v25, %s734_s29  ;;  %v297_v34 = vsel %vm296_vm0, %v291_v25, %v293_v21  ;;  %v313_v35 = vpop.permute.xlu2 %312 }
  0x8e   : > { %394 = vrot.lane.b32.xlu2 %v295_v24, %s734_s29  ;;  %v306_v37 = vsel %vm305_vm1, %v300_v23, %v302_v26  ;;  %v307_v38 = vsel %vm305_vm1, %v302_v26, %v304_v22 }
  0x94   : > { %v284_v29 = vpop.permute.xlu1 %283 }
  0x95   : > { %v282_v28 = vpop.permute.xlu0 %281  ;;  %386 = vrot.lane.b32.xlu0 %v286_v27, %s734_s29  ;;  %v254_v43 = vpop.permute.xlu2 %253  ;;  %v289_v44 = vsel %vm287_vm4, %v284_v29, %v286_v27 }
  0x96   : > { %v288_v48 = vsel %vm287_vm4, %v282_v28, %v284_v29 }
  0x9c   : > { %v275_v32 = vpop.permute.xlu1 %274 }
  0x9d   : > { %v273_v30 = vpop.permute.xlu0 %272  ;;  %380 = vrot.lane.b32.xlu0 %v282_v28, %s734_s29  ;;  %v280_v36 = vsel %vm278_vm2, %v275_v32, %v277_v31  ;;  %v242_v50 = vpop.permute.xlu2 %241 }
  0x9e   : > { %372 = vrot.lane.b32.xlu2 %v273_v30, %s734_s29  ;;  %v279_v49 = vsel %vm278_vm2, %v273_v30, %v275_v32 }
  0xa4   : > { %v311_v40 = vpop.permute.xlu1 %310 }
  0xa5   : > { %v309_v33 = vpop.permute.xlu0 %308  ;;  %378 = vrot.lane.b32.xlu0 %v277_v31, %s734_s29  ;;  %v316_v41 = vsel %vm314_vm3, %v311_v40, %v313_v35  ;;  %v228_v55 = vpop.permute.xlu2 %227 }
  0xa6   : > { %390 = vrot.lane.b32.xlu2 %v297_v34, %s734_s29  ;;  %404 = vrot.lane.b32.xlu1 %v309_v33, %s734_s29  ;;  %v315_v54 = vsel %vm314_vm3, %v309_v33, %v311_v40  ;;  %v695_v33 = vld [vmem:[%s959_s1 + $0x4] sm:$0xf]  ;;  %v679_v34 = vld [vmem:[%s959_s1 + $0x8] sm:$0xf0] }
  0xac   : > { %v252_v46 = vpop.permute.xlu1 %251 }
  0xad   : > { %398 = vrot.lane.b32.xlu0 %v306_v37, %s734_s29  ;;  %v250_v39 = vpop.permute.xlu0 %249  ;;  %v258_v47 = vsel %vm255_vm5, %v252_v46, %v254_v43  ;;  %v224_v63 = vpop.permute.xlu2 %223 }
  0xae   : > { %376 = vrot.lane.b32.xlu2 %v280_v36, %s734_s29  ;;  %400 = vrot.lane.b32.xlu1 %v307_v38, %s734_s29  ;;  %v257_v59 = vsel %vm255_vm5, %v250_v39, %v252_v46 }
  0xb4   : > { %v240_v52 = vpop.permute.xlu1 %239 }
  0xb5   : > { %392 = vrot.lane.b32.xlu0 %v298_v42, %s734_s29  ;;  %v238_v45 = vpop.permute.xlu0 %237  ;;  %v246_v60 = vsel %vm243_vm6, %v240_v52, %v242_v50 }
  0xb6   : > { %408 = vrot.lane.b32.xlu2 %v316_v41, %s734_s29  ;;  %384 = vrot.lane.b32.xlu1 %v289_v44, %s734_s29  ;;  %v245_v53 = vsel %vm243_vm6, %v238_v45, %v240_v52  ;;  %v682_v41 = vor.u32 %v695_v33, %v679_v34  ;;  %v319_v52 = vld [vmem:[%s960_s2] sm:$0xff] }
  0xbc   : > { %v226_v61 = vpop.permute.xlu1 %225 }
  0xbd   : > { %382 = vrot.lane.b32.xlu0 %v288_v48, %s734_s29  ;;  %v248_v51 = vpop.permute.xlu0 %247  ;;  %v233_v62 = vsel %vm231_vm7, %v226_v61, %v228_v55  ;;  %v232_v1 = vsel %vm231_vm7, %v224_v63, %v226_v61  ;;  %v677_v61 = vld [vmem:[%s959_s1] sm:$0xf] }
  0xbe   : > { %368 = vrot.lane.b32.xlu2 %v258_v47, %s734_s29  ;;  %374 = vrot.lane.b32.xlu1 %v279_v49, %s734_s29  ;;  %v256_v58 = vsel %vm255_vm5, %v248_v51, %v250_v39 }
  0xc4   : > { %v236_v0 = vpop.permute.xlu1 %235 }
  0xc5   : > { %358 = vrot.lane.b32.xlu0 %v245_v53, %s734_s29  ;;  %v230_v56 = vpop.permute.xlu0 %229  ;;  %v244_v2 = vsel %vm243_vm6, %v236_v0, %v238_v45 }
  0xc6   : > { %370 = vrot.lane.b32.xlu2 %v254_v43, %s734_s29  ;;  %406 = vrot.lane.b32.xlu1 %v315_v54, %s734_s29  ;;  %v234_v57 = vsel %vm231_vm7, %v228_v55, %v230_v56  ;;  %v735_v54 = vmov 0  }
  0xc7   : > { %716 = vset.pattern.permute.xlu0 %v735_v54  ;;  %569 = vst [vmem:[%s907_s10] sm:$0xf] %v735_v54  ;;  %717 = vset.pattern.permute.xlu1 %v735_v54 }
  0xc8   : > { %570 = vst [vmem:[%s907_s10 + $0x14] sm:$0xf] %v735_v54 }
  0xcd   : > { %364 = vrot.lane.b32.xlu0 %v256_v58, %s734_s29 }
  0xce   : > { %366 = vrot.lane.b32.xlu1 %v257_v59, %s734_s29  ;;  %352 = vrot.lane.b32.xlu2 %v234_v57, %s734_s29 }
  0xd5   : > { %362 = vrot.lane.b32.xlu0 %v242_v50, %s734_s29 }
  0xd6   : > { %360 = vrot.lane.b32.xlu1 %v246_v60, %s734_s29  ;;  %342 = vrot.lane.b32.xlu2 %v793_v16, %s734_s29 }
  0xdd   : > { %344 = vrot.lane.b32.xlu0 %v789_v13, %s734_s29 }
  0xde   : > { %350 = vrot.lane.b32.xlu1 %v233_v62, %s734_s29  ;;  %410 = vrot.lane.b32.xlu2 %v313_v35, %s734_s29  ;;  %v696_v62 = vld [vmem:[%s959_s1 + $0x4] sm:$0xf0] }
  0xdf   : > { %v678_v0 = vor.u32 %v696_v62, %v677_v61 }
  0xe0   : > { %v397_v3 = vpop.permute.xlu2 %396 }
  0xe5   : > { %348 = vrot.lane.b32.xlu0 %v232_v1, %s734_s29 }
  0xe6   : > { %356 = vrot.lane.b32.xlu1 %v244_v2, %s734_s29  ;;  %340 = vrot.lane.b32.xlu2 %v805_v20, %s734_s29 }
  0xe8   : > { %v395_v4 = vpop.permute.xlu2 %394 }
  0xed   : > { %323 = vperm.xlu0 %716, %v319_v52  }
  0xee   : > { %354 = vrot.lane.b32.xlu1 %v230_v56, %s734_s29  ;;  %v320_v56 = vld [vmem:[%s960_s2 + $0x8] sm:$0xff] }
  0xf6   : > { %346 = vrot.lane.b32.xlu1 %v795_v17, %s734_s29 }
  0xf7   : > { %v403_v11 = vpop.permute.xlu1 %402 }
  0xf8   : > { %v373_v5 = vpop.permute.xlu2 %372 }
  0xfe   : > { %328 = vperm.xlu1 %717, %v320_v56  }
  0xff   : > { %v389_v6 = vpop.permute.xlu0 %388 }
 0x100   : > { %v391_v7 = vpop.permute.xlu2 %390 }
 0x101   : > { %v431_v21 = vsel %vm412_vm8, %v389_v6, %v391_v7 }
 0x107   : > { %v387_v8 = vpop.permute.xlu0 %386 }
 0x108   : > { %v377_v9 = vpop.permute.xlu2 %376 }
 0x10f   : > { %v381_v10 = vpop.permute.xlu0 %380 }
 0x110   : > { %v409_v12 = vpop.permute.xlu2 %408 }
 0x117   : > { %v379_v13 = vpop.permute.xlu0 %378 }
 0x118   : > { %v868_v14 = vpop.permute.xlu2 %368  ;;  %v405_v15 = vpop.permute.xlu1 %404  ;;  %v427_v49 = vsel %vm412_vm8, %v377_v9, %v379_v13 }
 0x11f   : > { %v399_v16 = vpop.permute.xlu0 %398 }
 0x120   : > { %v870_v18 = vpop.permute.xlu2 %370  ;;  %v401_v19 = vpop.permute.xlu1 %400  ;;  %v434_v20 = vsel %vm412_vm8, %v397_v3, %v399_v16 }
 0x121   : > { %471 = vmatpush.bf16.msra.mxu0 %v434_v20  ;;  %v435_v17 = vsel %vm412_vm8, %v399_v16, %v401_v19  ;;  %v436_v42 = vsel %vm412_vm8, %v401_v19, %v403_v11  ;;  %v424_v55 = vsel %vm412_vm8, %v868_v14, %v870_v18  ;;  %v555_v18 = vld [vmem:[%s961_s3] sm:$0x7] }
 0x122   : > { %499 = vmatpush.bf16.msra.mxu2 %v435_v17  ;;  %v558_v17 = vperm.slane %v555_v18, 1 }
 0x125   : > { %472 = vmatpush.bf16.msra.mxu0 %v431_v21 }
 0x127   : > { %v393_v22 = vpop.permute.xlu0 %392 }
 0x128   : > { %v385_v23 = vpop.permute.xlu1 %384  ;;  %v875_v24 = vpop.permute.xlu2 %352  ;;  %v432_v25 = vsel %vm412_vm8, %v391_v7, %v393_v22  ;;  %v433_v43 = vsel %vm412_vm8, %v393_v22, %v395_v4 }
 0x129   : > { %500 = vmatpush.bf16.msra.mxu2 %v432_v25  ;;  %v430_v48 = vsel %vm412_vm8, %v385_v23, %v387_v8 }
 0x12f   : > { %v383_v26 = vpop.permute.xlu0 %382 }
 0x130   : > { %v375_v27 = vpop.permute.xlu1 %374  ;;  %v878_v28 = vpop.permute.xlu2 %342  ;;  %v428_v29 = vsel %vm412_vm8, %v381_v10, %v383_v26  ;;  %v429_v30 = vsel %vm412_vm8, %v383_v26, %v385_v23  ;;  %v557_v23 = vperm.slane %v555_v18, 0 }
 0x131   : > { %473 = vmatpush.bf16.msra.mxu0 %v428_v29  ;;  %501 = vmatpush.bf16.msra.mxu2 %v429_v30  ;;  %v425_v31 = vsel %vm412_vm8, %v373_v5, %v375_v27  ;;  %v426_v32 = vsel %vm412_vm8, %v375_v27, %v377_v9 }
 0x135   : > { %474 = vmatpush.bf16.msra.mxu0 %v425_v31  ;;  %502 = vmatpush.bf16.msra.mxu2 %v426_v32 }
 0x137   : > { %v359_v35 = vpop.permute.xlu0 %358 }
 0x138   : > { %v407_v36 = vpop.permute.xlu1 %406  ;;  %v411_v37 = vpop.permute.xlu2 %410 }
 0x139   : > { %v437_v38 = vsel %vm412_vm8, %v405_v15, %v407_v36  ;;  %v438_v39 = vsel %vm412_vm8, %v407_v36, %v409_v12  ;;  %v439_v40 = vsel %vm412_vm8, %v409_v12, %v411_v37  ;;  %v559_v37 = vperm.slane %v555_v18, 2 }
 0x13a   : > { %492 = vmatpush.bf16.msra.mxu1 %v437_v38  ;;  %520 = vmatpush.bf16.msra.mxu3 %v438_v39 }
 0x13d   : > { %684 = vmatmul.msk.bf16.vlgmr.msra.gmra.mxu3 %vm467_vm9, %v682_v41  ;;  %683 = vmatmul.msk.bf16.vlgmr.msra.gmra.mxu1 %vm467_vm9, %v682_v41 }
 0x13e   : > { %527 = vmatpush.bf16.msrb.mxu1 %v436_v42  ;;  %548 = vmatpush.bf16.msrb.mxu3 %v439_v40 }
 0x13f   : > { %v365_v44 = vpop.permute.xlu0 %364 }
 0x140   : > { %v367_v45 = vpop.permute.xlu1 %366  ;;  %v341_v5 = vpop.permute.xlu2 %340 }
 0x141   : > { %v422_v46 = vsel %vm412_vm8, %v365_v44, %v367_v45  ;;  %v423_v47 = vsel %vm412_vm8, %v367_v45, %v868_v14  ;;  %v413_v7 = vsel %vm412_vm8, %v341_v5, %v878_v28 }
 0x142   : > { %528 = vmatpush.bf16.msrb.mxu1 %v433_v43  ;;  %475 = vmatpush.bf16.msra.mxu0 %v422_v46 }
 0x143   : > { %503 = vmatpush.bf16.msra.mxu2 %v423_v47 }
 0x146   : > { %529 = vmatpush.bf16.msrb.mxu1 %v430_v48 }
 0x147   : > { %v363_v50 = vpop.permute.xlu0 %362 }
 0x148   : > { %v361_v51 = vpop.permute.xlu1 %360 }
 0x149   : > { %v420_v53 = vsel %vm412_vm8, %v359_v35, %v361_v51  ;;  %v421_v57 = vsel %vm412_vm8, %v361_v51, %v363_v50 }
 0x14a   : > { %530 = vmatpush.bf16.msrb.mxu1 %v427_v49  ;;  %504 = vmatpush.bf16.msra.mxu2 %v420_v53 }
 0x14d   : > { %685 = vmatmul.msk.bf16.vlgmr.msrb.gmra.mxu3 %vm467_vm9, %v682_v41 }
 0x14e   : > { %531 = vmatpush.bf16.msrb.mxu1 %v424_v55 }
 0x14f   : > { %v345_v59 = vpop.permute.xlu0 %344 }
 0x150   : > { %v351_v58 = vpop.permute.xlu1 %350  ;;  %v414_v63 = vsel %vm412_vm8, %v878_v28, %v345_v59 }
 0x151   : > { %v417_v60 = vsel %vm412_vm8, %v351_v58, %v875_v24 }
 0x152   : > { %532 = vmatpush.bf16.msrb.mxu1 %v421_v57  ;;  %505 = vmatpush.bf16.msra.mxu2 %v417_v60 }
 0x156   : > { %506 = vmatpush.bf16.msra.mxu2 %v414_v63 }
 0x157   : > { %v349_v3 = vpop.permute.xlu0 %348 }
 0x158   : > { %v357_v1 = vpop.permute.xlu1 %356  ;;  %v416_v4 = vsel %vm412_vm8, %v349_v3, %v351_v58 }
 0x159   : > { %507 = vmatmul.bf16.vlgmr.msra.gmra.mxu2 %v678_v0  ;;  %v419_v2 = vsel %vm412_vm8, %v357_v1, %v359_v35 }
 0x15a   : > { %476 = vmatpush.bf16.msra.mxu0 %v419_v2 }
 0x15e   : > { %477 = vmatpush.bf16.msra.mxu0 %v416_v4 }
 0x15f   : > { %v324_v14 = vpop.permute.xlu0 %323 }
 0x160   : > { %v355_v6 = vpop.permute.xlu1 %354 }
 0x161   : > { %v418_v8 = vsel %vm412_vm8, %v875_v24, %v355_v6 }
 0x162   : > { %478 = vmatpush.bf16.msra.mxu0 %v413_v7  ;;  %533 = vmatpush.bf16.msrb.mxu1 %v418_v8 }
 0x165   : > { %479 = vmatmul.bf16.vlgmr.msra.gmra.mxu0 %v678_v0 }
 0x168   : > { %v347_v9 = vpop.permute.xlu1 %346 }
 0x169   : > { %v415_v10 = vsel %vm412_vm8, %v345_v59, %v347_v9 }
 0x16a   : > { %534 = vmatpush.bf16.msrb.mxu1 %v415_v10 }
 0x16d   : > { %535 = vmatmul.bf16.vlgmr.msrb.gmra.mxu1 %v678_v0 }
 0x170   : > { %v329_v24 = vpop.permute.xlu1 %328 }
 0x1ba   : > { %v494_v12 = vpop.f32.mrf.mxu1 }
 0x1c0   : > { %v522_v11 = vpop.f32.mrf.mxu3 }
 0x1c2   : > { %v496_v19 = vpop.f32.mrf.mxu1 }
 0x1c8   : > { %v524_v15 = vpop.f32.mrf.mxu3 }
 0x1d0   : > { %v550_v31 = vpop.f32.mrf.mxu3 }
 0x1d8   : > { %v552_v47 = vpop.f32.mrf.mxu3 }
 0x1dc   : > { %v508_v13 = vpop.f32.mrf.mxu2 }
 0x1dd   : > { %v509_v16 = vadd.f32 %v508_v13, %v324_v14 }
 0x1df   : > { %v523_v21 = vadd.f32 %v522_v11, %v509_v16 }
 0x1e1   : > { %v564_v27 = vmul.f32 %v558_v17, %v523_v21 }
 0x1e2   : > { %v480_v20 = vpop.f32.mrf.mxu0 }
 0x1e3   : > { %v481_v22 = vadd.f32 %v480_v20, %v324_v14 }
 0x1e4   : > { %v510_v25 = vpop.f32.mrf.mxu2 }
 0x1e5   : > { %v495_v26 = vadd.f32 %v494_v12, %v481_v22  ;;  %v511_v29 = vadd.f32 %v510_v25, %v329_v24 }
 0x1e7   : > { %v563_v28 = vmul.f32 %v557_v23, %v495_v26  ;;  %v525_v34 = vadd.f32 %v524_v15, %v511_v29 }
 0x1e9   : > { %v571_v30 = vpack.c.bf16 %v564_v27, %v563_v28  ;;  %v567_v40 = vmul.f32 %v558_v17, %v525_v34 }
 0x1ea   : > { %v482_v32 = vpop.f32.mrf.mxu0  ;;  %v536_v33 = vpop.f32.mrf.mxu1 }
 0x1eb   : > { %575 = vst [vmem:[%s907_s10 + $0x4] sm:$0xff] %v571_v30  ;;  %v483_v35 = vadd.f32 %v482_v32, %v329_v24  ;;  %v537_v36 = vadd.f32 %v536_v33, %v324_v14 }
 0x1ed   : > { %v497_v38 = vadd.f32 %v496_v19, %v483_v35  ;;  %v551_v39 = vadd.f32 %v550_v31, %v537_v36 }
 0x1ef   : > { %v566_v41 = vmul.f32 %v557_v23, %v497_v38  ;;  %v565_v42 = vmul.f32 %v559_v37, %v551_v39 }
 0x1f1   : > { %v573_v43 = vpack.c.bf16 %v567_v40, %v566_v41  ;;  %v572_v44 = vpack.c.bf16 %v565_v42, %v565_v42 }
 0x1f2   : > { %v538_v45 = vpop.f32.mrf.mxu1 }
 0x1f3   : > { %578 = vst [vmem:[%s907_s10 + $0x18] sm:$0xff] %v573_v43  ;;  %v539_v46 = vadd.f32 %v538_v45, %v329_v24 }
 0x1f4   : > { %577 = vst.msk [vmem:[%s907_s10 + $0xc] sm:$0xf] %vm576_vm12, %v572_v44 }
 0x1f5   : > { %583 = vst.msk [vmem:[%s907_s10 + $0xc] sm:$0xff] %vm582_vm13, %v735_v54  ;;  %v553_v48 = vadd.f32 %v552_v47, %v539_v46 }
 0x1f7   : > { %v568_v49 = vmul.f32 %v559_v37, %v553_v48 }
 0x1f9   : > { %v574_v50 = vpack.c.bf16 %v568_v49, %v568_v49 }
 0x1fb   : > { %579 = vst.msk [vmem:[%s907_s10 + $0x20] sm:$0xf] %vm576_vm12, %v574_v50 }
 0x1fc   : > { %584 = vst.msk [vmem:[%s907_s10 + $0x20] sm:$0xff] %vm582_vm13, %v735_v54 }
 0x1fd PF: > { %s14_s15 = sadd.s32 1, %s724_s15  }
 0x1fe   : > { %p11_p4 = scmp.ge.s32.totalorder %s14_s15, 4  }
 0x200   :  { %13 = sbr.rel (!%p11_p4) target bundleno = 1 (0x1), region = 66 }

// kernel: semantic_fpn_forward.34
= control target key start
LH: loop header
LB: loop body
LE: loop exit
PB: predicated region body
PF: predicated region fallthrough
CT: control target
= control target key end

     0   :  { %s1134_s21 = smov 0   ;;  %s1430_s0 = inlined_call_operand.vmem [shape: bf16[2,16,580], index: 0, kind: input, shape index: {}]   ;;  %s1431_s1 = inlined_call_operand.vmem [shape: bf16[16,144], index: 1, kind: input, shape index: {}]   ;;  %s1432_s2 = inlined_call_operand.vmem [shape: f32[16,1], index: 2, kind: input, shape index: {}]   ;;  %s1433_s3 = inlined_call_operand.vmem [shape: f32[16,1], index: 3, kind: input, shape index: {}]   ;;  %s1434_s4 = inlined_call_operand.vmem [shape: f32[16,1], index: 4, kind: input, shape index: {}]   ;;  %s1435_s5 = inlined_call_operand.vmem [shape: f32[1,324], index: 5, kind: input, shape index: {}]   ;;  %s1436_s6 = inlined_call_operand.vmem [shape: bf16[2,16,580], index: 6, kind: output, shape index: {}]  }
   0x1 LB: > { %s988_s22 = sadd.s32 4294967295, %s1086_s21   ;;  %p992_p0 = scmp.ge.s32.totalorder %s1086_s21, 1  ;;  %s1086_s21 = sphi %s1134_s21, %s16_s21  }
   0x2   : > { %p212_p1 = scmp.lt.s32.totalorder %s1086_s21, 3 }
   0x4   : > { %p213_p2 = pnand %p992_p0, %p212_p1 }
   0x5   : > { %p242_p3 = scmp.lt.s32.totalorder (!%p213_p2), %s988_s22, 1  ;;  %s1088_s27 = smov (!%p213_p2), 91  }
   0x6   : > { %216 = sbr.rel (%p213_p2) target bundleno = 797 (0x31d), region = 44  ;;  %s1089_s28 = smov (!%p213_p2), 92  }
   0x7   : > { %s1090_s29 = smov (!%p213_p2), 108   ;;  %s1091_s30 = smov (!%p213_p2), 109  }
   0x8   : > { %s1092_s7 = smov (!%p213_p2), 90   ;;  %s1093_s8 = smov (!%p213_p2), 110  }
   0x9   : > { %s1094_s9 = smov (!%p213_p2), 126   ;;  %s1095_s10 = smov (!%p213_p2), 127  }
   0xa   : > { %s1096_s11 = smov (!%p213_p2), 19  }
   0xb   : > { %s1440_s22 = smov (!%p242_p3, %s988_s22), 1  ;;  %vm359_vm0 = vcmask 744448   ;;  %vm341_vm1 = vcmask 883712   ;;  %vm332_vm2 = vcmask 891904   ;;  %vm350_vm3 = vcmask 752640  }
   0xc   : > { %s1049_s23 = smul.u32 40, %s1440_s22  ;;  %vm309_vm4 = vcmask 900096   ;;  %vm297_vm5 = vcmask 1031168   ;;  %vm368_vm6 = vcmask 736256   ;;  %vm285_vm7 = vcmask 1039360  }
   0xd   : > { %vm466_vm8 = vcmask 154624   ;;  %vm521_vm9 = vcmask 130048   ;;  %vm624_vm10 = vcmask 556032  }
   0xe   : > { %s1150_s26 = scalar_lea.vmem %s1430_s0, %s1049_s23  ;;  %s1276_s18 = scalar_lea.vmem %s1436_s6, %s1049_s23 }
   0xf   : > { %v1021_v0 = vld [vmem:[%s1150_s26 + $0xc] sm:$0xf]  ;;  %v1046_v1 = vld [vmem:[%s1150_s26 + $0x1c] sm:$0xf0]  ;;  %v1013_v2 = vld [vmem:[%s1150_s26 + $0x4] sm:$0xf] }
  0x10   : > { %v1022_v3 = vor.u32 %v1046_v1, %v1021_v0  ;;  %v1045_v4 = vld [vmem:[%s1150_s26 + $0x14] sm:$0xf0]  ;;  %v1044_v5 = vld [vmem:[%s1150_s26 + $0x8] sm:$0xf]  ;;  %v1015_v6 = vld [vmem:[%s1150_s26 + $0x18] sm:$0xf0] }
  0x11   : > { %v1014_v7 = vor.u32 %v1045_v4, %v1013_v2  ;;  %v1018_v8 = vor.u32 %v1044_v5, %v1015_v6  ;;  %v1005_v9 = vld [vmem:[%s1150_s26 + $0x8] sm:$0xf]  ;;  %v1043_v10 = vld [vmem:[%s1150_s26 + $0x18] sm:$0xf0]  ;;  %v1040_v11 = vld [vmem:[%s1150_s26 + $0x4] sm:$0xf] }
  0x12   : > { %357 = vrot.lane.b32.xlu1 %v1022_v3, %s1088_s27  ;;  %v999_v12 = vld [vmem:[%s1150_s26 + $0x14] sm:$0xf0]  ;;  %v1041_v13 = vld [vmem:[%s1150_s26 + $0xc] sm:$0xf]  ;;  %v1007_v14 = vld [vmem:[%s1150_s26 + $0x1c] sm:$0xf0]  ;;  %v1164_v15 = vor.u32 %v1043_v10, %v1005_v9 }
  0x13   : > { %353 = vrot.lane.b32.xlu0 %v1014_v7, %s1088_s27  ;;  %346 = vrot.lane.b32.xlu2 %v1018_v8, %s1089_s28  ;;  %v1166_v16 = vor.u32 %v1040_v11, %v999_v12  ;;  %v1168_v17 = vor.u32 %v1041_v13, %v1007_v14  ;;  %v997_v18 = vld [vmem:[%s1150_s26] sm:$0xf]  ;;  %v1042_v19 = vld [vmem:[%s1150_s26 + $0x10] sm:$0xf0] }
  0x14   : > { %v1178_v20 = vor.u32 %v1042_v19, %v997_v18 }
  0x1a   : > { %344 = vrot.lane.b32.xlu1 %v1014_v7, %s1089_s28 }
  0x1b   : > { %355 = vrot.lane.b32.xlu0 %v1018_v8, %s1088_s27  ;;  %348 = vrot.lane.b32.xlu2 %v1022_v3, %s1089_s28 }
  0x22   : > { %337 = vrot.lane.b32.xlu1 %v1018_v8, %s1090_s29 }
  0x23   : > { %335 = vrot.lane.b32.xlu0 %v1014_v7, %s1090_s29  ;;  %339 = vrot.lane.b32.xlu2 %v1022_v3, %s1090_s29 }
  0x2a   : > { %328 = vrot.lane.b32.xlu1 %v1018_v8, %s1091_s30 }
  0x2b   : > { %326 = vrot.lane.b32.xlu0 %v1014_v7, %s1091_s30  ;;  %330 = vrot.lane.b32.xlu2 %v1022_v3, %s1091_s30 }
  0x32   : > { %364 = vrot.lane.b32.xlu1 %v1018_v8, %s1092_s7 }
  0x33   : > { %362 = vrot.lane.b32.xlu0 %v1014_v7, %s1092_s7  ;;  %366 = vrot.lane.b32.xlu2 %v1022_v3, %s1092_s7 }
  0x3a   : > { %305 = vrot.lane.b32.xlu1 %v1164_v15, %s1093_s8 }
  0x3b   : > { %303 = vrot.lane.b32.xlu0 %v1166_v16, %s1093_s8  ;;  %307 = vrot.lane.b32.xlu2 %v1168_v17, %s1093_s8 }
  0x42   : > { %293 = vrot.lane.b32.xlu1 %v1164_v15, %s1094_s9 }
  0x43   : > { %291 = vrot.lane.b32.xlu0 %v1166_v16, %s1094_s9  ;;  %295 = vrot.lane.b32.xlu2 %v1168_v17, %s1094_s9 }
  0x4a   : > { %279 = vrot.lane.b32.xlu1 %v1166_v16, %s1095_s10 }
  0x4b   : > { %301 = vrot.lane.b32.xlu0 %v1178_v20, %s1093_s8  ;;  %281 = vrot.lane.b32.xlu2 %v1164_v15, %s1095_s10 }
  0x52   : > { %289 = vrot.lane.b32.xlu1 %v1178_v20, %s1094_s9 }
  0x53   : > { %283 = vrot.lane.b32.xlu0 %v1168_v17, %s1095_s10  ;;  %277 = vrot.lane.b32.xlu2 %v1178_v20, %s1095_s10 }
  0x6d   : > { %v347_v21 = vpop.permute.xlu2 %346 }
  0x75   : > { %v349_v22 = vpop.permute.xlu2 %348 }
  0x76   : > { %448 = vrot.lane.b32.xlu0 %v349_v22, %s1096_s11  ;;  %v352_v43 = vsel %vm350_vm3, %v347_v21, %v349_v22 }
  0x7d   : > { %v340_v25 = vpop.permute.xlu2 %339 }
  0x84   : > { %v358_v23 = vpop.permute.xlu1 %357 }
  0x85   : > { %v354_v24 = vpop.permute.xlu0 %353  ;;  %456 = vrot.lane.b32.xlu2 %v358_v23, %s1096_s11  ;;  %v331_v28 = vpop.permute.xlu2 %330 }
  0x86   : > { %450 = vrot.lane.b32.xlu1 %v354_v24, %s1096_s11 }
  0x8c   : > { %v345_v26 = vpop.permute.xlu1 %344 }
  0x8d   : > { %v356_v27 = vpop.permute.xlu0 %355  ;;  %442 = vrot.lane.b32.xlu2 %v345_v26, %s1096_s11  ;;  %v1195_v34 = vpop.permute.xlu2 %366  ;;  %v351_v40 = vsel %vm350_vm3, %v345_v26, %v347_v21 }
  0x8e   : > { %440 = vrot.lane.b32.xlu1 %v340_v25, %s1096_s11  ;;  %v361_v33 = vsel %vm359_vm0, %v356_v27, %v358_v23  ;;  %v360_v38 = vsel %vm359_vm0, %v354_v24, %v356_v27 }
  0x94   : > { %v338_v29 = vpop.permute.xlu1 %337 }
  0x95   : > { %v336_v30 = vpop.permute.xlu0 %335  ;;  %v343_v37 = vsel %vm341_vm1, %v338_v29, %v340_v25  ;;  %v308_v39 = vpop.permute.xlu2 %307 }
  0x96   : > { %432 = vrot.lane.b32.xlu1 %v331_v28, %s1096_s11  ;;  %434 = vrot.lane.b32.xlu0 %v336_v30, %s1096_s11  ;;  %v342_v47 = vsel %vm341_vm1, %v336_v30, %v338_v29  ;;  %v1027_v29 = vld [vmem:[%s1431_s1 + $0x8] sm:$0xf0] }
  0x9c   : > { %v329_v31 = vpop.permute.xlu1 %328 }
  0x9d   : > { %v327_v32 = vpop.permute.xlu0 %326  ;;  %v334_v46 = vsel %vm332_vm2, %v329_v31, %v331_v28  ;;  %v296_v48 = vpop.permute.xlu2 %295  ;;  %v1047_v28 = vld [vmem:[%s1431_s1 + $0x4] sm:$0xf] }
  0x9e   : > { %454 = vrot.lane.b32.xlu1 %v361_v33, %s1096_s11  ;;  %426 = vrot.lane.b32.xlu0 %v327_v32, %s1096_s11  ;;  %v333_v41 = vsel %vm332_vm2, %v327_v32, %v329_v31  ;;  %v1255_v31 = vor.u32 %v1047_v28, %v1027_v29 }
  0xa4   : > { %v365_v35 = vpop.permute.xlu1 %364 }
  0xa5   : > { %v363_v36 = vpop.permute.xlu0 %362  ;;  %v370_v52 = vsel %vm368_vm6, %v365_v35, %v1195_v34  ;;  %v282_v54 = vpop.permute.xlu2 %281 }
  0xa6   : > { %458 = vrot.lane.b32.xlu2 %v363_v36, %s1096_s11  ;;  %438 = vrot.lane.b32.xlu1 %v343_v37, %s1096_s11  ;;  %v369_v51 = vsel %vm368_vm6, %v363_v36, %v365_v35 }
  0xa7   : > { %452 = vrot.lane.b32.xlu0 %v360_v38, %s1096_s11 }
  0xac   : > { %v306_v42 = vpop.permute.xlu1 %305 }
  0xad   : > { %v304_v44 = vpop.permute.xlu0 %303  ;;  %v312_v58 = vsel %vm309_vm4, %v306_v42, %v308_v39  ;;  %v278_v61 = vpop.permute.xlu2 %277 }
  0xae   : > { %444 = vrot.lane.b32.xlu2 %v351_v40, %s1096_s11  ;;  %428 = vrot.lane.b32.xlu1 %v333_v41, %s1096_s11  ;;  %v311_v45 = vsel %vm309_vm4, %v304_v44, %v306_v42 }
  0xaf   : > { %446 = vrot.lane.b32.xlu0 %v352_v43, %s1096_s11 }
  0xb4   : > { %v294_v49 = vpop.permute.xlu1 %293 }
  0xb5   : > { %v300_v50 = vsel %vm297_vm5, %v294_v49, %v296_v48  ;;  %v292_v53 = vpop.permute.xlu0 %291 }
  0xb6   : > { %430 = vrot.lane.b32.xlu2 %v334_v46, %s1096_s11  ;;  %420 = vrot.lane.b32.xlu1 %v311_v45, %s1096_s11  ;;  %v299_v57 = vsel %vm297_vm5, %v292_v53, %v294_v49 }
  0xb7   : > { %436 = vrot.lane.b32.xlu0 %v342_v47, %s1096_s11 }
  0xbc   : > { %v280_v55 = vpop.permute.xlu1 %279 }
  0xbd   : > { %v287_v56 = vsel %vm285_vm7, %v280_v55, %v282_v54  ;;  %v302_v59 = vpop.permute.xlu0 %301  ;;  %v286_v0 = vsel %vm285_vm7, %v278_v61, %v280_v55 }
  0xbe   : > { %460 = vrot.lane.b32.xlu2 %v369_v51, %s1096_s11  ;;  %414 = vrot.lane.b32.xlu1 %v300_v50, %s1096_s11  ;;  %v310_v60 = vsel %vm309_vm4, %v302_v59, %v304_v44  ;;  %v373_v51 = vld [vmem:[%s1432_s2] sm:$0xff] }
  0xbf   : > { %462 = vrot.lane.b32.xlu0 %v370_v52, %s1096_s11  ;;  %v374_v52 = vld [vmem:[%s1432_s2 + $0x8] sm:$0xff] }
  0xc4   : > { %v290_v63 = vpop.permute.xlu1 %289 }
  0xc5   : > { %v284_v62 = vpop.permute.xlu0 %283  ;;  %v298_v2 = vsel %vm297_vm5, %v290_v63, %v292_v53  ;;  %v1097_v53 = vmov 0  }
  0xc6   : > { %422 = vrot.lane.b32.xlu2 %v312_v58, %s1096_s11  ;;  %404 = vrot.lane.b32.xlu1 %v287_v56, %s1096_s11  ;;  %v288_v1 = vsel %vm285_vm7, %v282_v54, %v284_v62  ;;  %917 = vst [vmem:[%s1276_s18] sm:$0xf] %v1097_v53 }
  0xc7   : > { %412 = vrot.lane.b32.xlu0 %v299_v57, %s1096_s11  ;;  %918 = vst [vmem:[%s1276_s18 + $0x14] sm:$0xf] %v1097_v53  ;;  %1070 = vset.pattern.permute.xlu1 %v1097_v53 }
  0xc8   : > { %1069 = vset.pattern.permute.xlu0 %v1097_v53  ;;  %1071 = vset.pattern.permute.xlu2 %v1097_v53 }
  0xce   : > { %416 = vrot.lane.b32.xlu1 %v296_v48, %s1096_s11  ;;  %418 = vrot.lane.b32.xlu2 %v310_v60, %s1096_s11 }
  0xcf   : > { %424 = vrot.lane.b32.xlu0 %v308_v39, %s1096_s11 }
  0xd6   : > { %402 = vrot.lane.b32.xlu1 %v286_v0, %s1096_s11  ;;  %406 = vrot.lane.b32.xlu2 %v288_v1, %s1096_s11  ;;  %v1025_v1 = vld [vmem:[%s1431_s1] sm:$0xf] }
  0xd7   : > { %410 = vrot.lane.b32.xlu0 %v298_v2, %s1096_s11  ;;  %v1048_v2 = vld [vmem:[%s1431_s1 + $0x4] sm:$0xf0] }
  0xde   : > { %394 = vrot.lane.b32.xlu1 %v1178_v20, %s1096_s11  ;;  %396 = vrot.lane.b32.xlu2 %v1166_v16, %s1096_s11 }
  0xdf   : > { %398 = vrot.lane.b32.xlu0 %v1164_v15, %s1096_s11  ;;  %v457_v3 = vpop.permute.xlu2 %456 }
  0xe6   : > { %408 = vrot.lane.b32.xlu2 %v284_v62, %s1096_s11  ;;  %382 = vperm.xlu1 %1070, %v374_v52  }
  0xe7   : > { %464 = vrot.lane.b32.xlu0 %v1195_v34, %s1096_s11  ;;  %v443_v4 = vpop.permute.xlu2 %442 }
  0xe8   : > { %v449_v6 = vpop.permute.xlu0 %448 }
  0xee   : > { %400 = vrot.lane.b32.xlu2 %v1168_v17, %s1096_s11 }
  0xef   : > { %377 = vperm.xlu0 %1069, %v373_v51  }
  0xf8   : > { %v451_v5 = vpop.permute.xlu1 %450 }
 0x100   : > { %v459_v7 = vpop.permute.xlu2 %458  ;;  %v441_v8 = vpop.permute.xlu1 %440 }
 0x108   : > { %v445_v9 = vpop.permute.xlu2 %444  ;;  %v433_v10 = vpop.permute.xlu1 %432 }
 0x109   : > { %v435_v11 = vpop.permute.xlu0 %434  ;;  %v485_v22 = vsel %vm466_vm8, %v443_v4, %v445_v9 }
 0x110   : > { %v431_v12 = vpop.permute.xlu2 %430  ;;  %v455_v13 = vpop.permute.xlu1 %454 }
 0x111   : > { %v427_v14 = vpop.permute.xlu0 %426  ;;  %v490_v21 = vsel %vm466_vm8, %v455_v13, %v457_v3  ;;  %v481_v37 = vsel %vm466_vm8, %v431_v12, %v433_v10 }
 0x118   : > { %v461_v15 = vpop.permute.xlu2 %460  ;;  %v439_v16 = vpop.permute.xlu1 %438 }
 0x119   : > { %v453_v18 = vpop.permute.xlu0 %452  ;;  %v491_v19 = vsel %vm466_vm8, %v459_v7, %v461_v15  ;;  %v484_v30 = vsel %vm466_vm8, %v439_v16, %v441_v8  ;;  %v1026_v8 = vor.u32 %v1048_v2, %v1025_v1  ;;  %v887_v2 = vld [vmem:[%s1434_s4] sm:$0xff] }
 0x11a   : > { %v488_v20 = vsel %vm466_vm8, %v451_v5, %v453_v18  ;;  %546 = vmatpush.bf16.msra.mxu1 %v491_v19  ;;  %v489_v17 = vsel %vm466_vm8, %v453_v18, %v455_v13 }
 0x11b   : > { %525 = vmatpush.bf16.msra.mxu0 %v488_v20  ;;  %553 = vmatpush.bf16.msra.mxu2 %v489_v17  ;;  %v609_v17 = vld [vmem:[%s1435_s5] sm:$0x7] }
 0x11d   : > { %1031 = vmatmul.msk.bf16.vlgmr.msra.gmra.mxu1 %vm521_vm9, %v1255_v31 }
 0x11e   : > { %581 = vmatpush.bf16.msrb.mxu1 %v490_v21 }
 0x11f   : > { %526 = vmatpush.bf16.msra.mxu0 %v485_v22  ;;  %v1311_v22 = vperm.slane %v609_v17, 1 }
 0x120   : > { %v423_v23 = vpop.permute.xlu2 %422  ;;  %v429_v24 = vpop.permute.xlu1 %428 }
 0x121   : > { %v447_v25 = vpop.permute.xlu0 %446  ;;  %v479_v38 = vsel %vm466_vm8, %v427_v14, %v429_v24  ;;  %v480_v39 = vsel %vm466_vm8, %v429_v24, %v431_v12 }
 0x122   : > { %v486_v26 = vsel %vm466_vm8, %v445_v9, %v447_v25  ;;  %v487_v27 = vsel %vm466_vm8, %v447_v25, %v449_v6  ;;  %v1317_v25 = vperm.slane %v609_v17, 0 }
 0x123   : > { %554 = vmatpush.bf16.msra.mxu2 %v486_v26  ;;  %582 = vmatpush.bf16.msrb.mxu1 %v487_v27 }
 0x127   : > { %583 = vmatpush.bf16.msrb.mxu1 %v484_v30  ;;  %v1321_v30 = vperm.slane %v609_v17, 2 }
 0x128   : > { %v421_v32 = vpop.permute.xlu1 %420  ;;  %v419_v33 = vpop.permute.xlu2 %418 }
 0x129   : > { %v437_v34 = vpop.permute.xlu0 %436  ;;  %v476_v42 = vsel %vm466_vm8, %v419_v33, %v421_v32  ;;  %v477_v43 = vsel %vm466_vm8, %v421_v32, %v423_v23 }
 0x12a   : > { %v482_v35 = vsel %vm466_vm8, %v435_v11, %v437_v34  ;;  %v483_v36 = vsel %vm466_vm8, %v437_v34, %v439_v16 }
 0x12b   : > { %527 = vmatpush.bf16.msra.mxu0 %v482_v35  ;;  %555 = vmatpush.bf16.msra.mxu2 %v483_v36 }
 0x12c   : > { %584 = vmatpush.bf16.msrb.mxu1 %v481_v37 }
 0x12f   : > { %528 = vmatpush.bf16.msra.mxu0 %v479_v38  ;;  %556 = vmatpush.bf16.msra.mxu2 %v480_v39 }
 0x130   : > { %v415_v40 = vpop.permute.xlu1 %414  ;;  %v407_v45 = vpop.permute.xlu2 %406 }
 0x131   : > { %v463_v41 = vpop.permute.xlu0 %462 }
 0x132   : > { %v492_v44 = vsel %vm466_vm8, %v461_v15, %v463_v41 }
 0x133   : > { %529 = vmatpush.bf16.msra.mxu0 %v476_v42  ;;  %557 = vmatpush.bf16.msra.mxu2 %v477_v43 }
 0x134   : > { %574 = vmatpush.bf16.msra.mxu3 %v492_v44 }
 0x137   : > { %1032 = vmatmul.msk.bf16.vlgmr.msra.gmra.mxu3 %vm521_vm9, %v1255_v31 }
 0x138   : > { %v405_v46 = vpop.permute.xlu1 %404  ;;  %v397_v49 = vpop.permute.xlu2 %396 }
 0x139   : > { %v413_v47 = vpop.permute.xlu0 %412  ;;  %v471_v50 = vsel %vm466_vm8, %v405_v46, %v407_v45 }
 0x13a   : > { %v474_v48 = vsel %vm466_vm8, %v413_v47, %v415_v40 }
 0x13b   : > { %558 = vmatpush.bf16.msra.mxu2 %v474_v48 }
 0x13f   : > { %559 = vmatpush.bf16.msra.mxu2 %v471_v50 }
 0x140   : > { %v417_v54 = vpop.permute.xlu1 %416  ;;  %v409_v58 = vpop.permute.xlu2 %408 }
 0x141   : > { %v425_v55 = vpop.permute.xlu0 %424  ;;  %v475_v57 = vsel %vm466_vm8, %v415_v40, %v417_v54  ;;  %v472_v62 = vsel %vm466_vm8, %v407_v45, %v409_v58 }
 0x142   : > { %v478_v56 = vsel %vm466_vm8, %v423_v23, %v425_v55 }
 0x143   : > { %585 = vmatpush.bf16.msrb.mxu1 %v478_v56 }
 0x147   : > { %586 = vmatpush.bf16.msrb.mxu1 %v475_v57 }
 0x148   : > { %v403_v59 = vpop.permute.xlu1 %402  ;;  %v401_v0 = vpop.permute.xlu2 %400 }
 0x149   : > { %v411_v60 = vpop.permute.xlu0 %410  ;;  %v470_v63 = vsel %vm466_vm8, %v403_v59, %v405_v46 }
 0x14a   : > { %v473_v61 = vsel %vm466_vm8, %v411_v60, %v413_v47 }
 0x14b   : > { %530 = vmatpush.bf16.msra.mxu0 %v473_v61  ;;  %587 = vmatpush.bf16.msrb.mxu1 %v472_v62 }
 0x14f   : > { %531 = vmatpush.bf16.msra.mxu0 %v470_v63 }
 0x150   : > { %v395_v3 = vpop.permute.xlu1 %394 }
 0x151   : > { %v399_v4 = vpop.permute.xlu0 %398  ;;  %v467_v5 = vsel %vm466_vm8, %v395_v3, %v397_v49  ;;  %v650_v3 = vlaneseq }
 0x152   : > { %v468_v6 = vsel %vm466_vm8, %v397_v49, %v399_v4  ;;  %v469_v7 = vsel %vm466_vm8, %v399_v4, %v401_v0 }
 0x153   : > { %532 = vmatpush.bf16.msra.mxu0 %v467_v5  ;;  %560 = vmatpush.bf16.msra.mxu2 %v468_v6  ;;  %v651_v4 = vshrl.u32 %v650_v3, 7 }
 0x154   : > { %588 = vmatpush.bf16.msrb.mxu1 %v469_v7  ;;  %v1098_v7 = vmov 0.0  }
 0x155   : > { %v652_v5 = vadd.s32 8, %v651_v4  ;;  %vm655_vm11 = vcmp.lt.s32.totalorder %v651_v4, 4  ;;  %vm705_vm12 = vcmp.ge.s32.totalorder %v651_v4, 4 }
 0x156   : > { %533 = vmatmul.bf16.vlgmr.msra.gmra.mxu0 %v1026_v8  ;;  %561 = vmatmul.bf16.vlgmr.msra.gmra.mxu2 %v1026_v8 }
 0x157   : > { %589 = vmatmul.bf16.vlgmr.msrb.gmra.mxu1 %v1026_v8  ;;  %vm760_vm13 = vcmp.lt.s32.totalorder %v652_v5, 12  ;;  %vm810_vm14 = vcmp.ge.s32.totalorder %v652_v5, 12  ;;  %v1354_v8 = vsel %vm655_vm11, 1.0, %v1098_v7  ;;  %vm928_vm11 = vcmask 1044000  }
 0x158   : > { %v383_v26 = vpop.permute.xlu1 %382 }
 0x159   : > { %v465_v9 = vpop.permute.xlu0 %464 }
 0x15a   : > { %v493_v10 = vsel %vm466_vm8, %v463_v41, %v465_v9  ;;  %v1356_v9 = vsel %vm705_vm12, 1.0, %v1098_v7  ;;  %vm929_vm12 = vcmask 556036  }
 0x15b   : > { %602 = vmatpush.bf16.msrb.mxu3 %v493_v10  ;;  %v1358_v10 = vsel %vm760_vm13, 1.0, %v1098_v7  ;;  %vm924_vm13 = vcmask 551936  }
 0x15e   : > { %1033 = vmatmul.msk.bf16.vlgmr.msrb.gmra.mxu3 %vm521_vm9, %v1255_v31 }
 0x161   : > { %v378_v15 = vpop.permute.xlu0 %377 }
 0x19a   : > { %v548_v11 = vpop.f32.mrf.mxu1 }
 0x1a2   : > { %v550_v13 = vpop.f32.mrf.mxu1 }
 0x1ba   : > { %v576_v12 = vpop.f32.mrf.mxu3 }
 0x1c2   : > { %v578_v19 = vpop.f32.mrf.mxu3 }
 0x1d3   : > { %v534_v14 = vpop.f32.mrf.mxu0 }
 0x1d4   : > { %v535_v16 = vadd.f32 %v534_v14, %v378_v15  ;;  %v590_v21 = vpop.f32.mrf.mxu1 }
 0x1d5   : > { %v591_v28 = vadd.f32 %v590_v21, %v378_v15 }
 0x1d6   : > { %v1315_v24 = vadd.f32 %v548_v11, %v535_v16  ;;  %v1360_v11 = vsel %vm810_vm14, 1.0, %v1098_v7  ;;  %vm1400_vm14 = vmor %vm929_vm12, %vm928_vm11 }
 0x1d8   : > { %v617_v34 = vmul.f32 %v1317_v25, %v1315_v24 }
 0x1d9   : > { %v562_v18 = vpop.f32.mrf.mxu2 }
 0x1da   : > { %v563_v20 = vadd.f32 %v562_v18, %v378_v15  ;;  %v634_v43 = vmul.f32 %v617_v34, %v1315_v24 }
 0x1db   : > { %v536_v27 = vpop.f32.mrf.mxu0 }
 0x1dc   : > { %v1313_v23 = vadd.f32 %v576_v12, %v563_v20  ;;  %v537_v31 = vadd.f32 %v536_v27, %v383_v26  ;;  %v592_v41 = vpop.f32.mrf.mxu1 }
 0x1dd   : > { %v593_v49 = vadd.f32 %v592_v41, %v383_v26 }
 0x1de   : > { %v618_v29 = vmul.f32 %v1311_v22, %v1313_v23  ;;  %v1332_v40 = vadd.f32 %v550_v13, %v537_v31 }
 0x1e0   : > { %v635_v37 = vmul.f32 %v618_v29, %v1313_v23  ;;  %v623_v42 = vadd.f32 %v618_v29, %v617_v34  ;;  %v620_v54 = vmul.f32 %v1317_v25, %v1332_v40 }
 0x1e1   : > { %v564_v32 = vpop.f32.mrf.mxu2  ;;  %v604_v33 = vpop.f32.mrf.mxu3 }
 0x1e2   : > { %v565_v35 = vadd.f32 %v564_v32, %v383_v26  ;;  %v1325_v36 = vadd.f32 %v604_v33, %v591_v28  ;;  %v640_v47 = vadd.f32 %v635_v37, %v634_v43  ;;  %v637_v59 = vmul.f32 %v620_v54, %v1332_v40 }
 0x1e4   : > { %v1328_v38 = vadd.f32 %v578_v19, %v565_v35  ;;  %v619_v39 = vmul.f32 %v1321_v30, %v1325_v36 }
 0x1e6   : > { %v625_v44 = vsel %vm624_vm10, %v619_v39, 0.0  ;;  %v636_v45 = vmul.f32 %v619_v39, %v1325_v36  ;;  %v621_v48 = vmul.f32 %v1311_v22, %v1328_v38 }
 0x1e7   : > { %v626_v46 = vadd.f32 %v625_v44, %v623_v42 }
 0x1e8   : > { %v641_v50 = vsel %vm624_vm10, %v636_v45, 0.0  ;;  %v638_v56 = vmul.f32 %v621_v48, %v1328_v38  ;;  %v629_v58 = vadd.f32 %v621_v48, %v620_v54 }
 0x1e9   : > { %v606_v51 = vpop.f32.mrf.mxu3  ;;  %627 = vadd.xlane.f32.xlu2 %v626_v46  ;;  %v642_v52 = vadd.f32 %v641_v50, %v640_v47 }
 0x1ea   : > { %v1342_v55 = vadd.f32 %v606_v51, %v593_v49  ;;  %v645_v63 = vadd.f32 %v638_v56, %v637_v59 }
 0x1eb   : > { %643 = vadd.xlane.f32.xlu0 %v642_v52 }
 0x1ec   : > { %v622_v57 = vmul.f32 %v1321_v30, %v1342_v55 }
 0x1ee   : > { %v630_v60 = vsel %vm624_vm10, %v622_v57, 0.0  ;;  %v639_v61 = vmul.f32 %v622_v57, %v1342_v55 }
 0x1ef   : > { %v631_v62 = vadd.f32 %v630_v60, %v629_v58 }
 0x1f0   : > { %v646_v0 = vsel %vm624_vm10, %v639_v61, 0.0 }
 0x1f1   : > { %632 = vadd.xlane.f32.xlu1 %v631_v62  ;;  %v647_v1 = vadd.f32 %v646_v0, %v645_v63 }
 0x1f3   : > { %648 = vadd.xlane.f32.xlu2 %v647_v1 }
 0x1ff   : > { %891 = vperm.xlu0 %1069, %v887_v2  }
 0x25c   : > { %v628_v6 = vpop.xlane.xlu2 %627 }
 0x25d   : > { %v663_v13 = vmul.f32 %v1354_v8, %v628_v6  ;;  %v715_v14 = vmul.f32 %v1356_v9, %v628_v6  ;;  %v767_v16 = vmul.f32 0.0, %v628_v6 }
 0x25e   : > { %v644_v12 = vpop.xlane.xlu0 %643 }
 0x25f   : > { %v672_v17 = vmul.f32 %v1354_v8, %v644_v12  ;;  %v724_v21 = vmul.f32 %v1356_v9, %v644_v12  ;;  %v776_v32 = vmul.f32 0.0, %v644_v12 }
 0x264   : > { %v633_v15 = vpop.xlane.xlu1 %632 }
 0x265   : > { %v664_v18 = vmul.f32 0.0, %v633_v15  ;;  %v768_v19 = vmul.f32 %v1358_v10, %v633_v15  ;;  %v820_v20 = vmul.f32 %v1360_v11, %v633_v15 }
 0x266   : > { %v649_v26 = vpop.xlane.xlu2 %648 }
 0x267   : > { %v665_v27 = vadd.f32 %v664_v18, %v663_v13  ;;  %v717_v28 = vadd.f32 %v715_v14, %v664_v18  ;;  %v769_v29 = vadd.f32 %v768_v19, %v767_v16  ;;  %v821_v31 = vadd.f32 %v820_v20, %v767_v16 }
 0x268   : > { %v673_v33 = vmul.f32 0.0, %v649_v26  ;;  %v777_v34 = vmul.f32 %v1358_v10, %v649_v26  ;;  %v829_v35 = vmul.f32 %v1360_v11, %v649_v26 }
 0x269   : > { %v666_v37 = vrot.slane %v665_v27, 4  ;;  %v718_v39 = vrot.slane %v717_v28, 4  ;;  %v770_v41 = vrot.slane %v769_v29, 4  ;;  %v822_v42 = vrot.slane %v821_v31, 4 }
 0x26a   : > { %v674_v43 = vadd.f32 %v673_v33, %v672_v17  ;;  %v726_v44 = vadd.f32 %v724_v21, %v673_v33  ;;  %v778_v45 = vadd.f32 %v777_v34, %v776_v32  ;;  %v830_v46 = vadd.f32 %v829_v35, %v776_v32 }
 0x26b   : > { %v667_v47 = vadd.f32 %v666_v37, %v665_v27  ;;  %v719_v48 = vadd.f32 %v718_v39, %v717_v28  ;;  %v771_v49 = vadd.f32 %v770_v41, %v769_v29  ;;  %v823_v50 = vadd.f32 %v822_v42, %v821_v31 }
 0x26c   : > { %v675_v51 = vrot.slane %v674_v43, 4  ;;  %v727_v52 = vrot.slane %v726_v44, 4  ;;  %v779_v54 = vrot.slane %v778_v45, 4  ;;  %v831_v56 = vrot.slane %v830_v46, 4 }
 0x26d   : > { %v668_v57 = vrot.slane %v667_v47, 2  ;;  %v720_v58 = vrot.slane %v719_v48, 2  ;;  %v772_v59 = vrot.slane %v771_v49, 2  ;;  %v824_v60 = vrot.slane %v823_v50, 2 }
 0x26e   : > { %v676_v61 = vadd.f32 %v675_v51, %v674_v43  ;;  %v728_v62 = vadd.f32 %v727_v52, %v726_v44  ;;  %v780_v63 = vadd.f32 %v779_v54, %v778_v45  ;;  %v832_v0 = vadd.f32 %v831_v56, %v830_v46 }
 0x26f   : > { %v669_v1 = vadd.f32 %v668_v57, %v667_v47  ;;  %v721_v2 = vadd.f32 %v720_v58, %v719_v48  ;;  %v773_v3 = vadd.f32 %v772_v59, %v771_v49  ;;  %v825_v4 = vadd.f32 %v824_v60, %v823_v50 }
 0x270   : > { %v677_v5 = vrot.slane %v676_v61, 2  ;;  %v729_v6 = vrot.slane %v728_v62, 2  ;;  %v781_v7 = vrot.slane %v780_v63, 2  ;;  %v833_v12 = vrot.slane %v832_v0, 2 }
 0x271   : > { %v670_v13 = vrot.slane %v669_v1, 1  ;;  %v722_v14 = vrot.slane %v721_v2, 1  ;;  %v774_v15 = vrot.slane %v773_v3, 1  ;;  %v826_v16 = vrot.slane %v825_v4, 1 }
 0x272   : > { %v678_v18 = vadd.f32 %v677_v5, %v676_v61  ;;  %v730_v19 = vadd.f32 %v729_v6, %v728_v62  ;;  %v782_v20 = vadd.f32 %v781_v7, %v780_v63  ;;  %v834_v17 = vadd.f32 %v833_v12, %v832_v0 }
 0x273   : > { %v671_v21 = vadd.f32 %v670_v13, %v669_v1  ;;  %v723_v26 = vadd.f32 %v722_v14, %v721_v2  ;;  %v775_v27 = vadd.f32 %v774_v15, %v773_v3  ;;  %v827_v28 = vadd.f32 %v826_v16, %v825_v4 }
 0x274   : > { %v679_v29 = vrot.slane %v678_v18, 1  ;;  %v731_v31 = vrot.slane %v730_v19, 1  ;;  %v783_v32 = vrot.slane %v782_v20, 1  ;;  %v835_v33 = vrot.slane %v834_v17, 1 }
 0x275   : > { %v681_v34 = vmul.f32 0.0009765625, %v671_v21  ;;  %v733_v35 = vmul.f32 0.0009765625, %v723_v26  ;;  %v785_v37 = vmul.f32 0.0009765625, %v775_v27  ;;  %v837_v39 = vmul.f32 0.0009765625, %v827_v28 }
 0x276   : > { %v680_v41 = vadd.f32 %v679_v29, %v678_v18  ;;  %v732_v42 = vadd.f32 %v731_v31, %v730_v19  ;;  %v784_v43 = vadd.f32 %v783_v32, %v782_v20  ;;  %v836_v44 = vadd.f32 %v835_v33, %v834_v17 }
 0x277   : > { %v802_v45 = vmul.f32 %v1358_v10, %v785_v37  ;;  %v683_v46 = vmul.f32 %v681_v34, %v681_v34  ;;  %v735_v47 = vmul.f32 %v733_v35, %v733_v35  ;;  %v787_v48 = vmul.f32 %v785_v37, %v785_v37 }
 0x278   : > { %v839_v49 = vmul.f32 %v837_v39, %v837_v39  ;;  %v682_v50 = vmul.f32 0.0009765625, %v680_v41  ;;  %v734_v51 = vmul.f32 0.0009765625, %v732_v42  ;;  %v786_v52 = vmul.f32 0.0009765625, %v784_v43 }
 0x279   : > { %v838_v54 = vmul.f32 0.0009765625, %v836_v44  ;;  %v697_v56 = vmul.f32 %v1354_v8, %v681_v34  ;;  %v749_v57 = vmul.f32 %v1356_v9, %v733_v35  ;;  %v801_v61 = vmul.f32 0.0, %v785_v37 }
 0x27a   : > { %v684_v58 = vsub.f32 %v682_v50, %v683_v46  ;;  %v736_v59 = vsub.f32 %v734_v51, %v735_v47  ;;  %v788_v60 = vsub.f32 %v786_v52, %v787_v48  ;;  %v698_v0 = vmul.f32 0.0, %v681_v34 }
 0x27b   : > { %v840_v62 = vsub.f32 %v838_v54, %v839_v49  ;;  %v751_v63 = vadd.f32 %v749_v57, %v697_v56  ;;  %v750_v1 = vmul.f32 0.0, %v733_v35  ;;  %v854_v5 = vmul.f32 %v1360_v11, %v837_v39 }
 0x27c   : > { %v685_v2 = vmax.f32 %v684_v58, 0.0  ;;  %v737_v3 = vmax.f32 %v736_v59, 0.0  ;;  %v789_v4 = vmax.f32 %v788_v60, 0.0  ;;  %v853_v12 = vmul.f32 0.0, %v837_v39 }
 0x27d   : > { %v841_v6 = vmax.f32 %v840_v62, 0.0  ;;  %v803_v7 = vadd.f32 %v801_v61, %v751_v63  ;;  %v752_v13 = vadd.f32 %v750_v1, %v698_v0 }
 0x27e   : > { %v686_v14 = vadd.f32 1e-05, %v685_v2  ;;  %v738_v15 = vadd.f32 1e-05, %v737_v3  ;;  %v790_v16 = vadd.f32 1e-05, %v789_v4 }
 0x27f   : > { %v842_v18 = vadd.f32 1e-05, %v841_v6  ;;  %v1374_v19 = vadd.f32 %v853_v12, %v803_v7  ;;  %v804_v20 = vadd.f32 %v802_v45, %v752_v13  ;;  %v867_v7 = vld [vmem:[%s1433_s3] sm:$0xff] }
 0x280   : > { %1072 = vrsqrt.f32 %v686_v14  ;;  %vm693_vm1 = vweird.f32 %v686_v14  ;;  %vm745_vm4 = vweird.f32 %v738_v15  ;;  %vm797_vm7 = vweird.f32 %v790_v16 }
 0x281   : > { %1074 = vrsqrt.f32 %v738_v15  ;;  %v1376_v17 = vadd.f32 %v854_v5, %v804_v20  ;;  %vm849_vm8 = vweird.f32 %v842_v18 }
 0x282   : > { %1076 = vrsqrt.f32 %v790_v16 }
 0x283   : > { %1078 = vrsqrt.f32 %v842_v18 }
 0x286   : > { %v1073_v21 = vpop.eup %1072 }
 0x287   : > { %v1075_v26 = vpop.eup %1074  ;;  %v688_v27 = vmul.f32 %v1073_v21, %v686_v14  ;;  %vm694_vm15 = vweird.f32 %v1073_v21 }
 0x288   : > { %v1077_v28 = vpop.eup %1076  ;;  %v740_v29 = vmul.f32 %v1075_v26, %v738_v15  ;;  %vm746_vm0 = vweird.f32 %v1075_v26  ;;  %vm695_vm3 = vmor %vm693_vm1, %vm694_vm15  ;;  %v862_v15 = vsub.f32 %v1313_v23, %v1374_v19 }
 0x289   : > { %v1079_v31 = vpop.eup %1078  ;;  %v792_v32 = vmul.f32 %v1077_v28, %v790_v16  ;;  %v689_v33 = vmul.f32 %v1073_v21, %v688_v27  ;;  %vm798_vm2 = vweird.f32 %v1077_v28  ;;  %vm747_vm6 = vmor %vm745_vm4, %vm746_vm0  ;;  %v863_v16 = vsub.f32 %v1325_v36, %v1374_v19  ;;  %v892_v27 = vpop.permute.xlu0 %891 }
 0x28a   : > { %v741_v34 = vmul.f32 %v1075_v26, %v740_v29  ;;  %v844_v35 = vmul.f32 %v1079_v31, %v842_v18  ;;  %vm850_vm5 = vweird.f32 %v1079_v31  ;;  %vm799_vm9 = vmor %vm797_vm7, %vm798_vm2 }
 0x28b   : > { %v690_v37 = vmul.f32 0.5, %v689_v33  ;;  %v793_v39 = vmul.f32 %v1077_v28, %v792_v32  ;;  %vm851_vm10 = vmor %vm849_vm8, %vm850_vm5 }
 0x28c   : > { %v742_v41 = vmul.f32 0.5, %v741_v34  ;;  %v845_v42 = vmul.f32 %v1079_v31, %v844_v35 }
 0x28d   : > { %v691_v43 = vsub.f32 1.5, %v690_v37  ;;  %v794_v44 = vmul.f32 0.5, %v793_v39  ;;  %v864_v39 = vsub.f32 %v1332_v40, %v1376_v17 }
 0x28e   : > { %v743_v45 = vsub.f32 1.5, %v742_v41  ;;  %v846_v46 = vmul.f32 0.5, %v845_v42  ;;  %v865_v41 = vsub.f32 %v1328_v38, %v1376_v17  ;;  %v866_v42 = vsub.f32 %v1342_v55, %v1376_v17 }
 0x28f   : > { %v692_v47 = vmul.f32 %v1073_v21, %v691_v43  ;;  %v795_v48 = vsub.f32 1.5, %v794_v44 }
 0x290   : > { %v744_v49 = vmul.f32 %v1075_v26, %v743_v45  ;;  %v847_v50 = vsub.f32 1.5, %v846_v46 }
 0x291   : > { %v696_v51 = vsel %vm695_vm3, %v1073_v21, %v692_v47  ;;  %v796_v52 = vmul.f32 %v1077_v28, %v795_v48 }
 0x292   : > { %v702_v54 = vmul.f32 0.0, %v696_v51  ;;  %v748_v56 = vsel %vm747_vm6, %v1075_v26, %v744_v49  ;;  %v848_v57 = vmul.f32 %v1079_v31, %v847_v50  ;;  %v701_v58 = vmul.f32 %v1354_v8, %v696_v51  ;;  %v868_v8 = vld [vmem:[%s1433_s3 + $0x8] sm:$0xff] }
 0x293   : > { %v754_v59 = vmul.f32 0.0, %v748_v56  ;;  %v800_v60 = vsel %vm799_vm9, %v1077_v28, %v796_v52  ;;  %v753_v61 = vmul.f32 %v1356_v9, %v748_v56 }
 0x294   : > { %v852_v62 = vsel %vm851_vm10, %v1079_v31, %v848_v57  ;;  %v806_v0 = vmul.f32 %v1358_v10, %v800_v60  ;;  %v805_v2 = vmul.f32 0.0, %v800_v60  ;;  %v888_v10 = vld [vmem:[%s1434_s4 + $0x8] sm:$0xff] }
 0x295   : > { %v756_v63 = vadd.f32 %v754_v59, %v702_v54  ;;  %v755_v1 = vadd.f32 %v753_v61, %v701_v58  ;;  %v858_v4 = vmul.f32 %v1360_v11, %v852_v62  ;;  %v857_v6 = vmul.f32 0.0, %v852_v62 }
 0x296   : > { %v861_v11 = vsub.f32 %v1315_v24, %v1374_v19 }
 0x297   : > { %v808_v3 = vadd.f32 %v806_v0, %v756_v63  ;;  %v807_v5 = vadd.f32 %v805_v2, %v755_v1 }
 0x299   : > { %v860_v9 = vadd.f32 %v858_v4, %v808_v3  ;;  %v859_v12 = vadd.f32 %v857_v6, %v807_v5 }
 0x29b   : > { %v870_v13 = vmul.f32 %v868_v8, %v860_v9  ;;  %v869_v14 = vmul.f32 %v867_v7, %v859_v12 }
 0x29d   : > { %878 = vperm.xlu1 %1070, %v870_v13   ;;  %873 = vperm.xlu2 %1071, %v869_v14  }
 0x2a5   : > { %896 = vperm.xlu2 %1071, %v888_v10  }
 0x2f7   : > { %v874_v18 = vpop.permute.xlu2 %873 }
 0x2f8   : > { %v881_v20 = vmul.f32 %v874_v18, %v861_v11  ;;  %v882_v21 = vmul.f32 %v874_v18, %v862_v15  ;;  %v883_v26 = vmul.f32 %v874_v18, %v863_v16 }
 0x2fa   : > { %v899_v28 = vadd.f32 %v892_v27, %v881_v20  ;;  %v900_v29 = vadd.f32 %v892_v27, %v882_v21  ;;  %v901_v31 = vadd.f32 %v892_v27, %v883_v26 }
 0x2fc   : > { %v905_v32 = vmax.f32 %v899_v28, 0.0  ;;  %v906_v33 = vmax.f32 %v900_v29, 0.0  ;;  %v907_v24 = vmax.f32 %v901_v31, 0.0 }
 0x2fe   : > { %v911_v23 = vmul.f32 %v905_v32, %v1317_v25  ;;  %v912_v34 = vmul.f32 %v906_v33, %v1311_v22  ;;  %v913_v36 = vmul.f32 %v907_v24, %v1321_v30 }
 0x2ff   : > { %v897_v47 = vpop.permute.xlu2 %896 }
 0x300   : > { %v919_v19 = vpack.c.bf16 %v912_v34, %v911_v23  ;;  %v920_v35 = vpack.c.bf16 %v913_v36, %v913_v36 }
 0x302   : > { %923 = vst [vmem:[%s1276_s18 + $0x4] sm:$0xff] %v919_v19 }
 0x303   : > { %925 = vst.msk [vmem:[%s1276_s18 + $0xc] sm:$0xf] %vm924_vm13, %v920_v35 }
 0x304   : > { %931 = vst.msk [vmem:[%s1276_s18 + $0xc] sm:$0xff] %vm1400_vm14, %v1097_v53 }
 0x30f   : > { %v879_v43 = vpop.permute.xlu1 %878 }
 0x310   : > { %v884_v44 = vmul.f32 %v879_v43, %v864_v39  ;;  %v885_v45 = vmul.f32 %v879_v43, %v865_v41  ;;  %v886_v46 = vmul.f32 %v879_v43, %v866_v42 }
 0x312   : > { %v902_v48 = vadd.f32 %v897_v47, %v884_v44  ;;  %v903_v49 = vadd.f32 %v897_v47, %v885_v45  ;;  %v904_v50 = vadd.f32 %v897_v47, %v886_v46 }
 0x314   : > { %v908_v51 = vmax.f32 %v902_v48, 0.0  ;;  %v909_v52 = vmax.f32 %v903_v49, 0.0  ;;  %v910_v40 = vmax.f32 %v904_v50, 0.0 }
 0x316   : > { %v914_v54 = vmul.f32 %v908_v51, %v1317_v25  ;;  %v915_v38 = vmul.f32 %v909_v52, %v1311_v22  ;;  %v916_v55 = vmul.f32 %v910_v40, %v1321_v30 }
 0x318   : > { %v921_v17 = vpack.c.bf16 %v915_v38, %v914_v54  ;;  %v922_v56 = vpack.c.bf16 %v916_v55, %v916_v55 }
 0x31a   : > { %926 = vst [vmem:[%s1276_s18 + $0x18] sm:$0xff] %v921_v17 }
 0x31b   : > { %927 = vst.msk [vmem:[%s1276_s18 + $0x20] sm:$0xf] %vm924_vm13, %v922_v56 }
 0x31c   : > { %932 = vst.msk [vmem:[%s1276_s18 + $0x20] sm:$0xff] %vm1400_vm14, %v1097_v53 }
 0x31d PF: > { %s16_s21 = sadd.s32 1, %s1086_s21  }
 0x31e   : > { %p13_p4 = scmp.ge.s32.totalorder %s16_s21, 4  }
 0x320   :  { %15 = sbr.rel (!%p13_p4) target bundleno = 1 (0x1), region = 74 }

// kernel: semantic_fpn_forward.31
= control target key start
LH: loop header
LB: loop body
LE: loop exit
PB: predicated region body
PF: predicated region fallthrough
CT: control target
= control target key end

     0   :  { %s512_s15 = smov 0   ;;  %s565_s0 = inlined_call_operand.vmem [shape: bf16[2,16,292], index: 0, kind: input, shape index: {}]   ;;  %s566_s1 = inlined_call_operand.vmem [shape: bf16[16,144], index: 1, kind: input, shape index: {}]   ;;  %s567_s2 = inlined_call_operand.vmem [shape: f32[16,1], index: 2, kind: input, shape index: {}]   ;;  %s568_s3 = inlined_call_operand.vmem [shape: f32[1,36], index: 3, kind: input, shape index: {}]   ;;  %s569_s4 = inlined_call_operand.vmem [shape: bf16[2,16,292], index: 4, kind: output, shape index: {}]  }
   0x1 LB: > { %s412_s16 = sadd.s32 4294967295, %s475_s15   ;;  %p416_p0 = scmp.ge.s32.totalorder %s475_s15, 1  ;;  %s475_s15 = sphi %s512_s15, %s14_s15  }
   0x2   : > { %p162_p1 = scmp.lt.s32.totalorder %s475_s15, 3 }
   0x4   : > { %p163_p2 = pnand %p416_p0, %p162_p1 }
   0x5   : > { %p188_p3 = scmp.lt.s32.totalorder (!%p163_p2), %s412_s16, 1  ;;  %s477_s21 = smov (!%p163_p2), 120  }
   0x6   : > { %166 = sbr.rel (%p163_p2) target bundleno = 429 (0x1ad), region = 36  ;;  %s478_s22 = smov (!%p163_p2), 115  }
   0x7   : > { %s479_s23 = smov (!%p163_p2), 122   ;;  %s480_s24 = smov (!%p163_p2), 121  }
   0x8   : > { %s481_s25 = smov (!%p163_p2), 116   ;;  %s482_s26 = smov (!%p163_p2), 126  }
   0x9   : > { %s483_s27 = smov (!%p163_p2), 127   ;;  %s484_s28 = smov (!%p163_p2), 114  }
   0xa   : > { %s485_s29 = smov (!%p163_p2), 7  }
   0xb   : > { %s571_s16 = smov (!%p188_p3, %s412_s16), 1  ;;  %vm227_vm0 = vcmask 998400   ;;  %vm221_vm1 = vcmask 1031168   ;;  %vm215_vm2 = vcmask 1039360   ;;  %v445_v28 = vld [vmem:[%s566_s1 + $0x4] sm:$0xf] }
   0xc   : > { %s447_s17 = smul.u32 24, %s571_s16  ;;  %v435_v29 = vld [vmem:[%s566_s1 + $0x8] sm:$0xf0]  ;;  %v246_v30 = vld [vmem:[%s567_s2] sm:$0xff]  ;;  %v486_v32 = vmov 0   ;;  %vm307_vm3 = vcmask 130048  }
   0xd   : > { %v247_v31 = vld [vmem:[%s567_s2 + $0x8] sm:$0xff]  ;;  %466 = vset.pattern.permute.xlu0 %v486_v32  ;;  %467 = vset.pattern.permute.xlu1 %v486_v32  ;;  %v438_v35 = vor.u32 %v445_v28, %v435_v29  ;;  %vm293_vm4 = vcmask 56320   ;;  %v433_v43 = vld [vmem:[%s566_s1] sm:$0xf]  ;;  %vm352_vm5 = vcmask 1043744   ;;  %vm353_vm6 = vcmask 293892  }
   0xe   : > { %s192_s20 = scalar_lea.vmem %s565_s0, %s447_s17  ;;  %s539_s10 = scalar_lea.vmem %s569_s4, %s447_s17  ;;  %v446_v44 = vld [vmem:[%s566_s1 + $0x4] sm:$0xf0]  ;;  %v468_v53 = vld [vmem:[%s568_s3] ss:$0 sm:$0xff]  ;;  %vm349_vm7 = vcmask 289792   ;;  %vm354_vm8 = vmor %vm353_vm6, %vm352_vm5 }
   0xf   : > { %v429_v0 = vld [vmem:[%s192_s20 + $0x4] sm:$0xf]  ;;  %v444_v1 = vld [vmem:[%s192_s20 + $0xc] sm:$0xf0]  ;;  %v421_v2 = vld [vmem:[%s192_s20] sm:$0xf]  ;;  %v434_v48 = vor.u32 %v446_v44, %v433_v43 }
  0x10   : > { %v430_v3 = vor.u32 %v444_v1, %v429_v0  ;;  %v443_v4 = vld [vmem:[%s192_s20 + $0x8] sm:$0xf0]  ;;  %v442_v6 = vld [vmem:[%s192_s20 + $0x4] sm:$0xf]  ;;  %v423_v7 = vld [vmem:[%s192_s20 + $0xc] sm:$0xf0] }
  0x11   : > { %v422_v5 = vor.u32 %v443_v4, %v421_v2  ;;  %v426_v8 = vor.u32 %v442_v6, %v423_v7  ;;  %345 = vst [vmem:[%s539_s10] sm:$0xf] %v486_v32 }
  0x12   : > { %236 = vrot.lane.b32.xlu1 %v430_v3, %s477_s21  ;;  %240 = vrot.lane.b32.xlu0 %v430_v3, %s478_s22  ;;  %346 = vst [vmem:[%s539_s10 + $0xc] sm:$0xf] %v486_v32 }
  0x13   : > { %223 = vrot.lane.b32.xlu2 %v422_v5, %s479_s23 }
  0x1a   : > { %234 = vrot.lane.b32.xlu1 %v430_v3, %s480_s24  ;;  %238 = vrot.lane.b32.xlu0 %v430_v3, %s481_s25 }
  0x1b   : > { %225 = vrot.lane.b32.xlu2 %v426_v8, %s479_s23 }
  0x22   : > { %217 = vrot.lane.b32.xlu0 %v422_v5, %s482_s26  ;;  %219 = vrot.lane.b32.xlu1 %v426_v8, %s482_s26 }
  0x23   : > { %211 = vrot.lane.b32.xlu2 %v422_v5, %s483_s27 }
  0x2a   : > { %213 = vrot.lane.b32.xlu0 %v426_v8, %s483_s27  ;;  %242 = vrot.lane.b32.xlu1 %v430_v3, %s484_s28 }
  0x6d   : > { %v224_v9 = vpop.permute.xlu2 %223 }
  0x75   : > { %v226_v14 = vpop.permute.xlu2 %225 }
  0x76   : > { %v228_v17 = vsel %vm227_vm0, %v224_v9, %v226_v14 }
  0x7d   : > { %v212_v19 = vpop.permute.xlu2 %211 }
  0x84   : > { %v237_v10 = vpop.permute.xlu1 %236  ;;  %v241_v11 = vpop.permute.xlu0 %240 }
  0x85   : > { %289 = vrot.lane.b32.xlu2 %v241_v11, %s485_s29  ;;  %285 = vrot.lane.b32.xlu1 %v237_v10, %s485_s29 }
  0x8c   : > { %v235_v12 = vpop.permute.xlu1 %234  ;;  %v239_v13 = vpop.permute.xlu0 %238 }
  0x8d   : > { %287 = vrot.lane.b32.xlu0 %v239_v13, %s485_s29  ;;  %283 = vrot.lane.b32.xlu2 %v235_v12, %s485_s29 }
  0x8e   : > { %281 = vrot.lane.b32.xlu1 %v226_v14, %s485_s29 }
  0x94   : > { %v218_v15 = vpop.permute.xlu0 %217  ;;  %v220_v16 = vpop.permute.xlu1 %219 }
  0x95   : > { %279 = vrot.lane.b32.xlu0 %v228_v17, %s485_s29  ;;  %v222_v18 = vsel %vm221_vm1, %v218_v15, %v220_v16 }
  0x96   : > { %275 = vrot.lane.b32.xlu2 %v222_v18, %s485_s29 }
  0x9c   : > { %v214_v20 = vpop.permute.xlu0 %213  ;;  %v243_v22 = vpop.permute.xlu1 %242 }
  0x9d   : > { %277 = vrot.lane.b32.xlu0 %v220_v16, %s485_s29  ;;  %v216_v21 = vsel %vm215_vm2, %v212_v19, %v214_v20 }
  0x9e   : > { %273 = vrot.lane.b32.xlu2 %v214_v20, %s485_s29  ;;  %271 = vrot.lane.b32.xlu1 %v216_v21, %s485_s29 }
  0xa5   : > { %267 = vrot.lane.b32.xlu0 %v422_v5, %s485_s29 }
  0xa6   : > { %269 = vrot.lane.b32.xlu1 %v426_v8, %s485_s29  ;;  %291 = vrot.lane.b32.xlu2 %v243_v22, %s485_s29 }
  0xad   : > { %250 = vperm.xlu0 %466, %v246_v30  }
  0xae   : > { %255 = vperm.xlu1 %467, %v247_v31  }
  0xdf   : > { %v290_v23 = vpop.permute.xlu2 %289 }
  0xe0   : > { %311 = vmatpush.bf16.msra.mxu0 %v290_v23 }
  0xe7   : > { %v284_v24 = vpop.permute.xlu2 %283 }
  0xf0   : > { %v276_v25 = vpop.permute.xlu2 %275 }
  0xf7   : > { %v286_v27 = vpop.permute.xlu1 %285 }
  0xf8   : > { %v274_v26 = vpop.permute.xlu2 %273 }
  0xff   : > { %v288_v33 = vpop.permute.xlu0 %287 }
 0x100   : > { %312 = vmatpush.bf16.msra.mxu0 %v288_v33  ;;  %v292_v34 = vpop.permute.xlu2 %291  ;;  %v282_v36 = vpop.permute.xlu1 %281 }
 0x101   : > { %332 = vmatpush.bf16.msra.mxu1 %v292_v34 }
 0x104   : > { %313 = vmatpush.bf16.msra.mxu0 %v286_v27  ;;  %439 = vmatmul.msk.bf16.vlgmr.msra.gmra.mxu1 %vm307_vm3, %v438_v35 }
 0x107   : > { %v280_v37 = vpop.permute.xlu0 %279 }
 0x108   : > { %314 = vmatpush.bf16.msra.mxu0 %v284_v24  ;;  %v297_v38 = vsel %vm293_vm4, %v280_v37, %v282_v36 }
 0x10c   : > { %315 = vmatpush.bf16.msra.mxu0 %v297_v38 }
 0x10f   : > { %v278_v39 = vpop.permute.xlu0 %277 }
 0x110   : > { %v272_v40 = vpop.permute.xlu1 %271  ;;  %v296_v41 = vsel %vm293_vm4, %v276_v25, %v278_v39 }
 0x111   : > { %316 = vmatpush.bf16.msra.mxu0 %v296_v41  ;;  %v295_v42 = vsel %vm293_vm4, %v272_v40, %v274_v26 }
 0x115   : > { %317 = vmatpush.bf16.msra.mxu0 %v295_v42 }
 0x117   : > { %v268_v45 = vpop.permute.xlu0 %267 }
 0x118   : > { %v270_v46 = vpop.permute.xlu1 %269 }
 0x119   : > { %v294_v47 = vsel %vm293_vm4, %v268_v45, %v270_v46 }
 0x11a   : > { %318 = vmatpush.bf16.msra.mxu0 %v294_v47 }
 0x11d   : > { %319 = vmatmul.bf16.vlgmr.msra.gmra.mxu0 %v434_v48 }
 0x11f   : > { %v251_v49 = vpop.permute.xlu0 %250 }
 0x120   : > { %v256_v56 = vpop.permute.xlu1 %255 }
 0x181   : > { %v334_v50 = vpop.f32.mrf.mxu1 }
 0x189   : > { %v336_v60 = vpop.f32.mrf.mxu1 }
 0x19a   : > { %v320_v51 = vpop.f32.mrf.mxu0 }
 0x19b   : > { %v321_v52 = vadd.f32 %v320_v51, %v251_v49 }
 0x19d   : > { %v335_v54 = vadd.f32 %v334_v50, %v321_v52 }
 0x19f   : > { %v343_v55 = vmul.f32 %v468_v53, %v335_v54 }
 0x1a1   : > { %v347_v57 = vpack.c.bf16 %v343_v55, %v343_v55 }
 0x1a2   : > { %v322_v58 = vpop.f32.mrf.mxu0 }
 0x1a3   : > { %350 = vst.msk [vmem:[%s539_s10 + $0x4] sm:$0xf] %vm349_vm7, %v347_v57  ;;  %v323_v59 = vadd.f32 %v322_v58, %v256_v56 }
 0x1a4   : > { %355 = vst.msk [vmem:[%s539_s10 + $0x4] sm:$0xff] %vm354_vm8, %v486_v32 }
 0x1a5   : > { %v337_v61 = vadd.f32 %v336_v60, %v323_v59 }
 0x1a7   : > { %v344_v62 = vmul.f32 %v468_v53, %v337_v61 }
 0x1a9   : > { %v348_v63 = vpack.c.bf16 %v344_v62, %v344_v62 }
 0x1ab   : > { %351 = vst.msk [vmem:[%s539_s10 + $0x10] sm:$0xf] %vm349_vm7, %v348_v63 }
 0x1ac   : > { %356 = vst.msk [vmem:[%s539_s10 + $0x10] sm:$0xff] %vm354_vm8, %v486_v32 }
 0x1ad PF: > { %s14_s15 = sadd.s32 1, %s475_s15  }
 0x1ae   : > { %p11_p4 = scmp.ge.s32.totalorder %s14_s15, 4  }
 0x1b0   :  { %13 = sbr.rel (!%p11_p4) target bundleno = 1 (0x1), region = 66 }

// kernel: semantic_fpn_forward.32
= control target key start
LH: loop header
LB: loop body
LE: loop exit
PB: predicated region body
PF: predicated region fallthrough
CT: control target
= control target key end

     0   :  { %s512_s15 = smov 0   ;;  %s565_s0 = inlined_call_operand.vmem [shape: bf16[2,16,356], index: 0, kind: input, shape index: {}]   ;;  %s566_s1 = inlined_call_operand.vmem [shape: bf16[16,144], index: 1, kind: input, shape index: {}]   ;;  %s567_s2 = inlined_call_operand.vmem [shape: f32[16,1], index: 2, kind: input, shape index: {}]   ;;  %s568_s3 = inlined_call_operand.vmem [shape: f32[1,100], index: 3, kind: input, shape index: {}]   ;;  %s569_s4 = inlined_call_operand.vmem [shape: bf16[2,16,356], index: 4, kind: output, shape index: {}]  }
   0x1 LB: > { %s412_s16 = sadd.s32 4294967295, %s475_s15   ;;  %p416_p0 = scmp.ge.s32.totalorder %s475_s15, 1  ;;  %s475_s15 = sphi %s512_s15, %s14_s15  }
   0x2   : > { %p162_p1 = scmp.lt.s32.totalorder %s475_s15, 3 }
   0x4   : > { %p163_p2 = pnand %p416_p0, %p162_p1 }
   0x5   : > { %p188_p3 = scmp.lt.s32.totalorder (!%p163_p2), %s412_s16, 1  ;;  %s477_s21 = smov (!%p163_p2), 116  }
   0x6   : > { %166 = sbr.rel (%p163_p2) target bundleno = 429 (0x1ad), region = 36  ;;  %s478_s22 = smov (!%p163_p2), 107  }
   0x7   : > { %s479_s23 = smov (!%p163_p2), 118   ;;  %s480_s24 = smov (!%p163_p2), 117  }
   0x8   : > { %s481_s25 = smov (!%p163_p2), 108   ;;  %s482_s26 = smov (!%p163_p2), 126  }
   0x9   : > { %s483_s27 = smov (!%p163_p2), 127   ;;  %s484_s28 = smov (!%p163_p2), 106  }
   0xa   : > { %s485_s29 = smov (!%p163_p2), 11  }
   0xb   : > { %s571_s16 = smov (!%p188_p3, %s412_s16), 1  ;;  %vm227_vm0 = vcmask 965632   ;;  %vm221_vm1 = vcmask 1031168   ;;  %vm215_vm2 = vcmask 1039360   ;;  %v445_v28 = vld [vmem:[%s566_s1 + $0x4] sm:$0xf] }
   0xc   : > { %s447_s17 = smul.u32 24, %s571_s16  ;;  %v435_v29 = vld [vmem:[%s566_s1 + $0x8] sm:$0xf0]  ;;  %v246_v30 = vld [vmem:[%s567_s2] sm:$0xff]  ;;  %v486_v32 = vmov 0   ;;  %vm307_vm3 = vcmask 130048  }
   0xd   : > { %v247_v31 = vld [vmem:[%s567_s2 + $0x8] sm:$0xff]  ;;  %466 = vset.pattern.permute.xlu0 %v486_v32  ;;  %467 = vset.pattern.permute.xlu1 %v486_v32  ;;  %v438_v35 = vor.u32 %v445_v28, %v435_v29  ;;  %vm293_vm4 = vcmask 89088   ;;  %v433_v43 = vld [vmem:[%s566_s1] sm:$0xf]  ;;  %vm352_vm5 = vcmask 1044256   ;;  %vm353_vm6 = vcmask 818180  }
   0xe   : > { %s192_s20 = scalar_lea.vmem %s565_s0, %s447_s17  ;;  %s539_s10 = scalar_lea.vmem %s569_s4, %s447_s17  ;;  %v446_v44 = vld [vmem:[%s566_s1 + $0x4] sm:$0xf0]  ;;  %v468_v53 = vld [vmem:[%s568_s3] ss:$0 sm:$0xff]  ;;  %vm349_vm7 = vcmask 814080   ;;  %vm354_vm8 = vmor %vm353_vm6, %vm352_vm5 }
   0xf   : > { %v429_v0 = vld [vmem:[%s192_s20 + $0x4] sm:$0xf]  ;;  %v444_v1 = vld [vmem:[%s192_s20 + $0xc] sm:$0xf0]  ;;  %v421_v2 = vld [vmem:[%s192_s20] sm:$0xf]  ;;  %v434_v48 = vor.u32 %v446_v44, %v433_v43 }
  0x10   : > { %v430_v3 = vor.u32 %v444_v1, %v429_v0  ;;  %v443_v4 = vld [vmem:[%s192_s20 + $0x8] sm:$0xf0]  ;;  %v442_v6 = vld [vmem:[%s192_s20 + $0x4] sm:$0xf]  ;;  %v423_v7 = vld [vmem:[%s192_s20 + $0xc] sm:$0xf0] }
  0x11   : > { %v422_v5 = vor.u32 %v443_v4, %v421_v2  ;;  %v426_v8 = vor.u32 %v442_v6, %v423_v7  ;;  %345 = vst [vmem:[%s539_s10] sm:$0xf] %v486_v32 }
  0x12   : > { %236 = vrot.lane.b32.xlu1 %v430_v3, %s477_s21  ;;  %240 = vrot.lane.b32.xlu0 %v430_v3, %s478_s22  ;;  %346 = vst [vmem:[%s539_s10 + $0xc] sm:$0xf] %v486_v32 }
  0x13   : > { %223 = vrot.lane.b32.xlu2 %v422_v5, %s479_s23 }
  0x1a   : > { %234 = vrot.lane.b32.xlu1 %v430_v3, %s480_s24  ;;  %238 = vrot.lane.b32.xlu0 %v430_v3, %s481_s25 }
  0x1b   : > { %225 = vrot.lane.b32.xlu2 %v426_v8, %s479_s23 }
  0x22   : > { %217 = vrot.lane.b32.xlu0 %v422_v5, %s482_s26  ;;  %219 = vrot.lane.b32.xlu1 %v426_v8, %s482_s26 }
  0x23   : > { %211 = vrot.lane.b32.xlu2 %v422_v5, %s483_s27 }
  0x2a   : > { %213 = vrot.lane.b32.xlu0 %v426_v8, %s483_s27  ;;  %242 = vrot.lane.b32.xlu1 %v430_v3, %s484_s28 }
  0x6d   : > { %v224_v9 = vpop.permute.xlu2 %223 }
  0x75   : > { %v226_v14 = vpop.permute.xlu2 %225 }
  0x76   : > { %v228_v17 = vsel %vm227_vm0, %v224_v9, %v226_v14 }
  0x7d   : > { %v212_v19 = vpop.permute.xlu2 %211 }
  0x84   : > { %v237_v10 = vpop.permute.xlu1 %236  ;;  %v241_v11 = vpop.permute.xlu0 %240 }
  0x85   : > { %289 = vrot.lane.b32.xlu2 %v241_v11, %s485_s29  ;;  %285 = vrot.lane.b32.xlu1 %v237_v10, %s485_s29 }
  0x8c   : > { %v235_v12 = vpop.permute.xlu1 %234  ;;  %v239_v13 = vpop.permute.xlu0 %238 }
  0x8d   : > { %287 = vrot.lane.b32.xlu0 %v239_v13, %s485_s29  ;;  %283 = vrot.lane.b32.xlu2 %v235_v12, %s485_s29 }
  0x8e   : > { %281 = vrot.lane.b32.xlu1 %v226_v14, %s485_s29 }
  0x94   : > { %v218_v15 = vpop.permute.xlu0 %217  ;;  %v220_v16 = vpop.permute.xlu1 %219 }
  0x95   : > { %279 = vrot.lane.b32.xlu0 %v228_v17, %s485_s29  ;;  %v222_v18 = vsel %vm221_vm1, %v218_v15, %v220_v16 }
  0x96   : > { %275 = vrot.lane.b32.xlu2 %v222_v18, %s485_s29 }
  0x9c   : > { %v214_v20 = vpop.permute.xlu0 %213  ;;  %v243_v22 = vpop.permute.xlu1 %242 }
  0x9d   : > { %277 = vrot.lane.b32.xlu0 %v220_v16, %s485_s29  ;;  %v216_v21 = vsel %vm215_vm2, %v212_v19, %v214_v20 }
  0x9e   : > { %273 = vrot.lane.b32.xlu2 %v214_v20, %s485_s29  ;;  %271 = vrot.lane.b32.xlu1 %v216_v21, %s485_s29 }
  0xa5   : > { %267 = vrot.lane.b32.xlu0 %v422_v5, %s485_s29 }
  0xa6   : > { %269 = vrot.lane.b32.xlu1 %v426_v8, %s485_s29  ;;  %291 = vrot.lane.b32.xlu2 %v243_v22, %s485_s29 }
  0xad   : > { %250 = vperm.xlu0 %466, %v246_v30  }
  0xae   : > { %255 = vperm.xlu1 %467, %v247_v31  }
  0xdf   : > { %v290_v23 = vpop.permute.xlu2 %289 }
  0xe0   : > { %311 = vmatpush.bf16.msra.mxu0 %v290_v23 }
  0xe7   : > { %v284_v24 = vpop.permute.xlu2 %283 }
  0xf0   : > { %v276_v25 = vpop.permute.xlu2 %275 }
  0xf7   : > { %v286_v27 = vpop.permute.xlu1 %285 }
  0xf8   : > { %v274_v26 = vpop.permute.xlu2 %273 }
  0xff   : > { %v288_v33 = vpop.permute.xlu0 %287 }
 0x100   : > { %312 = vmatpush.bf16.msra.mxu0 %v288_v33  ;;  %v292_v34 = vpop.permute.xlu2 %291  ;;  %v282_v36 = vpop.permute.xlu1 %281 }
 0x101   : > { %332 = vmatpush.bf16.msra.mxu1 %v292_v34 }
 0x104   : > { %313 = vmatpush.bf16.msra.mxu0 %v286_v27  ;;  %439 = vmatmul.msk.bf16.vlgmr.msra.gmra.mxu1 %vm307_vm3, %v438_v35 }
 0x107   : > { %v280_v37 = vpop.permute.xlu0 %279 }
 0x108   : > { %314 = vmatpush.bf16.msra.mxu0 %v284_v24  ;;  %v297_v38 = vsel %vm293_vm4, %v280_v37, %v282_v36 }
 0x10c   : > { %315 = vmatpush.bf16.msra.mxu0 %v297_v38 }
 0x10f   : > { %v278_v39 = vpop.permute.xlu0 %277 }
 0x110   : > { %v272_v40 = vpop.permute.xlu1 %271  ;;  %v296_v41 = vsel %vm293_vm4, %v276_v25, %v278_v39 }
 0x111   : > { %316 = vmatpush.bf16.msra.mxu0 %v296_v41  ;;  %v295_v42 = vsel %vm293_vm4, %v272_v40, %v274_v26 }
 0x115   : > { %317 = vmatpush.bf16.msra.mxu0 %v295_v42 }
 0x117   : > { %v268_v45 = vpop.permute.xlu0 %267 }
 0x118   : > { %v270_v46 = vpop.permute.xlu1 %269 }
 0x119   : > { %v294_v47 = vsel %vm293_vm4, %v268_v45, %v270_v46 }
 0x11a   : > { %318 = vmatpush.bf16.msra.mxu0 %v294_v47 }
 0x11d   : > { %319 = vmatmul.bf16.vlgmr.msra.gmra.mxu0 %v434_v48 }
 0x11f   : > { %v251_v49 = vpop.permute.xlu0 %250 }
 0x120   : > { %v256_v56 = vpop.permute.xlu1 %255 }
 0x181   : > { %v334_v50 = vpop.f32.mrf.mxu1 }
 0x189   : > { %v336_v60 = vpop.f32.mrf.mxu1 }
 0x19a   : > { %v320_v51 = vpop.f32.mrf.mxu0 }
 0x19b   : > { %v321_v52 = vadd.f32 %v320_v51, %v251_v49 }
 0x19d   : > { %v335_v54 = vadd.f32 %v334_v50, %v321_v52 }
 0x19f   : > { %v343_v55 = vmul.f32 %v468_v53, %v335_v54 }
 0x1a1   : > { %v347_v57 = vpack.c.bf16 %v343_v55, %v343_v55 }
 0x1a2   : > { %v322_v58 = vpop.f32.mrf.mxu0 }
 0x1a3   : > { %350 = vst.msk [vmem:[%s539_s10 + $0x4] sm:$0xf] %vm349_vm7, %v347_v57  ;;  %v323_v59 = vadd.f32 %v322_v58, %v256_v56 }
 0x1a4   : > { %355 = vst.msk [vmem:[%s539_s10 + $0x4] sm:$0xff] %vm354_vm8, %v486_v32 }
 0x1a5   : > { %v337_v61 = vadd.f32 %v336_v60, %v323_v59 }
 0x1a7   : > { %v344_v62 = vmul.f32 %v468_v53, %v337_v61 }
 0x1a9   : > { %v348_v63 = vpack.c.bf16 %v344_v62, %v344_v62 }
 0x1ab   : > { %351 = vst.msk [vmem:[%s539_s10 + $0x10] sm:$0xf] %vm349_vm7, %v348_v63 }
 0x1ac   : > { %356 = vst.msk [vmem:[%s539_s10 + $0x10] sm:$0xff] %vm354_vm8, %v486_v32 }
 0x1ad PF: > { %s14_s15 = sadd.s32 1, %s475_s15  }
 0x1ae   : > { %p11_p4 = scmp.ge.s32.totalorder %s14_s15, 4  }
 0x1b0   :  { %13 = sbr.rel (!%p11_p4) target bundleno = 1 (0x1), region = 66 }

// kernel: semantic_fpn_forward.41
= control target key start
LH: loop header
LB: loop body
LE: loop exit
PB: predicated region body
PF: predicated region fallthrough
CT: control target
= control target key end

     0   :  { %s645_s24 = smov 0   ;;  %s696_s0 = inlined_call_operand.vmem [shape: bf16[2,16,580], index: 0, kind: input, shape index: {}]   ;;  %s697_s1 = inlined_call_operand.vmem [shape: bf16[2,16,580], index: 1, kind: input, shape index: {}]   ;;  %s698_s2 = inlined_call_operand.vmem [shape: bf16[2,16,580], index: 2, kind: input, shape index: {}]   ;;  %s699_s3 = inlined_call_operand.vmem [shape: bf16[2,16,580], index: 3, kind: input, shape index: {}]   ;;  %s700_s4 = inlined_call_operand.vmem [shape: bf16[4,16], index: 4, kind: input, shape index: {}]   ;;  %s701_s5 = inlined_call_operand.vmem [shape: f32[4,1], index: 5, kind: input, shape index: {}]   ;;  %s702_s6 = inlined_call_operand.vmem [shape: f32[1,324], index: 6, kind: input, shape index: {}]   ;;  %s703_s7 = inlined_call_operand.vmem [shape: f32[2,4,580], index: 7, kind: output, shape index: {}]  }
   0x1 LB: > { %s567_s25 = sadd.s32 4294967295, %s601_s24   ;;  %p571_p0 = scmp.ge.s32.totalorder %s601_s24, 1  ;;  %s601_s24 = sphi %s645_s24, %s17_s24  }
   0x2   : > { %p267_p1 = scmp.lt.s32.totalorder %s601_s24, 3 }
   0x4   : > { %p268_p2 = pnand %p571_p0, %p267_p1 }
   0x5   : > { %p314_p3 = scmp.lt.s32.totalorder (!%p268_p2), %s567_s25, 1 }
   0x6   : > { %271 = sbr.rel (%p268_p2) target bundleno = 175 (0xaf), region = 48 }
   0xb   : > { %v603_v0 = vmov 0   ;;  %v402_v1 = vld [vmem:[%s701_s5] sm:$0xf]  ;;  %s705_s25 = smov (!%p314_p3, %s567_s25), 1  ;;  %vm408_vm0 = vcmask 130048   ;;  %vm466_vm1 = vcmask 1043456  }
   0xc   : > { %594 = vset.pattern.permute.xlu0 %v603_v0  ;;  %s582_s28 = smul.u32 40, %s705_s25  ;;  %v401_v60 = vld [vmem:[%s700_s4] sm:$0x3]  ;;  %v604_v0 = vmov 0.0   ;;  %vm472_vm2 = vcmask 1044000   ;;  %vm473_vm3 = vcmask 556036  }
   0xd   : > { %405 = vperm.xlu0 %594, %v402_v1   ;;  %s583_s20 = smul.u32 20, %s705_s25  ;;  %v451_v1 = vld [vmem:[%s702_s6] sm:$0x7]  ;;  %vm470_vm4 = vcmask 551936   ;;  %vm474_vm5 = vmor %vm473_vm3, %vm472_vm2 }
   0xe   : > { %s318_s8 = scalar_lea.vmem %s696_s0, %s582_s28  ;;  %s323_s11 = scalar_lea.vmem %s697_s1, %s582_s28 }
   0xf   : > { %s668_s14 = scalar_lea.vmem %s698_s2, %s582_s28  ;;  %s673_s17 = scalar_lea.vmem %s699_s3, %s582_s28  ;;  %v340_v2 = vld [vmem:[%s318_s8 + $0x4] sm:$0xff]  ;;  %v342_v3 = vld [vmem:[%s318_s8 + $0x18] sm:$0xff]  ;;  %v341_v22 = vld [vmem:[%s318_s8 + $0xc] sm:$0xf] }
  0x10   : > { %v350_v4 = vld [vmem:[%s323_s11 + $0x4] sm:$0xff]  ;;  %v344_v5 = vunpack.c.l.bf16 %v340_v2  ;;  %v347_v6 = vunpack.c.l.bf16 %v342_v3  ;;  %v352_v7 = vld [vmem:[%s323_s11 + $0x18] sm:$0xff]  ;;  %v345_v11 = vunpack.c.h.bf16 %v340_v2  ;;  %v348_v17 = vunpack.c.h.bf16 %v342_v3  ;;  %v343_v23 = vld [vmem:[%s318_s8 + $0x20] sm:$0xf]  ;;  %s338_s23 = scalar_lea.vmem %s703_s7, %s583_s20 }
  0x11   : > { %v354_v8 = vunpack.c.l.bf16 %v350_v4  ;;  %v366_v9 = vld [vmem:[%s668_s14 + $0x4] sm:$0xff]  ;;  %v368_v10 = vld [vmem:[%s668_s14 + $0x18] sm:$0xff]  ;;  %v357_v12 = vunpack.c.l.bf16 %v352_v7  ;;  %v355_v21 = vunpack.c.h.bf16 %v350_v4  ;;  %v358_v25 = vunpack.c.h.bf16 %v352_v7  ;;  %v351_v28 = vld [vmem:[%s323_s11 + $0xc] sm:$0xf]  ;;  %462 = vst [vmem:[%s338_s23] sm:$0xf] %v604_v0 }
  0x12   : > { %v370_v13 = vunpack.c.l.bf16 %v366_v9  ;;  %v373_v14 = vunpack.c.l.bf16 %v368_v10  ;;  %v382_v15 = vld [vmem:[%s673_s17 + $0x4] sm:$0xff]  ;;  %v384_v16 = vld [vmem:[%s673_s17 + $0x18] sm:$0xff]  ;;  %v371_v26 = vunpack.c.h.bf16 %v366_v9  ;;  %v374_v27 = vunpack.c.h.bf16 %v368_v10  ;;  %v353_v29 = vld [vmem:[%s323_s11 + $0x20] sm:$0xf] }
  0x13   : > { %v360_v18 = vadd.f32 %v354_v8, %v344_v5  ;;  %v386_v19 = vunpack.c.l.bf16 %v382_v15  ;;  %v389_v20 = vunpack.c.l.bf16 %v384_v16  ;;  %v363_v24 = vadd.f32 %v357_v12, %v347_v6  ;;  %v367_v34 = vld [vmem:[%s668_s14 + $0xc] sm:$0xf]  ;;  %v369_v35 = vld [vmem:[%s668_s14 + $0x20] sm:$0xf] }
  0x14   : > { %v361_v31 = vadd.f32 %v355_v21, %v345_v11  ;;  %v387_v32 = vunpack.c.h.bf16 %v382_v15  ;;  %v390_v33 = vunpack.c.h.bf16 %v384_v16  ;;  %v364_v37 = vadd.f32 %v358_v25, %v348_v17  ;;  %v383_v40 = vld [vmem:[%s673_s17 + $0xc] sm:$0xf]  ;;  %v385_v45 = vld [vmem:[%s673_s17 + $0x20] sm:$0xf] }
  0x15   : > { %v376_v30 = vadd.f32 %v370_v13, %v360_v18  ;;  %v379_v36 = vadd.f32 %v373_v14, %v363_v24  ;;  %v346_v38 = vunpack.c.l.bf16 %v341_v22  ;;  %v349_v39 = vunpack.c.l.bf16 %v343_v23 }
  0x16   : > { %v377_v42 = vadd.f32 %v371_v26, %v361_v31  ;;  %v356_v43 = vunpack.c.l.bf16 %v351_v28  ;;  %v359_v44 = vunpack.c.l.bf16 %v353_v29  ;;  %v380_v47 = vadd.f32 %v374_v27, %v364_v37 }
  0x17   : > { %v392_v41 = vadd.f32 %v386_v19, %v376_v30  ;;  %v395_v46 = vadd.f32 %v389_v20, %v379_v36  ;;  %v372_v48 = vunpack.c.l.bf16 %v367_v34  ;;  %v375_v49 = vunpack.c.l.bf16 %v369_v35 }
  0x18   : > { %v393_v50 = vadd.f32 %v387_v32, %v377_v42  ;;  %v362_v51 = vadd.f32 %v356_v43, %v346_v38  ;;  %v365_v52 = vadd.f32 %v359_v44, %v349_v39  ;;  %v388_v53 = vunpack.c.l.bf16 %v383_v40 }
  0x19   : > { %v398_v54 = vpack.c.bf16 %v395_v46, %v392_v41  ;;  %v396_v55 = vadd.f32 %v390_v33, %v380_v47  ;;  %v391_v56 = vunpack.c.l.bf16 %v385_v45  ;;  %v453_v4 = vperm.slane %v451_v1, 0 }
  0x1a   : > { %v378_v57 = vadd.f32 %v372_v48, %v362_v51  ;;  %v381_v58 = vadd.f32 %v375_v49, %v365_v52  ;;  %v454_v5 = vperm.slane %v451_v1, 1  ;;  %v455_v14 = vperm.slane %v451_v1, 2 }
  0x1b   : > { %419 = vmatpush.bf16.msra.mxu0 %v398_v54  ;;  %v399_v59 = vpack.c.bf16 %v396_v55, %v393_v50 }
  0x1c   : > { %v394_v61 = vadd.f32 %v388_v53, %v378_v57  ;;  %v397_v62 = vadd.f32 %v391_v56, %v381_v58 }
  0x1d   : > { %432 = vmatpush.bf16.msra.mxu1 %v399_v59 }
  0x1e   : > { %v400_v63 = vpack.c.bf16 %v397_v62, %v394_v61  ;;  %577 = vmatmul.msk.bf16.vlgmr.msra.gmra.mxu0 %vm408_vm0, %v401_v60 }
  0x20   : > { %445 = vmatpush.bf16.msra.mxu2 %v400_v63  ;;  %578 = vmatmul.msk.bf16.vlgmr.msra.gmra.mxu1 %vm408_vm0, %v401_v60 }
  0x23   : > { %579 = vmatmul.msk.bf16.vlgmr.msra.gmra.mxu2 %vm408_vm0, %v401_v60 }
  0x7f   : > { %v406_v3 = vpop.permute.xlu0 %405 }
  0x9b   : > { %v421_v2 = vpop.f32.mrf.mxu0 }
  0x9c   : > { %v422_v6 = vadd.f32 %v421_v2, %v406_v3 }
  0x9d   : > { %v434_v7 = vpop.f32.mrf.mxu1 }
  0x9e   : > { %v435_v8 = vadd.f32 %v434_v7, %v406_v3  ;;  %v459_v9 = vmul.f32 %v453_v4, %v422_v6 }
  0xa0   : > { %v460_v10 = vmul.f32 %v454_v5, %v435_v8 }
  0xa2   : > { %v465_v11 = vrot.slane %v460_v10, 4 }
  0xa3   : > { %v423_v12 = vpop.f32.mrf.mxu0 }
  0xa4   : > { %v467_v13 = vsel %vm466_vm1, %v459_v9, %v465_v11 }
  0xa5   : > { %469 = vst [vmem:[%s338_s23 + $0x4] sm:$0xff] %v467_v13  ;;  %v436_v15 = vpop.f32.mrf.mxu1 }
  0xa6   : > { %v447_v16 = vpop.f32.mrf.mxu2 }
  0xa7   : > { %v448_v17 = vadd.f32 %v447_v16, %v406_v3 }
  0xa9   : > { %v461_v18 = vmul.f32 %v455_v14, %v448_v17 }
  0xab   : > { %471 = vst.msk [vmem:[%s338_s23 + $0xc] sm:$0xf] %vm470_vm4, %v461_v18 }
  0xac   : > { %475 = vst.msk [vmem:[%s338_s23 + $0xc] sm:$0xff] %vm474_vm5, %v604_v0 }
  0xae   : > { %v449_v19 = vpop.f32.mrf.mxu2 }
  0xaf PF: > { %s17_s24 = sadd.s32 1, %s601_s24  }
  0xb0   : > { %p14_p4 = scmp.ge.s32.totalorder %s17_s24, 4  }
  0xb2   :  { %16 = sbr.rel (!%p14_p4) target bundleno = 1 (0x1), region = 87 }

</bundles_post_ra>
